<compile_context>
chip_gen: v6e
topology: v6e:2x2x1
jax: 0.10.0
libtpu: 0.0.40
codegen_flags: <defaults>
</compile_context>

<pallas_src>
import jax
import jax.numpy as jnp
from jax import lax
from jax.experimental import pallas as pl
from jax.experimental.pallas import tpu as pltpu

TILE_B = 256      # MXU-friendly M tile (clamped to 128 for small batches)
OUT_LANES = 128   # lane-dense output width (lanes 0..2 carry payload)


def _relu(x):
    return jnp.maximum(x, 0.0)


def _l2_normalize(x, eps=1e-12):
    # F.normalize(x, 2, -1) == x / max(||x||, eps) == x * rsqrt(max(||x||^2, eps^2))
    ss = jnp.sum(x * x, axis=-1, keepdims=True)
    return x * lax.rsqrt(jnp.maximum(ss, eps * eps))


def _vmem_limit_bytes():
    # Generation-aware VMEM budget: leave headroom for single-buffered weights +
    # double-buffered activation blocks.  v7x (64 MiB/TC) -> 48 MiB; v5e/v6e -> 96 MiB.
    try:
        cap = int(pltpu.get_tpu_info().vmem_capacity_bytes)
    except Exception:
        cap = 0
    if cap <= 0:
        return 64 * 1024 * 1024
    return min((cap * 3) // 4, 100 * 1024 * 1024)


# ----------------------------------------------------------------------------
# Fused kernel: IMG_Encoder autoencoder + TransE _calc score (per batch tile)
# ----------------------------------------------------------------------------
def transae_fused_kernel(
    v1t_ref, v1i_ref, t_ref, r_ref, tm_ref,
    w_te_ref, b_te_ref, w_ve_ref, b_ve_ref,
    w_ct_ref, w_ci_ref, b_c_ref,
    w_dec1_ref, b_dec1_ref,
    w_td2_ref, b_td2_ref, w_vd2_ref, b_vd2_ref,
    out_ref,
):
    f32 = jnp.float32
    bf16 = jnp.bfloat16
    D = t_ref.shape[1]                        # TransE dim == hidden_text_dim

    v1_t = v1t_ref[...]                       # (TB, T)  f32 text embedding
    v1_i_bf = v1i_ref[...]                    # (TB, V)  bf16 visual embedding
    tm = tm_ref[...]                          # (TB, 1)  int32 task mode

    # --- encoder (bf16 operands, f32 accumulation on the MXU) ---
    v2_t = _relu(jnp.dot(v1_t.astype(bf16), w_te_ref[...],
                         preferred_element_type=f32) + b_te_ref[...])
    v2_i = _relu(jnp.dot(v1_i_bf, w_ve_ref[...],
                         preferred_element_type=f32) + b_ve_ref[...])
    # encoder_combined_linear(cat(v2_t, v2_i)) == v2_t @ W[:D] + v2_i @ W[D:] + b
    comb = _relu(jnp.dot(v2_t.astype(bf16), w_ct_ref[...], preferred_element_type=f32)
                 + jnp.dot(v2_i.astype(bf16), w_ci_ref[...], preferred_element_type=f32)
                 + b_c_ref[...])

    is0 = tm == 0
    is1 = tm == 1
    # pretrain: v3 starts at zeros; tm==0 rows take v2_t, tm==1 rows take the combined
    # projection, everything else (tm==2 / padding) stays 0 — matches the PyTorch
    # masked assignments exactly.
    v3 = jnp.where(is0, v2_t, jnp.where(is1, comb, 0.0))      # (TB, D) f32

    # --- decoder: first layer fused over [text | visual] output columns ---
    v3_b = v3.astype(bf16)
    v4 = _relu(jnp.dot(v3_b, w_dec1_ref[...], preferred_element_type=f32)
               + b_dec1_ref[...])                              # (TB, D+H)
    v4_t = v4[:, :D]
    v4_i = v4[:, D:]
    v5_t = _relu(jnp.dot(v4_t.astype(bf16), w_td2_ref[...],
                         preferred_element_type=f32) + b_td2_ref[...])
    v5_i = _relu(jnp.dot(v4_i.astype(bf16), w_vd2_ref[...],
                         preferred_element_type=f32) + b_vd2_ref[...])

    # per-row reconstruction SSE, masked by task mode (global mean done in glue)
    m0 = is0.astype(f32)
    m1 = is1.astype(f32)
    res_t = jnp.sum((v1_t - v5_t) ** 2, axis=-1, keepdims=True) * m0         # (TB, 1)
    res_i = jnp.sum((v1_i_bf.astype(f32) - v5_i) ** 2,
                    axis=-1, keepdims=True) * m1                             # (TB, 1)

    # --- TransE _calc: L2-normalize, h + r - t, L1 norm (p_norm=1) ---
    h = _l2_normalize(v3)
    r = _l2_normalize(r_ref[...])
    t = _l2_normalize(t_ref[...])
    score = jnp.sum(jnp.abs(h + r - t), axis=-1, keepdims=True)              # (TB, 1)

    # Lane-dense packing: full 128-lane output block -> unmasked vector stores.
    lane = lax.broadcasted_iota(jnp.int32, out_ref.shape, 1)
    out_ref[...] = (jnp.where(lane == 0, score, 0.0)
                    + jnp.where(lane == 1, res_t, 0.0)
                    + jnp.where(lane == 2, res_i, 0.0))


# ----------------------------------------------------------------------------
# Wrapper: pad batch, build grid/BlockSpecs, call the fused kernel
# ----------------------------------------------------------------------------
def _call_fused(v1_t, v1_i, t_emb, r_emb, tm, weights, tile_b, n_tiles,
                single_buffer_weights):
    B_pad, T = v1_t.shape
    V = v1_i.shape[1]
    D = t_emb.shape[1]
    H = weights[2].shape[1]          # w_ve: (V, H)

    def act_spec(f):
        return pl.BlockSpec((tile_b, f), lambda b: (b, 0))

    def w_spec(w):
        # Constant index_map: the same weight window is reused by every grid step,
        # so single-buffering it (Buffered(1)) saves half the weight VMEM.
        if single_buffer_weights:
            return pl.BlockSpec(w.shape, lambda b: (0, 0),
                                pipeline_mode=pl.Buffered(1))
        return pl.BlockSpec(w.shape, lambda b: (0, 0))

    in_specs = ([act_spec(T), act_spec(V), act_spec(D), act_spec(D),
                 pl.BlockSpec((tile_b, 1), lambda b: (b, 0))]
                + [w_spec(w) for w in weights])

    flops = 2 * B_pad * (T * D + V * H + D * D + H * D          # encoder
                         + D * (D + H) + D * T + H * V)          # fused decoder
    act_bytes = (4 * B_pad * (T + D + D + 1 + OUT_LANES)         # f32 streams
                 + 2 * B_pad * V)                                 # bf16 visual stream
    w_bytes = sum(int(w.size) * w.dtype.itemsize for w in weights)
    cost = pl.CostEstimate(flops=int(flops), transcendentals=3 * B_pad,
                           bytes_accessed=int(act_bytes + w_bytes))

    return pl.pallas_call(
        transae_fused_kernel,
        grid=(n_tiles,),
        in_specs=in_specs,
        out_specs=pl.BlockSpec((tile_b, OUT_LANES), lambda b: (b, 0)),
        out_shape=jax.ShapeDtypeStruct((B_pad, OUT_LANES), jnp.float32),
        compiler_params=pltpu.CompilerParams(
            # One parallel batch axis: shards across the 2 TCs on v7x (no-op on
            # v5e/v6e).  At real batch sizes n_tiles >= 2, so both cores are busy.
            dimension_semantics=("parallel",),
            vmem_limit_bytes=_vmem_limit_bytes()),
        cost_estimate=cost,
    )(v1_t, v1_i, t_emb, r_emb, tm, *weights)


def transae_fused(v1_t, v1_i, t_emb, r_emb, task_mode, p, *, tile_b=TILE_B):
    B = v1_t.shape[0]
    if B <= 128:
        tile_b = min(tile_b, 128)    # avoid over-padding tiny batches
    n_tiles = pl.cdiv(B, tile_b)
    B_pad = n_tiles * tile_b
    pad = B_pad - B

    # Visual stream in bf16: halves the largest activation block's VMEM + DMA.
    v1_i = v1_i.astype(jnp.bfloat16)
    tm = task_mode.astype(jnp.int32)
    if pad:
        v1_t = jnp.pad(v1_t, ((0, pad), (0, 0)))
        v1_i = jnp.pad(v1_i, ((0, pad), (0, 0)))
        t_emb = jnp.pad(t_emb, ((0, pad), (0, 0)))
        r_emb = jnp.pad(r_emb, ((0, pad), (0, 0)))
        # padded rows get task_mode=2 -> v3=0, excluded from loss masks, score dropped
        tm = jnp.concatenate([tm, jnp.full((pad,), 2, jnp.int32)])
    tm = tm.reshape(B_pad, 1)

    # Fuse decoder first layer: one (D, D+H) weight replaces two matmuls on v3.
    w_dec1 = jnp.concatenate([p["w_td"], p["w_vd"]], axis=1)
    b_dec1 = jnp.concatenate([p["b_td"], p["b_vd"]], axis=1)

    weights = [
        p["w_te"], p["b_te"], p["w_ve"], p["b_ve"],
        p["w_ct"], p["w_ci"], p["b_c"],
        w_dec1, b_dec1,
        p["w_td2"], p["b_td2"], p["w_vd2"], p["b_vd2"],
    ]

    try:
        return _call_fused(v1_t, v1_i, t_emb, r_emb, tm, weights,
                           tile_b, n_tiles, single_buffer_weights=True)
    except Exception:
        # Portability fallback: if this jax build rejects pipeline_mode=Buffered(1),
        # retry with default double-buffered weight windows (correctness identical).
        return _call_fused(v1_t, v1_i, t_emb, r_emb, tm, weights,
                           tile_b, n_tiles, single_buffer_weights=False)


def transe_forward(params, data):
    """TransE.forward, pretrain path (finetune=False), mode 'normal'/'head_batch'."""
    batch_h = data["batch_h"]
    batch_t = data["batch_t"]
    batch_r = data["batch_r"]
    task_mode = data["task_mode"].astype(jnp.int32)
    mode = data["mode"]
    if mode not in ("normal", "head_batch"):
        # TODO(synk): 'tail_batch' mode's (-1, n_rel, dim) view and the finetune branch
        # (argmax relation + CE loss) are pure indexing / loss glue, not implemented.
        raise NotImplementedError(mode)

    # Embedding lookups (gathers) are plain-JAX glue.
    v1_t = params["text_table"][batch_h]
    v1_i = params["vis_table"][batch_h]
    t = params["tail_table"][batch_t]
    r = params["rel_table"][batch_r]

    B = batch_h.shape[0]
    T = v1_t.shape[1]
    V = v1_i.shape[1]

    out = transae_fused(v1_t, v1_i, t, r, task_mode, params)

    score_raw = out[:B, 0]
    sse_t = jnp.sum(out[:, 1])       # padded / other rows contribute 0 (masked in-kernel)
    sse_i = jnp.sum(out[:, 2])
    cnt0 = jnp.sum((task_mode == 0).astype(jnp.float32))
    cnt1 = jnp.sum((task_mode == 1).astype(jnp.float32))
    # MSELoss(reduction='mean') over the selected row subsets.  Guarded with max(.,1)
    # so an empty selection gives 0 instead of NaN (PyTorch would produce NaN there).
    hloss = (sse_t / jnp.maximum(cnt0 * T, 1.0)
             + sse_i / jnp.maximum(cnt1 * V, 1.0))
    # score[task_mode == 1] += hloss
    score = score_raw + jnp.where(task_mode == 1, hloss, 0.0)
    return score  # margin=None -> margin_flag=False -> raw score


# ----------------------------------------------------------------------------
# Deterministic parameter init (synthetic; shapes follow the module's __init__)
# ----------------------------------------------------------------------------
def init_params(key, *, ent_tot, rel_tot, dim, text_dim, vis_dim, vis_hidden):
    ks = jax.random.split(key, 19)

    def xavier(k, shape, dtype=jnp.float32):
        lim = (6.0 / (shape[0] + shape[1])) ** 0.5
        return jax.random.uniform(k, shape, jnp.float32, -lim, lim).astype(dtype)

    def bias(k, n):
        return jax.random.uniform(k, (1, n), jnp.float32, -0.01, 0.01)

    bf16 = jnp.bfloat16
    urange = 6.0 / (dim ** 0.5)
    p = {
        # embedding tables (text/visual have the +1 padding row like the module)
        "text_table": 0.1 * jax.random.normal(ks[0], (ent_tot + 1, text_dim), jnp.float32),
        "vis_table": jax.random.uniform(ks[1], (ent_tot + 1, vis_dim), jnp.float32,
                                        -urange, urange),
        "tail_table": xavier(ks[2], (ent_tot, dim)),
        "rel_table": xavier(ks[3], (rel_tot, dim)),
        # encoder (weights in bf16 for MXU throughput / VMEM footprint)
        "w_te": xavier(ks[4], (text_dim, dim), bf16), "b_te": bias(ks[5], dim),
        "w_ve": xavier(ks[6], (vis_dim, vis_hidden), bf16), "b_ve": bias(ks[7], vis_hidden),
        "w_ct": xavier(ks[8], (dim, dim), bf16),           # combined linear, text half
        "w_ci": xavier(ks[9], (vis_hidden, dim), bf16),    # combined linear, visual half
        "b_c": bias(ks[10], dim),
        # decoder
        "w_td": xavier(ks[11], (dim, dim), bf16), "b_td": bias(ks[12], dim),
        "w_vd": xavier(ks[13], (dim, vis_hidden), bf16), "b_vd": bias(ks[14], vis_hidden),
        "w_td2": xavier(ks[15], (dim, text_dim), bf16), "b_td2": bias(ks[16], text_dim),
        "w_vd2": xavier(ks[17], (vis_hidden, vis_dim), bf16), "b_vd2": bias(ks[18], vis_dim),
    }
    return p


if __name__ == "__main__":
    # Small, TPU-friendly shapes consistent with the module structure:
    # dim = hidden_text_dim = 128, text_embedding_dim = 128,
    # visual embedding_dim = 512 (stands in for 4096), visual hidden = 256 (for 1024).
    B, DIM, TEXT_DIM, VIS_DIM, VIS_HIDDEN = 8, 128, 128, 512, 256
    ENT_TOT, REL_TOT = 32, 8

    key = jax.random.PRNGKey(0)
    kp, kh, kt, kr = jax.random.split(key, 4)
    params = init_params(
        kp, ent_tot=ENT_TOT, rel_tot=REL_TOT, dim=DIM,
        text_dim=TEXT_DIM, vis_dim=VIS_DIM, vis_hidden=VIS_HIDDEN,
    )

    batch_h = jax.random.randint(kh, (B,), 0, ENT_TOT)
    batch_t = jax.random.randint(kt, (B,), 0, ENT_TOT)
    batch_r = jax.random.randint(kr, (B,), 0, REL_TOT)
    task_mode = jnp.array([0, 1, 0, 1, 1, 0, 2, 1], dtype=jnp.int32)

    data = {
        "batch_h": batch_h,
        "batch_t": batch_t,
        "batch_r": batch_r,
        "task_mode": task_mode,
        "mode": "normal",
    }

    score = transe_forward(params, data)
    score = jax.block_until_ready(score)
    assert score.shape == (B,) and score.dtype == jnp.float32
    assert bool(jnp.all(jnp.isfinite(score)))
    print("KERNEL_OK")
</pallas_src>

<mosaic_0001>
module attributes {stable_mosaic.version = 11 : i64} {
  func.func @transae_fused_kernel(%arg0: i32, %arg1: memref<128x128xf32, #tpu.memory_space<vmem>>, %arg2: memref<128x512xbf16, #tpu.memory_space<vmem>>, %arg3: memref<128x128xf32, #tpu.memory_space<vmem>>, %arg4: memref<128x128xf32, #tpu.memory_space<vmem>>, %arg5: memref<128x1xi32, #tpu.memory_space<vmem>>, %arg6: memref<128x128xbf16, #tpu.memory_space<vmem>>, %arg7: memref<1x128xf32, #tpu.memory_space<vmem>>, %arg8: memref<512x256xbf16, #tpu.memory_space<vmem>>, %arg9: memref<1x256xf32, #tpu.memory_space<vmem>>, %arg10: memref<128x128xbf16, #tpu.memory_space<vmem>>, %arg11: memref<256x128xbf16, #tpu.memory_space<vmem>>, %arg12: memref<1x128xf32, #tpu.memory_space<vmem>>, %arg13: memref<128x384xbf16, #tpu.memory_space<vmem>>, %arg14: memref<1x384xf32, #tpu.memory_space<vmem>>, %arg15: memref<128x128xbf16, #tpu.memory_space<vmem>>, %arg16: memref<1x128xf32, #tpu.memory_space<vmem>>, %arg17: memref<256x512xbf16, #tpu.memory_space<vmem>>, %arg18: memref<1x512xf32, #tpu.memory_space<vmem>>, %arg19: memref<128x128xf32, #tpu.memory_space<vmem>>) attributes {dimension_semantics = [#tpu.dimension_semantics<parallel>], iteration_bounds = array<i64: 1>, scalar_prefetch = 0 : i64, scratch_operands = 0 : i64, tpu.core_type = #tpu.core_type<tc>, window_params = [{transform_indices = @transform_0, window_bounds = array<i64: 128, 128>}, {transform_indices = @transform_1, window_bounds = array<i64: 128, 512>}, {transform_indices = @transform_2, window_bounds = array<i64: 128, 128>}, {transform_indices = @transform_3, window_bounds = array<i64: 128, 128>}, {transform_indices = @transform_4, window_bounds = array<i64: 128, 1>}, {pipeline_mode = #tpu.pipeline_mode<synchronous>, transform_indices = @transform_5, window_bounds = array<i64: 128, 128>}, {pipeline_mode = #tpu.pipeline_mode<synchronous>, transform_indices = @transform_6, window_bounds = array<i64: 1, 128>}, {pipeline_mode = #tpu.pipeline_mode<synchronous>, transform_indices = @transform_7, window_bounds = array<i64: 512, 256>}, {pipeline_mode = #tpu.pipeline_mode<synchronous>, transform_indices = @transform_8, window_bounds = array<i64: 1, 256>}, {pipeline_mode = #tpu.pipeline_mode<synchronous>, transform_indices = @transform_9, window_bounds = array<i64: 128, 128>}, {pipeline_mode = #tpu.pipeline_mode<synchronous>, transform_indices = @transform_10, window_bounds = array<i64: 256, 128>}, {pipeline_mode = #tpu.pipeline_mode<synchronous>, transform_indices = @transform_11, window_bounds = array<i64: 1, 128>}, {pipeline_mode = #tpu.pipeline_mode<synchronous>, transform_indices = @transform_12, window_bounds = array<i64: 128, 384>}, {pipeline_mode = #tpu.pipeline_mode<synchronous>, transform_indices = @transform_13, window_bounds = array<i64: 1, 384>}, {pipeline_mode = #tpu.pipeline_mode<synchronous>, transform_indices = @transform_14, window_bounds = array<i64: 128, 128>}, {pipeline_mode = #tpu.pipeline_mode<synchronous>, transform_indices = @transform_15, window_bounds = array<i64: 1, 128>}, {pipeline_mode = #tpu.pipeline_mode<synchronous>, transform_indices = @transform_16, window_bounds = array<i64: 256, 512>}, {pipeline_mode = #tpu.pipeline_mode<synchronous>, transform_indices = @transform_17, window_bounds = array<i64: 1, 512>}, {transform_indices = @transform_18, window_bounds = array<i64: 128, 128>}]} {
    %c0 = arith.constant 0 : index
    %c0_0 = arith.constant 0 : index
    %0 = vector.load %arg1[%c0, %c0_0] : memref<128x128xf32, #tpu.memory_space<vmem>>, vector<128x128xf32>
    %c0_1 = arith.constant 0 : index
    %c0_2 = arith.constant 0 : index
    %1 = vector.load %arg2[%c0_1, %c0_2] : memref<128x512xbf16, #tpu.memory_space<vmem>>, vector<128x512xbf16>
    %c0_3 = arith.constant 0 : index
    %c0_4 = arith.constant 0 : index
    %2 = vector.load %arg5[%c0_3, %c0_4] : memref<128x1xi32, #tpu.memory_space<vmem>>, vector<128x1xi32>
    %3 = arith.truncf %0 : vector<128x128xf32> to vector<128x128xbf16>
    %c0_5 = arith.constant 0 : index
    %c0_6 = arith.constant 0 : index
    %4 = vector.load %arg6[%c0_5, %c0_6] : memref<128x128xbf16, #tpu.memory_space<vmem>>, vector<128x128xbf16>
    %cst = arith.constant dense<0.000000e+00> : vector<128x128xf32>
    %5 = tpu.matmul %3, %4, %cst {dimension_numbers = #tpu.dot_dimension_numbers<[1], [0], [0], [1], [0, 0, 1, 1], [], []>} : vector<128x128xbf16>, vector<128x128xbf16>, vector<128x128xf32> -> vector<128x128xf32>
    %c0_7 = arith.constant 0 : index
    %c0_8 = arith.constant 0 : index
    %6 = vector.load %arg7[%c0_7, %c0_8] : memref<1x128xf32, #tpu.memory_space<vmem>>, vector<1x128xf32>
    %7 = vector.broadcast %6 : vector<1x128xf32> to vector<128x128xf32>
    %8 = arith.addf %5, %7 : vector<128x128xf32>
    %cst_9 = arith.constant 0.000000e+00 : f32
    %9 = vector.broadcast %cst_9 : f32 to vector<128x128xf32>
    %10 = arith.maximumf %8, %9 : vector<128x128xf32>
    %c0_10 = arith.constant 0 : index
    %c0_11 = arith.constant 0 : index
    %11 = vector.load %arg8[%c0_10, %c0_11] : memref<512x256xbf16, #tpu.memory_space<vmem>>, vector<512x256xbf16>
    %cst_12 = arith.constant dense<0.000000e+00> : vector<128x256xf32>
    %12 = tpu.matmul %1, %11, %cst_12 {dimension_numbers = #tpu.dot_dimension_numbers<[1], [0], [0], [1], [0, 0, 1, 1], [], []>} : vector<128x512xbf16>, vector<512x256xbf16>, vector<128x256xf32> -> vector<128x256xf32>
    %c0_13 = arith.constant 0 : index
    %c0_14 = arith.constant 0 : index
    %13 = vector.load %arg9[%c0_13, %c0_14] : memref<1x256xf32, #tpu.memory_space<vmem>>, vector<1x256xf32>
    %14 = vector.broadcast %13 : vector<1x256xf32> to vector<128x256xf32>
    %15 = arith.addf %12, %14 : vector<128x256xf32>
    %cst_15 = arith.constant 0.000000e+00 : f32
    %16 = vector.broadcast %cst_15 : f32 to vector<128x256xf32>
    %17 = arith.maximumf %15, %16 : vector<128x256xf32>
    %18 = arith.truncf %10 : vector<128x128xf32> to vector<128x128xbf16>
    %c0_16 = arith.constant 0 : index
    %c0_17 = arith.constant 0 : index
    %19 = vector.load %arg10[%c0_16, %c0_17] : memref<128x128xbf16, #tpu.memory_space<vmem>>, vector<128x128xbf16>
    %cst_18 = arith.constant dense<0.000000e+00> : vector<128x128xf32>
    %20 = tpu.matmul %18, %19, %cst_18 {dimension_numbers = #tpu.dot_dimension_numbers<[1], [0], [0], [1], [0, 0, 1, 1], [], []>} : vector<128x128xbf16>, vector<128x128xbf16>, vector<128x128xf32> -> vector<128x128xf32>
    %21 = arith.truncf %17 : vector<128x256xf32> to vector<128x256xbf16>
    %c0_19 = arith.constant 0 : index
    %c0_20 = arith.constant 0 : index
    %22 = vector.load %arg11[%c0_19, %c0_20] : memref<256x128xbf16, #tpu.memory_space<vmem>>, vector<256x128xbf16>
    %cst_21 = arith.constant dense<0.000000e+00> : vector<128x128xf32>
    %23 = tpu.matmul %21, %22, %cst_21 {dimension_numbers = #tpu.dot_dimension_numbers<[1], [0], [0], [1], [0, 0, 1, 1], [], []>} : vector<128x256xbf16>, vector<256x128xbf16>, vector<128x128xf32> -> vector<128x128xf32>
    %24 = arith.addf %20, %23 : vector<128x128xf32>
    %c0_22 = arith.constant 0 : index
    %c0_23 = arith.constant 0 : index
    %25 = vector.load %arg12[%c0_22, %c0_23] : memref<1x128xf32, #tpu.memory_space<vmem>>, vector<1x128xf32>
    %26 = vector.broadcast %25 : vector<1x128xf32> to vector<128x128xf32>
    %27 = arith.addf %24, %26 : vector<128x128xf32>
    %cst_24 = arith.constant 0.000000e+00 : f32
    %28 = vector.broadcast %cst_24 : f32 to vector<128x128xf32>
    %29 = arith.maximumf %27, %28 : vector<128x128xf32>
    %c0_i32 = arith.constant 0 : i32
    %30 = vector.broadcast %c0_i32 : i32 to vector<128x1xi32>
    %31 = arith.cmpi eq, %2, %30 : vector<128x1xi32>
    %c1_i32 = arith.constant 1 : i32
    %32 = vector.broadcast %c1_i32 : i32 to vector<128x1xi32>
    %33 = arith.cmpi eq, %2, %32 : vector<128x1xi32>
    %cst_25 = arith.constant 0.000000e+00 : f32
    %34 = vector.shape_cast %33 : vector<128x1xi1> to vector<128x1xi1>
    %35 = vector.broadcast %34 : vector<128x1xi1> to vector<128x128xi1>
    %36 = vector.broadcast %cst_25 : f32 to vector<128x128xf32>
    %37 = arith.select %35, %29, %36 : vector<128x128xi1>, vector<128x128xf32>
    %38 = vector.shape_cast %31 : vector<128x1xi1> to vector<128x1xi1>
    %39 = vector.broadcast %38 : vector<128x1xi1> to vector<128x128xi1>
    %40 = arith.select %39, %10, %37 : vector<128x128xi1>, vector<128x128xf32>
    %41 = arith.truncf %40 : vector<128x128xf32> to vector<128x128xbf16>
    %c0_26 = arith.constant 0 : index
    %c0_27 = arith.constant 0 : index
    %42 = vector.load %arg13[%c0_26, %c0_27] : memref<128x384xbf16, #tpu.memory_space<vmem>>, vector<128x384xbf16>
    %cst_28 = arith.constant dense<0.000000e+00> : vector<128x384xf32>
    %43 = tpu.matmul %41, %42, %cst_28 {dimension_numbers = #tpu.dot_dimension_numbers<[1], [0], [0], [1], [0, 0, 1, 1], [], []>} : vector<128x128xbf16>, vector<128x384xbf16>, vector<128x384xf32> -> vector<128x384xf32>
    %c0_29 = arith.constant 0 : index
    %c0_30 = arith.constant 0 : index
    %44 = vector.load %arg14[%c0_29, %c0_30] : memref<1x384xf32, #tpu.memory_space<vmem>>, vector<1x384xf32>
    %45 = vector.broadcast %44 : vector<1x384xf32> to vector<128x384xf32>
    %46 = arith.addf %43, %45 : vector<128x384xf32>
    %cst_31 = arith.constant 0.000000e+00 : f32
    %47 = vector.broadcast %cst_31 : f32 to vector<128x384xf32>
    %48 = arith.maximumf %46, %47 : vector<128x384xf32>
    %49 = vector.extract_strided_slice %48 {offsets = [0, 0], sizes = [128, 128], strides = [1, 1]} : vector<128x384xf32> to vector<128x128xf32>
    %50 = vector.extract_strided_slice %48 {offsets = [0, 128], sizes = [128, 256], strides = [1, 1]} : vector<128x384xf32> to vector<128x256xf32>
    %51 = arith.truncf %49 : vector<128x128xf32> to vector<128x128xbf16>
    %c0_32 = arith.constant 0 : index
    %c0_33 = arith.constant 0 : index
    %52 = vector.load %arg15[%c0_32, %c0_33] : memref<128x128xbf16, #tpu.memory_space<vmem>>, vector<128x128xbf16>
    %cst_34 = arith.constant dense<0.000000e+00> : vector<128x128xf32>
    %53 = tpu.matmul %51, %52, %cst_34 {dimension_numbers = #tpu.dot_dimension_numbers<[1], [0], [0], [1], [0, 0, 1, 1], [], []>} : vector<128x128xbf16>, vector<128x128xbf16>, vector<128x128xf32> -> vector<128x128xf32>
    %c0_35 = arith.constant 0 : index
    %c0_36 = arith.constant 0 : index
    %54 = vector.load %arg16[%c0_35, %c0_36] : memref<1x128xf32, #tpu.memory_space<vmem>>, vector<1x128xf32>
    %55 = vector.broadcast %54 : vector<1x128xf32> to vector<128x128xf32>
    %56 = arith.addf %53, %55 : vector<128x128xf32>
    %cst_37 = arith.constant 0.000000e+00 : f32
    %57 = vector.broadcast %cst_37 : f32 to vector<128x128xf32>
    %58 = arith.maximumf %56, %57 : vector<128x128xf32>
    %59 = arith.truncf %50 : vector<128x256xf32> to vector<128x256xbf16>
    %c0_38 = arith.constant 0 : index
    %c0_39 = arith.constant 0 : index
    %60 = vector.load %arg17[%c0_38, %c0_39] : memref<256x512xbf16, #tpu.memory_space<vmem>>, vector<256x512xbf16>
    %cst_40 = arith.constant dense<0.000000e+00> : vector<128x512xf32>
    %61 = tpu.matmul %59, %60, %cst_40 {dimension_numbers = #tpu.dot_dimension_numbers<[1], [0], [0], [1], [0, 0, 1, 1], [], []>} : vector<128x256xbf16>, vector<256x512xbf16>, vector<128x512xf32> -> vector<128x512xf32>
    %c0_41 = arith.constant 0 : index
    %c0_42 = arith.constant 0 : index
    %62 = vector.load %arg18[%c0_41, %c0_42] : memref<1x512xf32, #tpu.memory_space<vmem>>, vector<1x512xf32>
    %63 = vector.broadcast %62 : vector<1x512xf32> to vector<128x512xf32>
    %64 = arith.addf %61, %63 : vector<128x512xf32>
    %cst_43 = arith.constant 0.000000e+00 : f32
    %65 = vector.broadcast %cst_43 : f32 to vector<128x512xf32>
    %66 = arith.maximumf %64, %65 : vector<128x512xf32>
    %67 = arith.extui %31 : vector<128x1xi1> to vector<128x1xi32>
    %68 = arith.sitofp %67 : vector<128x1xi32> to vector<128x1xf32>
    %69 = arith.extui %33 : vector<128x1xi1> to vector<128x1xi32>
    %70 = arith.sitofp %69 : vector<128x1xi32> to vector<128x1xf32>
    %71 = arith.subf %0, %58 : vector<128x128xf32>
    %72 = arith.mulf %71, %71 : vector<128x128xf32>
    %cst_44 = arith.constant dense<0.000000e+00> : vector<128xf32>
    %73 = vector.multi_reduction <add>, %72, %cst_44 [1] : vector<128x128xf32> to vector<128xf32>
    %74 = vector.shape_cast %73 : vector<128xf32> to vector<128x1xf32>
    %75 = arith.mulf %74, %68 : vector<128x1xf32>
    %76 = arith.extf %1 : vector<128x512xbf16> to vector<128x512xf32>
    %77 = arith.subf %76, %66 : vector<128x512xf32>
    %78 = arith.mulf %77, %77 : vector<128x512xf32>
    %cst_45 = arith.constant dense<0.000000e+00> : vector<128xf32>
    %79 = vector.multi_reduction <add>, %78, %cst_45 [1] : vector<128x512xf32> to vector<128xf32>
    %80 = vector.shape_cast %79 : vector<128xf32> to vector<128x1xf32>
    %81 = arith.mulf %80, %70 : vector<128x1xf32>
    %82 = arith.mulf %40, %40 : vector<128x128xf32>
    %cst_46 = arith.constant dense<0.000000e+00> : vector<128xf32>
    %83 = vector.multi_reduction <add>, %82, %cst_46 [1] : vector<128x128xf32> to vector<128xf32>
    %84 = vector.shape_cast %83 : vector<128xf32> to vector<128x1xf32>
    %cst_47 = arith.constant 1.000000e-24 : f32
    %85 = vector.broadcast %cst_47 : f32 to vector<128x1xf32>
    %86 = arith.maximumf %84, %85 : vector<128x1xf32>
    %87 = math.rsqrt %86 : vector<128x1xf32>
    %88 = vector.broadcast %87 : vector<128x1xf32> to vector<128x128xf32>
    %89 = arith.mulf %40, %88 : vector<128x128xf32>
    %c0_48 = arith.constant 0 : index
    %c0_49 = arith.constant 0 : index
    %90 = vector.load %arg4[%c0_48, %c0_49] : memref<128x128xf32, #tpu.memory_space<vmem>>, vector<128x128xf32>
    %91 = arith.mulf %90, %90 : vector<128x128xf32>
    %cst_50 = arith.constant dense<0.000000e+00> : vector<128xf32>
    %92 = vector.multi_reduction <add>, %91, %cst_50 [1] : vector<128x128xf32> to vector<128xf32>
    %93 = vector.shape_cast %92 : vector<128xf32> to vector<128x1xf32>
    %cst_51 = arith.constant 1.000000e-24 : f32
    %94 = vector.broadcast %cst_51 : f32 to vector<128x1xf32>
    %95 = arith.maximumf %93, %94 : vector<128x1xf32>
    %96 = math.rsqrt %95 : vector<128x1xf32>
    %97 = vector.broadcast %96 : vector<128x1xf32> to vector<128x128xf32>
    %98 = arith.mulf %90, %97 : vector<128x128xf32>
    %c0_52 = arith.constant 0 : index
    %c0_53 = arith.constant 0 : index
    %99 = vector.load %arg3[%c0_52, %c0_53] : memref<128x128xf32, #tpu.memory_space<vmem>>, vector<128x128xf32>
    %100 = arith.mulf %99, %99 : vector<128x128xf32>
    %cst_54 = arith.constant dense<0.000000e+00> : vector<128xf32>
    %101 = vector.multi_reduction <add>, %100, %cst_54 [1] : vector<128x128xf32> to vector<128xf32>
    %102 = vector.shape_cast %101 : vector<128xf32> to vector<128x1xf32>
    %cst_55 = arith.constant 1.000000e-24 : f32
    %103 = vector.broadcast %cst_55 : f32 to vector<128x1xf32>
    %104 = arith.maximumf %102, %103 : vector<128x1xf32>
    %105 = math.rsqrt %104 : vector<128x1xf32>
    %106 = vector.broadcast %105 : vector<128x1xf32> to vector<128x128xf32>
    %107 = arith.mulf %99, %106 : vector<128x128xf32>
    %108 = arith.addf %89, %98 : vector<128x128xf32>
    %109 = arith.subf %108, %107 : vector<128x128xf32>
    %110 = math.absf %109 : vector<128x128xf32>
    %cst_56 = arith.constant dense<0.000000e+00> : vector<128xf32>
    %111 = vector.multi_reduction <add>, %110, %cst_56 [1] : vector<128x128xf32> to vector<128xf32>
    %112 = vector.shape_cast %111 : vector<128xf32> to vector<128x1xf32>
    %113 = tpu.iota {dimensions = array<i32: 1>} : vector<128x128xi32>
    %c0_i32_57 = arith.constant 0 : i32
    %114 = vector.broadcast %c0_i32_57 : i32 to vector<128x128xi32>
    %115 = arith.cmpi eq, %113, %114 : vector<128x128xi32>
    %cst_58 = arith.constant 0.000000e+00 : f32
    %116 = vector.shape_cast %112 : vector<128x1xf32> to vector<128x1xf32>
    %117 = vector.broadcast %116 : vector<128x1xf32> to vector<128x128xf32>
    %118 = vector.broadcast %cst_58 : f32 to vector<128x128xf32>
    %119 = arith.select %115, %117, %118 : vector<128x128xi1>, vector<128x128xf32>
    %c1_i32_59 = arith.constant 1 : i32
    %120 = vector.broadcast %c1_i32_59 : i32 to vector<128x128xi32>
    %121 = arith.cmpi eq, %113, %120 : vector<128x128xi32>
    %cst_60 = arith.constant 0.000000e+00 : f32
    %122 = vector.shape_cast %75 : vector<128x1xf32> to vector<128x1xf32>
    %123 = vector.broadcast %122 : vector<128x1xf32> to vector<128x128xf32>
    %124 = vector.broadcast %cst_60 : f32 to vector<128x128xf32>
    %125 = arith.select %121, %123, %124 : vector<128x128xi1>, vector<128x128xf32>
    %126 = arith.addf %119, %125 : vector<128x128xf32>
    %c2_i32 = arith.constant 2 : i32
    %127 = vector.broadcast %c2_i32 : i32 to vector<128x128xi32>
    %128 = arith.cmpi eq, %113, %127 : vector<128x128xi32>
    %cst_61 = arith.constant 0.000000e+00 : f32
    %129 = vector.shape_cast %81 : vector<128x1xf32> to vector<128x1xf32>
    %130 = vector.broadcast %129 : vector<128x1xf32> to vector<128x128xf32>
    %131 = vector.broadcast %cst_61 : f32 to vector<128x128xf32>
    %132 = arith.select %128, %130, %131 : vector<128x128xi1>, vector<128x128xf32>
    %133 = arith.addf %126, %132 : vector<128x128xf32>
    %c0_62 = arith.constant 0 : index
    %c0_63 = arith.constant 0 : index
    %134 = vector.load %arg19[%c0_62, %c0_63] : memref<128x128xf32, #tpu.memory_space<vmem>>, vector<128x128xf32>
    tpu.vector_store %arg19[%c0_62, %c0_63], %133 {strides = array<i32>} : memref<128x128xf32, #tpu.memory_space<vmem>>, vector<128x128xf32>,
    return
  }
  func.func @transform_0(%arg0: i32) -> (i32, i32) {
    %c0_i32 = arith.constant 0 : i32
    %c0_i32_0 = arith.constant 0 : i32
    return %arg0, %c0_i32 : i32, i32
  }
  func.func @transform_1(%arg0: i32) -> (i32, i32) {
    %c0_i32 = arith.constant 0 : i32
    %c0_i32_0 = arith.constant 0 : i32
    return %arg0, %c0_i32 : i32, i32
  }
  func.func @transform_2(%arg0: i32) -> (i32, i32) {
    %c0_i32 = arith.constant 0 : i32
    %c0_i32_0 = arith.constant 0 : i32
    return %arg0, %c0_i32 : i32, i32
  }
  func.func @transform_3(%arg0: i32) -> (i32, i32) {
    %c0_i32 = arith.constant 0 : i32
    %c0_i32_0 = arith.constant 0 : i32
    return %arg0, %c0_i32 : i32, i32
  }
  func.func @transform_4(%arg0: i32) -> (i32, i32) {
    %c0_i32 = arith.constant 0 : i32
    %c0_i32_0 = arith.constant 0 : i32
    return %arg0, %c0_i32 : i32, i32
  }
  func.func @transform_5(%arg0: i32) -> (i32, i32) {
    %c0_i32 = arith.constant 0 : i32
    %c0_i32_0 = arith.constant 0 : i32
    %c0_i32_1 = arith.constant 0 : i32
    return %c0_i32, %c0_i32_0 : i32, i32
  }
  func.func @transform_6(%arg0: i32) -> (i32, i32) {
    %c0_i32 = arith.constant 0 : i32
    %c0_i32_0 = arith.constant 0 : i32
    %c0_i32_1 = arith.constant 0 : i32
    return %c0_i32, %c0_i32_0 : i32, i32
  }
  func.func @transform_7(%arg0: i32) -> (i32, i32) {
    %c0_i32 = arith.constant 0 : i32
    %c0_i32_0 = arith.constant 0 : i32
    %c0_i32_1 = arith.constant 0 : i32
    return %c0_i32, %c0_i32_0 : i32, i32
  }
  func.func @transform_8(%arg0: i32) -> (i32, i32) {
    %c0_i32 = arith.constant 0 : i32
    %c0_i32_0 = arith.constant 0 : i32
    %c0_i32_1 = arith.constant 0 : i32
    return %c0_i32, %c0_i32_0 : i32, i32
  }
  func.func @transform_9(%arg0: i32) -> (i32, i32) {
    %c0_i32 = arith.constant 0 : i32
    %c0_i32_0 = arith.constant 0 : i32
    %c0_i32_1 = arith.constant 0 : i32
    return %c0_i32, %c0_i32_0 : i32, i32
  }
  func.func @transform_10(%arg0: i32) -> (i32, i32) {
    %c0_i32 = arith.constant 0 : i32
    %c0_i32_0 = arith.constant 0 : i32
    %c0_i32_1 = arith.constant 0 : i32
    return %c0_i32, %c0_i32_0 : i32, i32
  }
  func.func @transform_11(%arg0: i32) -> (i32, i32) {
    %c0_i32 = arith.constant 0 : i32
    %c0_i32_0 = arith.constant 0 : i32
    %c0_i32_1 = arith.constant 0 : i32
    return %c0_i32, %c0_i32_0 : i32, i32
  }
  func.func @transform_12(%arg0: i32) -> (i32, i32) {
    %c0_i32 = arith.constant 0 : i32
    %c0_i32_0 = arith.constant 0 : i32
    %c0_i32_1 = arith.constant 0 : i32
    return %c0_i32, %c0_i32_0 : i32, i32
  }
  func.func @transform_13(%arg0: i32) -> (i32, i32) {
    %c0_i32 = arith.constant 0 : i32
    %c0_i32_0 = arith.constant 0 : i32
    %c0_i32_1 = arith.constant 0 : i32
    return %c0_i32, %c0_i32_0 : i32, i32
  }
  func.func @transform_14(%arg0: i32) -> (i32, i32) {
    %c0_i32 = arith.constant 0 : i32
    %c0_i32_0 = arith.constant 0 : i32
    %c0_i32_1 = arith.constant 0 : i32
    return %c0_i32, %c0_i32_0 : i32, i32
  }
  func.func @transform_15(%arg0: i32) -> (i32, i32) {
    %c0_i32 = arith.constant 0 : i32
    %c0_i32_0 = arith.constant 0 : i32
    %c0_i32_1 = arith.constant 0 : i32
    return %c0_i32, %c0_i32_0 : i32, i32
  }
  func.func @transform_16(%arg0: i32) -> (i32, i32) {
    %c0_i32 = arith.constant 0 : i32
    %c0_i32_0 = arith.constant 0 : i32
    %c0_i32_1 = arith.constant 0 : i32
    return %c0_i32, %c0_i32_0 : i32, i32
  }
  func.func @transform_17(%arg0: i32) -> (i32, i32) {
    %c0_i32 = arith.constant 0 : i32
    %c0_i32_0 = arith.constant 0 : i32
    %c0_i32_1 = arith.constant 0 : i32
    return %c0_i32, %c0_i32_0 : i32, i32
  }
  func.func @transform_18(%arg0: i32) -> (i32, i32) {
    %c0_i32 = arith.constant 0 : i32
    %c0_i32_0 = arith.constant 0 : i32
    return %arg0, %c0_i32 : i32, i32
  }
}

module attributes {stable_mosaic.version = 11 : i64} {
  func.func @transae_fused_kernel(%arg0: i32, %arg1: memref<128x128xf32, #tpu.memory_space<vmem>>, %arg2: memref<128x512xbf16, #tpu.memory_space<vmem>>, %arg3: memref<128x128xf32, #tpu.memory_space<vmem>>, %arg4: memref<128x128xf32, #tpu.memory_space<vmem>>, %arg5: memref<128x1xi32, #tpu.memory_space<vmem>>, %arg6: memref<128x128xbf16, #tpu.memory_space<vmem>>, %arg7: memref<1x128xf32, #tpu.memory_space<vmem>>, %arg8: memref<512x256xbf16, #tpu.memory_space<vmem>>, %arg9: memref<1x256xf32, #tpu.memory_space<vmem>>, %arg10: memref<128x128xbf16, #tpu.memory_space<vmem>>, %arg11: memref<256x128xbf16, #tpu.memory_space<vmem>>, %arg12: memref<1x128xf32, #tpu.memory_space<vmem>>, %arg13: memref<128x384xbf16, #tpu.memory_space<vmem>>, %arg14: memref<1x384xf32, #tpu.memory_space<vmem>>, %arg15: memref<128x128xbf16, #tpu.memory_space<vmem>>, %arg16: memref<1x128xf32, #tpu.memory_space<vmem>>, %arg17: memref<256x512xbf16, #tpu.memory_space<vmem>>, %arg18: memref<1x512xf32, #tpu.memory_space<vmem>>, %arg19: memref<128x128xf32, #tpu.memory_space<vmem>>) attributes {dimension_semantics = [#tpu.dimension_semantics<parallel>], iteration_bounds = array<i64: 1>, scalar_prefetch = 0 : i64, scratch_operands = 0 : i64, tpu.core_type = #tpu.core_type<tc>, window_params = [{transform_indices = @transform_0, window_bounds = array<i64: 128, 128>}, {transform_indices = @transform_1, window_bounds = array<i64: 128, 512>}, {transform_indices = @transform_2, window_bounds = array<i64: 128, 128>}, {transform_indices = @transform_3, window_bounds = array<i64: 128, 128>}, {transform_indices = @transform_4, window_bounds = array<i64: 128, 1>}, {pipeline_mode = #tpu.pipeline_mode<synchronous>, transform_indices = @transform_5, window_bounds = array<i64: 128, 128>}, {pipeline_mode = #tpu.pipeline_mode<synchronous>, transform_indices = @transform_6, window_bounds = array<i64: 1, 128>}, {pipeline_mode = #tpu.pipeline_mode<synchronous>, transform_indices = @transform_7, window_bounds = array<i64: 512, 256>}, {pipeline_mode = #tpu.pipeline_mode<synchronous>, transform_indices = @transform_8, window_bounds = array<i64: 1, 256>}, {pipeline_mode = #tpu.pipeline_mode<synchronous>, transform_indices = @transform_9, window_bounds = array<i64: 128, 128>}, {pipeline_mode = #tpu.pipeline_mode<synchronous>, transform_indices = @transform_10, window_bounds = array<i64: 256, 128>}, {pipeline_mode = #tpu.pipeline_mode<synchronous>, transform_indices = @transform_11, window_bounds = array<i64: 1, 128>}, {pipeline_mode = #tpu.pipeline_mode<synchronous>, transform_indices = @transform_12, window_bounds = array<i64: 128, 384>}, {pipeline_mode = #tpu.pipeline_mode<synchronous>, transform_indices = @transform_13, window_bounds = array<i64: 1, 384>}, {pipeline_mode = #tpu.pipeline_mode<synchronous>, transform_indices = @transform_14, window_bounds = array<i64: 128, 128>}, {pipeline_mode = #tpu.pipeline_mode<synchronous>, transform_indices = @transform_15, window_bounds = array<i64: 1, 128>}, {pipeline_mode = #tpu.pipeline_mode<synchronous>, transform_indices = @transform_16, window_bounds = array<i64: 256, 512>}, {pipeline_mode = #tpu.pipeline_mode<synchronous>, transform_indices = @transform_17, window_bounds = array<i64: 1, 512>}, {transform_indices = @transform_18, window_bounds = array<i64: 128, 128>}]} {
    %c0 = arith.constant 0 : index
    %c0_0 = arith.constant 0 : index
    %0 = vector.load %arg1[%c0, %c0_0] : memref<128x128xf32, #tpu.memory_space<vmem>>, vector<128x128xf32>
    %c0_1 = arith.constant 0 : index
    %c0_2 = arith.constant 0 : index
    %1 = vector.load %arg2[%c0_1, %c0_2] : memref<128x512xbf16, #tpu.memory_space<vmem>>, vector<128x512xbf16>
    %c0_3 = arith.constant 0 : index
    %c0_4 = arith.constant 0 : index
    %2 = vector.load %arg5[%c0_3, %c0_4] : memref<128x1xi32, #tpu.memory_space<vmem>>, vector<128x1xi32>
    %3 = arith.truncf %0 : vector<128x128xf32> to vector<128x128xbf16>
    %c0_5 = arith.constant 0 : index
    %c0_6 = arith.constant 0 : index
    %4 = vector.load %arg6[%c0_5, %c0_6] : memref<128x128xbf16, #tpu.memory_space<vmem>>, vector<128x128xbf16>
    %cst = arith.constant dense<0.000000e+00> : vector<128x128xf32>
    %5 = tpu.matmul %3, %4, %cst {dimension_numbers = #tpu.dot_dimension_numbers<[1], [0], [0], [1], [0, 0, 1, 1], [], []>} : vector<128x128xbf16>, vector<128x128xbf16>, vector<128x128xf32> -> vector<128x128xf32>
    %c0_7 = arith.constant 0 : index
    %c0_8 = arith.constant 0 : index
    %6 = vector.load %arg7[%c0_7, %c0_8] : memref<1x128xf32, #tpu.memory_space<vmem>>, vector<1x128xf32>
    %7 = vector.broadcast %6 : vector<1x128xf32> to vector<128x128xf32>
    %8 = arith.addf %5, %7 : vector<128x128xf32>
    %cst_9 = arith.constant 0.000000e+00 : f32
    %9 = vector.broadcast %cst_9 : f32 to vector<128x128xf32>
    %10 = arith.maximumf %8, %9 : vector<128x128xf32>
    %c0_10 = arith.constant 0 : index
    %c0_11 = arith.constant 0 : index
    %11 = vector.load %arg8[%c0_10, %c0_11] : memref<512x256xbf16, #tpu.memory_space<vmem>>, vector<512x256xbf16>
    %cst_12 = arith.constant dense<0.000000e+00> : vector<128x256xf32>
    %12 = tpu.matmul %1, %11, %cst_12 {dimension_numbers = #tpu.dot_dimension_numbers<[1], [0], [0], [1], [0, 0, 1, 1], [], []>} : vector<128x512xbf16>, vector<512x256xbf16>, vector<128x256xf32> -> vector<128x256xf32>
    %c0_13 = arith.constant 0 : index
    %c0_14 = arith.constant 0 : index
    %13 = vector.load %arg9[%c0_13, %c0_14] : memref<1x256xf32, #tpu.memory_space<vmem>>, vector<1x256xf32>
    %14 = vector.broadcast %13 : vector<1x256xf32> to vector<128x256xf32>
    %15 = arith.addf %12, %14 : vector<128x256xf32>
    %cst_15 = arith.constant 0.000000e+00 : f32
    %16 = vector.broadcast %cst_15 : f32 to vector<128x256xf32>
    %17 = arith.maximumf %15, %16 : vector<128x256xf32>
    %18 = arith.truncf %10 : vector<128x128xf32> to vector<128x128xbf16>
    %c0_16 = arith.constant 0 : index
    %c0_17 = arith.constant 0 : index
    %19 = vector.load %arg10[%c0_16, %c0_17] : memref<128x128xbf16, #tpu.memory_space<vmem>>, vector<128x128xbf16>
    %cst_18 = arith.constant dense<0.000000e+00> : vector<128x128xf32>
    %20 = tpu.matmul %18, %19, %cst_18 {dimension_numbers = #tpu.dot_dimension_numbers<[1], [0], [0], [1], [0, 0, 1, 1], [], []>} : vector<128x128xbf16>, vector<128x128xbf16>, vector<128x128xf32> -> vector<128x128xf32>
    %21 = arith.truncf %17 : vector<128x256xf32> to vector<128x256xbf16>
    %c0_19 = arith.constant 0 : index
    %c0_20 = arith.constant 0 : index
    %22 = vector.load %arg11[%c0_19, %c0_20] : memref<256x128xbf16, #tpu.memory_space<vmem>>, vector<256x128xbf16>
    %cst_21 = arith.constant dense<0.000000e+00> : vector<128x128xf32>
    %23 = tpu.matmul %21, %22, %cst_21 {dimension_numbers = #tpu.dot_dimension_numbers<[1], [0], [0], [1], [0, 0, 1, 1], [], []>} : vector<128x256xbf16>, vector<256x128xbf16>, vector<128x128xf32> -> vector<128x128xf32>
    %24 = arith.addf %20, %23 : vector<128x128xf32>
    %c0_22 = arith.constant 0 : index
    %c0_23 = arith.constant 0 : index
    %25 = vector.load %arg12[%c0_22, %c0_23] : memref<1x128xf32, #tpu.memory_space<vmem>>, vector<1x128xf32>
    %26 = vector.broadcast %25 : vector<1x128xf32> to vector<128x128xf32>
    %27 = arith.addf %24, %26 : vector<128x128xf32>
    %cst_24 = arith.constant 0.000000e+00 : f32
    %28 = vector.broadcast %cst_24 : f32 to vector<128x128xf32>
    %29 = arith.maximumf %27, %28 : vector<128x128xf32>
    %c0_i32 = arith.constant 0 : i32
    %30 = vector.broadcast %c0_i32 : i32 to vector<128x1xi32>
    %31 = arith.cmpi eq, %2, %30 : vector<128x1xi32>
    %c1_i32 = arith.constant 1 : i32
    %32 = vector.broadcast %c1_i32 : i32 to vector<128x1xi32>
    %33 = arith.cmpi eq, %2, %32 : vector<128x1xi32>
    %cst_25 = arith.constant 0.000000e+00 : f32
    %34 = vector.shape_cast %33 : vector<128x1xi1> to vector<128x1xi1>
    %35 = vector.broadcast %34 : vector<128x1xi1> to vector<128x128xi1>
    %36 = vector.broadcast %cst_25 : f32 to vector<128x128xf32>
    %37 = arith.select %35, %29, %36 : vector<128x128xi1>, vector<128x128xf32>
    %38 = vector.shape_cast %31 : vector<128x1xi1> to vector<128x1xi1>
    %39 = vector.broadcast %38 : vector<128x1xi1> to vector<128x128xi1>
    %40 = arith.select %39, %10, %37 : vector<128x128xi1>, vector<128x128xf32>
    %41 = arith.truncf %40 : vector<128x128xf32> to vector<128x128xbf16>
    %c0_26 = arith.constant 0 : index
    %c0_27 = arith.constant 0 : index
    %42 = vector.load %arg13[%c0_26, %c0_27] : memref<128x384xbf16, #tpu.memory_space<vmem>>, vector<128x384xbf16>
    %cst_28 = arith.constant dense<0.000000e+00> : vector<128x384xf32>
    %43 = tpu.matmul %41, %42, %cst_28 {dimension_numbers = #tpu.dot_dimension_numbers<[1], [0], [0], [1], [0, 0, 1, 1], [], []>} : vector<128x128xbf16>, vector<128x384xbf16>, vector<128x384xf32> -> vector<128x384xf32>
    %c0_29 = arith.constant 0 : index
    %c0_30 = arith.constant 0 : index
    %44 = vector.load %arg14[%c0_29, %c0_30] : memref<1x384xf32, #tpu.memory_space<vmem>>, vector<1x384xf32>
    %45 = vector.broadcast %44 : vector<1x384xf32> to vector<128x384xf32>
    %46 = arith.addf %43, %45 : vector<128x384xf32>
    %cst_31 = arith.constant 0.000000e+00 : f32
    %47 = vector.broadcast %cst_31 : f32 to vector<128x384xf32>
    %48 = arith.maximumf %46, %47 : vector<128x384xf32>
    %49 = vector.extract_strided_slice %48 {offsets = [0, 0], sizes = [128, 128], strides = [1, 1]} : vector<128x384xf32> to vector<128x128xf32>
    %50 = vector.extract_strided_slice %48 {offsets = [0, 128], sizes = [128, 256], strides = [1, 1]} : vector<128x384xf32> to vector<128x256xf32>
    %51 = arith.truncf %49 : vector<128x128xf32> to vector<128x128xbf16>
    %c0_32 = arith.constant 0 : index
    %c0_33 = arith.constant 0 : index
    %52 = vector.load %arg15[%c0_32, %c0_33] : memref<128x128xbf16, #tpu.memory_space<vmem>>, vector<128x128xbf16>
    %cst_34 = arith.constant dense<0.000000e+00> : vector<128x128xf32>
    %53 = tpu.matmul %51, %52, %cst_34 {dimension_numbers = #tpu.dot_dimension_numbers<[1], [0], [0], [1], [0, 0, 1, 1], [], []>} : vector<128x128xbf16>, vector<128x128xbf16>, vector<128x128xf32> -> vector<128x128xf32>
    %c0_35 = arith.constant 0 : index
    %c0_36 = arith.constant 0 : index
    %54 = vector.load %arg16[%c0_35, %c0_36] : memref<1x128xf32, #tpu.memory_space<vmem>>, vector<1x128xf32>
    %55 = vector.broadcast %54 : vector<1x128xf32> to vector<128x128xf32>
    %56 = arith.addf %53, %55 : vector<128x128xf32>
    %cst_37 = arith.constant 0.000000e+00 : f32
    %57 = vector.broadcast %cst_37 : f32 to vector<128x128xf32>
    %58 = arith.maximumf %56, %57 : vector<128x128xf32>
    %59 = arith.truncf %50 : vector<128x256xf32> to vector<128x256xbf16>
    %c0_38 = arith.constant 0 : index
    %c0_39 = arith.constant 0 : index
    %60 = vector.load %arg17[%c0_38, %c0_39] : memref<256x512xbf16, #tpu.memory_space<vmem>>, vector<256x512xbf16>
    %cst_40 = arith.constant dense<0.000000e+00> : vector<128x512xf32>
    %61 = tpu.matmul %59, %60, %cst_40 {dimension_numbers = #tpu.dot_dimension_numbers<[1], [0], [0], [1], [0, 0, 1, 1], [], []>} : vector<128x256xbf16>, vector<256x512xbf16>, vector<128x512xf32> -> vector<128x512xf32>
    %c0_41 = arith.constant 0 : index
    %c0_42 = arith.constant 0 : index
    %62 = vector.load %arg18[%c0_41, %c0_42] : memref<1x512xf32, #tpu.memory_space<vmem>>, vector<1x512xf32>
    %63 = vector.broadcast %62 : vector<1x512xf32> to vector<128x512xf32>
    %64 = arith.addf %61, %63 : vector<128x512xf32>
    %cst_43 = arith.constant 0.000000e+00 : f32
    %65 = vector.broadcast %cst_43 : f32 to vector<128x512xf32>
    %66 = arith.maximumf %64, %65 : vector<128x512xf32>
    %67 = arith.extui %31 : vector<128x1xi1> to vector<128x1xi32>
    %68 = arith.sitofp %67 : vector<128x1xi32> to vector<128x1xf32>
    %69 = arith.extui %33 : vector<128x1xi1> to vector<128x1xi32>
    %70 = arith.sitofp %69 : vector<128x1xi32> to vector<128x1xf32>
    %71 = arith.subf %0, %58 : vector<128x128xf32>
    %72 = arith.mulf %71, %71 : vector<128x128xf32>
    %cst_44 = arith.constant dense<0.000000e+00> : vector<128xf32>
    %73 = vector.multi_reduction <add>, %72, %cst_44 [1] : vector<128x128xf32> to vector<128xf32>
    %74 = vector.shape_cast %73 : vector<128xf32> to vector<128x1xf32>
    %75 = arith.mulf %74, %68 : vector<128x1xf32>
    %76 = arith.extf %1 : vector<128x512xbf16> to vector<128x512xf32>
    %77 = arith.subf %76, %66 : vector<128x512xf32>
    %78 = arith.mulf %77, %77 : vector<128x512xf32>
    %cst_45 = arith.constant dense<0.000000e+00> : vector<128xf32>
    %79 = vector.multi_reduction <add>, %78, %cst_45 [1] : vector<128x512xf32> to vector<128xf32>
    %80 = vector.shape_cast %79 : vector<128xf32> to vector<128x1xf32>
    %81 = arith.mulf %80, %70 : vector<128x1xf32>
    %82 = arith.mulf %40, %40 : vector<128x128xf32>
    %cst_46 = arith.constant dense<0.000000e+00> : vector<128xf32>
    %83 = vector.multi_reduction <add>, %82, %cst_46 [1] : vector<128x128xf32> to vector<128xf32>
    %84 = vector.shape_cast %83 : vector<128xf32> to vector<128x1xf32>
    %cst_47 = arith.constant 1.000000e-24 : f32
    %85 = vector.broadcast %cst_47 : f32 to vector<128x1xf32>
    %86 = arith.maximumf %84, %85 : vector<128x1xf32>
    %87 = math.rsqrt %86 : vector<128x1xf32>
    %88 = vector.broadcast %87 : vector<128x1xf32> to vector<128x128xf32>
    %89 = arith.mulf %40, %88 : vector<128x128xf32>
    %c0_48 = arith.constant 0 : index
    %c0_49 = arith.constant 0 : index
    %90 = vector.load %arg4[%c0_48, %c0_49] : memref<128x128xf32, #tpu.memory_space<vmem>>, vector<128x128xf32>
    %91 = arith.mulf %90, %90 : vector<128x128xf32>
    %cst_50 = arith.constant dense<0.000000e+00> : vector<128xf32>
    %92 = vector.multi_reduction <add>, %91, %cst_50 [1] : vector<128x128xf32> to vector<128xf32>
    %93 = vector.shape_cast %92 : vector<128xf32> to vector<128x1xf32>
    %cst_51 = arith.constant 1.000000e-24 : f32
    %94 = vector.broadcast %cst_51 : f32 to vector<128x1xf32>
    %95 = arith.maximumf %93, %94 : vector<128x1xf32>
    %96 = math.rsqrt %95 : vector<128x1xf32>
    %97 = vector.broadcast %96 : vector<128x1xf32> to vector<128x128xf32>
    %98 = arith.mulf %90, %97 : vector<128x128xf32>
    %c0_52 = arith.constant 0 : index
    %c0_53 = arith.constant 0 : index
    %99 = vector.load %arg3[%c0_52, %c0_53] : memref<128x128xf32, #tpu.memory_space<vmem>>, vector<128x128xf32>
    %100 = arith.mulf %99, %99 : vector<128x128xf32>
    %cst_54 = arith.constant dense<0.000000e+00> : vector<128xf32>
    %101 = vector.multi_reduction <add>, %100, %cst_54 [1] : vector<128x128xf32> to vector<128xf32>
    %102 = vector.shape_cast %101 : vector<128xf32> to vector<128x1xf32>
    %cst_55 = arith.constant 1.000000e-24 : f32
    %103 = vector.broadcast %cst_55 : f32 to vector<128x1xf32>
    %104 = arith.maximumf %102, %103 : vector<128x1xf32>
    %105 = math.rsqrt %104 : vector<128x1xf32>
    %106 = vector.broadcast %105 : vector<128x1xf32> to vector<128x128xf32>
    %107 = arith.mulf %99, %106 : vector<128x128xf32>
    %108 = arith.addf %89, %98 : vector<128x128xf32>
    %109 = arith.subf %108, %107 : vector<128x128xf32>
    %110 = math.absf %109 : vector<128x128xf32>
    %cst_56 = arith.constant dense<0.000000e+00> : vector<128xf32>
    %111 = vector.multi_reduction <add>, %110, %cst_56 [1] : vector<128x128xf32> to vector<128xf32>
    %112 = vector.shape_cast %111 : vector<128xf32> to vector<128x1xf32>
    %113 = tpu.iota {dimensions = array<i32: 1>} : vector<128x128xi32>
    %c0_i32_57 = arith.constant 0 : i32
    %114 = vector.broadcast %c0_i32_57 : i32 to vector<128x128xi32>
    %115 = arith.cmpi eq, %113, %114 : vector<128x128xi32>
    %cst_58 = arith.constant 0.000000e+00 : f32
    %116 = vector.shape_cast %112 : vector<128x1xf32> to vector<128x1xf32>
    %117 = vector.broadcast %116 : vector<128x1xf32> to vector<128x128xf32>
    %118 = vector.broadcast %cst_58 : f32 to vector<128x128xf32>
    %119 = arith.select %115, %117, %118 : vector<128x128xi1>, vector<128x128xf32>
    %c1_i32_59 = arith.constant 1 : i32
    %120 = vector.broadcast %c1_i32_59 : i32 to vector<128x128xi32>
    %121 = arith.cmpi eq, %113, %120 : vector<128x128xi32>
    %cst_60 = arith.constant 0.000000e+00 : f32
    %122 = vector.shape_cast %75 : vector<128x1xf32> to vector<128x1xf32>
    %123 = vector.broadcast %122 : vector<128x1xf32> to vector<128x128xf32>
    %124 = vector.broadcast %cst_60 : f32 to vector<128x128xf32>
    %125 = arith.select %121, %123, %124 : vector<128x128xi1>, vector<128x128xf32>
    %126 = arith.addf %119, %125 : vector<128x128xf32>
    %c2_i32 = arith.constant 2 : i32
    %127 = vector.broadcast %c2_i32 : i32 to vector<128x128xi32>
    %128 = arith.cmpi eq, %113, %127 : vector<128x128xi32>
    %cst_61 = arith.constant 0.000000e+00 : f32
    %129 = vector.shape_cast %81 : vector<128x1xf32> to vector<128x1xf32>
    %130 = vector.broadcast %129 : vector<128x1xf32> to vector<128x128xf32>
    %131 = vector.broadcast %cst_61 : f32 to vector<128x128xf32>
    %132 = arith.select %128, %130, %131 : vector<128x128xi1>, vector<128x128xf32>
    %133 = arith.addf %126, %132 : vector<128x128xf32>
    %c0_62 = arith.constant 0 : index
    %c0_63 = arith.constant 0 : index
    %134 = vector.load %arg19[%c0_62, %c0_63] : memref<128x128xf32, #tpu.memory_space<vmem>>, vector<128x128xf32>
    tpu.vector_store %arg19[%c0_62, %c0_63], %133 {strides = array<i32>} : memref<128x128xf32, #tpu.memory_space<vmem>>, vector<128x128xf32>,
    return
  }
  func.func @transform_0(%arg0: i32) -> (i32, i32) {
    %c0_i32 = arith.constant 0 : i32
    %c0_i32_0 = arith.constant 0 : i32
    return %arg0, %c0_i32 : i32, i32
  }
  func.func @transform_1(%arg0: i32) -> (i32, i32) {
    %c0_i32 = arith.constant 0 : i32
    %c0_i32_0 = arith.constant 0 : i32
    return %arg0, %c0_i32 : i32, i32
  }
  func.func @transform_2(%arg0: i32) -> (i32, i32) {
    %c0_i32 = arith.constant 0 : i32
    %c0_i32_0 = arith.constant 0 : i32
    return %arg0, %c0_i32 : i32, i32
  }
  func.func @transform_3(%arg0: i32) -> (i32, i32) {
    %c0_i32 = arith.constant 0 : i32
    %c0_i32_0 = arith.constant 0 : i32
    return %arg0, %c0_i32 : i32, i32
  }
  func.func @transform_4(%arg0: i32) -> (i32, i32) {
    %c0_i32 = arith.constant 0 : i32
    %c0_i32_0 = arith.constant 0 : i32
    return %arg0, %c0_i32 : i32, i32
  }
  func.func @transform_5(%arg0: i32) -> (i32, i32) {
    %c0_i32 = arith.constant 0 : i32
    %c0_i32_0 = arith.constant 0 : i32
    %c0_i32_1 = arith.constant 0 : i32
    return %c0_i32, %c0_i32_0 : i32, i32
  }
  func.func @transform_6(%arg0: i32) -> (i32, i32) {
    %c0_i32 = arith.constant 0 : i32
    %c0_i32_0 = arith.constant 0 : i32
    %c0_i32_1 = arith.constant 0 : i32
    return %c0_i32, %c0_i32_0 : i32, i32
  }
  func.func @transform_7(%arg0: i32) -> (i32, i32) {
    %c0_i32 = arith.constant 0 : i32
    %c0_i32_0 = arith.constant 0 : i32
    %c0_i32_1 = arith.constant 0 : i32
    return %c0_i32, %c0_i32_0 : i32, i32
  }
  func.func @transform_8(%arg0: i32) -> (i32, i32) {
    %c0_i32 = arith.constant 0 : i32
    %c0_i32_0 = arith.constant 0 : i32
    %c0_i32_1 = arith.constant 0 : i32
    return %c0_i32, %c0_i32_0 : i32, i32
  }
  func.func @transform_9(%arg0: i32) -> (i32, i32) {
    %c0_i32 = arith.constant 0 : i32
    %c0_i32_0 = arith.constant 0 : i32
    %c0_i32_1 = arith.constant 0 : i32
    return %c0_i32, %c0_i32_0 : i32, i32
  }
  func.func @transform_10(%arg0: i32) -> (i32, i32) {
    %c0_i32 = arith.constant 0 : i32
    %c0_i32_0 = arith.constant 0 : i32
    %c0_i32_1 = arith.constant 0 : i32
    return %c0_i32, %c0_i32_0 : i32, i32
  }
  func.func @transform_11(%arg0: i32) -> (i32, i32) {
    %c0_i32 = arith.constant 0 : i32
    %c0_i32_0 = arith.constant 0 : i32
    %c0_i32_1 = arith.constant 0 : i32
    return %c0_i32, %c0_i32_0 : i32, i32
  }
  func.func @transform_12(%arg0: i32) -> (i32, i32) {
    %c0_i32 = arith.constant 0 : i32
    %c0_i32_0 = arith.constant 0 : i32
    %c0_i32_1 = arith.constant 0 : i32
    return %c0_i32, %c0_i32_0 : i32, i32
  }
  func.func @transform_13(%arg0: i32) -> (i32, i32) {
    %c0_i32 = arith.constant 0 : i32
    %c0_i32_0 = arith.constant 0 : i32
    %c0_i32_1 = arith.constant 0 : i32
    return %c0_i32, %c0_i32_0 : i32, i32
  }
  func.func @transform_14(%arg0: i32) -> (i32, i32) {
    %c0_i32 = arith.constant 0 : i32
    %c0_i32_0 = arith.constant 0 : i32
    %c0_i32_1 = arith.constant 0 : i32
    return %c0_i32, %c0_i32_0 : i32, i32
  }
  func.func @transform_15(%arg0: i32) -> (i32, i32) {
    %c0_i32 = arith.constant 0 : i32
    %c0_i32_0 = arith.constant 0 : i32
    %c0_i32_1 = arith.constant 0 : i32
    return %c0_i32, %c0_i32_0 : i32, i32
  }
  func.func @transform_16(%arg0: i32) -> (i32, i32) {
    %c0_i32 = arith.constant 0 : i32
    %c0_i32_0 = arith.constant 0 : i32
    %c0_i32_1 = arith.constant 0 : i32
    return %c0_i32, %c0_i32_0 : i32, i32
  }
  func.func @transform_17(%arg0: i32) -> (i32, i32) {
    %c0_i32 = arith.constant 0 : i32
    %c0_i32_0 = arith.constant 0 : i32
    %c0_i32_1 = arith.constant 0 : i32
    return %c0_i32, %c0_i32_0 : i32, i32
  }
  func.func @transform_18(%arg0: i32) -> (i32, i32) {
    %c0_i32 = arith.constant 0 : i32
    %c0_i32_0 = arith.constant 0 : i32
    return %arg0, %c0_i32 : i32, i32
  }
}

</mosaic_0001>

<bundles_post_ra>
// kernel: tpu_custom_call.1
= control target key start
LH: loop header
LB: loop body
LE: loop exit
PB: predicated region body
PF: predicated region fallthrough
CT: control target
= control target key end

     0   :  { %s7538_s0 = inlined_call_operand.vmem [shape: f32[128,128], index: 0, kind: input, shape index: {}]   ;;  %s7539_s1 = inlined_call_operand.hbm [shape: bf16[128,512], index: 1, kind: input, shape index: {}]   ;;  %s7540_s2 = inlined_call_operand.hbm [shape: f32[128,128], index: 2, kind: input, shape index: {}]   ;;  %s7541_s3 = inlined_call_operand.hbm [shape: f32[128,128], index: 3, kind: input, shape index: {}]   ;;  %s7542_s4 = inlined_call_operand.vmem [shape: s32[128,1], index: 4, kind: input, shape index: {}]   ;;  %s7543_s5 = inlined_call_operand.hbm [shape: bf16[128,128], index: 5, kind: input, shape index: {}]   ;;  %s7544_s6 = inlined_call_operand.vmem [shape: f32[1,128], index: 6, kind: input, shape index: {}]   ;;  %s7545_s7 = inlined_call_operand.hbm [shape: bf16[512,256], index: 7, kind: input, shape index: {}]   ;;  %s7546_s8 = inlined_call_operand.vmem [shape: f32[1,256], index: 8, kind: input, shape index: {}]   ;;  %s7547_s9 = inlined_call_operand.hbm [shape: bf16[128,128], index: 9, kind: input, shape index: {}]   ;;  %s7548_s10 = inlined_call_operand.hbm [shape: bf16[256,128], index: 10, kind: input, shape index: {}]   ;;  %s7549_s11 = inlined_call_operand.vmem [shape: f32[1,128], index: 11, kind: input, shape index: {}]   ;;  %s7550_s12 = inlined_call_operand.hbm [shape: bf16[128,384], index: 12, kind: input, shape index: {}]   ;;  %s7551_s13 = inlined_call_operand.vmem [shape: f32[1,384], index: 13, kind: input, shape index: {}]   ;;  %s7552_s14 = inlined_call_operand.hbm [shape: bf16[128,128], index: 14, kind: input, shape index: {}]   ;;  %s7553_s15 = inlined_call_operand.vmem [shape: f32[1,128], index: 15, kind: input, shape index: {}]   ;;  %s7554_s16 = inlined_call_operand.hbm [shape: bf16[256,512], index: 16, kind: input, shape index: {}]   ;;  %s7555_s17 = inlined_call_operand.vmem [shape: f32[1,512], index: 17, kind: input, shape index: {}]   ;;  %s7556_s18 = inlined_call_operand.hbm [shape: f32[128,128], index: 18, kind: output, shape index: {}]  }
   0x1   :  { %7643 = sst [smem:[#allocation50_spill]] %s7538_s0 }
   0x2   :  { %7644 = sst [smem:[#allocation51_spill]] %s7539_s1 }
   0x3   :  { %7645 = sst [smem:[#allocation52_spill]] %s7540_s2 }
   0x4   :  { %23 = vsyncpa [#allocation3], 0 }
   0x5   :  { %24 = vsyncpa [#allocation6], 0 }
   0x6   :  { %25 = vsyncpa [#allocation9], 0 }
   0x7   :  { %26 = vsyncpa [#allocation12], 0 }
   0x8   :  { %27 = vsyncpa [#allocation15], 0 }
   0x9   :  { %28 = vsyncpa [#allocation18], 0 }
   0xa   :  { %29 = vsyncpa [#allocation4], 0  ;;  %s5646_s27 = smov [#allocation5]  }
   0xb   :  { %s49_s28 = sshll.u32 %s5646_s27, 4  ;;  %s50_s28 = int_to_ptr.vmem [resolvable:$true] %s49_s28 }
   0xc   :  { %s5420_s29 = scalar_lea.vmem %s50_s28, 2048  ;;  %p5425_p1 = scmp.lt.s32.totalorder %s50_s28, %s50_s28 }
   0xd   :  { %p5421_p0 = scmp.ne.s32.totalorder %s50_s28, %s5420_s29  ;;  %p5426_p2 = scmp.lt.s32.totalorder %s5420_s29, %s5420_s29 }
   0xf   :  { %p5427_p3 = por %p5426_p2, %p5425_p1 }
  0x11   :  { %p5428_p4 = pnand %p5427_p3, %p5421_p0 }
  0x13   :  { %5431 = shalt.err (!%p5428_p4)
}
  0x14   :  { %s5647_s30 = smov 128   ;;  %s5648_s0 = smov 8  }
  0x15   :  { %s7646_s20 = sld [smem:[#allocation52_spill]]  ;;  %s5649_s21 = smov [#allocation8]  }
  0x16   :  { %s75_s22 = sshll.u32 %s5649_s21, 4  ;;  %s76_s22 = int_to_ptr.vmem [resolvable:$true] %s75_s22 }
  0x17   :  { %s5440_s2 = scalar_lea.vmem %s76_s22, 1024  ;;  %p5445_p6 = scmp.lt.s32.totalorder %s76_s22, %s76_s22 }
  0x18   :  { %p5441_p5 = scmp.ne.s32.totalorder %s76_s22, %s5440_s2  ;;  %p5446_p7 = scmp.lt.s32.totalorder %s5440_s2, %s5440_s2 }
  0x1a   :  { %p5447_p8 = por %p5446_p7, %p5445_p6 }
  0x1b   :  { %55 = dma.hbm_to_vmem [thread:$0]  %s7646_s20, 2048, %s50_s28, [#allocation6], %s5647_s30, %s5647_s30, %s5648_s0  }
  0x1c   :  { %p5448_p9 = pnand %p5447_p8, %p5441_p5 }
  0x1e   :  { %5451 = shalt.err (!%p5448_p9)
}
  0x1f   :  { %s5650_s23 = smov 64   ;;  %s5651_s24 = smov 4  }
  0x20   :  { %81 = dma.hbm_to_vmem [thread:$0]  %s7543_s5, 1024, %s76_s22, [#allocation9], %s5650_s23, %s5650_s23, %s5651_s24  }
  0x21   :  { %s5652_s27 = smov [#allocation11]   ;;  %s5653_s29 = smov [#allocation14]  }
  0x22   :  { %s103_s28 = sshll.u32 %s5652_s27, 4  ;;  %s129_s19 = sshll.u32 %s5653_s29, 4  ;;  %s104_s28 = int_to_ptr.vmem [resolvable:$true] %s103_s28  ;;  %s130_s19 = int_to_ptr.vmem [resolvable:$true] %s129_s19 }
  0x23   :  { %s5460_s1 = scalar_lea.vmem %s104_s28, 1024  ;;  %p5465_p11 = scmp.lt.s32.totalorder %s104_s28, %s104_s28 }
  0x24   :  { %p5461_p10 = scmp.ne.s32.totalorder %s104_s28, %s5460_s1  ;;  %p5466_p12 = scmp.lt.s32.totalorder %s5460_s1, %s5460_s1 }
  0x26   :  { %p5467_p13 = por %p5466_p12, %p5465_p11 }
  0x28   :  { %p5468_p0 = pnand %p5467_p13, %p5461_p10 }
  0x2a   :  { %5471 = shalt.err (!%p5468_p0)
}
  0x2b   :  { %109 = dma.hbm_to_vmem [thread:$0]  %s7547_s9, 1024, %s104_s28, [#allocation12], %s5650_s23, %s5650_s23, %s5651_s24  }
  0x2c   :  { %s5480_s5 = scalar_lea.vmem %s130_s19, 3072  ;;  %p5485_p2 = scmp.lt.s32.totalorder %s130_s19, %s130_s19 }
  0x2d   :  { %p5481_p1 = scmp.ne.s32.totalorder %s130_s19, %s5480_s5  ;;  %p5486_p3 = scmp.lt.s32.totalorder %s5480_s5, %s5480_s5 }
  0x2f   :  { %p5487_p4 = por %p5486_p3, %p5485_p2 }
  0x31   :  { %p5488_p5 = pnand %p5487_p4, %p5481_p1 }
  0x33   :  { %5491 = shalt.err (!%p5488_p5)
}
  0x34   :  { %s5654_s22 = smov 192   ;;  %s5655_s2 = smov 12  }
  0x35   :  { %135 = dma.hbm_to_vmem [thread:$0]  %s7550_s12, 3072, %s130_s19, [#allocation15], %s5654_s22, %s5654_s22, %s5655_s2  }
  0x36   :  { %s5656_s27 = smov [#allocation2]  }
  0x37   :  { %s37_s29 = sshll.u32 %s5656_s27, 4  ;;  %s38_s29 = int_to_ptr.vmem [resolvable:$true] %s37_s29 }
  0x38   :  { %s5500_s1 = scalar_lea.vmem %s38_s29, 4096  ;;  %p5505_p7 = scmp.lt.s32.totalorder %s38_s29, %s38_s29 }
  0x39   :  { %p5501_p6 = scmp.ne.s32.totalorder %s38_s29, %s5500_s1  ;;  %p5506_p8 = scmp.lt.s32.totalorder %s5500_s1, %s5500_s1 }
  0x3b   :  { %p5507_p9 = por %p5506_p8, %p5505_p7 }
  0x3d   :  { %p5508_p10 = pnand %p5507_p9, %p5501_p6 }
  0x3f   :  { %5511 = shalt.err (!%p5508_p10)
}
  0x40   :  { %s5657_s9 = smov 256   ;;  %s5658_s28 = smov 16  }
  0x41   :  { %s7647_s5 = sld [smem:[#allocation51_spill]]  ;;  %s5659_s12 = smov [#allocation7]  }
  0x42   :  { %s61_s19 = sshll.u32 %s5659_s12, 4  ;;  %s5660_s22 = smov [#allocation10]   ;;  %s62_s19 = int_to_ptr.vmem [resolvable:$true] %s61_s19 }
  0x43   :  { %s89_s2 = sshll.u32 %s5660_s22, 4  ;;  %s5520_s25 = scalar_lea.vmem %s62_s19, 2048  ;;  %s90_s2 = int_to_ptr.vmem [resolvable:$true] %s89_s2 }
  0x44   :  { %p5521_p11 = scmp.ne.s32.totalorder %s62_s19, %s5520_s25  ;;  %p5525_p12 = scmp.lt.s32.totalorder %s62_s19, %s62_s19 }
  0x45   :  { %p5526_p13 = scmp.lt.s32.totalorder %s5520_s25, %s5520_s25 }
  0x47   :  { %43 = dma.hbm_to_vmem [thread:$0]  %s7647_s5, 4096, %s38_s29, [#allocation3], %s5657_s9, %s5657_s9, %s5658_s28  }
  0x48   :  { %p5527_p0 = por %p5526_p13, %p5525_p12 }
  0x4a   :  { %p5528_p1 = pnand %p5527_p0, %p5521_p11 }
  0x4c   :  { %5531 = shalt.err (!%p5528_p1)
}
  0x4d   :  { %67 = dma.hbm_to_vmem [thread:$0]  %s7541_s3, 2048, %s62_s19, [#allocation6], %s5647_s30, %s5647_s30, %s5648_s0  }
  0x4e   :  { %s5540_s29 = scalar_lea.vmem %s90_s2, 8192  ;;  %p5545_p3 = scmp.lt.s32.totalorder %s90_s2, %s90_s2 }
  0x4f   :  { %p5541_p2 = scmp.ne.s32.totalorder %s90_s2, %s5540_s29  ;;  %p5546_p4 = scmp.lt.s32.totalorder %s5540_s29, %s5540_s29 }
  0x51   :  { %p5547_p5 = por %p5546_p4, %p5545_p3 }
  0x53   :  { %p5548_p6 = pnand %p5547_p5, %p5541_p2 }
  0x55   :  { %5551 = shalt.err (!%p5548_p6)
}
  0x56   :  { %95 = dma.hbm_to_vmem [thread:$0]  %s7545_s7, 8192, %s90_s2, [#allocation9], %s5647_s30, %s5647_s30, %s5648_s0  }
  0x57   :  { %s5661_s21 = smov [#allocation13]   ;;  %s5662_s12 = smov [#allocation16]  }
  0x58   :  { %s115_s5 = sshll.u32 %s5661_s21, 4  ;;  %s143_s3 = sshll.u32 %s5662_s12, 4  ;;  %s116_s5 = int_to_ptr.vmem [resolvable:$true] %s115_s5  ;;  %s144_s3 = int_to_ptr.vmem [resolvable:$true] %s143_s3 }
  0x59   :  { %s5560_s19 = scalar_lea.vmem %s116_s5, 2048  ;;  %p5565_p8 = scmp.lt.s32.totalorder %s116_s5, %s116_s5 }
  0x5a   :  { %p5561_p7 = scmp.ne.s32.totalorder %s116_s5, %s5560_s19  ;;  %p5566_p9 = scmp.lt.s32.totalorder %s5560_s19, %s5560_s19 }
  0x5c   :  { %p5567_p10 = por %p5566_p9, %p5565_p8 }
  0x5e   :  { %p5568_p11 = pnand %p5567_p10, %p5561_p7 }
  0x60   :  { %5571 = shalt.err (!%p5568_p11)
}
  0x61   :  { %121 = dma.hbm_to_vmem [thread:$0]  %s7548_s10, 2048, %s116_s5, [#allocation12], %s5650_s23, %s5650_s23, %s5651_s24  }
  0x62   :  { %s5580_s7 = scalar_lea.vmem %s144_s3, 1024  ;;  %p5585_p13 = scmp.lt.s32.totalorder %s144_s3, %s144_s3 }
  0x63   :  { %p5581_p12 = scmp.ne.s32.totalorder %s144_s3, %s5580_s7  ;;  %p5586_p0 = scmp.lt.s32.totalorder %s5580_s7, %s5580_s7 }
  0x65   :  { %p5587_p1 = por %p5586_p0, %p5585_p13 }
  0x67   :  { %p5588_p2 = pnand %p5587_p1, %p5581_p12 }
  0x69   :  { %5591 = shalt.err (!%p5588_p2)
}
  0x6a   :  { %149 = dma.hbm_to_vmem [thread:$0]  %s7552_s14, 1024, %s144_s3, [#allocation15], %s5650_s23, %s5650_s23, %s5651_s24  }
  0x6b   :  { %s5663_s27 = smov [#allocation17]  }
  0x6c   :  { %s157_s29 = sshll.u32 %s5663_s27, 4  ;;  %s158_s29 = int_to_ptr.vmem [resolvable:$true] %s157_s29 }
  0x6d   :  { %s5600_s1 = scalar_lea.vmem %s158_s29, 8192  ;;  %p5605_p4 = scmp.lt.s32.totalorder %s158_s29, %s158_s29 }
  0x6e   :  { %p5601_p3 = scmp.ne.s32.totalorder %s158_s29, %s5600_s1  ;;  %p5606_p5 = scmp.lt.s32.totalorder %s5600_s1, %s5600_s1 }
  0x70   :  { %p5607_p6 = por %p5606_p5, %p5605_p4 }
  0x72   :  { %p5608_p7 = pnand %p5607_p6, %p5601_p3 }
  0x74   :  { %5611 = shalt.err (!%p5608_p7)
}
  0x75   :  { %163 = dma.hbm_to_vmem [thread:$0]  %s7554_s16, 8192, %s158_s29, [#allocation18], %s5657_s9, %s5657_s9, %s5658_s28  }
  0x76   :  { %5632 = dma.done.wait [#allocation3], 4096  }
  0x77   :  { %5633 = vsyncadd [#allocation3], 4294963200 }
  0x78   :  { %5634 = dma.done.wait [#allocation6], 4096  }
  0x79   :  { %5635 = vsyncadd [#allocation6], 4294963200 }
  0x7a   :  { %5636 = dma.done.wait [#allocation9], 9216  }
  0x7b   :  { %5637 = vsyncadd [#allocation9], 4294958080 }
  0x7c   :  { %5638 = dma.done.wait [#allocation12], 3072  }
  0x7d   :  { %5639 = vsyncadd [#allocation12], 4294964224 }
  0x7e   :  { %5640 = dma.done.wait [#allocation15], 4096  }
  0x7f   :  { %5641 = vsyncadd [#allocation15], 4294963200 }
  0x80   :  { %5642 = dma.done.wait [#allocation18], 8192  }
  0x81   :  { %5643 = vsyncadd [#allocation18], 4294959104  ;;  %v4940_v0 = vld [vmem:[#allocation8 + $0x38] sm:$0xff]   ;;  %v4941_v1 = vld [vmem:[#allocation8 + $0x30] sm:$0xff]   ;;  %s7648_s23 = sld [smem:[#allocation50_spill]] }
  0x82   :  { %4757 = vmatprep.subr.bf16.mxu0 %v4940_v0  ;;  %v4942_v2 = vld [vmem:[#allocation8 + $0x28] sm:$0xff]   ;;  %v4943_v3 = vld [vmem:[#allocation8 + $0x20] sm:$0xff]   ;;  %v4947_v4 = vld [vmem:[#allocation10 + $0x74] ss:$8 sps:$4 sm:$0xff]  }
  0x83   :  { %4758 = vmatpush3.bf16.msra.mxu0 %v4940_v0  ;;  %v4949_v5 = vld [vmem:[#allocation10 + $0x70] ss:$8 sps:$4 sm:$0xff]   ;;  %1009 = vmatprep.subr.bf16.mxu1 %v4947_v4  ;;  %v4951_v6 = vld [vmem:[#allocation10 + $0x64] ss:$8 sps:$4 sm:$0xff]   ;;  %v4953_v7 = vld [vmem:[#allocation10 + $0x60] ss:$8 sps:$4 sm:$0xff]  }
  0x84   :  { %4759 = vmatprep.subr.bf16.mxu0 %v4941_v1  ;;  %1010 = vmatpush1.bf16.msra.mxu1 %v4949_v5  ;;  %v4944_v9 = vld [vmem:[#allocation8 + $0x18] sm:$0xff]   ;;  %v4960_v14 = vld [vmem:[#allocation10 + $0x44] ss:$8 sps:$4 sm:$0xff]   ;;  %v4945_v15 = vld [vmem:[#allocation8 + $0x10] sm:$0xff]  }
  0x85   :  { %1011 = vmatprep.subr.bf16.mxu1 %v4951_v6  ;;  %v4954_v12 = vld [vmem:[#allocation10 + $0x54] ss:$8 sps:$4 sm:$0xff]   ;;  %v4959_v13 = vld [vmem:[#allocation10 + $0x50] ss:$8 sps:$4 sm:$0xff]   ;;  %v4965_v16 = vld [vmem:[#allocation10 + $0x40] ss:$8 sps:$4 sm:$0xff]  }
  0x86   :  { %v4966_v17 = vld [vmem:[#allocation10 + $0x34] ss:$8 sps:$4 sm:$0xff]   ;;  %v4946_v18 = vld [vmem:[#allocation8 + $0x8] sm:$0xff]   ;;  %v4971_v19 = vld [vmem:[#allocation10 + $0x30] ss:$8 sps:$4 sm:$0xff]  }
  0x87   :  { %4760 = vmatpush3.bf16.msra.mxu0 %v4941_v1  ;;  %v197_v8 = vld [vmem:[%s7648_s23] sm:$0xff]  ;;  %v198_v10 = vld [vmem:[%s7648_s23 + $0x8] sm:$0xff]  ;;  %v199_v23 = vld [vmem:[%s7648_s23 + $0x10] sm:$0xff] }
  0x88   :  { %4761 = vmatprep.subr.bf16.mxu0 %v4942_v2  ;;  %v261_v11 = vpack.c.bf16 %v198_v10, %v197_v8  ;;  %1012 = vmatpush1.bf16.msra.mxu1 %v4953_v7  ;;  %v4972_v20 = vld [vmem:[#allocation10 + $0x24] ss:$8 sps:$4 sm:$0xff]   ;;  %v4977_v22 = vld [vmem:[#allocation10 + $0x20] ss:$8 sps:$4 sm:$0xff]   ;;  %v200_v24 = vld [vmem:[%s7648_s23 + $0x18] sm:$0xff] }
  0x89   :  { %1013 = vmatprep.subr.bf16.mxu1 %v4954_v12  ;;  %v4950_v21 = vld [vmem:[#allocation8] sm:$0xff]   ;;  %v4978_v25 = vld [vmem:[#allocation10 + $0x14] ss:$8 sps:$4 sm:$0xff]   ;;  %v262_v27 = vpack.c.bf16 %v200_v24, %v199_v23  ;;  %v4983_v28 = vld [vmem:[#allocation10 + $0x10] ss:$8 sps:$4 sm:$0xff]  }
  0x8a   :  { %4773 = vmatprep.mubr.bf16.mxu0 %v261_v11  ;;  %v4958_v26 = vld [vmem:[#allocation10 + $0x174] ss:$8 sps:$4 sm:$0xff]   ;;  %v201_v29 = vld [vmem:[%s7648_s23 + $0x20] sm:$0xff]  ;;  %v4956_v30 = vld [vmem:[#allocation10 + $0x170] ss:$8 sps:$4 sm:$0xff]  }
  0x8b   :  { %4762 = vmatpush3.bf16.msra.mxu0 %v4942_v2  ;;  %v4984_v31 = vld [vmem:[#allocation10 + $0x4] ss:$8 sps:$4 sm:$0xff]   ;;  %v4962_v35 = vld [vmem:[#allocation10 + $0x160] ss:$8 sps:$4 sm:$0xff]   ;;  %v4990_v37 = vld [vmem:[#allocation10 + $0xf4] ss:$8 sps:$4 sm:$0xff]  }
  0x8c   :  { %4763 = vmatprep.subr.bf16.mxu0 %v4943_v3  ;;  %1014 = vmatpush1.bf16.msra.mxu1 %v4959_v13  ;;  %v202_v32 = vld [vmem:[%s7648_s23 + $0x28] sm:$0xff]  ;;  %v203_v38 = vld [vmem:[%s7648_s23 + $0x30] sm:$0xff]  ;;  %v204_v39 = vld [vmem:[%s7648_s23 + $0x38] sm:$0xff] }
  0x8d   :  { %1015 = vmatprep.subr.bf16.mxu1 %v4960_v14  ;;  %v4964_v33 = vld [vmem:[#allocation10 + $0x164] ss:$8 sps:$4 sm:$0xff]   ;;  %v263_v34 = vpack.c.bf16 %v202_v32, %v201_v29  ;;  %v4989_v36 = vld [vmem:[#allocation10] ss:$8 sps:$4 sm:$0xff]   ;;  %v4970_v40 = vld [vmem:[#allocation10 + $0x154] ss:$8 sps:$4 sm:$0xff]   ;;  %v264_v45 = vpack.c.bf16 %v204_v39, %v203_v38 }
  0x8e   :  { %v205_v41 = vld [vmem:[%s7648_s23 + $0x40] sm:$0xff]  ;;  %v206_v42 = vld [vmem:[%s7648_s23 + $0x48] sm:$0xff]  ;;  %v4968_v43 = vld [vmem:[#allocation10 + $0x150] ss:$8 sps:$4 sm:$0xff]  }
  0x8f   :  { %4764 = vmatpush3.bf16.msra.mxu0 %v4943_v3  ;;  %v4995_v44 = vld [vmem:[#allocation10 + $0xf0] ss:$8 sps:$4 sm:$0xff]   ;;  %v4996_v46 = vld [vmem:[#allocation10 + $0xe4] ss:$8 sps:$4 sm:$0xff]   ;;  %v265_v48 = vpack.c.bf16 %v206_v42, %v205_v41  ;;  %v4974_v49 = vld [vmem:[#allocation10 + $0x140] ss:$8 sps:$4 sm:$0xff]  }
  0x90   :  { %4765 = vmatprep.subr.bf16.mxu0 %v4944_v9  ;;  %1016 = vmatpush1.bf16.msra.mxu1 %v4965_v16  ;;  %v4976_v47 = vld [vmem:[#allocation10 + $0x144] ss:$8 sps:$4 sm:$0xff]   ;;  %v5001_v50 = vld [vmem:[#allocation10 + $0xe0] ss:$8 sps:$4 sm:$0xff]   ;;  %v5002_v51 = vld [vmem:[#allocation10 + $0xd4] ss:$8 sps:$4 sm:$0xff]  }
  0x91   :  { %1017 = vmatprep.subr.bf16.mxu1 %v4966_v17  ;;  %v207_v52 = vld [vmem:[%s7648_s23 + $0x50] sm:$0xff]  ;;  %v208_v53 = vld [vmem:[%s7648_s23 + $0x58] sm:$0xff]  ;;  %v209_v55 = vld [vmem:[%s7648_s23 + $0x60] sm:$0xff] }
  0x92   :  { %v4982_v54 = vld [vmem:[#allocation10 + $0x134] ss:$8 sps:$4 sm:$0xff]   ;;  %v210_v56 = vld [vmem:[%s7648_s23 + $0x68] sm:$0xff]  ;;  %v5007_v57 = vld [vmem:[#allocation10 + $0xd0] ss:$8 sps:$4 sm:$0xff]   ;;  %v266_v58 = vpack.c.bf16 %v208_v53, %v207_v52 }
  0x93   :  { %4766 = vmatpush3.bf16.msra.mxu0 %v4944_v9  ;;  %v4980_v59 = vld [vmem:[#allocation10 + $0x130] ss:$8 sps:$4 sm:$0xff]   ;;  %v5008_v60 = vld [vmem:[#allocation10 + $0xc4] ss:$8 sps:$4 sm:$0xff]   ;;  %v267_v62 = vpack.c.bf16 %v210_v56, %v209_v55  ;;  %v4986_v63 = vld [vmem:[#allocation10 + $0x120] ss:$8 sps:$4 sm:$0xff]  }
  0x94   :  { %4767 = vmatprep.subr.bf16.mxu0 %v4945_v15  ;;  %1018 = vmatpush1.bf16.msra.mxu1 %v4971_v19  ;;  %v4988_v61 = vld [vmem:[#allocation10 + $0x124] ss:$8 sps:$4 sm:$0xff]   ;;  %v5013_v0 = vld [vmem:[#allocation10 + $0xc0] ss:$8 sps:$4 sm:$0xff]   ;;  %v5014_v1 = vld [vmem:[#allocation10 + $0xb4] ss:$8 sps:$4 sm:$0xff]  }
  0x95   :  { %1019 = vmatprep.subr.bf16.mxu1 %v4972_v20  ;;  %v211_v2 = vld [vmem:[%s7648_s23 + $0x70] sm:$0xff]  ;;  %v212_v3 = vld [vmem:[%s7648_s23 + $0x78] sm:$0xff]  ;;  %v213_v6 = vld [vmem:[#allocation2] sm:$0xff] }
  0x96   :  { %v4994_v4 = vld [vmem:[#allocation10 + $0x114] ss:$8 sps:$4 sm:$0xff]   ;;  %v4992_v5 = vld [vmem:[#allocation10 + $0x110] ss:$8 sps:$4 sm:$0xff]   ;;  %v268_v9 = vpack.c.bf16 %v212_v3, %v211_v2  ;;  %v5020_v11 = vld [vmem:[#allocation10 + $0xa4] ss:$8 sps:$4 sm:$0xff]  }
  0x97   :  { %4768 = vmatpush3.bf16.msra.mxu0 %v4945_v15  ;;  %v215_v7 = vld [vmem:[#allocation2 + $0x10] sm:$0xff]  ;;  %v5000_v12 = vld [vmem:[#allocation10 + $0x104] ss:$8 sps:$4 sm:$0xff]   ;;  %v5869_v14 = vld [vmem:[#allocation2 + $0x18] sm:$0xff] }
  0x98   :  { %4769 = vmatprep.subr.bf16.mxu0 %v4946_v18  ;;  %1020 = vmatpush1.bf16.msra.mxu1 %v4977_v22  ;;  %v5019_v8 = vld [vmem:[#allocation10 + $0xb0] ss:$8 sps:$4 sm:$0xff]   ;;  %v4380_v10 = vcombine.high %v213_v6, %v215_v7  ;;  %v5867_v13 = vld [vmem:[#allocation2 + $0x8] sm:$0xff]  ;;  %v5006_v19 = vld [vmem:[#allocation10 + $0x1f4] ss:$8 sps:$4 sm:$0xff]   ;;  %v4379_v29 = vcombine.low %v213_v6, %v215_v7 }
  0x99   :  { %1021 = vmatprep.subr.bf16.mxu1 %v4978_v25  ;;  %v5025_v15 = vld [vmem:[#allocation10 + $0xa0] ss:$8 sps:$4 sm:$0xff]   ;;  %v4382_v16 = vcombine.high %v5867_v13, %v5869_v14  ;;  %v5031_v20 = vld [vmem:[#allocation10 + $0x90] ss:$8 sps:$4 sm:$0xff]   ;;  %v5032_v22 = vld [vmem:[#allocation10 + $0x84] ss:$8 sps:$4 sm:$0xff]   ;;  %v4381_v56 = vcombine.low %v5867_v13, %v5869_v14 }
  0x9a   :  { %1041 = vmatprep.mubr.bf16.mxu1 %v4380_v10  ;;  %v4998_v17 = vld [vmem:[#allocation10 + $0x100] ss:$8 sps:$4 sm:$0xff]   ;;  %v5012_v23 = vld [vmem:[#allocation10 + $0x1e4] ss:$8 sps:$4 sm:$0xff]   ;;  %v220_v53 = vld [vmem:[#allocation2 + $0x38] sm:$0xff] }
  0x9b   :  { %4770 = vmatpush3.bf16.msra.mxu0 %v4946_v18  ;;  %v5026_v18 = vld [vmem:[#allocation10 + $0x94] ss:$8 sps:$4 sm:$0xff]   ;;  %v5010_v24 = vld [vmem:[#allocation10 + $0x1e0] ss:$8 sps:$4 sm:$0xff]   ;;  %v5024_v32 = vld [vmem:[#allocation10 + $0x1c4] ss:$8 sps:$4 sm:$0xff]  }
  0x9c   :  { %4771 = vmatprep.subr.bf16.mxu0 %v4950_v21  ;;  %1022 = vmatpush1.bf16.msra.mxu1 %v4983_v28  ;;  %v5037_v25 = vld [vmem:[#allocation10 + $0x80] ss:$8 sps:$4 sm:$0xff]   ;;  %v5018_v28 = vld [vmem:[#allocation10 + $0x1d4] ss:$8 sps:$4 sm:$0xff]   ;;  %v5036_v39 = vld [vmem:[#allocation10 + $0x1a4] ss:$8 sps:$4 sm:$0xff]  }
  0x9d   :  { %1023 = vmatprep.subr.bf16.mxu1 %v4984_v31  ;;  %v5034_v41 = vld [vmem:[#allocation10 + $0x1a0] ss:$8 sps:$4 sm:$0xff]   ;;  %v239_v7 = vld [vmem:[#allocation2 + $0xd0] sm:$0xff]  ;;  %v5080_v10 = vld [vmem:[#allocation11 + $0x18] sm:$0xff]  }
  0x9e   :  { %v225_v42 = vld [vmem:[#allocation2 + $0x60] sm:$0xff]  ;;  %v218_v52 = vld [vmem:[#allocation2 + $0x28] sm:$0xff] }
  0x9f   :  { %4772 = vmatpush3.bf16.msra.mxu0 %v4950_v21  ;;  %v5004_v21 = vld [vmem:[#allocation10 + $0x1f0] ss:$8 sps:$4 sm:$0xff]   ;;  %v4385_v2 = vcombine.low %v218_v52, %v220_v53  ;;  %v237_v6 = vld [vmem:[#allocation2 + $0xc0] sm:$0xff] }
  0xa0   :  { %1122 = vmatprep.subr.bf16.mxu0 %v4958_v26  ;;  %1024 = vmatpush1.bf16.msra.mxu1 %v4989_v36  ;;  %v217_v26 = vld [vmem:[#allocation2 + $0x20] sm:$0xff]  ;;  %v5030_v36 = vld [vmem:[#allocation10 + $0x1b4] ss:$8 sps:$4 sm:$0xff]   ;;  %v4404_v14 = vcombine.high %v237_v6, %v239_v7 }
  0xa1   :  { %1025 = vmatprep.subr.bf16.mxu1 %v4990_v37  ;;  %v5028_v37 = vld [vmem:[#allocation10 + $0x1b0] ss:$8 sps:$4 sm:$0xff]  }
  0xa2   :  { %4774 = vmatmul.mubr.bf16.vlgmr.msra.gmra.mxu0 %v262_v27  ;;  %v219_v27 = vld [vmem:[#allocation2 + $0x30] sm:$0xff] }
  0xa3   :  { %1123 = vmatpush1.bf16.msra.mxu0 %v4956_v30  ;;  %4777 = vmatprep.mubr.bf16.mxu0 %v263_v34  ;;  %v5016_v30 = vld [vmem:[#allocation10 + $0x1d0] ss:$8 sps:$4 sm:$0xff]   ;;  %v4384_v31 = vcombine.high %v217_v26, %v219_v27  ;;  %v221_v34 = vld [vmem:[#allocation2 + $0x40] sm:$0xff]  ;;  %v4383_v38 = vcombine.low %v217_v26, %v219_v27  ;;  %v4403_v26 = vcombine.low %v237_v6, %v239_v7  ;;  %v5938_v6 = vld [vmem:[%s7542_s4 + $0x28] sm:$0xff] }
  0xa4   :  { %1124 = vmatprep.subr.bf16.mxu0 %v4964_v33  ;;  %1026 = vmatpush2.bf16.msra.mxu1 %v4995_v44  ;;  %v5022_v33 = vld [vmem:[#allocation10 + $0x1c0] ss:$8 sps:$4 sm:$0xff]   ;;  %v5042_v44 = vld [vmem:[#allocation10 + $0x194] ss:$8 sps:$4 sm:$0xff]   ;;  %7654 = vst [vmem:[#allocation32_spill] sm:$0xff] %v5938_v6  ;;  %vm7565_vm9 = vcmp.eq.s32.totalorder %v5938_v6, 1 }
  0xa5   :  { %1027 = vmatprep.subr.bf16.mxu1 %v4996_v46  ;;  %vm1721_vm11 = vcmp.eq.s32.totalorder %v5938_v6, 0 }
  0xa7   :  { %1125 = vmatpush1.bf16.msra.mxu0 %v4962_v35  ;;  %v223_v35 = vld [vmem:[#allocation2 + $0x50] sm:$0xff] }
  0xa8   :  { %1126 = vmatprep.subr.bf16.mxu0 %v4970_v40  ;;  %1028 = vmatpush2.bf16.msra.mxu1 %v5001_v50  ;;  %v4388_v40 = vcombine.high %v221_v34, %v223_v35  ;;  %v4387_v46 = vcombine.low %v221_v34, %v223_v35  ;;  %v229_v50 = vld [vmem:[#allocation2 + $0x80] sm:$0xff]  ;;  %v236_v34 = vld [vmem:[#allocation2 + $0xb8] sm:$0xff] }
  0xa9   :  { %1029 = vmatprep.subr.bf16.mxu1 %v5002_v51  ;;  %v231_v51 = vld [vmem:[#allocation2 + $0x90] sm:$0xff]  ;;  %v5091_v35 = vld [vmem:[#allocation13 + $0x20] sm:$0xff]  }
  0xaa   :  { %4778 = vmatmul.mubr.bf16.gmra.mxu0 %v264_v45  ;;  %v5040_v45 = vld [vmem:[#allocation10 + $0x190] ss:$8 sps:$4 sm:$0xff]  }
  0xab   :  { %1127 = vmatpush1.bf16.msra.mxu0 %v4968_v43  ;;  %4781 = vmatprep.mubr.bf16.mxu0 %v265_v48  ;;  %v227_v43 = vld [vmem:[#allocation2 + $0x70] sm:$0xff] }
  0xac   :  { %1128 = vmatprep.subr.bf16.mxu0 %v4976_v47  ;;  %1030 = vmatpush2.bf16.msra.mxu1 %v5007_v57  ;;  %v5045_v47 = vld [vmem:[#allocation10 + $0x184] ss:$8 sps:$4 sm:$0xff]   ;;  %v4392_v48 = vcombine.high %v225_v42, %v227_v43  ;;  %v4391_v55 = vcombine.low %v225_v42, %v227_v43  ;;  %v4396_v57 = vcombine.high %v229_v50, %v231_v51  ;;  %v240_v43 = vld [vmem:[#allocation2 + $0xd8] sm:$0xff] }
  0xad   :  { %1031 = vmatprep.subr.bf16.mxu1 %v5008_v60  ;;  %v233_v60 = vld [vmem:[#allocation2 + $0xa0] sm:$0xff]  ;;  %v238_v42 = vld [vmem:[#allocation2 + $0xc8] sm:$0xff] }
  0xaf   :  { %1129 = vmatpush1.bf16.msra.mxu0 %v4974_v49  ;;  %v5043_v49 = vld [vmem:[#allocation10 + $0x180] ss:$8 sps:$4 sm:$0xff]  }
  0xb0   :  { %1130 = vmatprep.subr.bf16.mxu0 %v4982_v54  ;;  %1032 = vmatpush2.bf16.msra.mxu1 %v5013_v0  ;;  %v5076_v54 = vld [vmem:[#allocation11 + $0x38] sm:$0xff]   ;;  %v5078_v0 = vld [vmem:[#allocation11 + $0x28] sm:$0xff]  }
  0xb1   :  { %1033 = vmatprep.subr.bf16.mxu1 %v5014_v1  ;;  %v4395_v1 = vcombine.low %v229_v50, %v231_v51  ;;  %v5096_v50 = vld [vmem:[#allocation13 + $0x48] sm:$0xff]  }
  0xb2   :  { %4782 = vmatmul.mubr.bf16.gmra.mxu0 %v266_v58  ;;  %v5077_v58 = vld [vmem:[#allocation11 + $0x30] sm:$0xff]  }
  0xb3   :  { %1131 = vmatpush1.bf16.msra.mxu0 %v4980_v59  ;;  %4785 = vmatprep.mubr.bf16.mxu0 %v267_v62  ;;  %v4386_v59 = vcombine.high %v218_v52, %v220_v53  ;;  %v224_v62 = vld [vmem:[#allocation2 + $0x58] sm:$0xff]  ;;  %v5097_v52 = vld [vmem:[#allocation13 + $0x8] sm:$0xff]  }
  0xb4   :  { %1132 = vmatprep.subr.bf16.mxu0 %v4988_v61  ;;  %1034 = vmatpush2.bf16.msra.mxu1 %v5019_v8  ;;  %v222_v61 = vld [vmem:[#allocation2 + $0x48] sm:$0xff] }
  0xb5   :  { %1035 = vmatprep.subr.bf16.mxu1 %v5020_v11  ;;  %v226_v8 = vld [vmem:[#allocation2 + $0x68] sm:$0xff]  ;;  %v5084_v11 = vld [vmem:[#allocation13 + $0x78] sm:$0xff]   ;;  %v4389_v13 = vcombine.low %v222_v61, %v224_v62 }
  0xb7   :  { %1133 = vmatpush1.bf16.msra.mxu0 %v4986_v63  ;;  %v235_v63 = vld [vmem:[#allocation2 + $0xb0] sm:$0xff] }
  0xb8   :  { %1134 = vmatprep.subr.bf16.mxu0 %v4994_v4  ;;  %1036 = vmatpush2.bf16.msra.mxu1 %v5025_v15  ;;  %v4400_v3 = vcombine.high %v233_v60, %v235_v63  ;;  %v5079_v4 = vld [vmem:[#allocation11 + $0x20] sm:$0xff]  }
  0xb9   :  { %1037 = vmatprep.subr.bf16.mxu1 %v5026_v18  ;;  %v241_v18 = vld [vmem:[#allocation2 + $0xe0] sm:$0xff] }
  0xba   :  { %4786 = vmatmul.mubr.bf16.gmra.mxu0 %v268_v9  ;;  %v228_v9 = vld [vmem:[#allocation2 + $0x78] sm:$0xff] }
  0xbb   :  { %1135 = vmatpush1.bf16.msra.mxu0 %v4992_v5  ;;  %1154 = vmatprep.mubr.bf16.mxu0 %v4382_v16  ;;  %v4390_v5 = vcombine.high %v222_v61, %v224_v62  ;;  %v4394_v15 = vcombine.high %v226_v8, %v228_v9  ;;  %v5081_v16 = vld [vmem:[#allocation11 + $0x10] sm:$0xff]   ;;  %v4393_v27 = vcombine.low %v226_v8, %v228_v9 }
  0xbc   :  { %1136 = vmatprep.subr.bf16.mxu0 %v5000_v12  ;;  %1038 = vmatpush2.bf16.msra.mxu1 %v5031_v20  ;;  %v4399_v12 = vcombine.low %v233_v60, %v235_v63  ;;  %v5086_v20 = vld [vmem:[#allocation13 + $0x70] sm:$0xff]   ;;  %v5893_v60 = vld [vmem:[%s7542_s4 + $0x8] sm:$0xff] }
  0xbd   :  { %1039 = vmatprep.subr.bf16.mxu1 %v5032_v22  ;;  %v232_v22 = vld [vmem:[#allocation2 + $0x98] sm:$0xff]  ;;  %7650 = vst [vmem:[#allocation28_spill] sm:$0xff] %v5893_v60  ;;  %vm7563_vm2 = vcmp.eq.s32.totalorder %v5893_v60, 1  ;;  %vm1717_vm3 = vcmp.eq.s32.totalorder %v5893_v60, 0  ;;  %v5906_v63 = vld [vmem:[%s7542_s4 + $0x10] sm:$0xff] }
  0xbe   :  { %7651 = vst [vmem:[#allocation29_spill] sm:$0xff] %v5906_v63  ;;  %vm7560_vm4 = vcmp.eq.s32.totalorder %v5906_v63, 1  ;;  %vm1718_vm6 = vcmp.eq.s32.totalorder %v5906_v63, 0 }
  0xbf   :  { %1137 = vmatpush1.bf16.msra.mxu0 %v4998_v17  ;;  %v5085_v17 = vld [vmem:[#allocation13 + $0x38] sm:$0xff]  }
  0xc0   :  { %1138 = vmatprep.subr.bf16.mxu0 %v5006_v19  ;;  %1040 = vmatpush2.bf16.msra.mxu1 %v5037_v25  ;;  %v243_v19 = vld [vmem:[#allocation2 + $0xf0] sm:$0xff]  ;;  %v5088_v25 = vld [vmem:[#allocation13 + $0x68] sm:$0xff]  }
  0xc1   :  { %4645 = vmatprep.subr.bf16.mxu1 %v5084_v11  ;;  %v5958_v11 = vld [vmem:[%s7542_s4 + $0x30] sm:$0xff] }
  0xc2   :  { %7655 = vst [vmem:[#allocation33_spill] sm:$0xff] %v5958_v11  ;;  %vm7564_vm12 = vcmp.eq.s32.totalorder %v5958_v11, 1  ;;  %vm1722_vm14 = vcmp.eq.s32.totalorder %v5958_v11, 0 }
  0xc3   :  { %1139 = vmatpush2.bf16.msra.mxu0 %v5004_v21  ;;  %1042 = vmatmul.mubr.bf16.vlgmr.msra.gmra.mxu1 %v4379_v29  ;;  %v230_v21 = vld [vmem:[#allocation2 + $0x88] sm:$0xff]  ;;  %v5083_v29 = vld [vmem:[#allocation11] sm:$0xff]  }
  0xc4   :  { %1140 = vmatprep.subr.bf16.mxu0 %v5012_v23  ;;  %1051 = vmatprep.mubr.bf16.mxu1 %v4384_v31  ;;  %v5082_v23 = vld [vmem:[#allocation11 + $0x8] sm:$0xff]  }
  0xc5   :  { %4646 = vmatpush3.bf16.msra.mxu1 %v5085_v17  ;;  %v5089_v31 = vld [vmem:[#allocation13 + $0x28] sm:$0xff]   ;;  %v5984_v17 = vld [vmem:[%s7542_s4 + $0x40] sm:$0xff] }
  0xc6   :  { %4647 = vmatprep.subr.bf16.mxu1 %v5086_v20  ;;  %7657 = vst [vmem:[#allocation35_spill] sm:$0xff] %v5984_v17 }
  0xc7   :  { %1141 = vmatpush2.bf16.msra.mxu0 %v5010_v24  ;;  %v5087_v24 = vld [vmem:[#allocation13 + $0x30] sm:$0xff]  }
  0xc8   :  { %1142 = vmatprep.subr.bf16.mxu0 %v5018_v28  ;;  %v4408_v28 = vcombine.high %v241_v18, %v243_v19 }
  0xc9   :  { %4648 = vmatpush3.bf16.msra.mxu1 %v5087_v24 }
  0xca   :  { %4649 = vmatprep.subr.bf16.mxu1 %v5088_v25 }
  0xcb   :  { %1143 = vmatpush2.bf16.msra.mxu0 %v5016_v30  ;;  %1052 = vmatmul.mubr.bf16.gmra.mxu1 %v4383_v38  ;;  %v4398_v30 = vcombine.high %v230_v21, %v232_v22 }
  0xcc   :  { %1144 = vmatprep.subr.bf16.mxu0 %v5024_v32  ;;  %1061 = vmatprep.mubr.bf16.mxu1 %v4388_v40  ;;  %v5090_v32 = vld [vmem:[#allocation13 + $0x60] sm:$0xff]   ;;  %v5093_v40 = vld [vmem:[#allocation13 + $0x18] sm:$0xff]  }
  0xcd   :  { %4650 = vmatpush3.bf16.msra.mxu1 %v5089_v31 }
  0xce   :  { %4651 = vmatprep.subr.bf16.mxu1 %v5090_v32  ;;  %v6030_v32 = vld [vmem:[%s7542_s4 + $0x58] sm:$0xff] }
  0xcf   :  { %1145 = vmatpush2.bf16.msra.mxu0 %v5022_v33  ;;  %v234_v33 = vld [vmem:[#allocation2 + $0xa8] sm:$0xff]  ;;  %7660 = vst [vmem:[#allocation38_spill] sm:$0xff] %v6030_v32 }
  0xd0   :  { %1146 = vmatprep.subr.bf16.mxu0 %v5030_v36  ;;  %v4407_v36 = vcombine.low %v241_v18, %v243_v19  ;;  %v4402_v38 = vcombine.high %v234_v33, %v236_v34  ;;  %v5990_v18 = vld [vmem:[%s7542_s4 + $0x48] sm:$0xff] }
  0xd1   :  { %4652 = vmatpush3.bf16.msra.mxu1 %v5091_v35  ;;  %7658 = vst [vmem:[#allocation36_spill] sm:$0xff] %v5990_v18  ;;  %v6043_v35 = vld [vmem:[%s7542_s4 + $0x60] sm:$0xff] }
  0xd2   :  { %7661 = vst [vmem:[#allocation39_spill] sm:$0xff] %v6043_v35 }
  0xd3   :  { %1147 = vmatpush2.bf16.msra.mxu0 %v5028_v37  ;;  %1062 = vmatmul.mubr.bf16.gmra.mxu1 %v4387_v46  ;;  %v4397_v37 = vcombine.low %v230_v21, %v232_v22  ;;  %v4406_v46 = vcombine.high %v238_v42, %v240_v43  ;;  %v6002_v22 = vld [vmem:[%s7544_s6] ss:$0 sm:$0xff] }
  0xd4   :  { %1148 = vmatprep.subr.bf16.mxu0 %v5036_v39  ;;  %1071 = vmatprep.mubr.bf16.mxu1 %v4392_v48  ;;  %v5092_v39 = vld [vmem:[#allocation13 + $0x58] sm:$0xff]  }
  0xd5   :  { %4653 = vmatprep.subr.bf16.mxu1 %v5092_v39  ;;  %v244_v48 = vld [vmem:[#allocation2 + $0xf8] sm:$0xff]  ;;  %v6053_v39 = vld [vmem:[%s7542_s4 + $0x68] sm:$0xff] }
  0xd6   :  { %4654 = vmatpush3.bf16.msra.mxu1 %v5093_v40  ;;  %7662 = vst [vmem:[#allocation40_spill] sm:$0xff] %v6053_v39 }
  0xd7   :  { %1149 = vmatpush2.bf16.msra.mxu0 %v5034_v41  ;;  %v5094_v41 = vld [vmem:[#allocation13 + $0x50] sm:$0xff]  }
  0xd8   :  { %1150 = vmatprep.subr.bf16.mxu0 %v5042_v44  ;;  %v5095_v44 = vld [vmem:[#allocation13 + $0x10] sm:$0xff]   ;;  %4655 = vmatprep.subr.bf16.mxu1 %v5094_v41 }
  0xda   :  { %4656 = vmatpush3.bf16.msra.mxu1 %v5095_v44 }
  0xdb   :  { %1151 = vmatpush2.bf16.msra.mxu0 %v5040_v45  ;;  %1072 = vmatmul.mubr.bf16.gmra.mxu1 %v4391_v55  ;;  %v4401_v45 = vcombine.low %v234_v33, %v236_v34  ;;  %v5099_v55 = vld [vmem:[#allocation13] sm:$0xff]  }
  0xdc   :  { %1152 = vmatprep.subr.bf16.mxu0 %v5045_v47  ;;  %1081 = vmatprep.mubr.bf16.mxu1 %v4396_v57  ;;  %v242_v47 = vld [vmem:[#allocation2 + $0xe8] sm:$0xff]  ;;  %v7588_v57 = vmov 0  }
  0xdd   :  { %v4410_v51 = vcombine.high %v242_v47, %v244_v48  ;;  %4657 = vmatprep.subr.bf16.mxu1 %v5096_v50  ;;  %v4409_v53 = vcombine.low %v242_v47, %v244_v48  ;;  %4938 = vset.pattern.permute.xlu0 %v7588_v57  ;;  %v1749_v61 = vsel %vm7563_vm2, 1, %v7588_v57  ;;  %v1845_v62 = vsel %vm1717_vm3, 1, %v7588_v57 }
  0xde   :  { %4658 = vmatpush3.bf16.msra.mxu1 %v5097_v52  ;;  %4939 = vset.pattern.permute.xlu1 %v7588_v57  ;;  %v1753_v8 = vsel %vm7565_vm9, 1, %v7588_v57  ;;  %vm1727_vm9 = vcmp.eq.s32.totalorder %v6030_v32, 0 }
  0xdf   :  { %1153 = vmatpush2.bf16.msra.mxu0 %v5043_v49  ;;  %v4405_v49 = vcombine.low %v238_v42, %v240_v43 }
  0xe0   :  { %4789 = vmatprep.subr.bf16.mxu0 %v5076_v54 }
  0xe2   :  { %1155 = vmatmul.mubr.bf16.vlgmr.msra.gmra.mxu0 %v4381_v56  ;;  %v5878_v56 = vld [vmem:[%s7542_s4] sm:$0xff] }
  0xe3   :  { %1164 = vmatprep.mubr.bf16.mxu0 %v4386_v59  ;;  %4790 = vmatpush3.bf16.msra.mxu0 %v5076_v54  ;;  %v5098_v54 = vld [vmem:[#allocation13 + $0x40] sm:$0xff]   ;;  %7649 = vst [vmem:[#allocation27_spill] sm:$0xff] %v5878_v56  ;;  %vm7568_vm0 = vcmp.eq.s32.totalorder %v5878_v56, 1  ;;  %vm1716_vm1 = vcmp.eq.s32.totalorder %v5878_v56, 0 }
  0xe4   :  { %4791 = vmatprep.subr.bf16.mxu0 %v5077_v58  ;;  %1082 = vmatmul.mubr.bf16.gmra.mxu1 %v4395_v1  ;;  %v1844_v59 = vsel %vm1716_vm1, 1, %v7588_v57  ;;  %v1750_v1 = vsel %vm7560_vm4, 1, %v7588_v57  ;;  %vm1724_vm4 = vcmp.eq.s32.totalorder %v5984_v17, 0 }
  0xe5   :  { %1091 = vmatprep.mubr.bf16.mxu1 %v4400_v3  ;;  %4659 = vmatprep.subr.bf16.mxu1 %v5098_v54  ;;  %v1846_v3 = vsel %vm1718_vm6, 1, %v7588_v57  ;;  %v1852_v24 = vsel %vm1724_vm4, 1, %v7588_v57 }
  0xe6   :  { %4660 = vmatpush3.bf16.msra.mxu1 %v5099_v55  ;;  %1861 = vperm.xlu1 %4939, %v1844_v59  }
  0xe7   :  { %4792 = vmatpush3.bf16.msra.mxu0 %v5077_v58  ;;  %v1748_v58 = vsel %vm7568_vm0, 1, %v7588_v57  ;;  %vm7573_vm0 = vcmp.eq.s32.totalorder %v6043_v35, 0 }
  0xe8   :  { %4793 = vmatprep.subr.bf16.mxu0 %v5078_v0  ;;  %1765 = vperm.xlu0 %4938, %v1748_v58  }
  0xea   :  { %1165 = vmatmul.mubr.bf16.gmra.mxu0 %v4385_v2  ;;  %1864 = vperm.xlu1 %4939, %v1845_v62   ;;  %v6100_v62 = vld [vmem:[%s7542_s4 + $0x70] sm:$0xff] }
  0xeb   :  { %1174 = vmatprep.mubr.bf16.mxu0 %v4390_v5  ;;  %4794 = vmatpush3.bf16.msra.mxu0 %v5078_v0  ;;  %v5912_v0 = vld [vmem:[%s7542_s4 + $0x18] sm:$0xff]  ;;  %v5932_v5 = vld [vmem:[%s7542_s4 + $0x20] sm:$0xff]  ;;  %7663 = vst [vmem:[#allocation41_spill] sm:$0xff] %v6100_v62 }
  0xec   :  { %4795 = vmatprep.subr.bf16.mxu0 %v5079_v4  ;;  %1092 = vmatmul.mubr.bf16.gmra.mxu1 %v4399_v12  ;;  %7652 = vst [vmem:[#allocation30_spill] sm:$0xff] %v5912_v0  ;;  %vm7558_vm5 = vcmp.eq.s32.totalorder %v5912_v0, 1  ;;  %vm1719_vm7 = vcmp.eq.s32.totalorder %v5912_v0, 0  ;;  %7653 = vst [vmem:[#allocation31_spill] sm:$0xff] %v5932_v5  ;;  %vm7569_vm8 = vcmp.eq.s32.totalorder %v5932_v5, 1  ;;  %vm1720_vm10 = vcmp.eq.s32.totalorder %v5932_v5, 0 }
  0xed   :  { %1101 = vmatprep.mubr.bf16.mxu1 %v4404_v14  ;;  %1768 = vperm.xlu0 %4938, %v1749_v61   ;;  %v1751_v2 = vsel %vm7558_vm5, 1, %v7588_v57  ;;  %v1752_v7 = vsel %vm7569_vm8, 1, %v7588_v57  ;;  %v1848_v9 = vsel %vm1720_vm10, 1, %v7588_v57  ;;  %v5964_v12 = vld [vmem:[%s7542_s4 + $0x38] sm:$0xff]  ;;  %vm7561_vm5 = vcmp.eq.s32.totalorder %v5984_v17, 1 }
  0xee   :  { %1774 = vperm.xlu1 %4939, %v1751_v2   ;;  %7656 = vst [vmem:[#allocation34_spill] sm:$0xff] %v5964_v12  ;;  %vm7559_vm13 = vcmp.eq.s32.totalorder %v5964_v12, 1  ;;  %vm1723_vm15 = vcmp.eq.s32.totalorder %v5964_v12, 0  ;;  %v1756_v19 = vsel %vm7561_vm5, 1, %v7588_v57  ;;  %vm1725_vm5 = vcmp.eq.s32.totalorder %v5990_v18, 0  ;;  %v6105_v2 = vld [vmem:[%s7542_s4 + $0x78] sm:$0xff] }
  0xef   :  { %4796 = vmatpush3.bf16.msra.mxu0 %v5079_v4  ;;  %v1847_v4 = vsel %vm1719_vm7, 1, %v7588_v57  ;;  %v1755_v14 = vsel %vm7559_vm13, 1, %v7588_v57  ;;  %vm7562_vm13 = vcmp.eq.s32.totalorder %v5990_v18, 1  ;;  %vm7572_vm8 = vcmp.eq.s32.totalorder %v6053_v39, 0  ;;  %7664 = vst [vmem:[#allocation42_spill] sm:$0xff] %v6105_v2 }
  0xf0   :  { %4797 = vmatprep.subr.bf16.mxu0 %v5080_v10  ;;  %v1757_v21 = vsel %vm7562_vm13, 1, %v7588_v57 }
  0xf1   :  { %1771 = vperm.xlu0 %4938, %v1750_v1  }
  0xf2   :  { %1175 = vmatmul.mubr.bf16.gmra.mxu0 %v4389_v13  ;;  %1870 = vperm.xlu1 %4939, %v1847_v4   ;;  %v1754_v13 = vsel %vm7564_vm12, 1, %v7588_v57  ;;  %vm7566_vm12 = vcmp.eq.s32.totalorder %v6030_v32, 1  ;;  %v1856_v4 = vsel %vm7573_vm0, 1, %v7588_v57  ;;  %vm7613_vm0 = vcmp.eq.s32.totalorder %v6105_v2, 0 }
  0xf3   :  { %1184 = vmatprep.mubr.bf16.mxu0 %v4394_v15  ;;  %4798 = vmatpush3.bf16.msra.mxu0 %v5080_v10  ;;  %v1849_v10 = vsel %vm1721_vm11, 1, %v7588_v57  ;;  %v1850_v15 = vsel %vm1722_vm14, 1, %v7588_v57 }
  0xf4   :  { %4799 = vmatprep.subr.bf16.mxu0 %v5081_v16  ;;  %1102 = vmatmul.mubr.bf16.gmra.mxu1 %v4403_v26  ;;  %v1853_v26 = vsel %vm1725_vm5, 1, %v7588_v57 }
  0xf5   :  { %1111 = vmatprep.mubr.bf16.mxu1 %v4408_v28  ;;  %1867 = vperm.xlu0 %4938, %v1846_v3  }
  0xf6   :  { %1780 = vperm.xlu1 %4939, %v1753_v8  }
  0xf7   :  { %4800 = vmatpush3.bf16.msra.mxu0 %v5081_v16  ;;  %v1851_v16 = vsel %vm1723_vm15, 1, %v7588_v57 }
  0xf8   :  { %4801 = vmatprep.subr.bf16.mxu0 %v5082_v23 }
  0xf9   :  { %1777 = vperm.xlu0 %4938, %v1752_v7  }
  0xfa   :  { %1185 = vmatmul.mubr.bf16.gmra.mxu0 %v4393_v27  ;;  %1876 = vperm.xlu1 %4939, %v1849_v10   ;;  %v1857_v10 = vsel %vm7572_vm8, 1, %v7588_v57  ;;  %vm7614_vm8 = vcmp.eq.s32.totalorder %v6100_v62, 0 }
  0xfb   :  { %1194 = vmatprep.mubr.bf16.mxu0 %v4398_v30  ;;  %4802 = vmatpush3.bf16.msra.mxu0 %v5082_v23 }
  0xfc   :  { %4803 = vmatprep.subr.bf16.mxu0 %v5083_v29  ;;  %1112 = vmatmul.mubr.bf16.gmra.mxu1 %v4407_v36 }
  0xfd   :  { %1873 = vperm.xlu0 %4938, %v1848_v9  }
  0xfe   :  { %1786 = vperm.xlu1 %4939, %v1755_v14  }
  0xff   :  { %4804 = vmatpush3.bf16.msra.mxu0 %v5083_v29  ;;  %v6021_v29 = vld [vmem:[%s7542_s4 + $0x50] sm:$0xff] }
 0x100   :  { %7659 = vst [vmem:[#allocation37_spill] sm:$0xff] %v6021_v29  ;;  %vm7567_vm13 = vcmp.eq.s32.totalorder %v6021_v29, 1  ;;  %vm1726_vm2 = vcmp.eq.s32.totalorder %v6021_v29, 0  ;;  %v3786_v29 = vld [vmem:[#allocation7 + $0x18] sm:$0xff] }
 0x101   :  { %1783 = vperm.xlu0 %4938, %v1754_v13   ;;  %v1758_v34 = vsel %vm7567_vm13, 1, %v7588_v57  ;;  %v1854_v42 = vsel %vm1726_vm2, 1, %v7588_v57  ;;  %vm7570_vm13 = vcmp.eq.s32.totalorder %v6053_v39, 1 }
 0x102   :  { %1195 = vmatmul.mubr.bf16.gmra.mxu0 %v4397_v37  ;;  %1882 = vperm.xlu1 %4939, %v1851_v16   ;;  %v1761_v55 = vsel %vm7570_vm13, 1, %v7588_v57  ;;  %vm7612_vm13 = vcmp.eq.s32.totalorder %v6100_v62, 1 }
 0x103   :  { %1204 = vmatprep.mubr.bf16.mxu0 %v4402_v38  ;;  %v1759_v38 = vsel %vm7566_vm12, 1, %v7588_v57  ;;  %vm7571_vm12 = vcmp.eq.s32.totalorder %v6043_v35, 1 }
 0x104   :  { %v1760_v52 = vsel %vm7571_vm12, 1, %v7588_v57  ;;  %vm7611_vm12 = vcmp.eq.s32.totalorder %v6105_v2, 1 }
 0x105   :  { %1879 = vperm.xlu0 %4938, %v1850_v15  }
 0x106   :  { %1792 = vperm.xlu1 %4939, %v1757_v21  }
 0x109   :  { %1789 = vperm.xlu0 %4938, %v1756_v19   ;;  %v1762_v19 = vsel %vm7612_vm13, 1, %v7588_v57 }
 0x10a   :  { %1205 = vmatmul.mubr.bf16.gmra.mxu0 %v4401_v45  ;;  %1888 = vperm.xlu1 %4939, %v1853_v26  }
 0x10b   :  { %1214 = vmatprep.mubr.bf16.mxu0 %v4406_v46  ;;  %v1855_v46 = vsel %vm1727_vm9, 1, %v7588_v57 }
 0x10d   :  { %1885 = vperm.xlu0 %4938, %v1852_v24  }
 0x10e   :  { %1798 = vperm.xlu1 %4939, %v1759_v38  }
 0x111   :  { %1795 = vperm.xlu0 %4938, %v1758_v34  }
 0x112   :  { %1215 = vmatmul.mubr.bf16.gmra.mxu0 %v4405_v49  ;;  %1894 = vperm.xlu1 %4939, %v1855_v46   ;;  %v1859_v46 = vsel %vm7613_vm0, 1, %v7588_v57 }
 0x113   :  { %1224 = vmatprep.mubr.bf16.mxu0 %v4410_v51 }
 0x115   :  { %1891 = vperm.xlu0 %4938, %v1854_v42  }
 0x116   :  { %1804 = vperm.xlu1 %4939, %v1761_v55  }
 0x119   :  { %1801 = vperm.xlu0 %4938, %v1760_v52  }
 0x11a   :  { %1225 = vmatmul.mubr.bf16.gmra.mxu0 %v4409_v53  ;;  %1900 = vperm.xlu1 %4939, %v1857_v10  }
 0x11d   :  { %1897 = vperm.xlu0 %4938, %v1856_v4  }
 0x121   :  { %1807 = vperm.xlu0 %4938, %v1762_v19  }
 0x162   :  { %v4775_v20 = vpop.f32.mrf.mxu0 }
 0x163   :  { %v6024_v30 = vadd.f32 %v4775_v20, %v6002_v22 }
 0x164   :  { %v374_v23 = vpop.f32.mrf.mxu0 }
 0x165   :  { %v6013_v27 = vadd.f32 %v6002_v22, %v374_v23  ;;  %v7590_v43 = vmax.f32 %v6024_v30, 0.0  ;;  %v1763_v23 = vsel %vm7611_vm12, 1, %v7588_v57 }
 0x166   :  { %v4776_v25 = vpop.f32.mrf.mxu0  ;;  %1810 = vperm.xlu1 %4939, %v1763_v23  }
 0x167   :  { %v6016_v28 = vadd.f32 %v4776_v25, %v6002_v22  ;;  %v7592_v40 = vmax.f32 %v6013_v27, 0.0 }
 0x168   :  { %v377_v31 = vpop.f32.mrf.mxu0 }
 0x169   :  { %v6034_v33 = vadd.f32 %v6002_v22, %v377_v31  ;;  %v7587_v36 = vmax.f32 %v6016_v28, 0.0 }
 0x16a   :  { %v4779_v37 = vpop.f32.mrf.mxu0  ;;  %1906 = vperm.xlu1 %4939, %v1859_v46  }
 0x16b   :  { %v7591_v41 = vmax.f32 %v6034_v33, 0.0  ;;  %v6062_v44 = vadd.f32 %v4779_v37, %v6002_v22  ;;  %v1268_v49 = vpack.c.bf16 %v7587_v36, %v7590_v43  ;;  %v1858_v37 = vsel %vm7614_vm8, 1, %v7588_v57 }
 0x16c   :  { %v390_v45 = vpop.f32.mrf.mxu0  ;;  %1903 = vperm.xlu0 %4938, %v1858_v37   ;;  %v7577_v37 = vlaneseq }
 0x16d   :  { %v1267_v47 = vpack.c.bf16 %v7591_v41, %v7592_v40  ;;  %v6073_v48 = vadd.f32 %v6002_v22, %v390_v45  ;;  %v7584_v53 = vmax.f32 %v6062_v44, 0.0 }
 0x16e   :  { %v4780_v50 = vpop.f32.mrf.mxu0  ;;  %v6188_v46 = vshrl.u32 %v7577_v37, 7 }
 0x16f   :  { %4805 = vmatprep.mubr.bf16.mxu0 %v1267_v47  ;;  %v6081_v51 = vadd.f32 %v4780_v50, %v6002_v22  ;;  %v7586_v58 = vmax.f32 %v6073_v48, 0.0 }
 0x170   :  { %4806 = vmatmul.mubr.bf16.vlgmr.msra.gmra.mxu0 %v1268_v49  ;;  %v393_v54 = vpop.f32.mrf.mxu0 }
 0x171   :  { %v7583_v59 = vmax.f32 %v6081_v51, 0.0  ;;  %v6094_v61 = vadd.f32 %v6002_v22, %v393_v54 }
 0x172   :  { %v4783_v1 = vpop.f32.mrf.mxu0 }
 0x173   :  { %v7585_v3 = vmax.f32 %v6094_v61, 0.0  ;;  %v1270_v7 = vpack.c.bf16 %v7583_v59, %v7584_v53  ;;  %v6116_v8 = vadd.f32 %v4783_v1, %v6002_v22 }
 0x174   :  { %v406_v9 = vpop.f32.mrf.mxu0 }
 0x175   :  { %v6123_v13 = vadd.f32 %v6002_v22, %v406_v9  ;;  %v1269_v14 = vpack.c.bf16 %v7585_v3, %v7586_v58  ;;  %v7580_v20 = vmax.f32 %v6116_v8, 0.0 }
 0x176   :  { %v4784_v15 = vpop.f32.mrf.mxu0 }
 0x177   :  { %v6131_v16 = vadd.f32 %v4784_v15, %v6002_v22  ;;  %4809 = vmatprep.mubr.bf16.mxu0 %v1269_v14  ;;  %v7582_v24 = vmax.f32 %v6123_v13, 0.0 }
 0x178   :  { %v409_v21 = vpop.f32.mrf.mxu0  ;;  %4810 = vmatmul.mubr.bf16.gmra.mxu0 %v1270_v7 }
 0x179   :  { %v7579_v25 = vmax.f32 %v6131_v16, 0.0  ;;  %v6144_v26 = vadd.f32 %v6002_v22, %v409_v21 }
 0x17a   :  { %v4787_v31 = vpop.f32.mrf.mxu0 }
 0x17b   :  { %v7581_v34 = vmax.f32 %v6144_v26, 0.0  ;;  %v1272_v38 = vpack.c.bf16 %v7579_v25, %v7580_v20  ;;  %v6156_v42 = vadd.f32 %v4787_v31, %v6002_v22 }
 0x17c   :  { %v422_v45 = vpop.f32.mrf.mxu0 }
 0x17d   :  { %v6162_v47 = vadd.f32 %v6002_v22, %v422_v45  ;;  %v1271_v49 = vpack.c.bf16 %v7581_v34, %v7582_v24  ;;  %v7575_v54 = vmax.f32 %v6156_v42, 0.0 }
 0x17e   :  { %v4788_v50 = vpop.f32.mrf.mxu0 }
 0x17f   :  { %v6169_v52 = vadd.f32 %v4788_v50, %v6002_v22  ;;  %4813 = vmatprep.mubr.bf16.mxu0 %v1271_v49  ;;  %v7578_v1 = vmax.f32 %v6162_v47, 0.0 }
 0x180   :  { %v425_v55 = vpop.f32.mrf.mxu0  ;;  %4814 = vmatmul.mubr.bf16.gmra.mxu0 %v1272_v38 }
 0x181   :  { %v7574_v4 = vmax.f32 %v6169_v52, 0.0  ;;  %v6175_v7 = vadd.f32 %v6002_v22, %v425_v55  ;;  %v6191_v55 = vsub.s32 0, %v6188_v46 }
 0x183   :  { %v7576_v9 = vmax.f32 %v6175_v7, 0.0  ;;  %v1274_v10 = vpack.c.bf16 %v7574_v4, %v7575_v54  ;;  %v1043_v15 = vpop.f32.mrf.mxu1 }
 0x185   :  { %v1273_v14 = vpack.c.bf16 %v7576_v9, %v7578_v1  ;;  %v1045_v19 = vpop.f32.mrf.mxu1 }
 0x187   :  { %4817 = vmatprep.mubr.bf16.mxu0 %v1273_v14  ;;  %v1047_v22 = vpop.f32.mrf.mxu1  ;;  %v6197_v14 = vsub.s32 1, %v6188_v46 }
 0x188   :  { %4818 = vmatmul.mubr.bf16.gmra.mxu0 %v1274_v10  ;;  %v517_v10 = vld [vmem:[%s7546_s8] sm:$0x3] }
 0x189   :  { %2157 = vmatprep.mubr.bf16.mxu0 %v7588_v57  ;;  %v1049_v21 = vpop.f32.mrf.mxu1  ;;  %v6200_v9 = vrot.slane %v517_v10, %v6191_v55  ;;  %v6203_v37 = vrot.slane %v517_v10, %v6197_v14 }
 0x18b   :  { %v1053_v23 = vpop.f32.mrf.mxu1  ;;  %v1044_v34 = vadd.f32 %v1043_v15, %v6200_v9  ;;  %v1046_v59 = vadd.f32 %v1045_v19, %v6203_v37  ;;  %v1048_v53 = vadd.f32 %v1047_v22, %v6200_v9  ;;  %v1050_v36 = vadd.f32 %v1049_v21, %v6203_v37 }
 0x18c   :  { %v1054_v22 = vadd.f32 %v1053_v23, %v6200_v9 }
 0x18d   :  { %v1055_v31 = vpop.f32.mrf.mxu1 }
 0x18f   :  { %v1057_v38 = vpop.f32.mrf.mxu1 }
 0x191   :  { %v1059_v45 = vpop.f32.mrf.mxu1 }
 0x193   :  { %v1063_v49 = vpop.f32.mrf.mxu1 }
 0x195   :  { %v1065_v50 = vpop.f32.mrf.mxu1 }
 0x197   :  { %v1067_v4 = vpop.f32.mrf.mxu1 }
 0x199   :  { %v1069_v54 = vpop.f32.mrf.mxu1 }
 0x19b   :  { %v6205_v1 = vpop.f32.mrf.mxu1 }
 0x19d   :  { %v6207_v20 = vpop.f32.mrf.mxu1 }
 0x19f   :  { %v6212_v3 = vpop.f32.mrf.mxu1 }
 0x1a1   :  { %v6215_v43 = vpop.f32.mrf.mxu1 }
 0x1a2   :  { %v1156_v25 = vpop.f32.mrf.mxu0 }
 0x1a3   :  { %v1157_v41 = vadd.f32 %v1156_v25, %v1044_v34  ;;  %v1060_v25 = vadd.f32 %v1059_v45, %v6203_v37 }
 0x1a4   :  { %v1158_v24 = vpop.f32.mrf.mxu0  ;;  %v6217_v2 = vpop.f32.mrf.mxu1 }
 0x1a5   :  { %v1159_v57 = vadd.f32 %v1158_v24, %v1046_v59  ;;  %v1235_v32 = vmax.f32 %v1157_v41, 0.0  ;;  %v1056_v59 = vadd.f32 %v1055_v31, %v6203_v37  ;;  %v1064_v41 = vadd.f32 %v1063_v49, %v6200_v9 }
 0x1a6   :  { %v1160_v58 = vpop.f32.mrf.mxu0  ;;  %v6219_v18 = vpop.f32.mrf.mxu1  ;;  %v1070_v49 = vadd.f32 %v1069_v54, %v6203_v37  ;;  %v1076_v54 = vadd.f32 %v6207_v20, %v6203_v37  ;;  %v1080_v20 = vadd.f32 %v6215_v43, %v6203_v37 }
 0x1a7   :  { %v1161_v10 = vadd.f32 %v1160_v58, %v1048_v53  ;;  %v1236_v62 = vmax.f32 %v1159_v57, 0.0  ;;  %v1058_v53 = vadd.f32 %v1057_v38, %v6200_v9  ;;  %v1066_v38 = vadd.f32 %v1065_v50, %v6203_v37 }
 0x1a8   :  { %v1162_v40 = vpop.f32.mrf.mxu0  ;;  %v6224_v24 = vpop.f32.mrf.mxu1  ;;  %v1086_v43 = vadd.f32 %v6219_v18, %v6203_v37 }
 0x1a9   :  { %v1163_v39 = vadd.f32 %v1162_v40, %v1050_v36  ;;  %v1237_v15 = vmax.f32 %v1161_v10, 0.0 }
 0x1aa   :  { %v1166_v35 = vpop.f32.mrf.mxu0 }
 0x1ab   :  { %v1238_v19 = vmax.f32 %v1163_v39, 0.0  ;;  %v1291_v36 = vpack.c.bf16 %v1237_v15, %v1235_v32  ;;  %v6227_v39 = vpop.f32.mrf.mxu1  ;;  %v1167_v21 = vadd.f32 %v1166_v35, %v1054_v22 }
 0x1ac   :  { %v1168_v17 = vpop.f32.mrf.mxu0 }
 0x1ad   :  { %v1292_v58 = vpack.c.bf16 %v1238_v19, %v1236_v62  ;;  %v1169_v34 = vadd.f32 %v1168_v17, %v1056_v59  ;;  %v6231_v62 = vpop.f32.mrf.mxu1  ;;  %v1068_v17 = vadd.f32 %v1067_v4, %v6200_v9  ;;  %v1239_v59 = vmax.f32 %v1167_v21, 0.0 }
 0x1ae   :  { %v1170_v40 = vpop.f32.mrf.mxu0 }
 0x1af   :  { %v1171_v57 = vadd.f32 %v1170_v40, %v1058_v53  ;;  %1467 = vmatprep.mubr.bf16.mxu1 %v1292_v58  ;;  %v1240_v15 = vmax.f32 %v1169_v34, 0.0  ;;  %v6234_v45 = vpop.f32.mrf.mxu1 }
 0x1b0   :  { %v1172_v23 = vpop.f32.mrf.mxu0  ;;  %1468 = vmatmul.mubr.bf16.vlgmr.msra.gmra.mxu1 %v1291_v36 }
 0x1b1   :  { %v1173_v31 = vadd.f32 %v1172_v23, %v1060_v25  ;;  %v1241_v10 = vmax.f32 %v1171_v57, 0.0  ;;  %v6237_v36 = vpop.f32.mrf.mxu1  ;;  %v3783_v25 = vld [vmem:[#allocation7] sm:$0xff]  ;;  %v3784_v57 = vld [vmem:[#allocation7 + $0x8] sm:$0xff]  ;;  %v3785_v23 = vld [vmem:[#allocation7 + $0x10] sm:$0xff] }
 0x1b2   :  { %v1176_v32 = vpop.f32.mrf.mxu0  ;;  %v3800_v4 = vmul.f32 %v3784_v57, %v3784_v57 }
 0x1b3   :  { %v1242_v19 = vmax.f32 %v1173_v31, 0.0  ;;  %v1177_v53 = vadd.f32 %v1176_v32, %v1064_v41  ;;  %v1293_v50 = vpack.c.bf16 %v1241_v10, %v1239_v59  ;;  %v3799_v31 = vmul.f32 %v3783_v25, %v3783_v25  ;;  %v3787_v59 = vld [vmem:[#allocation7 + $0x20] sm:$0xff] }
 0x1b4   :  { %v1178_v35 = vpop.f32.mrf.mxu0  ;;  %v1074_v41 = vadd.f32 %v6205_v1, %v6200_v9  ;;  %3817 = vadd.xlane.f32.xlu0 %v3800_v4  ;;  %v1078_v1 = vadd.f32 %v6212_v3, %v6200_v9  ;;  %v3790_v4 = vld [vmem:[#allocation7 + $0x38] sm:$0xff] }
 0x1b5   :  { %v1179_v22 = vadd.f32 %v1178_v35, %v1066_v38  ;;  %v1294_v58 = vpack.c.bf16 %v1242_v19, %v1240_v15  ;;  %v1243_v6 = vmax.f32 %v1177_v53, 0.0  ;;  %v6243_v15 = vpop.f32.mrf.mxu1  ;;  %3815 = vadd.xlane.f32.xlu1 %v3799_v31  ;;  %v3801_v19 = vmul.f32 %v3785_v23, %v3785_v23  ;;  %v3788_v53 = vld [vmem:[#allocation7 + $0x28] sm:$0xff]  ;;  %v3789_v23 = vld [vmem:[#allocation7 + $0x30] sm:$0xff] }
 0x1b6   :  { %v1180_v40 = vpop.f32.mrf.mxu0 }
 0x1b7   :  { %v1181_v34 = vadd.f32 %v1180_v40, %v1068_v17  ;;  %1475 = vmatprep.mubr.bf16.mxu1 %v1294_v58  ;;  %v1244_v21 = vmax.f32 %v1179_v22, 0.0  ;;  %v3802_v17 = vmul.f32 %v3786_v29, %v3786_v29  ;;  %v3804_v29 = vmul.f32 %v3788_v53, %v3788_v53  ;;  %v3792_v53 = vld [vmem:[#allocation7 + $0x48] sm:$0xff] }
 0x1b8   :  { %v1182_v38 = vpop.f32.mrf.mxu0  ;;  %1476 = vmatmul.mubr.bf16.gmra.mxu1 %v1293_v50 }
 0x1b9   :  { %v1245_v10 = vmax.f32 %v1181_v34, 0.0  ;;  %v1183_v32 = vadd.f32 %v1182_v38, %v1070_v49  ;;  %v3803_v49 = vmul.f32 %v3787_v59, %v3787_v59  ;;  %v6249_v34 = vpop.f32.mrf.mxu1  ;;  %3819 = vadd.xlane.f32.xlu1 %v3801_v19  ;;  %3821 = vadd.xlane.f32.xlu0 %v3802_v17  ;;  %v3806_v17 = vmul.f32 %v3790_v4, %v3790_v4  ;;  %v3791_v59 = vld [vmem:[#allocation7 + $0x40] sm:$0xff]  ;;  %v3794_v4 = vld [vmem:[#allocation7 + $0x58] sm:$0xff] }
 0x1ba   :  { %v1186_v35 = vpop.f32.mrf.mxu0 }
 0x1bb   :  { %v1246_v22 = vmax.f32 %v1183_v32, 0.0  ;;  %v1295_v58 = vpack.c.bf16 %v1245_v10, %v1243_v6  ;;  %v1187_v50 = vadd.f32 %v1186_v35, %v1074_v41  ;;  %v1084_v6 = vadd.f32 %v6217_v2, %v6200_v9  ;;  %v6255_v19 = vpop.f32.mrf.mxu1 }
 0x1bc   :  { %v1188_v40 = vpop.f32.mrf.mxu0  ;;  %v1088_v2 = vadd.f32 %v6224_v24, %v6200_v9 }
 0x1bd   :  { %v1296_v25 = vpack.c.bf16 %v1246_v22, %v1244_v21  ;;  %v1189_v57 = vadd.f32 %v1188_v40, %v1076_v54  ;;  %v1247_v3 = vmax.f32 %v1187_v50, 0.0  ;;  %v3805_v21 = vmul.f32 %v3789_v23, %v3789_v23  ;;  %3823 = vadd.xlane.f32.xlu1 %v3803_v49  ;;  %3825 = vadd.xlane.f32.xlu0 %v3804_v29  ;;  %v5100_v22 = vld [vmem:[#allocation14 + $0xb0] ss:$12 sps:$4 sm:$0xff]  }
 0x1be   :  { %v1190_v31 = vpop.f32.mrf.mxu0  ;;  %v1090_v40 = vadd.f32 %v6227_v39, %v6203_v37  ;;  %4821 = vmatprep.subr.bf16.mxu1 %v5100_v22  ;;  %v3808_v29 = vmul.f32 %v3792_v53, %v3792_v53  ;;  %v3793_v23 = vld [vmem:[#allocation7 + $0x50] sm:$0xff]  ;;  %v5101_v53 = vld [vmem:[#allocation14 + $0x98] ss:$12 sps:$4 sm:$0xff]  }
 0x1bf   :  { %v1191_v38 = vadd.f32 %v1190_v31, %v1078_v1  ;;  %1483 = vmatprep.mubr.bf16.mxu1 %v1296_v25  ;;  %v1248_v54 = vmax.f32 %v1189_v57, 0.0  ;;  %v6261_v57 = vpop.f32.mrf.mxu1  ;;  %4822 = vmatpush3.bf16.msra.mxu1 %v5100_v22 }
 0x1c0   :  { %v1192_v41 = vpop.f32.mrf.mxu0  ;;  %1484 = vmatmul.mubr.bf16.gmra.mxu1 %v1295_v58  ;;  %4823 = vmatprep.subr.bf16.mxu1 %v5101_v53 }
 0x1c1   :  { %v1249_v10 = vmax.f32 %v1191_v38, 0.0  ;;  %v1193_v32 = vadd.f32 %v1192_v41, %v1080_v20  ;;  %v3807_v20 = vmul.f32 %v3791_v59, %v3791_v59  ;;  %3827 = vadd.xlane.f32.xlu1 %v3805_v21  ;;  %3829 = vadd.xlane.f32.xlu0 %v3806_v17  ;;  %v3809_v41 = vmul.f32 %v3793_v23, %v3793_v23  ;;  %v3795_v17 = vld [vmem:[#allocation7 + $0x60] sm:$0xff]  ;;  %v3798_v23 = vld [vmem:[#allocation7 + $0x78] sm:$0xff] }
 0x1c2   :  { %v1196_v35 = vpop.f32.mrf.mxu0 }
 0x1c3   :  { %v1250_v1 = vmax.f32 %v1193_v32, 0.0  ;;  %v1297_v58 = vpack.c.bf16 %v1249_v10, %v1247_v3  ;;  %v1197_v50 = vadd.f32 %v1196_v35, %v1084_v6  ;;  %v1094_v3 = vadd.f32 %v6231_v62, %v6200_v9  ;;  %v1109_v10 = vpop.f32.mrf.mxu1  ;;  %v3796_v35 = vld [vmem:[#allocation7 + $0x68] sm:$0xff]  ;;  %4824 = vmatpush3.bf16.msra.mxu1 %v5101_v53 }
 0x1c4   :  { %v1198_v18 = vpop.f32.mrf.mxu0  ;;  %v1096_v6 = vadd.f32 %v6234_v45, %v6203_v37  ;;  %v3810_v32 = vmul.f32 %v3794_v4, %v3794_v4  ;;  %v1098_v62 = vadd.f32 %v6237_v36, %v6200_v9  ;;  %v1100_v45 = vadd.f32 %v6243_v15, %v6203_v37  ;;  %v5104_v36 = vld [vmem:[#allocation14 + $0xac] ss:$12 sps:$4 sm:$0xff]  }
 0x1c5   :  { %v1298_v25 = vpack.c.bf16 %v1250_v1, %v1248_v54  ;;  %v1199_v49 = vadd.f32 %v1198_v18, %v1086_v43  ;;  %v1251_v38 = vmax.f32 %v1197_v50, 0.0  ;;  %3831 = vadd.xlane.f32.xlu1 %v3807_v20  ;;  %3833 = vadd.xlane.f32.xlu0 %v3808_v29  ;;  %v3811_v50 = vmul.f32 %v3795_v17, %v3795_v17  ;;  %v1113_v20 = vpop.f32.mrf.mxu1  ;;  %v3896_v53 = vld [vmem:[#allocation5 + $0x8] sm:$0xff] }
 0x1c6   :  { %v1200_v31 = vpop.f32.mrf.mxu0  ;;  %v1104_v15 = vadd.f32 %v6249_v34, %v6200_v9  ;;  %2125 = vmatprep.subr.bf16.mxu0 %v5104_v36  ;;  %v3814_v17 = vmul.f32 %v3798_v23, %v3798_v23  ;;  %v5105_v34 = vld [vmem:[#allocation14 + $0x90] ss:$12 sps:$4 sm:$0xff]  }
 0x1c7   :  { %v1201_v24 = vadd.f32 %v1200_v31, %v1088_v2  ;;  %1491 = vmatprep.mubr.bf16.mxu1 %v1298_v25  ;;  %v1252_v43 = vmax.f32 %v1199_v49, 0.0  ;;  %v3812_v25 = vmul.f32 %v3796_v35, %v3796_v35  ;;  %v3797_v49 = vld [vmem:[#allocation7 + $0x70] sm:$0xff]  ;;  %v3898_v36 = vld [vmem:[#allocation5 + $0x18] sm:$0xff] }
 0x1c8   :  { %v1202_v39 = vpop.f32.mrf.mxu0  ;;  %1492 = vmatmul.mubr.bf16.gmra.mxu1 %v1297_v58  ;;  %v5102_v31 = vld [vmem:[#allocation14 + $0xa8] ss:$12 sps:$4 sm:$0xff]  }
 0x1c9   :  { %v1253_v21 = vmax.f32 %v1201_v24, 0.0  ;;  %v1203_v54 = vadd.f32 %v1202_v39, %v1090_v40  ;;  %3835 = vadd.xlane.f32.xlu1 %v3809_v41  ;;  %3837 = vadd.xlane.f32.xlu0 %v3810_v32  ;;  %v3813_v39 = vmul.f32 %v3797_v49, %v3797_v49  ;;  %v5108_v41 = vld [vmem:[#allocation14 + $0x80] ss:$12 sps:$4 sm:$0xff]   ;;  %v1115_v32 = vpop.f32.mrf.mxu1  ;;  %v3897_v23 = vld [vmem:[#allocation5 + $0x10] sm:$0xff] }
 0x1ca   :  { %v1206_v59 = vpop.f32.mrf.mxu0  ;;  %2126 = vmatpush1.bf16.msra.mxu0 %v5102_v31  ;;  %4825 = vmatprep.subr.bf16.mxu1 %v5108_v41 }
 0x1cb   :  { %v1254_v22 = vmax.f32 %v1203_v54, 0.0  ;;  %v1299_v1 = vpack.c.bf16 %v1253_v21, %v1251_v38  ;;  %v1207_v2 = vadd.f32 %v1206_v59, %v1094_v3  ;;  %v1106_v3 = vadd.f32 %v6255_v19, %v6203_v37  ;;  %v3895_v59 = vld [vmem:[#allocation5] sm:$0xff]  ;;  %4826 = vmatpush3.bf16.msra.mxu1 %v5108_v41  ;;  %v1117_v49 = vpop.f32.mrf.mxu1 }
 0x1cc   :  { %v1208_v58 = vpop.f32.mrf.mxu0  ;;  %v1108_v19 = vadd.f32 %v6261_v57, %v6200_v9  ;;  %v5109_v57 = vld [vmem:[#allocation14 + $0x78] ss:$12 sps:$4 sm:$0xff]  }
 0x1cd   :  { %v1300_v18 = vpack.c.bf16 %v1254_v22, %v1252_v43  ;;  %v1209_v40 = vadd.f32 %v1208_v58, %v1096_v6  ;;  %v1255_v24 = vmax.f32 %v1207_v2, 0.0  ;;  %v5107_v6 = vld [vmem:[#allocation14 + $0x94] ss:$12 sps:$4 sm:$0xff]   ;;  %3839 = vadd.xlane.f32.xlu1 %v3811_v50  ;;  %3841 = vadd.xlane.f32.xlu0 %v3812_v25  ;;  %v1110_v50 = vadd.f32 %v1109_v10, %v6203_v37 }
 0x1ce   :  { %v1210_v29 = vpop.f32.mrf.mxu0  ;;  %2127 = vmatprep.subr.bf16.mxu0 %v5107_v6  ;;  %v1114_v10 = vadd.f32 %v1113_v20, %v6200_v9  ;;  %v1118_v20 = vadd.f32 %v1117_v49, %v6200_v9 }
 0x1cf   :  { %v1211_v4 = vadd.f32 %v1210_v29, %v1098_v62  ;;  %1499 = vmatprep.mubr.bf16.mxu1 %v1300_v18  ;;  %v1256_v43 = vmax.f32 %v1209_v40, 0.0  ;;  %v5111_v62 = vld [vmem:[#allocation14 + $0x7c] ss:$12 sps:$4 sm:$0xff]   ;;  %v3911_v18 = vmul.f32 %v3895_v59, %v3895_v59  ;;  %v3912_v29 = vmul.f32 %v3896_v53, %v3896_v53  ;;  %2128 = vmatpush1.bf16.msra.mxu0 %v5105_v34  ;;  %v5112_v53 = vld [vmem:[#allocation14 + $0x60] ss:$12 sps:$4 sm:$0xff]  }
 0x1d0   :  { %v1212_v38 = vpop.f32.mrf.mxu0  ;;  %1500 = vmatmul.mubr.bf16.gmra.mxu1 %v1299_v1  ;;  %v5115_v1 = vld [vmem:[#allocation14 + $0x68] ss:$12 sps:$4 sm:$0xff]   ;;  %2129 = vmatprep.subr.bf16.mxu0 %v5111_v62 }
 0x1d1   :  { %v1257_v21 = vmax.f32 %v1211_v4, 0.0  ;;  %v1213_v54 = vadd.f32 %v1212_v38, %v1100_v45  ;;  %3843 = vadd.xlane.f32.xlu1 %v3813_v39  ;;  %3845 = vadd.xlane.f32.xlu0 %v3814_v17  ;;  %v3913_v39 = vmul.f32 %v3897_v23, %v3897_v23  ;;  %v3899_v17 = vld [vmem:[#allocation5 + $0x20] sm:$0xff] }
 0x1d2   :  { %v1216_v35 = vpop.f32.mrf.mxu0  ;;  %4827 = vmatprep.subr.bf16.mxu1 %v5115_v1 }
 0x1d3   :  { %v1258_v22 = vmax.f32 %v1213_v54, 0.0  ;;  %v1301_v2 = vpack.c.bf16 %v1257_v21, %v1255_v24  ;;  %v1217_v58 = vadd.f32 %v1216_v35, %v1104_v15  ;;  %v5114_v24 = vld [vmem:[#allocation14 + $0x64] ss:$12 sps:$4 sm:$0xff]   ;;  %v1119_v21 = vpop.f32.mrf.mxu1  ;;  %v3914_v54 = vmul.f32 %v3898_v36, %v3898_v36  ;;  %v3900_v35 = vld [vmem:[#allocation5 + $0x28] sm:$0xff]  ;;  %2130 = vmatpush1.bf16.msra.mxu0 %v5109_v57  ;;  %4828 = vmatpush3.bf16.msra.mxu1 %v5115_v1 }
 0x1d4   :  { %v1218_v45 = vpop.f32.mrf.mxu0  ;;  %2131 = vmatprep.subr.bf16.mxu0 %v5114_v24  ;;  %v1120_v62 = vadd.f32 %v1119_v21, %v6203_v37  ;;  %v3903_v57 = vld [vmem:[#allocation5 + $0x40] sm:$0xff]  ;;  %v3906_v21 = vld [vmem:[#allocation5 + $0x58] sm:$0xff] }
 0x1d5   :  { %v1302_v40 = vpack.c.bf16 %v1258_v22, %v1256_v43  ;;  %v1219_v25 = vadd.f32 %v1218_v45, %v1106_v3  ;;  %v1259_v15 = vmax.f32 %v1217_v58, 0.0  ;;  %v1116_v3 = vadd.f32 %v1115_v32, %v6203_v37  ;;  %3927 = vadd.xlane.f32.xlu1 %v3911_v18  ;;  %3929 = vadd.xlane.f32.xlu0 %v3912_v29  ;;  %v3901_v18 = vld [vmem:[#allocation5 + $0x30] sm:$0xff] }
 0x1d6   :  { %v1220_v31 = vpop.f32.mrf.mxu0  ;;  %v3917_v49 = vmul.f32 %v3901_v18, %v3901_v18 }
 0x1d7   :  { %v1221_v4 = vadd.f32 %v1220_v31, %v1108_v19  ;;  %1507 = vmatprep.mubr.bf16.mxu1 %v1302_v40  ;;  %v1260_v6 = vmax.f32 %v1219_v25, 0.0  ;;  %v3902_v25 = vld [vmem:[#allocation5 + $0x38] sm:$0xff]  ;;  %2132 = vmatpush1.bf16.msra.mxu0 %v5112_v53 }
 0x1d8   :  { %v1222_v38 = vpop.f32.mrf.mxu0  ;;  %1508 = vmatmul.mubr.bf16.gmra.mxu1 %v1301_v2  ;;  %v3915_v2 = vmul.f32 %v3899_v17, %v3899_v17  ;;  %v3918_v37 = vmul.f32 %v3902_v25, %v3902_v25  ;;  %v5121_v17 = vld [vmem:[#allocation14 + $0x34] ss:$12 sps:$4 sm:$0xff]   ;;  %v5119_v53 = vld [vmem:[#allocation14 + $0x30] ss:$12 sps:$4 sm:$0xff]  }
 0x1d9   :  { %v1261_v41 = vmax.f32 %v1221_v4, 0.0  ;;  %v1223_v43 = vadd.f32 %v1222_v38, %v1110_v50  ;;  %3931 = vadd.xlane.f32.xlu1 %v3913_v39  ;;  %3933 = vadd.xlane.f32.xlu0 %v3914_v54  ;;  %v3916_v50 = vmul.f32 %v3900_v35, %v3900_v35  ;;  %v3904_v38 = vld [vmem:[#allocation5 + $0x48] sm:$0xff]  ;;  %v3907_v54 = vld [vmem:[#allocation5 + $0x60] sm:$0xff] }
 0x1da   :  { %v1226_v59 = vpop.f32.mrf.mxu0  ;;  %v5118_v39 = vld [vmem:[#allocation14 + $0x4c] ss:$12 sps:$4 sm:$0xff]   ;;  %v3923_v35 = vmul.f32 %v3907_v54, %v3907_v54 }
 0x1db   :  { %v1262_v34 = vmax.f32 %v1223_v43, 0.0  ;;  %v1303_v22 = vpack.c.bf16 %v1261_v41, %v1259_v15  ;;  %v1227_v32 = vadd.f32 %v1226_v59, %v1114_v10  ;;  %v3919_v10 = vmul.f32 %v3903_v57, %v3903_v57  ;;  %v5116_v43 = vld [vmem:[#allocation14 + $0x48] ss:$12 sps:$4 sm:$0xff]   ;;  %2133 = vmatprep.subr.bf16.mxu0 %v5118_v39  ;;  %v5130_v25 = vld [vmem:[#allocation14 + $0x20] ss:$12 sps:$4 sm:$0xff]  }
 0x1dc   :  { %v1228_v19 = vpop.f32.mrf.mxu0  ;;  %2134 = vmatpush1.bf16.msra.mxu0 %v5116_v43  ;;  %v3922_v59 = vmul.f32 %v3906_v21, %v3906_v21 }
 0x1dd   :  { %v1304_v58 = vpack.c.bf16 %v1262_v34, %v1260_v6  ;;  %v1229_v45 = vadd.f32 %v1228_v19, %v1116_v3  ;;  %v1263_v29 = vmax.f32 %v1227_v32, 0.0  ;;  %3935 = vadd.xlane.f32.xlu1 %v3915_v2  ;;  %3937 = vadd.xlane.f32.xlu0 %v3916_v50  ;;  %v3905_v3 = vld [vmem:[#allocation5 + $0x50] sm:$0xff]  ;;  %v3920_v6 = vmul.f32 %v3904_v38, %v3904_v38  ;;  %v3908_v34 = vld [vmem:[#allocation5 + $0x68] sm:$0xff]  ;;  %v5123_v2 = vld [vmem:[#allocation14 + $0x18] ss:$12 sps:$4 sm:$0xff]  }
 0x1de   :  { %v1230_v40 = vpop.f32.mrf.mxu0  ;;  %v3921_v41 = vmul.f32 %v3905_v3, %v3905_v3  ;;  %2135 = vmatprep.subr.bf16.mxu0 %v5121_v17  ;;  %v5125_v32 = vld [vmem:[#allocation14 + $0x1c] ss:$12 sps:$4 sm:$0xff]   ;;  %v3924_v19 = vmul.f32 %v3908_v34, %v3908_v34  ;;  %v5129_v50 = vld [vmem:[#allocation14 + $0x38] ss:$12 sps:$4 sm:$0xff]  }
 0x1df   :  { %v1231_v1 = vadd.f32 %v1230_v40, %v1118_v20  ;;  %1515 = vmatprep.mubr.bf16.mxu1 %v1304_v58  ;;  %v1264_v23 = vmax.f32 %v1229_v45, 0.0  ;;  %v3909_v20 = vld [vmem:[#allocation5 + $0x70] sm:$0xff]  ;;  %v3910_v58 = vld [vmem:[#allocation5 + $0x78] sm:$0xff]  ;;  %v5126_v40 = vld [vmem:[#allocation14] ss:$12 sps:$4 sm:$0xff]  }
 0x1e0   :  { %v1232_v9 = vpop.f32.mrf.mxu0  ;;  %1516 = vmatmul.mubr.bf16.gmra.mxu1 %v1303_v22  ;;  %2136 = vmatpush1.bf16.msra.mxu0 %v5119_v53  ;;  %v5122_v22 = vld [vmem:[#allocation14 + $0x50] ss:$12 sps:$4 sm:$0xff]   ;;  %v3926_v18 = vmul.f32 %v3910_v58, %v3910_v58 }
 0x1e1   :  { %v1265_v31 = vmax.f32 %v1231_v1, 0.0  ;;  %v1233_v36 = vadd.f32 %v1232_v9, %v1120_v62  ;;  %3939 = vadd.xlane.f32.xlu1 %v3917_v49  ;;  %3941 = vadd.xlane.f32.xlu0 %v3918_v37  ;;  %v3925_v62 = vmul.f32 %v3909_v20, %v3909_v20  ;;  %v5128_v45 = vld [vmem:[#allocation14 + $0x4] ss:$12 sps:$4 sm:$0xff]   ;;  %v5131_v1 = vld [vmem:[#allocation14 + $0x8] ss:$12 sps:$4 sm:$0xff]   ;;  %v1766_v9 = vpop.permute.xlu0 %1765 }
 0x1e2   :  { %4829 = vmatprep.subr.bf16.mxu1 %v5122_v22  ;;  %2137 = vmatprep.subr.bf16.mxu0 %v5125_v32  ;;  %vm1812_vm12 = vcmp.eq.s32.totalorder %v1766_v9, 1 }
 0x1e3   :  { %v1266_v4 = vmax.f32 %v1233_v36, 0.0  ;;  %v1305_v24 = vpack.c.bf16 %v1265_v31, %v1263_v29  ;;  %4830 = vmatpush3.bf16.msra.mxu1 %v5122_v22  ;;  %v1862_v29 = vpop.permute.xlu1 %1861 }
 0x1e4   :  { %2138 = vmatpush1.bf16.msra.mxu0 %v5123_v2  ;;  %4831 = vmatprep.subr.bf16.mxu1 %v5129_v50  ;;  %vm1908_vm13 = vcmp.eq.s32.totalorder %v1862_v29, 1 }
 0x1e5   :  { %v1306_v15 = vpack.c.bf16 %v1266_v4, %v1264_v23  ;;  %3943 = vadd.xlane.f32.xlu1 %v3919_v10  ;;  %3945 = vadd.xlane.f32.xlu0 %v3920_v6  ;;  %v1769_v23 = vpop.permute.xlu0 %1768 }
 0x1e6   :  { %2139 = vmatprep.subr.bf16.mxu0 %v5128_v45  ;;  %vm1813_vm0 = vcmp.eq.s32.totalorder %v1769_v23, 1 }
 0x1e7   :  { %1523 = vmatprep.mubr.bf16.mxu1 %v1306_v15  ;;  %4832 = vmatpush3.bf16.msra.mxu1 %v5129_v50  ;;  %v1865_v49 = vpop.permute.xlu1 %1864 }
 0x1e8   :  { %1524 = vmatmul.mubr.bf16.gmra.mxu1 %v1305_v24  ;;  %2140 = vmatpush1.bf16.msra.mxu0 %v5126_v40  ;;  %vm1909_vm8 = vcmp.eq.s32.totalorder %v1865_v49, 1 }
 0x1e9   :  { %3947 = vadd.xlane.f32.xlu1 %v3921_v41  ;;  %3949 = vadd.xlane.f32.xlu0 %v3922_v59  ;;  %v6284_v36 = vpop.permute.xlu0 %1771  ;;  %v6307_v59 = vld [vmem:[%s7549_s11] ss:$0 sm:$0xff] }
 0x1ea   :  { %4833 = vmatprep.subr.bf16.mxu1 %v5130_v25 }
 0x1eb   :  { %4834 = vmatpush3.bf16.msra.mxu1 %v5130_v25  ;;  %v6282_v31 = vpop.permute.xlu1 %1774 }
 0x1ec   :  { %4835 = vmatprep.subr.bf16.mxu1 %v5131_v1 }
 0x1ed   :  { %3951 = vadd.xlane.f32.xlu1 %v3923_v35  ;;  %3953 = vadd.xlane.f32.xlu0 %v3924_v19  ;;  %v6288_v57 = vpop.permute.xlu0 %1867 }
 0x1ef   :  { %4836 = vmatpush3.bf16.msra.mxu1 %v5131_v1  ;;  %v6286_v37 = vpop.permute.xlu1 %1870 }
 0x1f1   :  { %3955 = vadd.xlane.f32.xlu1 %v3925_v62  ;;  %3957 = vadd.xlane.f32.xlu0 %v3926_v18  ;;  %v6292_v24 = vpop.permute.xlu0 %1777 }
 0x1f3   :  { %v6290_v4 = vpop.permute.xlu1 %1780 }
 0x1f5   :  { %v6296_v10 = vpop.permute.xlu0 %1873 }
 0x1f7   :  { %v6294_v15 = vpop.permute.xlu1 %1876 }
 0x1f9   :  { %v6300_v41 = vpop.permute.xlu0 %1783 }
 0x1fb   :  { %v6298_v3 = vpop.permute.xlu1 %1786 }
 0x1fd   :  { %v6309_v20 = vpop.permute.xlu0 %1879 }
 0x1ff   :  { %v6302_v21 = vpop.permute.xlu1 %1882 }
 0x203   :  { %v6312_v2 = vpop.permute.xlu1 %1792 }
 0x230   :  { %v4807_v38 = vpop.f32.mrf.mxu0 }
 0x232   :  { %v1614_v39 = vpop.f32.mrf.mxu0 }
 0x234   :  { %v4808_v17 = vpop.f32.mrf.mxu0 }
 0x236   :  { %v1617_v19 = vpop.f32.mrf.mxu0 }
 0x238   :  { %v6315_v1 = vpop.f32.mrf.mxu0 }
 0x270   :  { %v4661_v6 = vpop.f32.mrf.mxu1 }
 0x272   :  { %v4662_v43 = vpop.f32.mrf.mxu1 }
 0x273   :  { %v4663_v54 = vadd.f32 %v4662_v43, %v4661_v6  ;;  %v7665_v6 = vmax.f32 %v6013_v27, 0.0  ;;  %v1630_v27 = vpop.f32.mrf.mxu0 }
 0x274   :  { %v4664_v35 = vpop.f32.mrf.mxu1 }
 0x275   :  { %v1615_v53 = vadd.f32 %v4663_v54, %v1614_v39  ;;  %v6321_v54 = vpop.permute.xlu0 %1789 }
 0x276   :  { %v4665_v34 = vpop.f32.mrf.mxu1 }
 0x277   :  { %v1684_v22 = vadd.f32 %v6307_v59, %v1615_v53  ;;  %v4666_v32 = vadd.f32 %v4665_v34, %v4664_v35  ;;  %v6325_v34 = vpop.permute.xlu1 %1888 }
 0x278   :  { %v4667_v62 = vpop.f32.mrf.mxu1 }
 0x279   :  { %v1700_v58 = vmax.f32 %v1684_v22, 0.0  ;;  %v1618_v45 = vadd.f32 %v4666_v32, %v1617_v19 }
 0x27a   :  { %v4668_v50 = vpop.f32.mrf.mxu1 }
 0x27b   :  { %v1685_v18 = vadd.f32 %v6307_v59, %v1618_v45  ;;  %v4669_v40 = vadd.f32 %v4668_v50, %v4667_v62  ;;  %v1828_v25 = vsel %vm1812_vm12, %v1700_v58, 0.0  ;;  %v7666_v58 = vmax.f32 %v6034_v33, 0.0 }
 0x27c   :  { %v4670_v39 = vpop.f32.mrf.mxu1  ;;  %v6319_v43 = vsel %vm1908_vm13, %v7665_v6, %v1828_v25  ;;  %vm1814_vm12 = vcmp.eq.s32.totalorder %v6284_v36, 1  ;;  %vm1910_vm13 = vcmp.eq.s32.totalorder %v6288_v57, 1  ;;  %v6346_v36 = vpop.permute.xlu1 %1798 }
 0x27d   :  { %v1701_v9 = vmax.f32 %v1685_v18, 0.0  ;;  %v1623_v29 = vadd.f32 %v4807_v38, %v4669_v40  ;;  %v3687_v35 = vmul.f32 %v6319_v43, %v6319_v43  ;;  %v6338_v40 = vpop.permute.xlu0 %1885 }
 0x27e   :  { %v4671_v53 = vpop.f32.mrf.mxu1 }
 0x27f   :  { %v1686_v22 = vadd.f32 %v6307_v59, %v1623_v29  ;;  %v4672_v32 = vadd.f32 %v4671_v53, %v4670_v39  ;;  %3703 = vadd.xlane.f32.xlu1 %v3687_v35  ;;  %v1829_v19 = vsel %vm1813_vm0, %v1701_v9, 0.0  ;;  %v7667_v9 = vmax.f32 %v6024_v30, 0.0 }
 0x280   :  { %v4673_v62 = vpop.f32.mrf.mxu1  ;;  %v6330_v45 = vsel %vm1909_vm8, %v7666_v58, %v1829_v19  ;;  %v7668_v35 = vmov 0   ;;  %vm1815_vm0 = vcmp.eq.s32.totalorder %v6282_v31, 1  ;;  %vm1911_vm8 = vcmp.eq.s32.totalorder %v6286_v37, 1 }
 0x281   :  { %v1702_v38 = vmax.f32 %v1686_v22, 0.0  ;;  %v1626_v50 = vadd.f32 %v4808_v17, %v4672_v32  ;;  %v3688_v23 = vmul.f32 %v6330_v45, %v6330_v45  ;;  %v1940_v49 = vpack.c.bf16 %v6330_v45, %v6319_v43  ;;  %v4812_v17 = vpop.f32.mrf.mxu0 }
 0x282   :  { %v4674_v18 = vpop.f32.mrf.mxu1 }
 0x283   :  { %v1687_v25 = vadd.f32 %v6307_v59, %v1626_v50  ;;  %v4675_v33 = vadd.f32 %v4674_v18, %v4673_v62  ;;  %3705 = vadd.xlane.f32.xlu0 %v3688_v23  ;;  %2158 = vmatmul.mubr.bf16.vlgmr.msra.gmra.mxu0 %v1940_v49  ;;  %v1830_v39 = vsel %vm1814_vm12, %v1702_v38, 0.0  ;;  %v1633_v58 = vpop.f32.mrf.mxu0  ;;  %v7669_v50 = vmax.f32 %v6016_v28, 0.0 }
 0x284   :  { %4837 = vmatprep.mubr.bf16.mxu1 %v1940_v49  ;;  %v4676_v6 = vpop.f32.mrf.mxu1  ;;  %v6343_v29 = vsel %vm1910_vm13, %v7667_v9, %v1830_v39  ;;  %2167 = vmatprep.mubr.bf16.mxu0 %v7668_v35  ;;  %vm1816_vm12 = vcmp.eq.s32.totalorder %v6292_v24, 1  ;;  %vm1912_vm13 = vcmp.eq.s32.totalorder %v6296_v10, 1 }
 0x285   :  { %v1703_v57 = vmax.f32 %v1687_v25, 0.0  ;;  %v1631_v53 = vadd.f32 %v4675_v33, %v1630_v27  ;;  %v3689_v22 = vmul.f32 %v6343_v29, %v6343_v29  ;;  %v6357_v27 = vpop.permute.xlu0 %1795  ;;  %v6365_v33 = vpop.permute.xlu1 %1894 }
 0x286   :  { %v4677_v32 = vpop.f32.mrf.mxu1  ;;  %v6368_v9 = vpop.f32.mrf.mxu0 }
 0x287   :  { %v1688_v19 = vadd.f32 %v6307_v59, %v1631_v53  ;;  %v4678_v62 = vadd.f32 %v4677_v32, %v4676_v6  ;;  %3707 = vadd.xlane.f32.xlu1 %v3689_v22  ;;  %v1831_v30 = vsel %vm1815_vm0, %v1703_v57, 0.0  ;;  %v7670_v53 = vmax.f32 %v6073_v48, 0.0 }
 0x288   :  { %v4679_v38 = vpop.f32.mrf.mxu1  ;;  %v6355_v23 = vsel %vm1911_vm8, %v7669_v50, %v1831_v30  ;;  %vm1817_vm0 = vcmp.eq.s32.totalorder %v6290_v4, 1  ;;  %vm1913_vm8 = vcmp.eq.s32.totalorder %v6294_v15, 1 }
 0x289   :  { %v1704_v49 = vmax.f32 %v1688_v19, 0.0  ;;  %v1634_v18 = vadd.f32 %v4678_v62, %v1633_v58  ;;  %v3690_v31 = vmul.f32 %v6355_v23, %v6355_v23  ;;  %v1941_v37 = vpack.c.bf16 %v6355_v23, %v6343_v29  ;;  %v6380_v62 = vpop.permute.xlu0 %1891 }
 0x28a   :  { %v4680_v25 = vpop.f32.mrf.mxu1 }
 0x28b   :  { %v1689_v28 = vadd.f32 %v6307_v59, %v1634_v18  ;;  %v4681_v39 = vadd.f32 %v4680_v25, %v4679_v38  ;;  %3709 = vadd.xlane.f32.xlu0 %v3690_v31  ;;  %2168 = vmatmul.mubr.bf16.gmra.mxu0 %v1941_v37  ;;  %v1832_v6 = vsel %vm1816_vm12, %v1704_v49, 0.0  ;;  %v1646_v38 = vpop.f32.mrf.mxu0  ;;  %v7671_v49 = vmax.f32 %v6094_v61, 0.0  ;;  %v6387_v18 = vpop.permute.xlu1 %1804 }
 0x28c   :  { %4838 = vmatmul.mubr.bf16.vlgmr.msra.gmra.mxu1 %v1941_v37  ;;  %v4682_v57 = vpop.f32.mrf.mxu1  ;;  %v6372_v22 = vsel %vm1912_vm13, %v7670_v53, %v1832_v6  ;;  %2177 = vmatprep.mubr.bf16.mxu0 %v7668_v35  ;;  %vm1818_vm12 = vcmp.eq.s32.totalorder %v6300_v41, 1  ;;  %vm1914_vm13 = vcmp.eq.s32.totalorder %v6309_v20, 1 }
 0x28d   :  { %v1705_v24 = vmax.f32 %v1689_v28, 0.0  ;;  %v1639_v10 = vadd.f32 %v6315_v1, %v4681_v39  ;;  %v3691_v32 = vmul.f32 %v6372_v22, %v6372_v22  ;;  %v4816_v6 = vpop.f32.mrf.mxu0 }
 0x28e   :  { %v4683_v19 = vpop.f32.mrf.mxu1 }
 0x28f   :  { %v1690_v30 = vadd.f32 %v6307_v59, %v1639_v10  ;;  %v4684_v48 = vadd.f32 %v4683_v19, %v4682_v57  ;;  %3711 = vadd.xlane.f32.xlu1 %v3691_v32  ;;  %v1833_v58 = vsel %vm1817_vm0, %v1705_v24, 0.0  ;;  %v7672_v57 = vmax.f32 %v6062_v44, 0.0  ;;  %v6401_v24 = vpop.permute.xlu0 %1801  ;;  %v6407_v19 = vpop.permute.xlu1 %1900 }
 0x290   :  { %v4685_v50 = vpop.f32.mrf.mxu1  ;;  %v6385_v1 = vsel %vm1913_vm8, %v7671_v49, %v1833_v58  ;;  %vm1819_vm0 = vcmp.eq.s32.totalorder %v6298_v3, 1  ;;  %vm1915_vm8 = vcmp.eq.s32.totalorder %v6302_v21, 1  ;;  %v1649_v58 = vpop.f32.mrf.mxu0  ;;  %v7673_v49 = vmax.f32 %v6081_v51, 0.0 }
 0x291   :  { %v1706_v31 = vmax.f32 %v1690_v30, 0.0  ;;  %v1642_v4 = vadd.f32 %v4812_v17, %v4684_v48  ;;  %v3692_v15 = vmul.f32 %v6385_v1, %v6385_v1  ;;  %v1942_v37 = vpack.c.bf16 %v6385_v1, %v6372_v22 }
 0x292   :  { %v4686_v25 = vpop.f32.mrf.mxu1 }
 0x293   :  { %v1691_v28 = vadd.f32 %v6307_v59, %v1642_v4  ;;  %v4687_v61 = vadd.f32 %v4686_v25, %v4685_v50  ;;  %3713 = vadd.xlane.f32.xlu0 %v3692_v15  ;;  %2178 = vmatmul.mubr.bf16.gmra.mxu0 %v1942_v37  ;;  %v1834_v39 = vsel %vm1818_vm12, %v1706_v31, 0.0  ;;  %v5134_v31 = vld [vmem:[#allocation17 + $0xe4] ss:$16 sps:$4 sm:$0xff]   ;;  %vm1820_vm12 = vcmp.eq.s32.totalorder %v6321_v54, 1 }
 0x294   :  { %4841 = vmatprep.mubr.bf16.mxu1 %v1942_v37  ;;  %v4688_v17 = vpop.f32.mrf.mxu1  ;;  %v6398_v53 = vsel %vm1914_vm13, %v7672_v57, %v1834_v39  ;;  %2187 = vmatprep.mubr.bf16.mxu0 %v7668_v35  ;;  %v5132_v37 = vld [vmem:[#allocation17 + $0xe0] ss:$16 sps:$4 sm:$0xff]   ;;  %vm1916_vm13 = vcmp.eq.s32.totalorder %v6338_v40, 1  ;;  %v5137_v54 = vld [vmem:[#allocation17 + $0xc4] ss:$16 sps:$4 sm:$0xff]   ;;  %v6430_v40 = vpop.permute.xlu1 %1810 }
 0x295   :  { %v1707_v41 = vmax.f32 %v1691_v28, 0.0  ;;  %v1647_v10 = vadd.f32 %v4687_v61, %v1646_v38  ;;  %v3693_v20 = vmul.f32 %v6398_v53, %v6398_v53  ;;  %2997 = vmatprep.subr.bf16.mxu0 %v5134_v31  ;;  %v6420_v28 = vpop.permute.xlu0 %1897 }
 0x296   :  { %v4689_v32 = vpop.f32.mrf.mxu1  ;;  %2998 = vmatpush1.bf16.msra.mxu0 %v5132_v37 }
 0x297   :  { %v1692_v44 = vadd.f32 %v6307_v59, %v1647_v10  ;;  %v4690_v30 = vadd.f32 %v4689_v32, %v4688_v17  ;;  %3715 = vadd.xlane.f32.xlu1 %v3693_v20  ;;  %v1835_v48 = vsel %vm1819_vm0, %v1707_v41, 0.0  ;;  %v6423_v17 = vpop.f32.mrf.mxu0  ;;  %v7674_v41 = vmax.f32 %v6123_v13, 0.0  ;;  %2999 = vmatprep.subr.bf16.mxu0 %v5137_v54 }
 0x298   :  { %v4691_v50 = vpop.f32.mrf.mxu1  ;;  %v6412_v38 = vsel %vm1915_vm8, %v7673_v49, %v1835_v48  ;;  %vm1821_vm0 = vcmp.eq.s32.totalorder %v6312_v2, 1  ;;  %vm1917_vm8 = vcmp.eq.s32.totalorder %v6325_v34, 1  ;;  %v7676_v54 = vmax.f32 %v6116_v8, 0.0 }
 0x299   :  { %v1708_v4 = vmax.f32 %v1692_v44, 0.0  ;;  %v1650_v15 = vadd.f32 %v4690_v30, %v1649_v58  ;;  %v3694_v3 = vmul.f32 %v6412_v38, %v6412_v38  ;;  %v1943_v21 = vpack.c.bf16 %v6412_v38, %v6398_v53  ;;  %v5135_v30 = vld [vmem:[#allocation17 + $0xc0] ss:$16 sps:$4 sm:$0xff]   ;;  %v1662_v49 = vpop.f32.mrf.mxu0 }
 0x29a   :  { %v4692_v25 = vpop.f32.mrf.mxu1  ;;  %3000 = vmatpush1.bf16.msra.mxu0 %v5135_v30  ;;  %v5141_v30 = vld [vmem:[#allocation17 + $0x80] ss:$16 sps:$4 sm:$0xff]  }
 0x29b   :  { %v1693_v51 = vadd.f32 %v6307_v59, %v1650_v15  ;;  %v4693_v61 = vadd.f32 %v4692_v25, %v4691_v50  ;;  %3717 = vadd.xlane.f32.xlu0 %v3694_v3  ;;  %2188 = vmatmul.mubr.bf16.gmra.mxu0 %v1943_v21  ;;  %v1836_v39 = vsel %vm1820_vm12, %v1708_v4, 0.0  ;;  %v5140_v15 = vld [vmem:[#allocation17 + $0xa4] ss:$16 sps:$4 sm:$0xff]   ;;  %v6442_v3 = vpop.permute.xlu0 %1807  ;;  %v5138_v25 = vld [vmem:[#allocation17 + $0xa0] ss:$16 sps:$4 sm:$0xff]   ;;  %vm1822_vm12 = vcmp.eq.s32.totalorder %v6357_v27, 1 }
 0x29c   :  { %4842 = vmatmul.mubr.bf16.gmra.mxu1 %v1943_v21  ;;  %v4694_v57 = vpop.f32.mrf.mxu1  ;;  %v6427_v10 = vsel %vm1916_vm13, %v7674_v41, %v1836_v39  ;;  %2197 = vmatprep.mubr.bf16.mxu0 %v7668_v35  ;;  %vm1918_vm13 = vcmp.eq.s32.totalorder %v6380_v62, 1  ;;  %v5143_v27 = vld [vmem:[#allocation17 + $0x84] ss:$16 sps:$4 sm:$0xff]  }
 0x29d   :  { %v1709_v20 = vmax.f32 %v1693_v51, 0.0  ;;  %v1655_v32 = vadd.f32 %v6368_v9, %v4693_v61  ;;  %v3695_v44 = vmul.f32 %v6427_v10, %v6427_v10  ;;  %v7675_v9 = vmax.f32 %v6144_v26, 0.0  ;;  %3001 = vmatprep.subr.bf16.mxu0 %v5140_v15  ;;  %v6450_v26 = vpop.permute.xlu1 %1906 }
 0x29e   :  { %v4695_v48 = vpop.f32.mrf.mxu1  ;;  %3002 = vmatpush1.bf16.msra.mxu0 %v5138_v25  ;;  %v7677_v15 = vmax.f32 %v6131_v16, 0.0  ;;  %v5144_v25 = vld [vmem:[#allocation17 + $0x60] ss:$16 sps:$4 sm:$0xff]  }
 0x29f   :  { %v1694_v13 = vadd.f32 %v6307_v59, %v1655_v32  ;;  %v4696_v58 = vadd.f32 %v4695_v48, %v4694_v57  ;;  %3719 = vadd.xlane.f32.xlu1 %v3695_v44  ;;  %v1837_v50 = vsel %vm1821_vm0, %v1709_v20, 0.0  ;;  %v6453_v57 = vpop.f32.mrf.mxu0  ;;  %vm1823_vm0 = vcmp.eq.s32.totalorder %v6346_v36, 1  ;;  %3003 = vmatprep.subr.bf16.mxu0 %v5143_v27  ;;  %v5146_v36 = vld [vmem:[#allocation17 + $0x64] ss:$16 sps:$4 sm:$0xff]  }
 0x2a0   :  { %v4697_v31 = vpop.f32.mrf.mxu1  ;;  %v6440_v4 = vsel %vm1917_vm8, %v7675_v9, %v1837_v50  ;;  %vm1919_vm8 = vcmp.eq.s32.totalorder %v6365_v33, 1 }
 0x2a1   :  { %v1710_v21 = vmax.f32 %v1694_v13, 0.0  ;;  %v1658_v2 = vadd.f32 %v4816_v6, %v4696_v58  ;;  %v3696_v37 = vmul.f32 %v6440_v4, %v6440_v4  ;;  %v1944_v34 = vpack.c.bf16 %v6440_v4, %v6427_v10  ;;  %v6464_v13 = vpop.permute.xlu0 %1903 }
 0x2a2   :  { %v4698_v51 = vpop.f32.mrf.mxu1  ;;  %3004 = vmatpush1.bf16.msra.mxu0 %v5141_v30 }
 0x2a3   :  { %v1695_v61 = vadd.f32 %v6307_v59, %v1658_v2  ;;  %v4699_v39 = vadd.f32 %v4698_v51, %v4697_v31  ;;  %3721 = vadd.xlane.f32.xlu0 %v3696_v37  ;;  %2198 = vmatmul.mubr.bf16.gmra.mxu0 %v1944_v34  ;;  %v1838_v6 = vsel %vm1822_vm12, %v1710_v21, 0.0  ;;  %v6467_v31 = vpop.xlane.xlu1 %3815  ;;  %vm1824_vm12 = vcmp.eq.s32.totalorder %v6401_v24, 1  ;;  %v5149_v24 = vld [vmem:[#allocation17 + $0x44] ss:$16 sps:$4 sm:$0xff]  }
 0x2a4   :  { %4845 = vmatprep.mubr.bf16.mxu1 %v1944_v34  ;;  %v4700_v41 = vpop.f32.mrf.mxu1  ;;  %v6457_v20 = vsel %vm1918_vm13, %v7676_v54, %v1838_v6  ;;  %2207 = vmatprep.mubr.bf16.mxu0 %v7668_v35  ;;  %vm1920_vm13 = vcmp.eq.s32.totalorder %v6420_v28, 1 }
 0x2a5   :  { %v1711_v62 = vmax.f32 %v1695_v61, 0.0  ;;  %v1663_v32 = vadd.f32 %v4699_v39, %v1662_v49  ;;  %v3697_v44 = vmul.f32 %v6457_v20, %v6457_v20  ;;  %v1665_v49 = vpop.f32.mrf.mxu0  ;;  %3005 = vmatprep.subr.bf16.mxu0 %v5146_v36  ;;  %v6485_v27 = vpop.xlane.xlu0 %3817 }
 0x2a6   :  { %v4701_v48 = vpop.f32.mrf.mxu1  ;;  %3006 = vmatpush1.bf16.msra.mxu0 %v5144_v25  ;;  %v5156_v25 = vld [vmem:[#allocation17 + $0x4] ss:$16 sps:$4 sm:$0xff]  }
 0x2a7   :  { %v1696_v8 = vadd.f32 %v6307_v59, %v1663_v32  ;;  %v4702_v58 = vadd.f32 %v4701_v48, %v4700_v41  ;;  %3723 = vadd.xlane.f32.xlu1 %v3697_v44  ;;  %v1839_v50 = vsel %vm1823_vm0, %v1711_v62, 0.0  ;;  %v7678_v41 = vmax.f32 %v6162_v47, 0.0  ;;  %v5147_v44 = vld [vmem:[#allocation17 + $0x40] ss:$16 sps:$4 sm:$0xff]   ;;  %v6491_v48 = vpop.xlane.xlu1 %3819  ;;  %3007 = vmatprep.subr.bf16.mxu0 %v5149_v24 }
 0x2a8   :  { %v4703_v9 = vpop.f32.mrf.mxu1  ;;  %v6471_v21 = vsel %vm1919_vm8, %v7677_v15, %v1839_v50  ;;  %vm1825_vm0 = vcmp.eq.s32.totalorder %v6387_v18, 1  ;;  %vm1921_vm8 = vcmp.eq.s32.totalorder %v6407_v19, 1  ;;  %v5150_v19 = vld [vmem:[#allocation17 + $0x20] ss:$16 sps:$4 sm:$0xff]   ;;  %v3849_v5 = vmax.f32 %v6491_v48, 1e-24 }
 0x2a9   :  { %v1712_v2 = vmax.f32 %v1696_v8, 0.0  ;;  %v1666_v37 = vadd.f32 %v4702_v58, %v1665_v49  ;;  %v3698_v33 = vmul.f32 %v6471_v21, %v6471_v21  ;;  %v1945_v34 = vpack.c.bf16 %v6471_v21, %v6457_v20  ;;  %v5152_v49 = vld [vmem:[#allocation17 + $0x24] ss:$16 sps:$4 sm:$0xff]   ;;  %v5158_v24 = vld [vmem:[#allocation17 + $0x1e0] ss:$16 sps:$4 sm:$0xff]  }
 0x2aa   :  { %v4704_v51 = vpop.f32.mrf.mxu1  ;;  %3008 = vmatpush1.bf16.msra.mxu0 %v5147_v44 }
 0x2ab   :  { %v1697_v16 = vadd.f32 %v6307_v59, %v1666_v37  ;;  %v4705_v61 = vadd.f32 %v4704_v51, %v4703_v9  ;;  %3725 = vadd.xlane.f32.xlu0 %v3698_v33  ;;  %2208 = vmatmul.mubr.bf16.gmra.mxu0 %v1945_v34  ;;  %v1840_v39 = vsel %vm1824_vm12, %v1712_v2, 0.0  ;;  %vm1826_vm12 = vcmp.eq.s32.totalorder %v6442_v3, 1  ;;  %v6505_v2 = vpop.xlane.xlu0 %3821  ;;  %v5153_v3 = vld [vmem:[#allocation16 + $0x38] sm:$0xff]  }
 0x2ac   :  { %4846 = vmatmul.mubr.bf16.gmra.mxu1 %v1945_v34  ;;  %v4706_v6 = vpop.f32.mrf.mxu1  ;;  %v6482_v54 = vsel %vm1920_vm13, %v7678_v41, %v1840_v39  ;;  %2217 = vmatprep.mubr.bf16.mxu0 %v7668_v35  ;;  %vm1922_vm13 = vcmp.eq.s32.totalorder %v6464_v13, 1  ;;  %v7680_v37 = vmax.f32 %v6156_v42, 0.0  ;;  %v6514_v34 = vpop.xlane.xlu1 %3823  ;;  %v5157_v39 = vld [vmem:[#allocation16 + $0x30] sm:$0xff]  }
 0x2ad   :  { %v1713_v62 = vmax.f32 %v1697_v16, 0.0  ;;  %v1671_v28 = vadd.f32 %v6423_v17, %v4705_v61  ;;  %v3699_v32 = vmul.f32 %v6482_v54, %v6482_v54  ;;  %v7679_v17 = vmax.f32 %v6175_v7, 0.0  ;;  %3009 = vmatprep.subr.bf16.mxu0 %v5152_v49  ;;  %4853 = vmatprep.subr.bf16.mxu1 %v5153_v3  ;;  %v5172_v49 = vld [vmem:[#allocation17 + $0x184] ss:$16 sps:$4 sm:$0xff]  }
 0x2ae   :  { %v4707_v30 = vpop.f32.mrf.mxu1  ;;  %3010 = vmatpush1.bf16.msra.mxu0 %v5150_v19  ;;  %4854 = vmatpush3.bf16.msra.mxu1 %v5153_v3  ;;  %v5174_v19 = vld [vmem:[#allocation17 + $0x160] ss:$16 sps:$4 sm:$0xff]   ;;  %v5180_v3 = vld [vmem:[#allocation17 + $0x144] ss:$16 sps:$4 sm:$0xff]  }
 0x2af   :  { %v1698_v47 = vadd.f32 %v6307_v59, %v1671_v28  ;;  %v4708_v8 = vadd.f32 %v4707_v30, %v4706_v6  ;;  %3727 = vadd.xlane.f32.xlu1 %v3699_v32  ;;  %v1841_v58 = vsel %vm1825_vm0, %v1713_v62, 0.0  ;;  %vm1827_vm0 = vcmp.eq.s32.totalorder %v6430_v40, 1  ;;  %3011 = vmatprep.subr.bf16.mxu0 %v5156_v25  ;;  %v6524_v61 = vpop.xlane.xlu0 %3825  ;;  %v5160_v6 = vld [vmem:[#allocation17 + $0x1e4] ss:$16 sps:$4 sm:$0xff]   ;;  %v5162_v28 = vld [vmem:[#allocation17 + $0x1c0] ss:$16 sps:$4 sm:$0xff]  }
 0x2b0   :  { %v6497_v50 = vsel %vm1921_vm8, %v7679_v17, %v1841_v58  ;;  %vm1923_vm8 = vcmp.eq.s32.totalorder %v6450_v26, 1  ;;  %v6530_v26 = vpop.xlane.xlu1 %3827  ;;  %4855 = vmatprep.subr.bf16.mxu1 %v5157_v39  ;;  %v5164_v62 = vld [vmem:[#allocation17 + $0x1c4] ss:$16 sps:$4 sm:$0xff]   ;;  %v5169_v17 = vld [vmem:[#allocation16 + $0x18] sm:$0xff]   ;;  %v5178_v25 = vld [vmem:[#allocation17 + $0x140] ss:$16 sps:$4 sm:$0xff]  }
 0x2b1   :  { %v1714_v9 = vmax.f32 %v1698_v47, 0.0  ;;  %v1674_v15 = vadd.f32 %v6453_v57, %v4708_v8  ;;  %v3700_v18 = vmul.f32 %v6497_v50, %v6497_v50  ;;  %v1946_v36 = vpack.c.bf16 %v6497_v50, %v6482_v54  ;;  %v5165_v30 = vld [vmem:[#allocation16 + $0x20] sm:$0xff]  }
 0x2b2   :  { %4856 = vmatpush3.bf16.msra.mxu1 %v5157_v39  ;;  %v5168_v47 = vld [vmem:[#allocation17 + $0x1a4] ss:$16 sps:$4 sm:$0xff]   ;;  %v5166_v8 = vld [vmem:[#allocation17 + $0x1a0] ss:$16 sps:$4 sm:$0xff]  }
 0x2b3   :  { %v1699_v7 = vadd.f32 %v6307_v59, %v1674_v15  ;;  %3729 = vadd.xlane.f32.xlu0 %v3700_v18  ;;  %2218 = vmatmul.mubr.bf16.gmra.mxu0 %v1946_v36  ;;  %v1842_v57 = vsel %vm1826_vm12, %v1714_v9, 0.0  ;;  %v5154_v59 = vld [vmem:[#allocation17] ss:$16 sps:$4 sm:$0xff]   ;;  %v6532_v32 = vpop.xlane.xlu0 %3829  ;;  %v5187_v39 = vld [vmem:[#allocation17 + $0x104] ss:$16 sps:$4 sm:$0xff]  }
 0x2b4   :  { %4849 = vmatprep.mubr.bf16.mxu1 %v1946_v36  ;;  %v6511_v33 = vsel %vm1922_vm13, %v7680_v37, %v1842_v57  ;;  %2227 = vmatprep.mubr.bf16.mxu0 %v7668_v35  ;;  %v7681_v35 = vmax.f32 %v6169_v52, 0.0  ;;  %v5161_v52 = vld [vmem:[#allocation16 + $0x28] sm:$0xff]   ;;  %v6534_v44 = vpop.xlane.xlu1 %3831  ;;  %v5170_v9 = vld [vmem:[#allocation17 + $0x180] ss:$16 sps:$4 sm:$0xff]   ;;  %v5176_v36 = vld [vmem:[#allocation17 + $0x164] ss:$16 sps:$4 sm:$0xff]  }
 0x2b5   :  { %v1715_v51 = vmax.f32 %v1699_v7, 0.0  ;;  %v3701_v13 = vmul.f32 %v6511_v33, %v6511_v33  ;;  %3012 = vmatpush1.bf16.msra.mxu0 %v5154_v59  ;;  %4857 = vmatprep.subr.bf16.mxu1 %v5161_v52  ;;  %v5173_v18 = vld [vmem:[#allocation16 + $0x10] sm:$0xff]   ;;  %v5177_v37 = vld [vmem:[#allocation16 + $0x8] sm:$0xff]  }
 0x2b6   :  { %3013 = vmatprep.subr.bf16.mxu0 %v5160_v6  ;;  %4858 = vmatpush3.bf16.msra.mxu1 %v5161_v52  ;;  %v5184_v59 = vld [vmem:[#allocation17 + $0x124] ss:$16 sps:$4 sm:$0xff]   ;;  %v5190_v6 = vld [vmem:[#allocation17 + $0xec] ss:$16 sps:$4 sm:$0xff]  }
 0x2b7   :  { %3731 = vadd.xlane.f32.xlu1 %v3701_v13  ;;  %v1843_v42 = vsel %vm1827_vm0, %v1715_v51, 0.0  ;;  %4859 = vmatprep.subr.bf16.mxu1 %v5165_v30  ;;  %v6536_v58 = vpop.xlane.xlu0 %3833  ;;  %v5181_v13 = vld [vmem:[#allocation16] sm:$0xff]  }
 0x2b8   :  { %v6522_v16 = vsel %vm1923_vm8, %v7681_v35, %v1843_v42  ;;  %v6538_v15 = vpop.xlane.xlu1 %3835  ;;  %v5182_v42 = vld [vmem:[#allocation17 + $0x120] ss:$16 sps:$4 sm:$0xff]  }
 0x2b9   :  { %v3702_v41 = vmul.f32 %v6522_v16, %v6522_v16  ;;  %v1947_v40 = vpack.c.bf16 %v6522_v16, %v6511_v33  ;;  %3014 = vmatpush2.bf16.msra.mxu0 %v5158_v24 }
 0x2ba   :  { %3015 = vmatprep.subr.bf16.mxu0 %v5164_v62  ;;  %4860 = vmatpush3.bf16.msra.mxu1 %v5165_v30 }
 0x2bb   :  { %3733 = vadd.xlane.f32.xlu0 %v3702_v41  ;;  %2228 = vmatmul.mubr.bf16.gmra.mxu0 %v1947_v40  ;;  %v6540_v7 = vpop.xlane.xlu0 %3837  ;;  %v5185_v41 = vld [vmem:[#allocation17 + $0x100] ss:$16 sps:$4 sm:$0xff]  }
 0x2bc   :  { %4850 = vmatmul.mubr.bf16.gmra.mxu1 %v1947_v40  ;;  %4861 = vmatprep.subr.bf16.mxu1 %v5169_v17  ;;  %v6542_v57 = vpop.xlane.xlu1 %3839 }
 0x2bd   :  { %3016 = vmatpush2.bf16.msra.mxu0 %v5162_v28 }
 0x2be   :  { %3017 = vmatprep.subr.bf16.mxu0 %v5168_v47  ;;  %4862 = vmatpush3.bf16.msra.mxu1 %v5169_v17 }
 0x2bf   :  { %4863 = vmatprep.subr.bf16.mxu1 %v5173_v18  ;;  %v6544_v51 = vpop.xlane.xlu0 %3841 }
 0x2c0   :  { %v6546_v35 = vpop.xlane.xlu1 %3843 }
 0x2c1   :  { %3018 = vmatpush2.bf16.msra.mxu0 %v5166_v8 }
 0x2c2   :  { %3019 = vmatprep.subr.bf16.mxu0 %v5172_v49  ;;  %4864 = vmatpush3.bf16.msra.mxu1 %v5173_v18 }
 0x2c3   :  { %4865 = vmatprep.subr.bf16.mxu1 %v5177_v37  ;;  %v6548_v40 = vpop.xlane.xlu0 %3845 }
 0x2c4   :  { %v3928_v24 = vpop.xlane.xlu1 %3927 }
 0x2c5   :  { %3020 = vmatpush2.bf16.msra.mxu0 %v5170_v9 }
 0x2c6   :  { %3021 = vmatprep.subr.bf16.mxu0 %v5176_v36  ;;  %4866 = vmatpush3.bf16.msra.mxu1 %v5177_v37 }
 0x2c7   :  { %4867 = vmatprep.subr.bf16.mxu1 %v5181_v13  ;;  %v3930_v52 = vpop.xlane.xlu0 %3929 }
 0x2c8   :  { %v3932_v62 = vpop.xlane.xlu1 %3931 }
 0x2c9   :  { %3022 = vmatpush2.bf16.msra.mxu0 %v5174_v19  ;;  %v3961_v11 = vmax.f32 %v3932_v62, 1e-24 }
 0x2ca   :  { %3023 = vmatprep.subr.bf16.mxu0 %v5180_v3  ;;  %4868 = vmatpush3.bf16.msra.mxu1 %v5181_v13  ;;  %v3959_v13 = vmax.f32 %v3928_v24, 1e-24 }
 0x2cb   :  { %4885 = vmatprep.subr.bf16.mxu1 %v5190_v6  ;;  %v3934_v28 = vpop.xlane.xlu0 %3933 }
 0x2cc   :  { %v3936_v30 = vpop.xlane.xlu1 %3935  ;;  %v3962_v24 = vmax.f32 %v3934_v28, 1e-24 }
 0x2cd   :  { %3024 = vmatpush2.bf16.msra.mxu0 %v5178_v25  ;;  %v3847_v25 = vmax.f32 %v6467_v31, 1e-24  ;;  %v3850_v31 = vmax.f32 %v6505_v2, 1e-24  ;;  %v3963_v48 = vmax.f32 %v3936_v30, 1e-24 }
 0x2ce   :  { %3025 = vmatprep.subr.bf16.mxu0 %v5184_v59  ;;  %v3848_v59 = vmax.f32 %v6485_v27, 1e-24 }
 0x2cf   :  { %v6550_v47 = vpop.xlane.xlu0 %3937  ;;  %5236 = vrsqrt.f32 %v3847_v25 }
 0x2d0   :  { %v6552_v8 = vpop.xlane.xlu1 %3939  ;;  %5238 = vrsqrt.f32 %v3959_v13  ;;  %v3964_v62 = vmax.f32 %v6550_v47, 1e-24 }
 0x2d1   :  { %3026 = vmatpush2.bf16.msra.mxu0 %v5182_v42  ;;  %5240 = vrsqrt.f32 %v3848_v59  ;;  %v3965_v47 = vmax.f32 %v6552_v8, 1e-24 }
 0x2d2   :  { %3027 = vmatprep.subr.bf16.mxu0 %v5187_v39 }
 0x2d3   :  { %v6554_v17 = vpop.xlane.xlu0 %3941 }
 0x2d4   :  { %v6556_v49 = vpop.xlane.xlu1 %3943  ;;  %v3966_v8 = vmax.f32 %v6554_v17, 1e-24 }
 0x2d5   :  { %3028 = vmatpush2.bf16.msra.mxu0 %v5185_v41  ;;  %v3967_v17 = vmax.f32 %v6556_v49, 1e-24 }
 0x2d6   :  { %3110 = vmatprep.subr.bf16.mxu0 %v5190_v6  ;;  %v3960_v6 = vmax.f32 %v3930_v52, 1e-24  ;;  %v3851_v52 = vmax.f32 %v6514_v34, 1e-24 }
 0x2d7   :  { %v6558_v9 = vpop.xlane.xlu0 %3945 }
 0x2d8   :  { %v6560_v18 = vpop.xlane.xlu1 %3947  ;;  %v3968_v49 = vmax.f32 %v6558_v9, 1e-24 }
 0x2d9   :  { %v3969_v9 = vmax.f32 %v6560_v18, 1e-24 }
 0x2db   :  { %v6562_v36 = vpop.xlane.xlu0 %3949 }
 0x2dc   :  { %v6564_v19 = vpop.xlane.xlu1 %3951  ;;  %v5237_v13 = vpop.eup %5236  ;;  %v3970_v18 = vmax.f32 %v6562_v36, 1e-24 }
 0x2dd   :  { %v3971_v36 = vmax.f32 %v6564_v19, 1e-24 }
 0x2df   :  { %v6566_v37 = vpop.xlane.xlu0 %3953 }
 0x2e0   :  { %v6568_v3 = vpop.xlane.xlu1 %3955  ;;  %v3972_v19 = vmax.f32 %v6566_v37, 1e-24 }
 0x2e1   :  { %v3973_v37 = vmax.f32 %v6568_v3, 1e-24 }
 0x2e3   :  { %v6572_v42 = vpop.xlane.xlu0 %3957 }
 0x308   :  { %v3704_v39 = vpop.xlane.xlu1 %3703 }
 0x309   :  { %v3735_v41 = vmax.f32 %v3704_v39, 1e-24 }
 0x30b   :  { %5242 = vrsqrt.f32 %v3735_v41 }
 0x30c   :  { %v3706_v12 = vpop.xlane.xlu0 %3705  ;;  %5244 = vrsqrt.f32 %v3960_v6  ;;  %v5239_v6 = vpop.eup %5238 }
 0x30d   :  { %v3736_v0 = vmax.f32 %v3706_v12, 1e-24  ;;  %5246 = vrsqrt.f32 %v3849_v5  ;;  %v3852_v5 = vmax.f32 %v6524_v61, 1e-24  ;;  %v5241_v12 = vpop.eup %5240 }
 0x30f   :  { %5248 = vrsqrt.f32 %v3736_v0  ;;  %v5332_v0 = vld [vmem:[#allocation7] sm:$0xff] }
 0x310   :  { %v3708_v27 = vpop.xlane.xlu1 %3707  ;;  %5250 = vrsqrt.f32 %v3961_v11  ;;  %v3879_v2 = vmul.f32 %v5332_v0, %v5237_v13 }
 0x311   :  { %v3737_v25 = vmax.f32 %v3708_v27, 1e-24  ;;  %5252 = vrsqrt.f32 %v3850_v31  ;;  %v5333_v31 = vld [vmem:[#allocation5] sm:$0xff] }
 0x312   :  { %v3991_v27 = vmul.f32 %v5333_v31, %v5239_v6 }
 0x313   :  { %5254 = vrsqrt.f32 %v3737_v25 }
 0x314   :  { %v3710_v59 = vpop.xlane.xlu0 %3709  ;;  %5256 = vrsqrt.f32 %v3962_v24  ;;  %v3853_v24 = vmax.f32 %v6530_v26, 1e-24  ;;  %v3854_v26 = vmax.f32 %v6532_v32, 1e-24  ;;  %v3855_v32 = vmax.f32 %v6534_v44, 1e-24 }
 0x315   :  { %v3738_v39 = vmax.f32 %v3710_v59, 1e-24  ;;  %5258 = vrsqrt.f32 %v3851_v52  ;;  %v5334_v52 = vld [vmem:[#allocation7 + $0x8] sm:$0xff]  ;;  %v3856_v44 = vmax.f32 %v6536_v58, 1e-24 }
 0x316   :  { %v3880_v59 = vmul.f32 %v5334_v52, %v5241_v12  ;;  %v5336_v12 = vld [vmem:[#allocation7 + $0x10] sm:$0xff]  ;;  %v3857_v58 = vmax.f32 %v6538_v15, 1e-24  ;;  %v3858_v15 = vmax.f32 %v6540_v7, 1e-24 }
 0x317   :  { %5260 = vrsqrt.f32 %v3738_v39  ;;  %v3859_v7 = vmax.f32 %v6542_v57, 1e-24  ;;  %v3860_v57 = vmax.f32 %v6544_v51, 1e-24  ;;  %v3861_v51 = vmax.f32 %v6546_v35, 1e-24 }
 0x318   :  { %v5243_v11 = vpop.eup %5242  ;;  %v3712_v28 = vpop.xlane.xlu1 %3711  ;;  %5262 = vrsqrt.f32 %v3963_v48  ;;  %v3862_v35 = vmax.f32 %v6548_v40, 1e-24 }
 0x319   :  { %v3739_v34 = vmax.f32 %v3712_v28, 1e-24  ;;  %v3767_v41 = vmul.f32 %v5243_v11, %v6319_v43  ;;  %v5245_v30 = vpop.eup %5244  ;;  %5264 = vrsqrt.f32 %v3852_v5  ;;  %v5335_v11 = vld [vmem:[#allocation5 + $0x8] sm:$0xff] }
 0x31a   :  { %v5247_v25 = vpop.eup %5246  ;;  %v3992_v6 = vmul.f32 %v5335_v11, %v5245_v30 }
 0x31b   :  { %5266 = vrsqrt.f32 %v3739_v34  ;;  %v4007_v61 = vadd.f32 %v3879_v2, %v3767_v41  ;;  %v3881_v41 = vmul.f32 %v5336_v12, %v5247_v25  ;;  %v5340_v12 = vld [vmem:[#allocation7 + $0x20] sm:$0xff] }
 0x31c   :  { %v5249_v13 = vpop.eup %5248  ;;  %5268 = vrsqrt.f32 %v3964_v62  ;;  %v3714_v39 = vpop.xlane.xlu0 %3713 }
 0x31d   :  { %v3740_v48 = vmax.f32 %v3714_v39, 1e-24  ;;  %v4023_v0 = vsub.f32 %v4007_v61, %v3991_v27  ;;  %v3768_v43 = vmul.f32 %v5249_v13, %v6330_v45  ;;  %v5251_v28 = vpop.eup %5250  ;;  %5270 = vrsqrt.f32 %v3853_v24  ;;  %v5337_v61 = vld [vmem:[#allocation5 + $0x10] sm:$0xff]  ;;  %v5338_v39 = vld [vmem:[#allocation7 + $0x18] sm:$0xff] }
 0x31e   :  { %v5253_v5 = vpop.eup %5252  ;;  %v3993_v24 = vmul.f32 %v5337_v61, %v5251_v28 }
 0x31f   :  { %5272 = vrsqrt.f32 %v3740_v48  ;;  %v4039_v2 = vand.u32 2147483647, %v4023_v0  ;;  %v4008_v34 = vadd.f32 %v3880_v59, %v3768_v43 }
 0x320   :  { %v5255_v62 = vpop.eup %5254  ;;  %5274 = vrsqrt.f32 %v3965_v47  ;;  %v3716_v31 = vpop.xlane.xlu1 %3715  ;;  %v3882_v47 = vmul.f32 %v5338_v39, %v5253_v5 }
 0x321   :  { %v3741_v27 = vmax.f32 %v3716_v31, 1e-24  ;;  %4055 = vadd.xlane.f32.xlu1 %v4039_v2  ;;  %v4024_v45 = vsub.f32 %v4008_v34, %v3992_v6  ;;  %v3769_v30 = vmul.f32 %v5255_v62, %v6343_v29  ;;  %v5257_v52 = vpop.eup %5256  ;;  %5276 = vrsqrt.f32 %v3854_v26  ;;  %v5339_v6 = vld [vmem:[#allocation5 + $0x18] sm:$0xff] }
 0x322   :  { %v5259_v13 = vpop.eup %5258  ;;  %v3994_v28 = vmul.f32 %v5339_v6, %v5257_v52 }
 0x323   :  { %5278 = vrsqrt.f32 %v3741_v27  ;;  %v4040_v59 = vand.u32 2147483647, %v4024_v45  ;;  %v4009_v25 = vadd.f32 %v3881_v41, %v3769_v30  ;;  %v3883_v41 = vmul.f32 %v5340_v12, %v5259_v13  ;;  %v5341_v30 = vld [vmem:[#allocation5 + $0x20] sm:$0xff]  ;;  %v5342_v13 = vld [vmem:[#allocation7 + $0x28] sm:$0xff] }
 0x324   :  { %v5261_v48 = vpop.eup %5260  ;;  %5280 = vrsqrt.f32 %v3966_v8  ;;  %v3718_v0 = vpop.xlane.xlu0 %3717 }
 0x325   :  { %v3742_v43 = vmax.f32 %v3718_v0, 1e-24  ;;  %4057 = vadd.xlane.f32.xlu0 %v4040_v59  ;;  %v4025_v29 = vsub.f32 %v4009_v25, %v3993_v24  ;;  %v3770_v11 = vmul.f32 %v5261_v48, %v6355_v23  ;;  %v5263_v26 = vpop.eup %5262  ;;  %5282 = vrsqrt.f32 %v3855_v32  ;;  %v5343_v0 = vld [vmem:[#allocation5 + $0x28] sm:$0xff] }
 0x326   :  { %v5265_v2 = vpop.eup %5264  ;;  %v3995_v61 = vmul.f32 %v5341_v30, %v5263_v26 }
 0x327   :  { %5284 = vrsqrt.f32 %v3742_v43  ;;  %v4041_v34 = vand.u32 2147483647, %v4025_v29  ;;  %v4010_v5 = vadd.f32 %v3882_v47, %v3770_v11  ;;  %v3884_v59 = vmul.f32 %v5342_v13, %v5265_v2 }
 0x328   :  { %v5267_v62 = vpop.eup %5266  ;;  %5286 = vrsqrt.f32 %v3967_v17  ;;  %v3720_v8 = vpop.xlane.xlu1 %3719 }
 0x329   :  { %v5269_v31 = vpop.eup %5268  ;;  %v3743_v27 = vmax.f32 %v3720_v8, 1e-24  ;;  %4059 = vadd.xlane.f32.xlu1 %v4041_v34  ;;  %v4026_v23 = vsub.f32 %v4010_v5, %v3994_v28  ;;  %v3771_v45 = vmul.f32 %v5267_v62, %v6372_v22  ;;  %5288 = vrsqrt.f32 %v3856_v44  ;;  %v5344_v28 = vld [vmem:[#allocation7 + $0x30] sm:$0xff] }
 0x32a   :  { %v5271_v24 = vpop.eup %5270  ;;  %v3996_v43 = vmul.f32 %v5343_v0, %v5269_v31 }
 0x32b   :  { %5290 = vrsqrt.f32 %v3743_v27  ;;  %v4042_v52 = vand.u32 2147483647, %v4026_v23  ;;  %v4011_v32 = vadd.f32 %v3883_v41, %v3771_v45  ;;  %v3885_v26 = vmul.f32 %v5344_v28, %v5271_v24  ;;  %v5345_v41 = vld [vmem:[#allocation5 + $0x30] sm:$0xff]  ;;  %v5346_v27 = vld [vmem:[#allocation7 + $0x38] sm:$0xff]  ;;  %v5350_v28 = vld [vmem:[#allocation7 + $0x48] sm:$0xff] }
 0x32c   :  { %v5273_v25 = vpop.eup %5272  ;;  %5292 = vrsqrt.f32 %v3968_v49  ;;  %v3722_v39 = vpop.xlane.xlu0 %3721 }
 0x32d   :  { %v5275_v47 = vpop.eup %5274  ;;  %v3744_v48 = vmax.f32 %v3722_v39, 1e-24  ;;  %4061 = vadd.xlane.f32.xlu0 %v4042_v52  ;;  %v4027_v22 = vsub.f32 %v4011_v32, %v3995_v61  ;;  %v3772_v17 = vmul.f32 %v5273_v25, %v6385_v1  ;;  %5294 = vrsqrt.f32 %v3857_v58  ;;  %v5347_v52 = vld [vmem:[#allocation5 + $0x38] sm:$0xff] }
 0x32e   :  { %v5277_v29 = vpop.eup %5276  ;;  %v3997_v62 = vmul.f32 %v5345_v41, %v5275_v47 }
 0x32f   :  { %5296 = vrsqrt.f32 %v3744_v48  ;;  %v4043_v11 = vand.u32 2147483647, %v4027_v22  ;;  %v4012_v6 = vadd.f32 %v3884_v59, %v3772_v17  ;;  %v3886_v23 = vmul.f32 %v5346_v27, %v5277_v29 }
 0x330   :  { %v5279_v44 = vpop.eup %5278  ;;  %5298 = vrsqrt.f32 %v3969_v9  ;;  %v3724_v2 = vpop.xlane.xlu1 %3723  ;;  %v5348_v9 = vld [vmem:[#allocation7 + $0x40] sm:$0xff] }
 0x331   :  { %v5281_v34 = vpop.eup %5280  ;;  %v3745_v5 = vmax.f32 %v3724_v2, 1e-24  ;;  %4063 = vadd.xlane.f32.xlu1 %v4043_v11  ;;  %v4028_v1 = vsub.f32 %v4012_v6, %v3996_v43  ;;  %v3773_v12 = vmul.f32 %v5279_v44, %v6398_v53  ;;  %5300 = vrsqrt.f32 %v3858_v15  ;;  %v5349_v43 = vld [vmem:[#allocation5 + $0x40] sm:$0xff] }
 0x332   :  { %v5283_v49 = vpop.eup %5282  ;;  %v3998_v32 = vmul.f32 %v5347_v52, %v5281_v34 }
 0x333   :  { %5302 = vrsqrt.f32 %v3745_v5  ;;  %v4044_v8 = vand.u32 2147483647, %v4028_v1  ;;  %v4013_v31 = vadd.f32 %v3885_v26, %v3773_v12  ;;  %v3887_v39 = vmul.f32 %v5348_v9, %v5283_v49  ;;  %v5351_v1 = vld [vmem:[#allocation5 + $0x48] sm:$0xff]  ;;  %v5352_v49 = vld [vmem:[#allocation7 + $0x50] sm:$0xff] }
 0x334   :  { %v5285_v45 = vpop.eup %5284  ;;  %5304 = vrsqrt.f32 %v3970_v18  ;;  %v3726_v30 = vpop.xlane.xlu0 %3725 }
 0x335   :  { %v5287_v61 = vpop.eup %5286  ;;  %v3746_v58 = vmax.f32 %v3726_v30, 1e-24  ;;  %4065 = vadd.xlane.f32.xlu0 %v4044_v8  ;;  %v4029_v53 = vsub.f32 %v4013_v31, %v3997_v62  ;;  %v3774_v24 = vmul.f32 %v5285_v45, %v6412_v38  ;;  %5306 = vrsqrt.f32 %v3859_v7  ;;  %v6611_v7 = vld [vmem:[%s7551_s13] sm:$0x7]  ;;  %v5353_v30 = vld [vmem:[#allocation5 + $0x50] sm:$0xff] }
 0x336   :  { %v5289_v13 = vpop.eup %5288  ;;  %v3999_v15 = vmul.f32 %v5349_v43, %v5287_v61 }
 0x337   :  { %5308 = vrsqrt.f32 %v3746_v58  ;;  %v4045_v59 = vand.u32 2147483647, %v4029_v53  ;;  %v4014_v25 = vadd.f32 %v3886_v23, %v3774_v24  ;;  %v3888_v26 = vmul.f32 %v5350_v28, %v5289_v13 }
 0x338   :  { %v5291_v47 = vpop.eup %5290  ;;  %5310 = vrsqrt.f32 %v3971_v36  ;;  %v3728_v48 = vpop.xlane.xlu1 %3727  ;;  %v6617_v58 = vrot.slane %v6611_v7, %v6191_v55 }
 0x339   :  { %v5293_v22 = vpop.eup %5292  ;;  %v3747_v17 = vmax.f32 %v3728_v48, 1e-24  ;;  %4067 = vadd.xlane.f32.xlu1 %v4045_v59  ;;  %v4030_v38 = vsub.f32 %v4014_v25, %v3998_v32  ;;  %v3775_v0 = vmul.f32 %v5291_v47, %v6427_v10  ;;  %5312 = vrsqrt.f32 %v3860_v57 }
 0x33a   :  { %v5295_v29 = vpop.eup %5294  ;;  %v4000_v12 = vmul.f32 %v5351_v1, %v5293_v22 }
 0x33b   :  { %5314 = vrsqrt.f32 %v3747_v17  ;;  %v4046_v11 = vand.u32 2147483647, %v4030_v38  ;;  %v4015_v6 = vadd.f32 %v3887_v39, %v3775_v0  ;;  %v3889_v8 = vmul.f32 %v5352_v49, %v5295_v29 }
 0x33c   :  { %v5297_v44 = vpop.eup %5296  ;;  %5316 = vrsqrt.f32 %v3972_v19  ;;  %v3730_v18 = vpop.xlane.xlu0 %3729  ;;  %v5355_v19 = vld [vmem:[#allocation5 + $0x58] sm:$0xff] }
 0x33d   :  { %v5299_v2 = vpop.eup %5298  ;;  %v3748_v34 = vmax.f32 %v3730_v18, 1e-24  ;;  %4069 = vadd.xlane.f32.xlu0 %v4046_v11  ;;  %v4031_v10 = vsub.f32 %v4015_v6, %v3999_v15  ;;  %v3776_v5 = vmul.f32 %v5297_v44, %v6440_v4  ;;  %5318 = vrsqrt.f32 %v3861_v51  ;;  %v5356_v15 = vld [vmem:[#allocation7 + $0x60] sm:$0xff] }
 0x33e   :  { %v5301_v41 = vpop.eup %5300  ;;  %v3974_v4 = vmax.f32 %v6572_v42, 1e-24  ;;  %v4001_v61 = vmul.f32 %v5353_v30, %v5299_v2  ;;  %v5354_v42 = vld [vmem:[#allocation7 + $0x58] sm:$0xff]  ;;  %v5357_v44 = vld [vmem:[#allocation5 + $0x60] sm:$0xff] }
 0x33f   :  { %5320 = vrsqrt.f32 %v3748_v34  ;;  %v4047_v62 = vand.u32 2147483647, %v4031_v10  ;;  %v4016_v3 = vadd.f32 %v3888_v26, %v3776_v5  ;;  %v3890_v57 = vmul.f32 %v5354_v42, %v5301_v41 }
 0x340   :  { %v5303_v31 = vpop.eup %5302  ;;  %5322 = vrsqrt.f32 %v3973_v37  ;;  %v3732_v27 = vpop.xlane.xlu1 %3731  ;;  %v1992_v34 = vsub.s32 2, %v6188_v46 }
 0x341   :  { %v5305_v23 = vpop.eup %5304  ;;  %v3749_v45 = vmax.f32 %v3732_v27, 1e-24  ;;  %4071 = vadd.xlane.f32.xlu1 %v4047_v62  ;;  %v4032_v40 = vsub.f32 %v4016_v3, %v4000_v12  ;;  %v3777_v36 = vmul.f32 %v5303_v31, %v6457_v20  ;;  %5324 = vrsqrt.f32 %v3862_v35  ;;  %v5358_v35 = vld [vmem:[#allocation7 + $0x68] sm:$0xff] }
 0x342   :  { %v5307_v53 = vpop.eup %5306  ;;  %v4002_v48 = vmul.f32 %v5355_v19, %v5305_v23  ;;  %v5359_v27 = vld [vmem:[#allocation5 + $0x68] sm:$0xff] }
 0x343   :  { %5326 = vrsqrt.f32 %v3749_v45  ;;  %v2159_v24 = vpop.f32.mrf.mxu0  ;;  %v4048_v52 = vand.u32 2147483647, %v4032_v40  ;;  %v4017_v32 = vadd.f32 %v3889_v8, %v3777_v36  ;;  %v3891_v51 = vmul.f32 %v5356_v15, %v5307_v53  ;;  %v5362_v15 = vld [vmem:[#allocation7 + $0x78] sm:$0xff] }
 0x344   :  { %v5309_v13 = vpop.eup %5308  ;;  %5328 = vrsqrt.f32 %v3974_v4  ;;  %v3734_v59 = vpop.xlane.xlu0 %3733  ;;  %v2160_v22 = vadd.f32 %v2159_v24, %v6617_v58  ;;  %v6631_v45 = vrot.slane %v6611_v7, %v6197_v14  ;;  %v6637_v36 = vrot.slane %v6611_v7, %v1992_v34 }
 0x345   :  { %v5311_v25 = vpop.eup %5310  ;;  %v3750_v9 = vmax.f32 %v3734_v59, 1e-24  ;;  %4073 = vadd.xlane.f32.xlu0 %v4048_v52  ;;  %v6619_v20 = vpop.f32.mrf.mxu0  ;;  %v4033_v39 = vsub.f32 %v4017_v32, %v4001_v61  ;;  %v3778_v47 = vmul.f32 %v5309_v13, %v6471_v21 }
 0x346   :  { %v5313_v17 = vpop.eup %5312  ;;  %v4003_v37 = vmul.f32 %v5357_v44, %v5311_v25  ;;  %v2335_v18 = vmax.f32 %v2160_v22, 0.0 }
 0x347   :  { %5330 = vrsqrt.f32 %v3750_v9  ;;  %v2163_v38 = vpop.f32.mrf.mxu0  ;;  %v4049_v0 = vand.u32 2147483647, %v4033_v39  ;;  %v4018_v43 = vadd.f32 %v3890_v57, %v3778_v47  ;;  %v3892_v41 = vmul.f32 %v5358_v35, %v5313_v17 }
 0x348   :  { %v5315_v29 = vpop.eup %5314  ;;  %v2164_v11 = vadd.f32 %v2163_v38, %v6617_v58  ;;  %v2162_v17 = vadd.f32 %v6619_v20, %v6631_v45 }
 0x349   :  { %v5317_v6 = vpop.eup %5316  ;;  %4075 = vadd.xlane.f32.xlu1 %v4049_v0  ;;  %v2165_v28 = vpop.f32.mrf.mxu0  ;;  %v4034_v26 = vsub.f32 %v4018_v43, %v4002_v48  ;;  %v3779_v21 = vmul.f32 %v5315_v29, %v6482_v54  ;;  %v5361_v48 = vld [vmem:[#allocation5 + $0x70] sm:$0xff] }
 0x34a   :  { %v2338_v2 = vmax.f32 %v2164_v11, 0.0  ;;  %v5319_v10 = vpop.eup %5318  ;;  %v4004_v23 = vmul.f32 %v5359_v27, %v5317_v6  ;;  %v2166_v57 = vadd.f32 %v2165_v28, %v6631_v45 }
 0x34b   :  { %v2169_v5 = vpop.f32.mrf.mxu0  ;;  %v4050_v1 = vand.u32 2147483647, %v4034_v26  ;;  %v4019_v12 = vadd.f32 %v3891_v51, %v3779_v21  ;;  %v5188_v26 = vld [vmem:[#allocation17 + $0xe8] ss:$16 sps:$4 sm:$0xff]  }
 0x34c   :  { %v5321_v62 = vpop.eup %5320  ;;  %v2383_v3 = vpack.c.bf16 %v2338_v2, %v2335_v18  ;;  %v4839_v49 = vpop.f32.mrf.mxu1  ;;  %v2170_v40 = vadd.f32 %v2169_v5, %v6617_v58  ;;  %v5193_v2 = vld [vmem:[#allocation17 + $0xcc] ss:$16 sps:$4 sm:$0xff]  }
 0x34d   :  { %v5323_v8 = vpop.eup %5322  ;;  %4077 = vadd.xlane.f32.xlu0 %v4050_v1  ;;  %v6626_v31 = vpop.f32.mrf.mxu0  ;;  %v4035_v54 = vsub.f32 %v4019_v12, %v4003_v37  ;;  %v3780_v4 = vmul.f32 %v5321_v62, %v6497_v50  ;;  %v5360_v50 = vld [vmem:[#allocation7 + $0x70] sm:$0xff]  ;;  %v2281_v29 = vadd.f32 %v4839_v49, %v6637_v36  ;;  %v2336_v62 = vmax.f32 %v2162_v17, 0.0 }
 0x34e   :  { %v2272_v30 = vpop.f32.mrf.mxu1  ;;  %4869 = vmatprep.mubr.bf16.mxu1 %v2383_v3  ;;  %v5325_v61 = vpop.eup %5324  ;;  %v3893_v32 = vmul.f32 %v5360_v50, %v5319_v10  ;;  %v4005_v22 = vmul.f32 %v5361_v48, %v5323_v8  ;;  %v2341_v38 = vmax.f32 %v2170_v40, 0.0  ;;  %v5363_v10 = vld [vmem:[#allocation5 + $0x78] sm:$0xff]  ;;  %v2172_v50 = vadd.f32 %v6626_v31, %v6631_v45 }
 0x34f   :  { %v2173_v53 = vpop.f32.mrf.mxu0  ;;  %v4051_v24 = vand.u32 2147483647, %v4035_v54  ;;  %v4020_v52 = vadd.f32 %v3892_v41, %v3780_v4  ;;  %v2273_v13 = vadd.f32 %v2272_v30, %v6637_v36  ;;  %v3894_v51 = vmul.f32 %v5362_v15, %v5325_v61  ;;  %v5191_v61 = vld [vmem:[#allocation17 + $0xc8] ss:$16 sps:$4 sm:$0xff]  }
 0x350   :  { %v5327_v42 = vpop.eup %5326  ;;  %v2174_v59 = vadd.f32 %v2173_v53, %v6617_v58  ;;  %v4840_v25 = vpop.f32.mrf.mxu1  ;;  %v2343_v49 = vmax.f32 %v2281_v29, 0.0  ;;  %v2342_v31 = vmax.f32 %v2172_v50, 0.0  ;;  %v5197_v15 = vld [vmem:[#allocation17 + $0x88] ss:$16 sps:$4 sm:$0xff]  }
 0x351   :  { %v5329_v9 = vpop.eup %5328  ;;  %v2284_v7 = vadd.f32 %v4840_v25, %v6637_v36  ;;  %4079 = vadd.xlane.f32.xlu1 %v4051_v24  ;;  %v2175_v39 = vpop.f32.mrf.mxu0  ;;  %v4036_v47 = vsub.f32 %v4020_v52, %v4004_v23  ;;  %v3781_v19 = vmul.f32 %v5327_v42, %v6511_v33  ;;  %v2339_v33 = vmax.f32 %v2166_v57, 0.0  ;;  %v5196_v52 = vld [vmem:[#allocation17 + $0xac] ss:$16 sps:$4 sm:$0xff]  }
 0x352   :  { %v2344_v0 = vmax.f32 %v2174_v59, 0.0  ;;  %v2275_v43 = vpop.f32.mrf.mxu1  ;;  %v2337_v37 = vmax.f32 %v2273_v13, 0.0  ;;  %v4006_v20 = vmul.f32 %v5363_v10, %v5329_v9  ;;  %v2176_v40 = vadd.f32 %v2175_v39, %v6631_v45 }
 0x353   :  { %v2276_v11 = vadd.f32 %v2275_v43, %v6637_v36  ;;  %v2179_v6 = vpop.f32.mrf.mxu0  ;;  %v4052_v28 = vand.u32 2147483647, %v4036_v47  ;;  %v4021_v21 = vadd.f32 %v3893_v32, %v3781_v19  ;;  %v2346_v5 = vmax.f32 %v2284_v7, 0.0  ;;  %v5194_v7 = vld [vmem:[#allocation17 + $0xa8] ss:$16 sps:$4 sm:$0xff]  }
 0x354   :  { %v5331_v44 = vpop.eup %5330  ;;  %v2384_v18 = vpack.c.bf16 %v2344_v0, %v2341_v38  ;;  %v2180_v3 = vadd.f32 %v2179_v6, %v6617_v58  ;;  %v6652_v23 = vpack.c.bf16 %v2339_v33, %v2336_v62  ;;  %v2345_v59 = vmax.f32 %v2176_v40, 0.0  ;;  %v5199_v47 = vld [vmem:[#allocation17 + $0x8c] ss:$16 sps:$4 sm:$0xff]  }
 0x355   :  { %v2340_v1 = vmax.f32 %v2276_v11, 0.0  ;;  %4081 = vadd.xlane.f32.xlu0 %v4052_v28  ;;  %v2181_v12 = vpop.f32.mrf.mxu0  ;;  %v4037_v35 = vsub.f32 %v4021_v21, %v4005_v22  ;;  %v3782_v41 = vmul.f32 %v5331_v44, %v6522_v16  ;;  %v6656_v16 = vpack.c.bf16 %v2346_v5, %v2343_v49  ;;  %v5202_v6 = vld [vmem:[#allocation17 + $0x6c] ss:$16 sps:$4 sm:$0xff]  }
 0x356   :  { %4870 = vmatmul.mubr.bf16.vlgmr.msra.gmra.mxu1 %v2384_v18  ;;  %v2347_v32 = vmax.f32 %v2180_v3, 0.0  ;;  %v6664_v17 = vpack.c.bf16 %v2345_v59, %v2342_v31  ;;  %v2182_v28 = vadd.f32 %v2181_v12, %v6631_v45 }
 0x357   :  { %v6650_v8 = vpack.c.bf16 %v2340_v1, %v2337_v37  ;;  %4901 = vmatpush1.bf16.msra.mxu1 %v5188_v26  ;;  %v2183_v54 = vpop.f32.mrf.mxu0  ;;  %v4053_v4 = vand.u32 2147483647, %v4037_v35  ;;  %v4022_v27 = vadd.f32 %v3894_v51, %v3782_v41  ;;  %v5205_v41 = vld [vmem:[#allocation17 + $0x4c] ss:$16 sps:$4 sm:$0xff]  }
 0x358   :  { %v2184_v30 = vadd.f32 %v2183_v54, %v6617_v58  ;;  %4886 = vmatprep.subr.bf16.mxu1 %v5193_v2  ;;  %v2348_v62 = vmax.f32 %v2182_v28, 0.0 }
 0x359   :  { %3029 = vmatprep.mubr.bf16.mxu0 %v6650_v8  ;;  %4083 = vadd.xlane.f32.xlu1 %v4053_v4  ;;  %v2185_v53 = vpop.f32.mrf.mxu0  ;;  %v4038_v24 = vsub.f32 %v4022_v27, %v4006_v20  ;;  %v5200_v20 = vld [vmem:[#allocation17 + $0x68] ss:$16 sps:$4 sm:$0xff]  }
 0x35a   :  { %v2350_v42 = vmax.f32 %v2184_v30, 0.0  ;;  %3030 = vmatmul.mubr.bf16.vlgmr.msra.gmra.mxu0 %v6652_v23  ;;  %v2186_v38 = vadd.f32 %v2185_v53, %v6631_v45 }
 0x35b   :  { %3039 = vmatprep.mubr.bf16.mxu0 %v6656_v16  ;;  %3111 = vmatpush1.bf16.msra.mxu0 %v5188_v26  ;;  %v2189_v57 = vpop.f32.mrf.mxu0  ;;  %v4054_v13 = vand.u32 2147483647, %v4038_v24 }
 0x35c   :  { %v2385_v25 = vpack.c.bf16 %v2350_v42, %v2347_v32  ;;  %4902 = vmatpush1.bf16.msra.mxu1 %v5191_v61  ;;  %v4843_v9 = vpop.f32.mrf.mxu1  ;;  %3112 = vmatprep.subr.bf16.mxu0 %v5193_v2  ;;  %v2190_v19 = vadd.f32 %v2189_v57, %v6617_v58  ;;  %v2351_v2 = vmax.f32 %v2186_v38, 0.0 }
 0x35d   :  { %4085 = vadd.xlane.f32.xlu0 %v4054_v13  ;;  %v2191_v39 = vpop.f32.mrf.mxu0  ;;  %4887 = vmatprep.subr.bf16.mxu1 %v5196_v52  ;;  %v2297_v33 = vadd.f32 %v4843_v9, %v6637_v36  ;;  %v5206_v9 = vld [vmem:[#allocation17 + $0x28] ss:$16 sps:$4 sm:$0xff]  }
 0x35e   :  { %v2288_v48 = vpop.f32.mrf.mxu1  ;;  %4873 = vmatprep.mubr.bf16.mxu1 %v2385_v25  ;;  %v2353_v26 = vmax.f32 %v2190_v19, 0.0  ;;  %v6677_v27 = vpack.c.bf16 %v2351_v2, %v2348_v62  ;;  %v2192_v50 = vadd.f32 %v2191_v39, %v6631_v45 }
 0x35f   :  { %3113 = vmatpush1.bf16.msra.mxu0 %v5191_v61  ;;  %v2193_v22 = vpop.f32.mrf.mxu0  ;;  %v2289_v51 = vadd.f32 %v2288_v48, %v6637_v36  ;;  %v2355_v49 = vmax.f32 %v2297_v33, 0.0  ;;  %v5203_v61 = vld [vmem:[#allocation17 + $0x48] ss:$16 sps:$4 sm:$0xff]  }
 0x360   :  { %4903 = vmatpush1.bf16.msra.mxu1 %v5194_v7  ;;  %v2194_v0 = vadd.f32 %v2193_v22, %v6617_v58  ;;  %v4844_v43 = vpop.f32.mrf.mxu1  ;;  %3114 = vmatprep.subr.bf16.mxu0 %v5196_v52  ;;  %v5208_v52 = vld [vmem:[#allocation17 + $0x2c] ss:$16 sps:$4 sm:$0xff]   ;;  %v2354_v31 = vmax.f32 %v2192_v50, 0.0 }
 0x361   :  { %v2300_v29 = vadd.f32 %v4844_v43, %v6637_v36  ;;  %v2195_v11 = vpop.f32.mrf.mxu0  ;;  %4888 = vmatprep.subr.bf16.mxu1 %v5199_v47  ;;  %v2349_v5 = vmax.f32 %v2289_v51, 0.0 }
 0x362   :  { %v2356_v21 = vmax.f32 %v2194_v0, 0.0  ;;  %v2291_v44 = vpop.f32.mrf.mxu1  ;;  %3040 = vmatmul.mubr.bf16.gmra.mxu0 %v6664_v17  ;;  %v2196_v40 = vadd.f32 %v2195_v11, %v6631_v45 }
 0x363   :  { %v2292_v37 = vadd.f32 %v2291_v44, %v6637_v36  ;;  %3115 = vmatpush1.bf16.msra.mxu0 %v5194_v7  ;;  %v2199_v18 = vpop.f32.mrf.mxu0  ;;  %v2358_v1 = vmax.f32 %v2300_v29, 0.0 }
 0x364   :  { %v2386_v10 = vpack.c.bf16 %v2356_v21, %v2353_v26  ;;  %4904 = vmatpush1.bf16.msra.mxu1 %v5197_v15  ;;  %3116 = vmatprep.subr.bf16.mxu0 %v5199_v47  ;;  %v2200_v3 = vadd.f32 %v2199_v18, %v6617_v58  ;;  %v2357_v13 = vmax.f32 %v2196_v40, 0.0  ;;  %v5211_v47 = vld [vmem:[#allocation17 + $0xc] ss:$16 sps:$4 sm:$0xff]  }
 0x365   :  { %v2352_v35 = vmax.f32 %v2292_v37, 0.0  ;;  %v2201_v12 = vpop.f32.mrf.mxu0  ;;  %4889 = vmatprep.subr.bf16.mxu1 %v5202_v6  ;;  %v6681_v53 = vpack.c.bf16 %v2358_v1, %v2355_v49 }
 0x366   :  { %4874 = vmatmul.mubr.bf16.gmra.mxu1 %v2386_v10  ;;  %v2359_v32 = vmax.f32 %v2200_v3, 0.0  ;;  %v6688_v22 = vpack.c.bf16 %v2357_v13, %v2354_v31  ;;  %v2202_v28 = vadd.f32 %v2201_v12, %v6631_v45 }
 0x367   :  { %v6675_v54 = vpack.c.bf16 %v2352_v35, %v2349_v5  ;;  %3117 = vmatpush1.bf16.msra.mxu0 %v5197_v15  ;;  %v2203_v4 = vpop.f32.mrf.mxu0  ;;  %v5209_v15 = vld [vmem:[#allocation17 + $0x8] ss:$16 sps:$4 sm:$0xff]  }
 0x368   :  { %4905 = vmatpush1.bf16.msra.mxu1 %v5200_v20  ;;  %v2204_v30 = vadd.f32 %v2203_v4, %v6617_v58  ;;  %3118 = vmatprep.subr.bf16.mxu0 %v5202_v6  ;;  %v5214_v6 = vld [vmem:[#allocation17 + $0x1ec] ss:$16 sps:$4 sm:$0xff]   ;;  %v2360_v62 = vmax.f32 %v2202_v28, 0.0 }
 0x369   :  { %3049 = vmatprep.mubr.bf16.mxu0 %v6675_v54  ;;  %v2205_v24 = vpop.f32.mrf.mxu0  ;;  %4890 = vmatprep.subr.bf16.mxu1 %v5205_v41 }
 0x36a   :  { %v2362_v42 = vmax.f32 %v2204_v30, 0.0  ;;  %3050 = vmatmul.mubr.bf16.gmra.mxu0 %v6677_v27  ;;  %v2206_v38 = vadd.f32 %v2205_v24, %v6631_v45 }
 0x36b   :  { %3059 = vmatprep.mubr.bf16.mxu0 %v6681_v53  ;;  %3119 = vmatpush1.bf16.msra.mxu0 %v5200_v20  ;;  %v2209_v57 = vpop.f32.mrf.mxu0  ;;  %v5212_v20 = vld [vmem:[#allocation17 + $0x1e8] ss:$16 sps:$4 sm:$0xff]  }
 0x36c   :  { %v2387_v59 = vpack.c.bf16 %v2362_v42, %v2359_v32  ;;  %4906 = vmatpush1.bf16.msra.mxu1 %v5203_v61  ;;  %v4847_v25 = vpop.f32.mrf.mxu1  ;;  %3120 = vmatprep.subr.bf16.mxu0 %v5205_v41  ;;  %v2210_v39 = vadd.f32 %v2209_v57, %v6617_v58  ;;  %v2363_v2 = vmax.f32 %v2206_v38, 0.0  ;;  %v5217_v41 = vld [vmem:[#allocation17 + $0x1cc] ss:$16 sps:$4 sm:$0xff]  }
 0x36d   :  { %v2211_v7 = vpop.f32.mrf.mxu0  ;;  %4891 = vmatprep.subr.bf16.mxu1 %v5208_v52  ;;  %v2313_v33 = vadd.f32 %v4847_v25, %v6637_v36  ;;  %v5220_v42 = vld [vmem:[#allocation17 + $0x1ac] ss:$16 sps:$4 sm:$0xff]  }
 0x36e   :  { %v2304_v19 = vpop.f32.mrf.mxu1  ;;  %4877 = vmatprep.mubr.bf16.mxu1 %v2387_v59  ;;  %v2365_v26 = vmax.f32 %v2210_v39, 0.0  ;;  %v6701_v30 = vpack.c.bf16 %v2363_v2, %v2360_v62  ;;  %v2212_v57 = vadd.f32 %v2211_v7, %v6631_v45  ;;  %v5218_v39 = vld [vmem:[#allocation17 + $0x1a8] ss:$16 sps:$4 sm:$0xff]  }
 0x36f   :  { %3121 = vmatpush1.bf16.msra.mxu0 %v5203_v61  ;;  %v2213_v48 = vpop.f32.mrf.mxu0  ;;  %v2305_v51 = vadd.f32 %v2304_v19, %v6637_v36  ;;  %v2367_v49 = vmax.f32 %v2313_v33, 0.0 }
 0x370   :  { %4907 = vmatpush1.bf16.msra.mxu1 %v5206_v9  ;;  %v2214_v0 = vadd.f32 %v2213_v48, %v6617_v58  ;;  %v4848_v43 = vpop.f32.mrf.mxu1  ;;  %3122 = vmatprep.subr.bf16.mxu0 %v5208_v52  ;;  %v5215_v52 = vld [vmem:[#allocation17 + $0x1c8] ss:$16 sps:$4 sm:$0xff]   ;;  %v5223_v48 = vld [vmem:[#allocation17 + $0x18c] ss:$16 sps:$4 sm:$0xff]   ;;  %v2366_v38 = vmax.f32 %v2212_v57, 0.0 }
 0x371   :  { %v2316_v29 = vadd.f32 %v4848_v43, %v6637_v36  ;;  %v2215_v11 = vpop.f32.mrf.mxu0  ;;  %4892 = vmatprep.subr.bf16.mxu1 %v5211_v47  ;;  %v2361_v5 = vmax.f32 %v2305_v51, 0.0 }
 0x372   :  { %v2368_v21 = vmax.f32 %v2214_v0, 0.0  ;;  %v2307_v44 = vpop.f32.mrf.mxu1  ;;  %3060 = vmatmul.mubr.bf16.gmra.mxu0 %v6688_v22  ;;  %v2216_v61 = vadd.f32 %v2215_v11, %v6631_v45 }
 0x373   :  { %v2308_v37 = vadd.f32 %v2307_v44, %v6637_v36  ;;  %3123 = vmatpush1.bf16.msra.mxu0 %v5206_v9  ;;  %v2219_v18 = vpop.f32.mrf.mxu0  ;;  %v2370_v1 = vmax.f32 %v2316_v29, 0.0 }
 0x374   :  { %v2388_v10 = vpack.c.bf16 %v2368_v21, %v2365_v26  ;;  %4908 = vmatpush1.bf16.msra.mxu1 %v5209_v15  ;;  %3124 = vmatprep.subr.bf16.mxu0 %v5211_v47  ;;  %v2220_v3 = vadd.f32 %v2219_v18, %v6617_v58  ;;  %v2369_v9 = vmax.f32 %v2216_v61, 0.0  ;;  %v5226_v21 = vld [vmem:[#allocation17 + $0x16c] ss:$16 sps:$4 sm:$0xff]  }
 0x375   :  { %v2364_v35 = vmax.f32 %v2308_v37, 0.0  ;;  %v2221_v12 = vpop.f32.mrf.mxu0  ;;  %4893 = vmatprep.subr.bf16.mxu1 %v5214_v6  ;;  %v6705_v50 = vpack.c.bf16 %v2370_v1, %v2367_v49 }
 0x376   :  { %4878 = vmatmul.mubr.bf16.gmra.mxu1 %v2388_v10  ;;  %v2371_v13 = vmax.f32 %v2220_v3, 0.0  ;;  %v2222_v44 = vadd.f32 %v2221_v12, %v6631_v45  ;;  %v5229_v12 = vld [vmem:[#allocation17 + $0x14c] ss:$16 sps:$4 sm:$0xff]  }
 0x377   :  { %v6699_v4 = vpack.c.bf16 %v2364_v35, %v2361_v5  ;;  %3125 = vmatpush1.bf16.msra.mxu0 %v5209_v15  ;;  %v2223_v40 = vpop.f32.mrf.mxu0  ;;  %v6712_v15 = vpack.c.bf16 %v2369_v9, %v2366_v38  ;;  %v5224_v5 = vld [vmem:[#allocation17 + $0x168] ss:$16 sps:$4 sm:$0xff]  }
 0x378   :  { %4909 = vmatpush2.bf16.msra.mxu1 %v5212_v20  ;;  %v2224_v24 = vadd.f32 %v2223_v40, %v6617_v58  ;;  %3126 = vmatprep.subr.bf16.mxu0 %v5214_v6  ;;  %v5221_v6 = vld [vmem:[#allocation17 + $0x188] ss:$16 sps:$4 sm:$0xff]   ;;  %v2372_v3 = vmax.f32 %v2222_v44, 0.0  ;;  %v6776_v44 = vld [vmem:[#allocation2 + $0x10] sm:$0xff] }
 0x379   :  { %3069 = vmatprep.mubr.bf16.mxu0 %v6699_v4  ;;  %v2225_v32 = vpop.f32.mrf.mxu0  ;;  %4894 = vmatprep.subr.bf16.mxu1 %v5217_v41  ;;  %v5233_v9 = vld [vmem:[#allocation17 + $0x108] ss:$16 sps:$4 sm:$0xff]  }
 0x37a   :  { %v2374_v59 = vmax.f32 %v2224_v24, 0.0  ;;  %3070 = vmatmul.mubr.bf16.gmra.mxu0 %v6701_v30  ;;  %v2226_v51 = vadd.f32 %v2225_v32, %v6631_v45  ;;  %v5227_v24 = vld [vmem:[#allocation17 + $0x148] ss:$16 sps:$4 sm:$0xff]   ;;  %v5232_v32 = vld [vmem:[#allocation17 + $0x12c] ss:$16 sps:$4 sm:$0xff]  }
 0x37b   :  { %3079 = vmatprep.mubr.bf16.mxu0 %v6705_v50  ;;  %3127 = vmatpush2.bf16.msra.mxu0 %v5212_v20  ;;  %v2229_v25 = vpop.f32.mrf.mxu0 }
 0x37c   :  { %v2389_v47 = vpack.c.bf16 %v2374_v59, %v2371_v13  ;;  %4910 = vmatpush2.bf16.msra.mxu1 %v5215_v52  ;;  %v4851_v31 = vpop.f32.mrf.mxu1  ;;  %3128 = vmatprep.subr.bf16.mxu0 %v5217_v41  ;;  %v2230_v7 = vadd.f32 %v2229_v25, %v6617_v58  ;;  %v2375_v10 = vmax.f32 %v2226_v51, 0.0  ;;  %v5230_v13 = vld [vmem:[#allocation17 + $0x128] ss:$16 sps:$4 sm:$0xff]  }
 0x37d   :  { %v2231_v19 = vpop.f32.mrf.mxu0  ;;  %4895 = vmatprep.subr.bf16.mxu1 %v5220_v42  ;;  %v2329_v2 = vadd.f32 %v4851_v31, %v6637_v36  ;;  %v6752_v31 = vld [vmem:[%s7555_s17] sm:$0xf] }
 0x37e   :  { %v2320_v0 = vpop.f32.mrf.mxu1  ;;  %4881 = vmatprep.mubr.bf16.mxu1 %v2389_v47  ;;  %v2377_v33 = vmax.f32 %v2230_v7, 0.0  ;;  %v6764_v51 = vrot.slane %v6752_v31, %v6191_v55  ;;  %v6949_v55 = vld [vmem:[#allocation2 + $0xc8] sm:$0xff] }
 0x37f   :  { %3129 = vmatpush2.bf16.msra.mxu0 %v5215_v52  ;;  %v2233_v43 = vpop.f32.mrf.mxu0  ;;  %v2321_v28 = vadd.f32 %v2320_v0, %v6637_v36  ;;  %v2379_v49 = vmax.f32 %v2329_v2, 0.0  ;;  %v6931_v2 = vld [vmem:[#allocation2 + $0xa8] sm:$0xff]  ;;  %7687 = vst [vmem:[#allocation48_spill] sm:$0xff] %v6949_v55 }
 0x380   :  { %4911 = vmatpush2.bf16.msra.mxu1 %v5218_v39  ;;  %v2234_v29 = vadd.f32 %v2233_v43, %v6617_v58  ;;  %v4852_v11 = vpop.f32.mrf.mxu1  ;;  %3130 = vmatprep.subr.bf16.mxu0 %v5220_v42  ;;  %v2232_v42 = vadd.f32 %v2231_v19, %v6631_v45  ;;  %7685 = vst [vmem:[#allocation46_spill] sm:$0xff] %v6931_v2 }
 0x381   :  { %v2332_v26 = vadd.f32 %v4852_v11, %v6637_v36  ;;  %4896 = vmatprep.subr.bf16.mxu1 %v5223_v48  ;;  %v2373_v1 = vmax.f32 %v2321_v28, 0.0  ;;  %v2235_v41 = vpop.f32.mrf.mxu0 }
 0x382   :  { %v2380_v37 = vmax.f32 %v2234_v29, 0.0  ;;  %v2323_v18 = vpop.f32.mrf.mxu1  ;;  %3080 = vmatmul.mubr.bf16.gmra.mxu0 %v6712_v15  ;;  %v2236_v61 = vadd.f32 %v2235_v41, %v6631_v45  ;;  %v2378_v59 = vmax.f32 %v2232_v42, 0.0  ;;  %v6739_v45 = vld [vmem:[%s7553_s15] ss:$0 sm:$0xff] }
 0x383   :  { %v2324_v58 = vadd.f32 %v2323_v18, %v6637_v36  ;;  %3131 = vmatpush2.bf16.msra.mxu0 %v5218_v39  ;;  %v2382_v35 = vmax.f32 %v2332_v26, 0.0  ;;  %v2587_v36 = vpack.c.bf16 %v2375_v10, %v2372_v3  ;;  %v6766_v29 = vld [vmem:[#allocation2] sm:$0xff]  ;;  %v6968_v18 = vld [vmem:[#allocation2 + $0xe8] sm:$0xff] }
 0x384   :  { %v2390_v20 = vpack.c.bf16 %v2380_v37, %v2377_v33  ;;  %4912 = vmatpush2.bf16.msra.mxu1 %v5221_v6  ;;  %3132 = vmatprep.subr.bf16.mxu0 %v5223_v48  ;;  %v2381_v57 = vmax.f32 %v2236_v61, 0.0  ;;  %v5365_v48 = vld [vmem:[%s7648_s23] sm:$0xff]  ;;  %v3399_v11 = vunpack.c.l.bf16 %v6766_v29  ;;  %v3400_v28 = vunpack.c.h.bf16 %v6766_v29 }
 0x385   :  { %v2376_v62 = vmax.f32 %v2324_v58, 0.0  ;;  %4897 = vmatprep.subr.bf16.mxu1 %v5226_v21  ;;  %v2590_v52 = vpack.c.bf16 %v2382_v35, %v2379_v49  ;;  %v6780_v37 = vld [vmem:[#allocation2 + $0x20] sm:$0xff]  ;;  %v5369_v58 = vld [vmem:[%s7648_s23 + $0x18] sm:$0xff]  ;;  %v5371_v35 = vld [vmem:[%s7648_s23 + $0x8] sm:$0xff] }
 0x386   :  { %4882 = vmatmul.mubr.bf16.gmra.mxu1 %v2390_v20  ;;  %v2589_v25 = vpack.c.bf16 %v2381_v57, %v2378_v59  ;;  %v6914_v57 = vld [vmem:[#allocation2 + $0x38] sm:$0xff]  ;;  %v7692_v2 = vunpack.c.h.bf16 %v6780_v37 }
 0x387   :  { %v2588_v40 = vpack.c.bf16 %v2376_v62, %v2373_v1  ;;  %3133 = vmatpush2.bf16.msra.mxu0 %v5221_v6  ;;  %3162 = vmatprep.mubr.bf16.mxu1 %v6675_v54  ;;  %v5235_v54 = vld [vmem:[#allocation17 + $0x10c] ss:$16 sps:$4 sm:$0xff]   ;;  %v6771_v6 = vrot.slane %v6752_v31, %v6197_v14 }
 0x388   :  { %4913 = vmatpush2.bf16.msra.mxu1 %v5224_v5  ;;  %3134 = vmatprep.subr.bf16.mxu0 %v5226_v21 }
 0x389   :  { %3089 = vmatprep.mubr.bf16.mxu0 %v2588_v40  ;;  %4898 = vmatprep.subr.bf16.mxu1 %v5229_v12 }
 0x38a   :  { %3090 = vmatmul.mubr.bf16.gmra.mxu0 %v2587_v36 }
 0x38b   :  { %3099 = vmatprep.mubr.bf16.mxu0 %v2590_v52  ;;  %3135 = vmatpush2.bf16.msra.mxu0 %v5224_v5  ;;  %v6789_v5 = vld [vmem:[#allocation2 + $0x30] sm:$0xff] }
 0x38c   :  { %4914 = vmatpush2.bf16.msra.mxu1 %v5227_v24  ;;  %3136 = vmatprep.subr.bf16.mxu0 %v5229_v12  ;;  %v6796_v12 = vld [vmem:[#allocation2 + $0x40] sm:$0xff] }
 0x38d   :  { %4899 = vmatprep.subr.bf16.mxu1 %v5232_v32 }
 0x38f   :  { %3137 = vmatpush2.bf16.msra.mxu0 %v5227_v24 }
 0x390   :  { %4915 = vmatpush2.bf16.msra.mxu1 %v5230_v13  ;;  %3138 = vmatprep.subr.bf16.mxu0 %v5232_v32  ;;  %v6806_v32 = vld [vmem:[#allocation2 + $0x60] sm:$0xff] }
 0x391   :  { %4900 = vmatprep.subr.bf16.mxu1 %v5235_v54 }
 0x392   :  { %3100 = vmatmul.mubr.bf16.gmra.mxu0 %v2589_v25 }
 0x393   :  { %3139 = vmatpush2.bf16.msra.mxu0 %v5230_v13  ;;  %3142 = vmatprep.mubr.bf16.mxu0 %v6650_v8  ;;  %v6810_v13 = vld [vmem:[#allocation2 + $0x70] sm:$0xff] }
 0x394   :  { %4916 = vmatpush2.bf16.msra.mxu1 %v5233_v9  ;;  %3140 = vmatprep.subr.bf16.mxu0 %v5235_v54  ;;  %v6876_v54 = vld [vmem:[#allocation2 + $0x58] sm:$0xff] }
 0x397   :  { %3163 = vmatmul.mubr.bf16.vlgmr.msra.gmra.mxu1 %v6677_v27  ;;  %3141 = vmatpush2.bf16.msra.mxu0 %v5233_v9 }
 0x398   :  { %3172 = vmatprep.mubr.bf16.mxu1 %v6681_v53 }
 0x39a   :  { %3143 = vmatmul.mubr.bf16.vlgmr.msra.gmra.mxu0 %v6652_v23 }
 0x39b   :  { %3152 = vmatprep.mubr.bf16.mxu0 %v6656_v16 }
 0x39f   :  { %3173 = vmatmul.mubr.bf16.gmra.mxu1 %v6688_v22 }
 0x3a0   :  { %3182 = vmatprep.mubr.bf16.mxu1 %v6699_v4 }
 0x3a2   :  { %3153 = vmatmul.mubr.bf16.gmra.mxu0 %v6664_v17 }
 0x3a7   :  { %3183 = vmatmul.mubr.bf16.gmra.mxu1 %v6701_v30 }
 0x3a8   :  { %3192 = vmatprep.mubr.bf16.mxu1 %v6705_v50  ;;  %v5364_v50 = vld [vmem:[%s7648_s23 + $0x10] sm:$0xff] }
 0x3af   :  { %3193 = vmatmul.mubr.bf16.gmra.mxu1 %v6712_v15 }
 0x3b0   :  { %3202 = vmatprep.mubr.bf16.mxu1 %v2588_v40  ;;  %v6800_v40 = vld [vmem:[#allocation2 + $0x50] sm:$0xff] }
 0x3b7   :  { %3203 = vmatmul.mubr.bf16.gmra.mxu1 %v2587_v36  ;;  %v6907_v36 = vld [vmem:[#allocation2 + $0x78] sm:$0xff] }
 0x3b8   :  { %3212 = vmatprep.mubr.bf16.mxu1 %v2590_v52  ;;  %v6904_v52 = vld [vmem:[#allocation2 + $0x28] sm:$0xff] }
 0x3bf   :  { %3213 = vmatmul.mubr.bf16.gmra.mxu1 %v2589_v25  ;;  %v6814_v25 = vld [vmem:[#allocation2 + $0x80] sm:$0xff] }
 0x416   :  { %v4871_v8 = vpop.f32.mrf.mxu1 }
 0x417   :  { %v2505_v23 = vadd.f32 %v4871_v8, %v6739_v45 }
 0x418   :  { %v2496_v16 = vpop.f32.mrf.mxu1 }
 0x419   :  { %v2561_v17 = vmax.f32 %v2505_v23, 0.0  ;;  %v2497_v27 = vadd.f32 %v6739_v45, %v2496_v16 }
 0x41a   :  { %v6743_v53 = vpop.f32.mrf.mxu0  ;;  %v4872_v22 = vpop.f32.mrf.mxu1 }
 0x41b   :  { %v2559_v4 = vmax.f32 %v2497_v27, 0.0  ;;  %v2508_v30 = vadd.f32 %v4872_v22, %v6739_v45  ;;  %v3321_v47 = vsub.f32 %v5364_v50, %v2561_v17  ;;  %v6820_v27 = vld [vmem:[#allocation2 + $0x90] sm:$0xff]  ;;  %v6825_v50 = vld [vmem:[#allocation2 + $0xa0] sm:$0xff] }
 0x41c   :  { %v6754_v39 = vpop.f32.mrf.mxu0  ;;  %v2499_v19 = vpop.f32.mrf.mxu1 }
 0x41d   :  { %v3319_v38 = vsub.f32 %v5365_v48, %v2559_v4  ;;  %v2562_v7 = vmax.f32 %v2508_v30, 0.0  ;;  %v2500_v0 = vadd.f32 %v6739_v45, %v2499_v19  ;;  %v3337_v15 = vmul.f32 %v3321_v47, %v3321_v47  ;;  %v6829_v48 = vld [vmem:[#allocation2 + $0xb0] sm:$0xff] }
 0x41e   :  { %v6760_v43 = vpop.f32.mrf.mxu0  ;;  %v2671_v30 = vsub.s32 3, %v6188_v46  ;;  %v6890_v46 = vld [vmem:[#allocation2 + $0x18] sm:$0xff] }
 0x41f   :  { %v2560_v26 = vmax.f32 %v2500_v0, 0.0  ;;  %3355 = vadd.xlane.f32.xlu0 %v3337_v15  ;;  %v3335_v14 = vmul.f32 %v3319_v38, %v3319_v38  ;;  %v3322_v10 = vsub.f32 %v5369_v58, %v2562_v7  ;;  %v6844_v38 = vld [vmem:[#allocation2 + $0xe0] sm:$0xff]  ;;  %v6863_v7 = vld [vmem:[#allocation2 + $0x48] sm:$0xff] }
 0x420   :  { %v6774_v21 = vpop.f32.mrf.mxu0  ;;  %7682 = vst [vmem:[#allocation43_spill] sm:$0xff] %v6844_v38  ;;  %v6860_v19 = vrot.slane %v6752_v31, %v2671_v30  ;;  %v6873_v30 = vld [vmem:[#allocation2 + $0x8] sm:$0xff] }
 0x421   :  { %v3320_v41 = vsub.f32 %v5371_v35, %v2560_v26  ;;  %v3338_v23 = vmul.f32 %v3322_v10, %v3322_v10  ;;  %v6840_v35 = vld [vmem:[#allocation2 + $0xd0] sm:$0xff] }
 0x422   :  { %v6787_v20 = vpop.f32.mrf.mxu0 }
 0x423   :  { %3351 = vadd.xlane.f32.xlu0 %v3335_v14  ;;  %v3336_v24 = vmul.f32 %v3320_v41, %v3320_v41  ;;  %v6836_v14 = vld [vmem:[#allocation2 + $0xc0] sm:$0xff]  ;;  %v6856_v41 = vld [vmem:[#allocation2 + $0xf0] sm:$0xff]  ;;  %v3042_v29 = vadd.f32 %v6787_v20, %v6764_v51 }
 0x424   :  { %v6803_v61 = vpop.f32.mrf.mxu0  ;;  %7683 = vst [vmem:[#allocation44_spill] sm:$0xff] %v6856_v41 }
 0x425   :  { %3353 = vadd.xlane.f32.xlu1 %v3336_v24  ;;  %v3231_v41 = vmax.f32 %v3042_v29, 0.0 }
 0x426   :  { %v6818_v16 = vpop.f32.mrf.mxu0  ;;  %v4875_v17 = vpop.f32.mrf.mxu1 }
 0x427   :  { %v2521_v0 = vadd.f32 %v4875_v17, %v6739_v45  ;;  %3357 = vadd.xlane.f32.xlu0 %v3338_v23  ;;  %v6851_v23 = vrot.slane %v6752_v31, %v1992_v34  ;;  %v3032_v34 = vadd.f32 %v6743_v53, %v6764_v51  ;;  %v6917_v53 = vld [vmem:[#allocation2 + $0x88] sm:$0xff] }
 0x428   :  { %v6834_v15 = vpop.f32.mrf.mxu0  ;;  %v2512_v26 = vpop.f32.mrf.mxu1 }
 0x429   :  { %v2565_v58 = vmax.f32 %v2521_v0, 0.0  ;;  %v2513_v10 = vadd.f32 %v6739_v45, %v2512_v26  ;;  %v5385_v26 = vld [vmem:[%s7648_s23 + $0x30] sm:$0xff]  ;;  %v3034_v0 = vadd.f32 %v6754_v39, %v6771_v6  ;;  %v5390_v39 = vld [vmem:[%s7648_s23 + $0x38] sm:$0xff] }
 0x42a   :  { %v6854_v47 = vpop.f32.mrf.mxu0  ;;  %v4876_v22 = vpop.f32.mrf.mxu1 }
 0x42b   :  { %v2524_v17 = vadd.f32 %v4876_v22, %v6739_v45  ;;  %v3325_v4 = vsub.f32 %v5385_v26, %v2565_v58  ;;  %v2563_v9 = vmax.f32 %v2513_v10, 0.0  ;;  %v5388_v26 = vld [vmem:[%s7648_s23 + $0x20] sm:$0xff]  ;;  %v6897_v58 = vld [vmem:[#allocation2 + $0x68] sm:$0xff]  ;;  %v3224_v3 = vmax.f32 %v3034_v0, 0.0 }
 0x42c   :  { %v6871_v24 = vpop.f32.mrf.mxu0  ;;  %v2515_v31 = vpop.f32.mrf.mxu1  ;;  %v3052_v56 = vadd.f32 %v6854_v47, %v6764_v51 }
 0x42d   :  { %v2566_v8 = vmax.f32 %v2524_v17, 0.0  ;;  %v3341_v10 = vmul.f32 %v3325_v4, %v3325_v4  ;;  %v3323_v59 = vsub.f32 %v5388_v26, %v2563_v9  ;;  %v2516_v4 = vadd.f32 %v6739_v45, %v2515_v31 }
 0x42e   :  { %v6887_v22 = vpop.f32.mrf.mxu0 }
 0x42f   :  { %v3326_v17 = vsub.f32 %v5390_v39, %v2566_v8  ;;  %3363 = vadd.xlane.f32.xlu1 %v3341_v10  ;;  %v3223_v39 = vmax.f32 %v3032_v34, 0.0  ;;  %v2564_v1 = vmax.f32 %v2516_v4, 0.0  ;;  %v3339_v9 = vmul.f32 %v3323_v59, %v3323_v59  ;;  %v5396_v34 = vld [vmem:[%s7648_s23 + $0x28] sm:$0xff]  ;;  %v6925_v4 = vld [vmem:[#allocation2 + $0x98] sm:$0xff] }
 0x430   :  { %v6901_v26 = vpop.f32.mrf.mxu0  ;;  %7684 = vst [vmem:[#allocation45_spill] sm:$0xff] %v6925_v4  ;;  %v3464_v10 = vsub.f32 %v3400_v28, %v3224_v3  ;;  %v3038_v59 = vadd.f32 %v6774_v21, %v6771_v6  ;;  %v3048_v28 = vadd.f32 %v6834_v15, %v6771_v6  ;;  %v3054_v3 = vadd.f32 %v6871_v24, %v6771_v6 }
 0x431   :  { %v3342_v42 = vmul.f32 %v3326_v17, %v3326_v17  ;;  %v3324_v0 = vsub.f32 %v5396_v34, %v2564_v1  ;;  %v3463_v17 = vsub.f32 %v3399_v11, %v3223_v39  ;;  %v6964_v34 = vld [vmem:[#allocation2 + $0xd8] sm:$0xff]  ;;  %v3046_v24 = vadd.f32 %v6818_v16, %v6764_v51 }
 0x432   :  { %v6911_v49 = vpop.f32.mrf.mxu0  ;;  %7688 = vst [vmem:[#allocation49_spill] sm:$0xff] %v6964_v34  ;;  %v3528_v33 = vmul.f32 %v3464_v10, %v3464_v10  ;;  %v3228_v60 = vmax.f32 %v3038_v59, 0.0  ;;  %v3236_v38 = vmax.f32 %v3048_v28, 0.0  ;;  %v5403_v10 = vld [vmem:[%s7648_s23 + $0x50] sm:$0xff]  ;;  %v3240_v59 = vmax.f32 %v3054_v3, 0.0 }
 0x433   :  { %3365 = vadd.xlane.f32.xlu0 %v3342_v42  ;;  %3359 = vadd.xlane.f32.xlu1 %v3339_v9  ;;  %v6935_v42 = vld [vmem:[#allocation2 + $0xb8] sm:$0xff]  ;;  %v3036_v9 = vadd.f32 %v6760_v43, %v6764_v51  ;;  %v3340_v62 = vmul.f32 %v3324_v0, %v3324_v0  ;;  %v3044_v43 = vadd.f32 %v6803_v61, %v6771_v6  ;;  %v7689_v61 = vunpack.c.l.bf16 %v6776_v44 }
 0x434   :  { %v6928_v31 = vpop.f32.mrf.mxu0  ;;  %7686 = vst [vmem:[#allocation47_spill] sm:$0xff] %v6935_v42  ;;  %v3527_v15 = vmul.f32 %v3463_v17, %v3463_v17  ;;  %v3056_v16 = vadd.f32 %v6887_v22, %v6764_v51  ;;  %v3058_v29 = vadd.f32 %v6901_v26, %v6771_v6  ;;  %v3239_v3 = vmax.f32 %v3052_v56, 0.0 }
 0x435   :  { %v3232_v34 = vmax.f32 %v3044_v43, 0.0  ;;  %v3062_v43 = vadd.f32 %v6911_v49, %v6764_v51  ;;  %v7690_v42 = vunpack.c.h.bf16 %v6776_v44  ;;  %v7693_v56 = vunpack.c.h.bf16 %v6789_v5 }
 0x436   :  { %v6946_v8 = vpop.f32.mrf.mxu0  ;;  %v4879_v1 = vpop.f32.mrf.mxu1 }
 0x437   :  { %v2537_v21 = vadd.f32 %v4879_v1, %v6739_v45  ;;  %3361 = vadd.xlane.f32.xlu0 %v3340_v62  ;;  %v3227_v1 = vmax.f32 %v3036_v9, 0.0  ;;  %v3472_v49 = vsub.f32 %v7692_v2, %v3232_v34  ;;  %v7695_v34 = vunpack.c.l.bf16 %v6789_v5 }
 0x438   :  { %v6962_v39 = vpop.f32.mrf.mxu0  ;;  %v2528_v0 = vpop.f32.mrf.mxu1  ;;  %v7019_v5 = vadd.f32 %v3528_v33, %v3527_v15 }
 0x439   :  { %v2569_v62 = vmax.f32 %v2537_v21, 0.0  ;;  %v2529_v63 = vadd.f32 %v6739_v45, %v2528_v0  ;;  %v3467_v55 = vsub.f32 %v7689_v61, %v3227_v1  ;;  %v3468_v61 = vsub.f32 %v7690_v42, %v3228_v60  ;;  %v5405_v60 = vld [vmem:[%s7648_s23 + $0x58] sm:$0xff] }
 0x43a   :  { %v6976_v11 = vpop.f32.mrf.mxu0  ;;  %v4880_v20 = vpop.f32.mrf.mxu1  ;;  %v7691_v1 = vunpack.c.l.bf16 %v6780_v37  ;;  %v3536_v4 = vmul.f32 %v3472_v49, %v3472_v49  ;;  %v7698_v49 = vunpack.c.h.bf16 %v6800_v40 }
 0x43b   :  { %v3329_v17 = vsub.f32 %v5403_v10, %v2569_v62  ;;  %v2567_v9 = vmax.f32 %v2529_v63, 0.0  ;;  %v2540_v47 = vadd.f32 %v4880_v20, %v6739_v45  ;;  %v3235_v62 = vmax.f32 %v3046_v24, 0.0  ;;  %v5404_v63 = vld [vmem:[%s7648_s23 + $0x40] sm:$0xff] }
 0x43c   :  { %v3073_v21 = vpop.f32.mrf.mxu0  ;;  %v2531_v0 = vpop.f32.mrf.mxu1  ;;  %v3471_v26 = vsub.f32 %v7691_v1, %v3231_v41  ;;  %v3244_v41 = vmax.f32 %v3058_v29, 0.0  ;;  %v3247_v1 = vmax.f32 %v3062_v43, 0.0  ;;  %v5406_v29 = vld [vmem:[%s7648_s23 + $0x48] sm:$0xff] }
 0x43d   :  { %v3345_v28 = vmul.f32 %v3329_v17, %v3329_v17  ;;  %v3327_v22 = vsub.f32 %v5404_v63, %v2567_v9  ;;  %v2570_v20 = vmax.f32 %v2540_v47, 0.0  ;;  %v2532_v24 = vadd.f32 %v6739_v45, %v2531_v0 }
 0x43e   :  { %v6993_v10 = vpop.f32.mrf.mxu0  ;;  %v3476_v17 = vsub.f32 %v7693_v56, %v3236_v38  ;;  %v7694_v9 = vunpack.c.h.bf16 %v6796_v12  ;;  %v3243_v63 = vmax.f32 %v3056_v16, 0.0  ;;  %v3475_v0 = vsub.f32 %v7695_v34, %v3235_v62 }
 0x43f   :  { %3371 = vadd.xlane.f32.xlu1 %v3345_v28  ;;  %v3330_v44 = vsub.f32 %v5405_v60, %v2570_v20  ;;  %v3343_v37 = vmul.f32 %v3327_v22, %v3327_v22  ;;  %v2568_v2 = vmax.f32 %v2532_v24, 0.0  ;;  %v7696_v28 = vunpack.c.l.bf16 %v6796_v12 }
 0x440   :  { %v3480_v47 = vsub.f32 %v7694_v9, %v3240_v59  ;;  %v3077_v42 = vpop.f32.mrf.mxu0  ;;  %v3064_v59 = vadd.f32 %v6928_v31, %v6771_v6  ;;  %v3532_v9 = vmul.f32 %v3468_v61, %v3468_v61  ;;  %v3540_v62 = vmul.f32 %v3476_v17, %v3476_v17 }
 0x441   :  { %v3479_v38 = vsub.f32 %v7696_v28, %v3239_v3  ;;  %v3346_v16 = vmul.f32 %v3330_v44, %v3330_v44  ;;  %v3328_v43 = vsub.f32 %v5406_v29, %v2568_v2  ;;  %v7697_v3 = vunpack.c.l.bf16 %v6800_v40 }
 0x442   :  { %v3081_v56 = vpop.f32.mrf.mxu0  ;;  %v3544_v12 = vmul.f32 %v3480_v47, %v3480_v47  ;;  %v3531_v24 = vmul.f32 %v3467_v55, %v3467_v55  ;;  %v3535_v61 = vmul.f32 %v3471_v26, %v3471_v26  ;;  %v3484_v60 = vsub.f32 %v7698_v49, %v3244_v41 }
 0x443   :  { %3367 = vadd.xlane.f32.xlu1 %v3343_v37  ;;  %v3483_v20 = vsub.f32 %v7697_v3, %v3243_v63  ;;  %3373 = vadd.xlane.f32.xlu0 %v3346_v16  ;;  %v7699_v44 = vunpack.c.l.bf16 %v6806_v32  ;;  %v3539_v37 = vmul.f32 %v3475_v0, %v3475_v0  ;;  %v3543_v34 = vmul.f32 %v3479_v38, %v3479_v38 }
 0x444   :  { %v3083_v31 = vpop.f32.mrf.mxu0  ;;  %v3248_v28 = vmax.f32 %v3064_v59, 0.0  ;;  %v3344_v33 = vmul.f32 %v3328_v43, %v3328_v43  ;;  %v7027_v47 = vadd.f32 %v3532_v9, %v3531_v24  ;;  %v7029_v29 = vadd.f32 %v3536_v4, %v3535_v61 }
 0x445   :  { %v3487_v2 = vsub.f32 %v7699_v44, %v3247_v1  ;;  %v3068_v55 = vadd.f32 %v6962_v39, %v6771_v6  ;;  %v7034_v40 = vadd.f32 %v3540_v62, %v3539_v37  ;;  %v7036_v63 = vadd.f32 %v3544_v12, %v3543_v34 }
 0x446   :  { %v3085_v15 = vpop.f32.mrf.mxu0  ;;  %v4883_v17 = vpop.f32.mrf.mxu1  ;;  %v7038_v41 = vmul.f32 %v3483_v20, %v3483_v20  ;;  %v3074_v1 = vadd.f32 %v3073_v21, %v6771_v6  ;;  %v7041_v59 = vmul.f32 %v3484_v60, %v3484_v60  ;;  %v3066_v39 = vadd.f32 %v6946_v8, %v6764_v51  ;;  %v5407_v8 = vld [vmem:[%s7648_s23 + $0x70] sm:$0xff] }
 0x447   :  { %v2553_v26 = vadd.f32 %v4883_v17, %v6739_v45  ;;  %3369 = vadd.xlane.f32.xlu0 %v3344_v33  ;;  %v7043_v4 = vmul.f32 %v3487_v2, %v3487_v2  ;;  %v7700_v9 = vunpack.c.h.bf16 %v6806_v32  ;;  %v3072_v62 = vadd.f32 %v6976_v11, %v6764_v51 }
 0x448   :  { %v3087_v0 = vpop.f32.mrf.mxu0  ;;  %v2544_v38 = vpop.f32.mrf.mxu1  ;;  %v3078_v12 = vadd.f32 %v3077_v42, %v6771_v6  ;;  %v3252_v24 = vmax.f32 %v3068_v55, 0.0  ;;  %v3084_v61 = vadd.f32 %v3083_v31, %v6771_v6  ;;  %v3256_v60 = vmax.f32 %v3074_v1, 0.0  ;;  %v5408_v1 = vld [vmem:[%s7648_s23 + $0x60] sm:$0xff] }
 0x449   :  { %v2573_v16 = vmax.f32 %v2553_v26, 0.0  ;;  %v3488_v43 = vsub.f32 %v7700_v9, %v3248_v28  ;;  %v2545_v21 = vadd.f32 %v6739_v45, %v2544_v38  ;;  %v3076_v11 = vadd.f32 %v6993_v10, %v6764_v51 }
 0x44a   :  { %v3091_v3 = vpop.f32.mrf.mxu0  ;;  %v4884_v20 = vpop.f32.mrf.mxu1  ;;  %v3082_v42 = vadd.f32 %v3081_v56, %v6764_v51  ;;  %v3251_v34 = vmax.f32 %v3066_v39, 0.0  ;;  %v3088_v31 = vadd.f32 %v3087_v0, %v6771_v6  ;;  %v3255_v17 = vmax.f32 %v3072_v62, 0.0  ;;  %v5409_v39 = vld [vmem:[%s7648_s23 + $0x78] sm:$0xff] }
 0x44b   :  { %v3333_v49 = vsub.f32 %v5407_v8, %v2573_v16  ;;  %v2556_v32 = vadd.f32 %v4884_v20, %v6739_v45  ;;  %v2571_v44 = vmax.f32 %v2545_v21, 0.0  ;;  %v3260_v55 = vmax.f32 %v3078_v12, 0.0 }
 0x44c   :  { %v3093_v2 = vpop.f32.mrf.mxu0  ;;  %v2547_v37 = vpop.f32.mrf.mxu1  ;;  %v3086_v26 = vadd.f32 %v3085_v15, %v6764_v51  ;;  %v3264_v16 = vmax.f32 %v3084_v61, 0.0  ;;  %v3092_v56 = vadd.f32 %v3091_v3, %v6764_v51  ;;  %v7701_v62 = vunpack.c.h.bf16 %v6810_v13 }
 0x44d   :  { %v3349_v28 = vmul.f32 %v3333_v49, %v3333_v49  ;;  %v2574_v33 = vmax.f32 %v2556_v32, 0.0  ;;  %v3331_v38 = vsub.f32 %v5408_v1, %v2571_v44  ;;  %v2548_v0 = vadd.f32 %v6739_v45, %v2547_v37 }
 0x44e   :  { %v3095_v10 = vpop.f32.mrf.mxu0  ;;  %v3492_v15 = vsub.f32 %v7701_v62, %v3252_v24  ;;  %v7702_v12 = vunpack.c.h.bf16 %v6814_v25  ;;  %v3259_v20 = vmax.f32 %v3076_v11, 0.0  ;;  %v3263_v8 = vmax.f32 %v3082_v42, 0.0 }
 0x44f   :  { %v3334_v9 = vsub.f32 %v5409_v39, %v2574_v33  ;;  %3379 = vadd.xlane.f32.xlu1 %v3349_v28  ;;  %v3268_v61 = vmax.f32 %v3088_v31, 0.0  ;;  %v3347_v32 = vmul.f32 %v3331_v38, %v3331_v38  ;;  %v2572_v44 = vmax.f32 %v2548_v0, 0.0  ;;  %v5410_v38 = vld [vmem:[%s7648_s23 + $0x68] sm:$0xff]  ;;  %s5666_s23 = smov [#allocation19]  }
 0x450   :  { %v3496_v21 = vsub.f32 %v7702_v12, %v3256_v60  ;;  %v3097_v49 = vpop.f32.mrf.mxu0  ;;  %v7703_v1 = vunpack.c.l.bf16 %v6810_v13  ;;  %v7704_v33 = vunpack.c.l.bf16 %v6814_v25  ;;  %v7705_v37 = vunpack.c.h.bf16 %v6820_v27  ;;  %s4353_s6 = sshll.u32 %s5666_s23, 4  ;;  %s4354_s6 = int_to_ptr.vmem [resolvable:$true] %s4353_s6 }
 0x451   :  { %v3350_v3 = vmul.f32 %v3334_v9, %v3334_v9  ;;  %v3267_v24 = vmax.f32 %v3086_v26, 0.0  ;;  %v7706_v60 = vunpack.c.h.bf16 %v6825_v50  ;;  %v3271_v42 = vmax.f32 %v3092_v56, 0.0  ;;  %s5612_s26 = scalar_lea.vmem %s4354_s6, 2048  ;;  %p5617_p9 = scmp.lt.s32.totalorder %s4354_s6, %s4354_s6 }
 0x452   :  { %v3491_v22 = vsub.f32 %v7703_v1, %v3251_v34  ;;  %v3495_v45 = vsub.f32 %v7704_v33, %v3255_v17  ;;  %v3500_v28 = vsub.f32 %v7705_v37, %v3260_v55  ;;  %v3101_v39 = vpop.f32.mrf.mxu0  ;;  %v3094_v31 = vadd.f32 %v3093_v2, %v6771_v6  ;;  %p5613_p8 = scmp.ne.s32.totalorder %s4354_s6, %s5612_s26  ;;  %p5618_p10 = scmp.lt.s32.totalorder %s5612_s26, %s5612_s26 }
 0x453   :  { %v3504_v11 = vsub.f32 %v7706_v60, %v3264_v16  ;;  %v3332_v13 = vsub.f32 %v5410_v38, %v2572_v44  ;;  %3375 = vadd.xlane.f32.xlu1 %v3347_v32  ;;  %3381 = vadd.xlane.f32.xlu0 %v3350_v3  ;;  %v3552_v25 = vmul.f32 %v3488_v43, %v3488_v43  ;;  %v7707_v55 = vunpack.c.l.bf16 %v6820_v27 }
 0x454   :  { %v3556_v34 = vmul.f32 %v3492_v15, %v3492_v15  ;;  %v3560_v17 = vmul.f32 %v3496_v21, %v3496_v21  ;;  %v7089_v9 = vpop.f32.mrf.mxu0  ;;  %v7708_v16 = vunpack.c.l.bf16 %v6825_v50  ;;  %v7709_v2 = vunpack.c.h.bf16 %v6829_v48  ;;  %p5619_p11 = por %p5618_p10, %p5617_p9 }
 0x455   :  { %v3499_v26 = vsub.f32 %v7707_v55, %v3259_v20  ;;  %v3348_v62 = vmul.f32 %v3332_v13, %v3332_v13  ;;  %v3096_v12 = vadd.f32 %v3095_v10, %v6764_v51  ;;  %v7098_v32 = vadd.f32 %v7041_v59, %v7038_v41 }
 0x456   :  { %v3503_v56 = vsub.f32 %v7708_v16, %v3263_v8  ;;  %v3508_v0 = vsub.f32 %v7709_v2, %v3268_v61  ;;  %v3555_v43 = vmul.f32 %v3491_v22, %v3491_v22  ;;  %v3564_v15 = vmul.f32 %v3500_v28, %v3500_v28  ;;  %v7102_v20 = vpop.f32.mrf.mxu0  ;;  %p5620_p12 = pnand %p5619_p11, %p5613_p8 }
 0x457   :  { %v7710_v27 = vunpack.c.l.bf16 %v6829_v48  ;;  %v3559_v3 = vmul.f32 %v3495_v45, %v3495_v45  ;;  %v3568_v50 = vmul.f32 %v3504_v11, %v3504_v11  ;;  %v7711_v8 = vunpack.c.l.bf16 %v6836_v14  ;;  %v3164_v1 = vpop.f32.mrf.mxu1  ;;  %3377 = vadd.xlane.f32.xlu0 %v3348_v62 }
 0x458   :  { %v3272_v61 = vmax.f32 %v3094_v31, 0.0  ;;  %v7107_v10 = vadd.f32 %v3552_v25, %v7043_v4  ;;  %v7109_v41 = vadd.f32 %v3556_v34, %v3555_v43  ;;  %v3563_v22 = vmul.f32 %v3499_v26, %v3499_v26  ;;  %v7112_v48 = vpop.f32.mrf.mxu0 }
 0x459   :  { %v3507_v21 = vsub.f32 %v7710_v27, %v3267_v24  ;;  %v3511_v44 = vsub.f32 %v7711_v8, %v3271_v42  ;;  %v3165_v59 = vadd.f32 %v3164_v1, %v6851_v23  ;;  %v7114_v33 = vadd.f32 %v3560_v17, %v3559_v3  ;;  %v3166_v24 = vpop.f32.mrf.mxu1 }
 0x45a   :  { %v3567_v45 = vmul.f32 %v3503_v56, %v3503_v56  ;;  %v3572_v37 = vmul.f32 %v3508_v0, %v3508_v0  ;;  %v3275_v28 = vmax.f32 %v3096_v12, 0.0  ;;  %v7116_v60 = vadd.f32 %v3564_v15, %v3563_v22  ;;  %v3144_v31 = vpop.f32.mrf.mxu0 }
 0x45b   :  { %v3571_v11 = vmul.f32 %v3507_v21, %v3507_v21  ;;  %v3241_v42 = vmax.f32 %v3165_v59, 0.0  ;;  %v3167_v4 = vadd.f32 %v3166_v24, %v6860_v19  ;;  %v7121_v13 = vmul.f32 %v3511_v44, %v3511_v44  ;;  %v3168_v55 = vpop.f32.mrf.mxu1 }
 0x45c   :  { %v7119_v38 = vadd.f32 %v3568_v50, %v3567_v45  ;;  %v7712_v25 = vunpack.c.h.bf16 %v6836_v14  ;;  %v3145_v17 = vadd.f32 %v3144_v31, %v6851_v23  ;;  %v7127_v26 = vadd.f32 %v3097_v49, %v6771_v6  ;;  %v3146_v62 = vpop.f32.mrf.mxu0 }
 0x45d   :  { %v7713_v16 = vunpack.c.l.bf16 %v6863_v7  ;;  %v3242_v2 = vmax.f32 %v3167_v4, 0.0  ;;  %v3169_v0 = vadd.f32 %v3168_v55, %v6851_v23  ;;  %v7132_v12 = vadd.f32 %v3572_v37, %v3571_v11  ;;  %v3170_v21 = vpop.f32.mrf.mxu1 }
 0x45e   :  { %v3512_v34 = vsub.f32 %v7712_v25, %v3272_v61  ;;  %v7714_v43 = vunpack.c.l.bf16 %v6840_v35  ;;  %v7139_v14 = vadd.f32 %v3101_v39, %v6764_v51  ;;  %v3225_v27 = vmax.f32 %v3145_v17, 0.0  ;;  %v3148_v61 = vpop.f32.mrf.mxu0 }
 0x45f   :  { %v3481_v56 = vsub.f32 %v7713_v16, %v3241_v42  ;;  %v7715_v3 = vunpack.c.h.bf16 %v6863_v7  ;;  %v3245_v8 = vmax.f32 %v3169_v0, 0.0  ;;  %v3147_v44 = vadd.f32 %v3146_v62, %v6860_v19  ;;  %v3174_v37 = vpop.f32.mrf.mxu1 }
 0x460   :  { %v7136_v15 = vsub.f32 %v7714_v43, %v3275_v28  ;;  %v7144_v1 = vmul.f32 %v3512_v34, %v3512_v34  ;;  %v7716_v22 = vunpack.c.l.bf16 %v6873_v30  ;;  %v3171_v45 = vadd.f32 %v3170_v21, %v6860_v19  ;;  %v3150_v4 = vpop.f32.mrf.mxu0 }
 0x461   :  { %v3545_v49 = vmul.f32 %v3481_v56, %v3481_v56  ;;  %v3482_v50 = vsub.f32 %v7715_v3, %v3242_v2  ;;  %v3149_v39 = vadd.f32 %v3148_v61, %v6851_v23  ;;  %v3276_v28 = vmax.f32 %v7127_v26, 0.0  ;;  %v3176_v55 = vpop.f32.mrf.mxu1 }
 0x462   :  { %v3465_v59 = vsub.f32 %v7716_v22, %v3225_v27  ;;  %v7717_v7 = vunpack.c.l.bf16 %v6876_v54  ;;  %v3226_v42 = vmax.f32 %v3147_v44, 0.0  ;;  %v3246_v34 = vmax.f32 %v3171_v45, 0.0  ;;  %v3154_v43 = vpop.f32.mrf.mxu0 }
 0x463   :  { %v3612_v24 = vadd.f32 %v7036_v63, %v3545_v49  ;;  %v3546_v31 = vmul.f32 %v3482_v50, %v3482_v50  ;;  %v3229_v17 = vmax.f32 %v3149_v39, 0.0  ;;  %v7718_v56 = vunpack.c.h.bf16 %v6873_v30 }
 0x464   :  { %v3485_v11 = vsub.f32 %v7717_v7, %v3245_v8  ;;  %v3529_v25 = vmul.f32 %v3465_v59, %v3465_v59  ;;  %v3175_v0 = vadd.f32 %v3174_v37, %v6851_v23  ;;  %v3151_v62 = vadd.f32 %v3150_v4, %v6860_v19  ;;  %v3178_v8 = vpop.f32.mrf.mxu1  ;;  %v3156_v59 = vpop.f32.mrf.mxu0 }
 0x465   :  { %v3466_v2 = vsub.f32 %v7718_v56, %v3226_v42  ;;  %v7719_v27 = vunpack.c.h.bf16 %v6876_v54  ;;  %v7720_v49 = vunpack.c.l.bf16 %v6890_v46  ;;  %v3177_v50 = vadd.f32 %v3176_v55, %v6860_v19 }
 0x466   :  { %v3549_v16 = vmul.f32 %v3485_v11, %v3485_v11  ;;  %v3592_v63 = vadd.f32 %v7019_v5, %v3529_v25  ;;  %v3249_v61 = vmax.f32 %v3175_v0, 0.0  ;;  %v3230_v22 = vmax.f32 %v3151_v62, 0.0  ;;  %v3180_v7 = vpop.f32.mrf.mxu1 }
 0x467   :  { %v3486_v21 = vsub.f32 %v7719_v27, %v3246_v34  ;;  %v3469_v3 = vsub.f32 %v7720_v49, %v3229_v17  ;;  %v3530_v30 = vmul.f32 %v3466_v2, %v3466_v2  ;;  %v3250_v37 = vmax.f32 %v3177_v50, 0.0 }
 0x468   :  { %v3617_v44 = vadd.f32 %v7098_v32, %v3549_v16  ;;  %v3155_v5 = vadd.f32 %v3154_v43, %v6851_v23  ;;  %v7721_v54 = vunpack.c.l.bf16 %v6897_v58  ;;  %v7722_v42 = vunpack.c.h.bf16 %v6890_v46  ;;  %v3158_v32 = vpop.f32.mrf.mxu0  ;;  %v3184_v0 = vpop.f32.mrf.mxu1 }
 0x469   :  { %v3550_v45 = vmul.f32 %v3486_v21, %v3486_v21  ;;  %v3533_v39 = vmul.f32 %v3469_v3, %v3469_v3  ;;  %v3179_v25 = vadd.f32 %v3178_v8, %v6851_v23  ;;  %v3613_v34 = vadd.f32 %v3612_v24, %v3546_v31 }
 0x46a   :  { %v3489_v11 = vsub.f32 %v7721_v54, %v3249_v61  ;;  %v3470_v4 = vsub.f32 %v7722_v42, %v3230_v22  ;;  %v7723_v55 = vunpack.c.h.bf16 %v6897_v58  ;;  %v3233_v56 = vmax.f32 %v3155_v5, 0.0  ;;  %v3186_v3 = vpop.f32.mrf.mxu1 }
 0x46b   :  { %v3597_v17 = vadd.f32 %v7027_v47, %v3533_v39  ;;  %v3157_v2 = vadd.f32 %v3156_v59, %v6860_v19  ;;  %v3253_v27 = vmax.f32 %v3179_v25, 0.0  ;;  %3614 = vadd.xlane.f32.xlu1 %v3613_v34  ;;  %v3181_v46 = vadd.f32 %v3180_v7, %v6860_v19  ;;  %v3160_v59 = vpop.f32.mrf.mxu0 }
 0x46c   :  { %v3490_v16 = vsub.f32 %v7723_v55, %v3250_v37  ;;  %v3553_v62 = vmul.f32 %v3489_v11, %v3489_v11  ;;  %v3534_v43 = vmul.f32 %v3470_v4, %v3470_v4  ;;  %v7724_v49 = vunpack.c.l.bf16 %v6904_v52  ;;  %v3188_v11 = vpop.f32.mrf.mxu1 }
 0x46d   :  { %v3234_v31 = vmax.f32 %v3157_v2, 0.0  ;;  %v3159_v47 = vadd.f32 %v3158_v32, %v6851_v23  ;;  %v7725_v50 = vunpack.c.l.bf16 %v6907_v36  ;;  %v3254_v61 = vmax.f32 %v3181_v46, 0.0 }
 0x46e   :  { %v3554_v21 = vmul.f32 %v3490_v16, %v3490_v16  ;;  %v3473_v24 = vsub.f32 %v7724_v49, %v3233_v56  ;;  %v3622_v58 = vadd.f32 %v7107_v10, %v3553_v62  ;;  %v3185_v22 = vadd.f32 %v3184_v0, %v6851_v23 }
 0x46f   :  { %v3493_v8 = vsub.f32 %v7725_v50, %v3253_v27  ;;  %v7726_v37 = vunpack.c.h.bf16 %v6904_v52  ;;  %v3237_v7 = vmax.f32 %v3159_v47, 0.0  ;;  %v3593_v54 = vadd.f32 %v3592_v63, %v3530_v30  ;;  %v3190_v52 = vpop.f32.mrf.mxu1 }
 0x470   :  { %v3537_v39 = vmul.f32 %v3473_v24, %v3473_v24  ;;  %v7727_v4 = vunpack.c.h.bf16 %v6907_v36  ;;  %v3257_v34 = vmax.f32 %v3185_v22, 0.0  ;;  %v3618_v10 = vadd.f32 %v3617_v44, %v3550_v45 }
 0x471   :  { %v3474_v5 = vsub.f32 %v7726_v37, %v3234_v31  ;;  %v3557_v42 = vmul.f32 %v3493_v8, %v3493_v8  ;;  %v7728_v16 = vunpack.c.l.bf16 %v6914_v57  ;;  %3594 = vadd.xlane.f32.xlu1 %v3593_v54  ;;  %v3161_v2 = vadd.f32 %v3160_v59, %v6860_v19  ;;  %v3194_v46 = vpop.f32.mrf.mxu1  ;;  %v7732_v37 = vld [vmem:[#allocation45_spill] sm:$0xff] }
 0x472   :  { %v3494_v25 = vsub.f32 %v7727_v4, %v3254_v61  ;;  %v3602_v32 = vadd.f32 %v7029_v29, %v3537_v39  ;;  %v7729_v30 = vunpack.c.l.bf16 %v6917_v53  ;;  %3619 = vadd.xlane.f32.xlu0 %v3618_v10  ;;  %v3187_v36 = vadd.f32 %v3186_v3, %v6860_v19  ;;  %v7735_v10 = vld [vmem:[#allocation46_spill] sm:$0xff] }
 0x473   :  { %v3538_v55 = vmul.f32 %v3474_v5, %v3474_v5  ;;  %v3477_v56 = vsub.f32 %v7728_v16, %v3237_v7  ;;  %v3627_v0 = vadd.f32 %v7109_v41, %v3557_v42  ;;  %v3238_v45 = vmax.f32 %v3161_v2, 0.0  ;;  %v3196_v22 = vpop.f32.mrf.mxu1 }
 0x474   :  { %v3558_v63 = vmul.f32 %v3494_v25, %v3494_v25  ;;  %v3497_v62 = vsub.f32 %v7729_v30, %v3257_v34  ;;  %v3189_v29 = vadd.f32 %v3188_v11, %v6851_v23  ;;  %v3623_v27 = vadd.f32 %v3622_v58, %v3554_v21 }
 0x475   :  { %v3541_v44 = vmul.f32 %v3477_v56, %v3477_v56  ;;  %v3258_v24 = vmax.f32 %v3187_v36, 0.0  ;;  %v3598_v31 = vadd.f32 %v3597_v17, %v3534_v43  ;;  %v3191_v47 = vadd.f32 %v3190_v52, %v6860_v19  ;;  %v3198_v54 = vpop.f32.mrf.mxu1 }
 0x476   :  { %v3561_v49 = vmul.f32 %v3497_v62, %v3497_v62  ;;  %v7730_v50 = vunpack.c.h.bf16 %v6914_v57  ;;  %v3261_v61 = vmax.f32 %v3189_v29, 0.0  ;;  %3624 = vadd.xlane.f32.xlu1 %v3623_v27  ;;  %v3195_v3 = vadd.f32 %v3194_v46, %v6851_v23 }
 0x477   :  { %v3607_v41 = vadd.f32 %v7034_v40, %v3541_v44  ;;  %v7731_v21 = vunpack.c.h.bf16 %v6917_v53  ;;  %3599 = vadd.xlane.f32.xlu0 %v3598_v31  ;;  %v3262_v39 = vmax.f32 %v3191_v47, 0.0  ;;  %v3603_v17 = vadd.f32 %v3602_v32, %v3538_v55  ;;  %v3200_v56 = vpop.f32.mrf.mxu1 }
 0x478   :  { %v3478_v8 = vsub.f32 %v7730_v50, %v3238_v45  ;;  %v3632_v59 = vadd.f32 %v7114_v33, %v3561_v49  ;;  %v7733_v5 = vunpack.c.l.bf16 %v7732_v37  ;;  %v3265_v7 = vmax.f32 %v3195_v3, 0.0  ;;  %v7739_v49 = vld [vmem:[#allocation47_spill] sm:$0xff] }
 0x479   :  { %v3498_v58 = vsub.f32 %v7731_v21, %v3258_v24  ;;  %v3628_v57 = vadd.f32 %v3627_v0, %v3558_v63  ;;  %v7734_v42 = vunpack.c.h.bf16 %v7732_v37  ;;  %v3197_v25 = vadd.f32 %v3196_v22, %v6860_v19  ;;  %v3204_v44 = vpop.f32.mrf.mxu1 }
 0x47a   :  { %v3542_v43 = vmul.f32 %v3478_v8, %v3478_v8  ;;  %v3501_v40 = vsub.f32 %v7733_v5, %v3261_v61  ;;  %v3199_v33 = vadd.f32 %v3198_v54, %v6851_v23  ;;  %v3279_v53 = vmax.f32 %v7139_v14, 0.0  ;;  %3604 = vadd.xlane.f32.xlu1 %v3603_v17 }
 0x47b   :  { %v3562_v11 = vmul.f32 %v3498_v58, %v3498_v58  ;;  %v3502_v4 = vsub.f32 %v7734_v42, %v3262_v39  ;;  %v7736_v32 = vunpack.c.l.bf16 %v7735_v10  ;;  %3629 = vadd.xlane.f32.xlu0 %v3628_v57  ;;  %v3266_v52 = vmax.f32 %v3197_v25, 0.0  ;;  %v3206_v26 = vpop.f32.mrf.mxu1  ;;  %v7742_v58 = vld [vmem:[#allocation48_spill] sm:$0xff]  ;;  %v7745_v42 = vld [vmem:[#allocation43_spill] sm:$0xff] }
 0x47c   :  { %v3565_v34 = vmul.f32 %v3501_v40, %v3501_v40  ;;  %v3608_v16 = vadd.f32 %v3607_v41, %v3542_v43  ;;  %v3269_v0 = vmax.f32 %v3199_v33, 0.0  ;;  %v3104_v30 = vadd.f32 %v7089_v9, %v6771_v6 }
 0x47d   :  { %v3505_v55 = vsub.f32 %v7736_v32, %v3265_v7  ;;  %v3566_v2 = vmul.f32 %v3502_v4, %v3502_v4  ;;  %v3633_v63 = vadd.f32 %v3632_v59, %v3562_v11  ;;  %v3201_v14 = vadd.f32 %v3200_v56, %v6860_v19 }
 0x47e   :  { %v3637_v62 = vadd.f32 %v7116_v60, %v3565_v34  ;;  %v7737_v45 = vunpack.c.h.bf16 %v6840_v35  ;;  %v7738_v27 = vunpack.c.h.bf16 %v7735_v10  ;;  %v7740_v24 = vunpack.c.l.bf16 %v7739_v49 }
 0x47f   :  { %v3569_v36 = vmul.f32 %v3505_v55, %v3505_v55  ;;  %v3205_v47 = vadd.f32 %v3204_v44, %v6851_v23  ;;  %v3108_v9 = vadd.f32 %v7112_v48, %v6771_v6  ;;  %3634 = vadd.xlane.f32.xlu1 %v3633_v63  ;;  %v3270_v41 = vmax.f32 %v3201_v14, 0.0  ;;  %3609 = vadd.xlane.f32.xlu0 %v3608_v16  ;;  %v7747_v16 = vld [vmem:[#allocation49_spill] sm:$0xff] }
 0x480   :  { %v3516_v29 = vsub.f32 %v7737_v45, %v3276_v28  ;;  %v3506_v46 = vsub.f32 %v7738_v27, %v3266_v52  ;;  %v3509_v31 = vsub.f32 %v7740_v24, %v3269_v0  ;;  %v3638_v50 = vadd.f32 %v3637_v62, %v3566_v2  ;;  %v7750_v62 = vld [vmem:[#allocation44_spill] sm:$0xff] }
 0x481   :  { %v3642_v60 = vadd.f32 %v7119_v38, %v3569_v36  ;;  %v3273_v28 = vmax.f32 %v3205_v47, 0.0  ;;  %v3207_v61 = vadd.f32 %v3206_v26, %v6860_v19  ;;  %v3651_v3 = vadd.f32 %v7144_v1, %v7121_v13  ;;  %v3208_v38 = vpop.f32.mrf.mxu1 }
 0x482   :  { %v3570_v8 = vmul.f32 %v3506_v46, %v3506_v46  ;;  %v3573_v35 = vmul.f32 %v3509_v31, %v3509_v31  ;;  %v3280_v22 = vmax.f32 %v3104_v30, 0.0  ;;  %v3106_v59 = vadd.f32 %v7102_v20, %v6764_v51 }
 0x483   :  { %v7741_v6 = vunpack.c.h.bf16 %v7739_v49  ;;  %v7743_v39 = vunpack.c.l.bf16 %v7742_v58  ;;  %v3274_v43 = vmax.f32 %v3207_v61, 0.0  ;;  %v3209_v37 = vadd.f32 %v3208_v38, %v6851_v23  ;;  %v3210_v1 = vpop.f32.mrf.mxu1  ;;  %3639 = vadd.xlane.f32.xlu0 %v3638_v50 }
 0x484   :  { %v3647_v21 = vadd.f32 %v7132_v12, %v3573_v35  ;;  %v3580_v5 = vmul.f32 %v3516_v29, %v3516_v29  ;;  %v3284_v40 = vmax.f32 %v3108_v9, 0.0  ;;  %v3643_v13 = vadd.f32 %v3642_v60, %v3570_v8  ;;  %v5411_v60 = vld [vmem:[#allocation2 + $0xf8] sm:$0xff] }
 0x485   :  { %v3510_v48 = vsub.f32 %v7741_v6, %v3270_v41  ;;  %v3513_v17 = vsub.f32 %v7743_v39, %v3273_v28  ;;  %v7744_v51 = vunpack.c.h.bf16 %v7742_v58  ;;  %v3277_v54 = vmax.f32 %v3209_v37, 0.0  ;;  %v3214_v34 = vpop.f32.mrf.mxu1 }
 0x486   :  { %v3211_v11 = vadd.f32 %v3210_v1, %v6860_v19  ;;  %v3579_v12 = vmul.f32 %v7136_v15, %v7136_v15  ;;  %v7746_v4 = vunpack.c.h.bf16 %v7745_v42  ;;  %v3283_v33 = vmax.f32 %v3106_v59, 0.0  ;;  %3644 = vadd.xlane.f32.xlu1 %v3643_v13 }
 0x487   :  { %v3574_v7 = vmul.f32 %v3510_v48, %v3510_v48  ;;  %v3577_v57 = vmul.f32 %v3513_v17, %v3513_v17  ;;  %v3514_v20 = vsub.f32 %v7744_v51, %v3274_v43  ;;  %v7748_v56 = vunpack.c.l.bf16 %v7747_v16  ;;  %v3216_v44 = vpop.f32.mrf.mxu1 }
 0x488   :  { %v3520_v25 = vsub.f32 %v7746_v4, %v3280_v22  ;;  %v3278_v52 = vmax.f32 %v3211_v11, 0.0  ;;  %v3656_v0 = vadd.f32 %v3580_v5, %v3579_v12  ;;  %v7749_v63 = vunpack.c.l.bf16 %v7745_v42  ;;  %v7269_v12 = vpop.xlane.xlu1 %4055 }
 0x489   :  { %v3648_v10 = vadd.f32 %v3647_v21, %v3574_v7  ;;  %v3652_v32 = vadd.f32 %v3651_v3, %v3577_v57  ;;  %v3578_v55 = vmul.f32 %v3514_v20, %v3514_v20  ;;  %v3517_v2 = vsub.f32 %v7748_v56, %v3277_v54  ;;  %v7265_v7 = vpop.xlane.xlu0 %4057 }
 0x48a   :  { %v3519_v30 = vsub.f32 %v7749_v63, %v3279_v53  ;;  %v7751_v36 = vunpack.c.h.bf16 %v7750_v62  ;;  %v3215_v14 = vadd.f32 %v3214_v34, %v6851_v23  ;;  %v7752_v29 = vunpack.c.h.bf16 %v7747_v16  ;;  %v3218_v53 = vpop.f32.mrf.mxu1  ;;  %v7756_v63 = vld [vmem:[#allocation29_spill] sm:$0xff] }
 0x48b   :  { %v3581_v45 = vmul.f32 %v3517_v2, %v3517_v2  ;;  %3649 = vadd.xlane.f32.xlu0 %v3648_v10  ;;  %v3217_v46 = vadd.f32 %v3216_v44, %v6860_v19  ;;  %v3653_v49 = vadd.f32 %v3652_v32, %v3578_v55  ;;  %v3584_v24 = vmul.f32 %v3520_v25, %v3520_v25 }
 0x48c   :  { %v3524_v15 = vsub.f32 %v7751_v36, %v3284_v40  ;;  %v3518_v27 = vsub.f32 %v7752_v29, %v3278_v52  ;;  %v7753_v31 = vunpack.c.l.bf16 %v7750_v62  ;;  %v3281_v9 = vmax.f32 %v3215_v14, 0.0  ;;  %v3220_v59 = vpop.f32.mrf.mxu1  ;;  %v7273_v4 = vpop.xlane.xlu1 %4059  ;;  %v7757_v14 = vld [vmem:[#allocation27_spill] sm:$0xff]  ;;  %v7758_v29 = vld [vmem:[#allocation28_spill] sm:$0xff] }
 0x48d   :  { %v3461_v41 = vunpack.c.l.bf16 %v5411_v60  ;;  %v3657_v50 = vadd.f32 %v3656_v0, %v3581_v45  ;;  %v3282_v8 = vmax.f32 %v3217_v46, 0.0  ;;  %v3219_v35 = vadd.f32 %v3218_v53, %v6851_v23  ;;  %3654 = vadd.xlane.f32.xlu1 %v3653_v49  ;;  %v7267_v11 = vpop.xlane.xlu0 %4061 }
 0x48e   :  { %v3523_v47 = vsub.f32 %v7753_v31, %v3283_v33  ;;  %v3582_v26 = vmul.f32 %v3518_v27, %v3518_v27  ;;  %v3583_v28 = vmul.f32 %v3519_v30, %v3519_v30  ;;  %v3588_v61 = vmul.f32 %v3524_v15, %v3524_v15 }
 0x48f   :  { %v7754_v3 = vunpack.c.l.bf16 %v6968_v18  ;;  %v3462_v6 = vunpack.c.h.bf16 %v5411_v60  ;;  %v7755_v48 = vunpack.c.h.bf16 %v6968_v18  ;;  %v3285_v21 = vmax.f32 %v3219_v35, 0.0  ;;  %v7760_v60 = vld [vmem:[#allocation33_spill] sm:$0xff] }
 0x490   :  { %v3221_v58 = vadd.f32 %v3220_v59, %v6860_v19  ;;  %v3658_v39 = vadd.f32 %v3657_v50, %v3582_v26  ;;  %v3661_v17 = vadd.f32 %v3584_v24, %v3583_v28  ;;  %v3587_v37 = vmul.f32 %v3523_v47, %v3523_v47  ;;  %v7277_v33 = vpop.xlane.xlu1 %4063  ;;  %v7759_v24 = vld [vmem:[#allocation30_spill] sm:$0xff]  ;;  %v7762_v28 = vld [vmem:[#allocation31_spill] sm:$0xff] }
 0x491   :  { %v3521_v22 = vsub.f32 %v7754_v3, %v3281_v9  ;;  %v3522_v38 = vsub.f32 %v7755_v48, %v3282_v8  ;;  %v3525_v23 = vsub.f32 %v3461_v41, %v3285_v21  ;;  %v7271_v42 = vpop.xlane.xlu0 %4065  ;;  %v5665_v0 = vmov 0.0   ;;  %v7761_v8 = vld [vmem:[#allocation34_spill] sm:$0xff]  ;;  %v7763_v48 = vld [vmem:[#allocation32_spill] sm:$0xff] }
 0x492   :  { %v3286_v40 = vmax.f32 %v3221_v58, 0.0  ;;  %3659 = vadd.xlane.f32.xlu0 %v3658_v39  ;;  %v3666_v1 = vadd.f32 %v3588_v61, %v3587_v37  ;;  %v4599_v30 = vsel %vm1718_vm6, 1.0, %v5665_v0  ;;  %v4597_v44 = vsel %vm1716_vm1, 1.0, %v5665_v0  ;;  %v7764_v39 = vld [vmem:[#allocation37_spill] sm:$0xff] }
 0x493   :  { %v3585_v43 = vmul.f32 %v3521_v22, %v3521_v22  ;;  %v3586_v5 = vmul.f32 %v3522_v38, %v3522_v38  ;;  %v3589_v57 = vmul.f32 %v3525_v23, %v3525_v23  ;;  %v4598_v27 = vsel %vm1717_vm3, 1.0, %v5665_v0 }
 0x494   :  { %v3526_v51 = vsub.f32 %v3462_v6, %v3286_v40  ;;  %v7281_v10 = vpop.xlane.xlu1 %4067  ;;  %v4600_v31 = vsel %vm1719_vm7, 1.0, %v5665_v0  ;;  %v4603_v41 = vsel %vm1722_vm14, 1.0, %v5665_v0  ;;  %v4604_v35 = vsel %vm1723_vm15, 1.0, %v5665_v0  ;;  %v7766_v40 = vld [vmem:[#allocation38_spill] sm:$0xff] }
 0x495   :  { %v3662_v13 = vadd.f32 %v3661_v17, %v3585_v43  ;;  %v3667_v18 = vadd.f32 %v3666_v1, %v3589_v57  ;;  %v7275_v25 = vpop.xlane.xlu0 %4069  ;;  %v4601_v61 = vsel %vm1720_vm10, 1.0, %v5665_v0  ;;  %v4602_v38 = vsel %vm1721_vm11, 1.0, %v5665_v0 }
 0x496   :  { %v3590_v54 = vmul.f32 %v3526_v51, %v3526_v51  ;;  %v4607_v17 = vsel %vm1726_vm2, 1.0, %v5665_v0  ;;  %v4605_v23 = vsel %vm1724_vm4, 1.0, %v5665_v0  ;;  %vm7777_vm6 = vcmp.eq.s32.totalorder %v7757_v14, 1 }
 0x497   :  { %v3663_v20 = vadd.f32 %v3662_v13, %v3586_v5  ;;  %v7765_v5 = vld [vmem:[#allocation35_spill] sm:$0xff]  ;;  %v4608_v13 = vsel %vm1727_vm9, 1.0, %v5665_v0  ;;  %vm7778_vm7 = vcmp.eq.s32.totalorder %v7763_v48, 1  ;;  %vm7779_vm9 = vcmp.eq.s32.totalorder %v7760_v60, 1 }
 0x498   :  { %v3668_v19 = vadd.f32 %v3667_v18, %v3590_v54  ;;  %v7285_v55 = vpop.xlane.xlu1 %4071  ;;  %v7767_v18 = vld [vmem:[#allocation36_spill] sm:$0xff]  ;;  %v4606_v54 = vsel %vm1725_vm5, 1.0, %v5665_v0  ;;  %vm7776_vm5 = vcmp.eq.s32.totalorder %v7762_v28, 1  ;;  %v4619_v28 = vsel %vm7779_vm9, 1.0, %v5665_v0 }
 0x499   :  { %3664 = vadd.xlane.f32.xlu1 %v3663_v20  ;;  %v7279_v34 = vpop.xlane.xlu0 %4073  ;;  %vm7780_vm10 = vcmp.eq.s32.totalorder %v7758_v29, 1  ;;  %vm7781_vm11 = vcmp.eq.s32.totalorder %v7756_v63, 1  ;;  %vm7782_vm14 = vcmp.eq.s32.totalorder %v7761_v8, 1  ;;  %vm7783_vm15 = vcmp.eq.s32.totalorder %v7765_v5, 1 }
 0x49a   :  { %3669 = vadd.xlane.f32.xlu0 %v3668_v19  ;;  %v4615_v48 = vsel %vm7781_vm11, 1.0, %v5665_v0  ;;  %v4620_v60 = vsel %vm7782_vm14, 1.0, %v5665_v0  ;;  %vm7784_vm12 = vcmp.eq.s32.totalorder %v7759_v24, 1  ;;  %vm7785_vm13 = vcmp.eq.s32.totalorder %v7767_v18, 1 }
 0x49b   :  { %v4616_v63 = vsel %vm7784_vm12, 1.0, %v5665_v0  ;;  %vm7786_vm0 = vcmp.eq.s32.totalorder %v7764_v39, 1  ;;  %vm7787_vm8 = vcmp.eq.s32.totalorder %v7766_v40, 1 }
 0x49c   :  { %v7289_v56 = vpop.xlane.xlu1 %4075  ;;  %v4623_v5 = vsel %vm7786_vm0, 1.0, %v5665_v0 }
 0x49d   :  { %v7283_v32 = vpop.xlane.xlu0 %4077 }
 0x4a0   :  { %v7293_v52 = vpop.xlane.xlu1 %4079 }
 0x4a1   :  { %v7287_v16 = vpop.xlane.xlu0 %4081 }
 0x4a4   :  { %v7298_v15 = vpop.xlane.xlu1 %4083 }
 0x4a5   :  { %v7291_v2 = vpop.xlane.xlu0 %4085 }
 0x4a9   :  { %v3356_v62 = vpop.xlane.xlu0 %3355 }
 0x4aa   :  { %v3385_v36 = vmul.f32 %v4599_v30, %v3356_v62  ;;  %v7768_v62 = vld [vmem:[#allocation41_spill] sm:$0xff] }
 0x4ab   :  { %vm7769_vm1 = vcmp.eq.s32.totalorder %v7768_v62, 0 }
 0x4ac   :  { %4119 = vperm.xlu1 %4939, %v3385_v36   ;;  %v4611_v36 = vsel %vm7769_vm1, 1.0, %v5665_v0 }
 0x4ad   :  { %v3352_v45 = vpop.xlane.xlu0 %3351 }
 0x4ae   :  { %v3383_v46 = vmul.f32 %v4597_v44, %v3352_v45  ;;  %v3354_v49 = vpop.xlane.xlu1 %3353 }
 0x4af   :  { %v3384_v47 = vmul.f32 %v4598_v27, %v3354_v49  ;;  %v7770_v27 = vld [vmem:[#allocation39_spill] sm:$0xff]  ;;  %v7772_v49 = vld [vmem:[#allocation42_spill] sm:$0xff] }
 0x4b0   :  { %4109 = vperm.xlu1 %4939, %v3383_v46   ;;  %vm7771_vm2 = vcmp.eq.s32.totalorder %v7770_v27, 0  ;;  %vm7773_vm3 = vcmp.eq.s32.totalorder %v7772_v49, 0  ;;  %vm7788_vm1 = vcmp.eq.s32.totalorder %v7770_v27, 1 }
 0x4b1   :  { %v3358_v9 = vpop.xlane.xlu0 %3357  ;;  %4114 = vperm.xlu0 %4938, %v3384_v47   ;;  %v4609_v46 = vsel %vm7771_vm2, 1.0, %v5665_v0  ;;  %v4625_v18 = vsel %vm7788_vm1, 1.0, %v5665_v0 }
 0x4b2   :  { %v3386_v53 = vmul.f32 %v4600_v31, %v3358_v9  ;;  %v4612_v31 = vsel %vm7773_vm3, 1.0, %v5665_v0  ;;  %vm7790_vm3 = vcmp.eq.s32.totalorder %v7768_v62, 1 }
 0x4b3   :  { %v4627_v40 = vsel %vm7790_vm3, 1.0, %v5665_v0 }
 0x4b4   :  { %4124 = vperm.xlu1 %4939, %v3386_v53  }
 0x4b8   :  { %v3364_v50 = vpop.xlane.xlu1 %3363 }
 0x4b9   :  { %v3389_v26 = vmul.f32 %v4603_v41, %v3364_v50  ;;  %v7774_v50 = vld [vmem:[#allocation40_spill] sm:$0xff] }
 0x4ba   :  { %vm7775_vm4 = vcmp.eq.s32.totalorder %v7774_v50, 0  ;;  %vm7789_vm2 = vcmp.eq.s32.totalorder %v7774_v50, 1 }
 0x4bb   :  { %4139 = vperm.xlu0 %4938, %v3389_v26   ;;  %v4610_v26 = vsel %vm7775_vm4, 1.0, %v5665_v0  ;;  %vm7791_vm4 = vcmp.eq.s32.totalorder %v7772_v49, 1  ;;  %v7792_v49 = vlaneseq }
 0x4bc   :  { %v3366_v3 = vpop.xlane.xlu0 %3365  ;;  %v3360_v22 = vpop.xlane.xlu1 %3359  ;;  %v4628_v27 = vsel %vm7791_vm4, 1.0, %v5665_v0 }
 0x4bd   :  { %v3390_v59 = vmul.f32 %v4604_v35, %v3366_v3  ;;  %v3387_v6 = vmul.f32 %v4601_v61, %v3360_v22  ;;  %v4617_v3 = vsel %vm7776_vm5, 1.0, %v5665_v0 }
 0x4bf   :  { %4144 = vperm.xlu1 %4939, %v3390_v59   ;;  %4129 = vperm.xlu0 %4938, %v3387_v6   ;;  %v4613_v6 = vsel %vm7777_vm6, 1.0, %v5665_v0 }
 0x4c0   :  { %v3362_v21 = vpop.xlane.xlu0 %3361 }
 0x4c1   :  { %v3388_v58 = vmul.f32 %v4602_v38, %v3362_v21  ;;  %v4618_v38 = vsel %vm7778_vm7, 1.0, %v5665_v0 }
 0x4c3   :  { %4134 = vperm.xlu1 %4939, %v3388_v58  }
 0x4c8   :  { %v3372_v43 = vpop.xlane.xlu1 %3371 }
 0x4c9   :  { %v3393_v37 = vmul.f32 %v4607_v17, %v3372_v43 }
 0x4cb   :  { %4159 = vperm.xlu0 %4938, %v3393_v37   ;;  %v4614_v37 = vsel %vm7780_vm10, 1.0, %v5665_v0 }
 0x4cc   :  { %v3368_v1 = vpop.xlane.xlu1 %3367  ;;  %v3374_v51 = vpop.xlane.xlu0 %3373 }
 0x4cd   :  { %v3391_v57 = vmul.f32 %v4605_v23, %v3368_v1  ;;  %v3394_v20 = vmul.f32 %v4608_v13, %v3374_v51 }
 0x4cf   :  { %4149 = vperm.xlu0 %4938, %v3391_v57   ;;  %4164 = vperm.xlu1 %4939, %v3394_v20  }
 0x4d0   :  { %v3370_v19 = vpop.xlane.xlu0 %3369 }
 0x4d1   :  { %v3392_v30 = vmul.f32 %v4606_v54, %v3370_v19  ;;  %v4621_v54 = vsel %vm7783_vm15, 1.0, %v5665_v0 }
 0x4d3   :  { %4154 = vperm.xlu1 %4939, %v3392_v30  }
 0x4d8   :  { %v3380_v44 = vpop.xlane.xlu1 %3379 }
 0x4d9   :  { %v3397_v45 = vmul.f32 %v4611_v36, %v3380_v44  ;;  %v4622_v44 = vsel %vm7785_vm13, 1.0, %v5665_v0 }
 0x4db   :  { %4179 = vperm.xlu0 %4938, %v3397_v45  }
 0x4dc   :  { %v3376_v47 = vpop.xlane.xlu1 %3375  ;;  %v3382_v9 = vpop.xlane.xlu0 %3381 }
 0x4dd   :  { %v3395_v53 = vmul.f32 %v4609_v46, %v3376_v47  ;;  %v3398_v41 = vmul.f32 %v4612_v31, %v3382_v9  ;;  %v4624_v47 = vsel %vm7787_vm8, 1.0, %v5665_v0 }
 0x4df   :  { %4169 = vperm.xlu0 %4938, %v3395_v53   ;;  %4184 = vperm.xlu1 %4939, %v3398_v41  }
 0x4e0   :  { %v3378_v35 = vpop.xlane.xlu0 %3377 }
 0x4e1   :  { %v3396_v61 = vmul.f32 %v4610_v26, %v3378_v35  ;;  %v4626_v26 = vsel %vm7789_vm2, 1.0, %v5665_v0 }
 0x4e3   :  { %4174 = vperm.xlu1 %4939, %v3396_v61  }
 0x4f4   :  { %v3615_v22 = vpop.xlane.xlu1 %3614 }
 0x4f5   :  { %v3675_v59 = vmul.f32 %v4617_v3, %v3615_v22 }
 0x4f7   :  { %4242 = vperm.xlu0 %4938, %v3675_v59  }
 0x4fa   :  { %v3595_v21 = vpop.xlane.xlu1 %3594 }
 0x4fb   :  { %v3671_v58 = vmul.f32 %v4613_v6, %v3595_v21  ;;  %v3620_v17 = vpop.xlane.xlu0 %3619 }
 0x4fc   :  { %v3676_v43 = vmul.f32 %v4618_v38, %v3620_v17 }
 0x4fd   :  { %4222 = vperm.xlu0 %4938, %v3671_v58  }
 0x4fe   :  { %4247 = vperm.xlu1 %4939, %v3676_v43  }
 0x4ff   :  { %v3625_v14 = vpop.xlane.xlu1 %3624 }
 0x500   :  { %v3677_v23 = vmul.f32 %v4619_v28, %v3625_v14  ;;  %v3600_v13 = vpop.xlane.xlu0 %3599 }
 0x501   :  { %v3672_v1 = vmul.f32 %v4614_v37, %v3600_v13 }
 0x502   :  { %4252 = vperm.xlu0 %4938, %v3677_v23  }
 0x503   :  { %4227 = vperm.xlu1 %4939, %v3672_v1   ;;  %v3605_v57 = vpop.xlane.xlu1 %3604  ;;  %v7402_v1 = vand.u32 127, %v7792_v49 }
 0x504   :  { %v3673_v51 = vmul.f32 %v4615_v48, %v3605_v57  ;;  %v3630_v20 = vpop.xlane.xlu0 %3629 }
 0x505   :  { %v3678_v29 = vmul.f32 %v4620_v60, %v3630_v20  ;;  %vm4106_vm5 = vcmp.eq.s32.totalorder %v7402_v1, 1  ;;  %vm4089_vm6 = vcmp.eq.s32.totalorder %v7402_v1, 0  ;;  %vm4219_vm7 = vcmp.eq.s32.totalorder %v7402_v1, 2 }
 0x506   :  { %4232 = vperm.xlu0 %4938, %v3673_v51   ;;  %v4094_v51 = vsel %vm4089_vm6, %v7277_v33, 0.0  ;;  %v4095_v33 = vsel %vm4089_vm6, %v7271_v42, 0.0  ;;  %v4096_v42 = vsel %vm4089_vm6, %v7281_v10, 0.0 }
 0x507   :  { %4257 = vperm.xlu1 %4939, %v3678_v29  }
 0x508   :  { %v3635_v19 = vpop.xlane.xlu1 %3634  ;;  %v3610_v36 = vpop.xlane.xlu0 %3609 }
 0x509   :  { %v3679_v30 = vmul.f32 %v4621_v54, %v3635_v19  ;;  %v3674_v8 = vmul.f32 %v4616_v63, %v3610_v36 }
 0x50b   :  { %4262 = vperm.xlu0 %4938, %v3679_v30   ;;  %4237 = vperm.xlu1 %4939, %v3674_v8   ;;  %v4090_v8 = vsel %vm4089_vm6, %v7269_v12, 0.0 }
 0x50c   :  { %v3640_v45 = vpop.xlane.xlu0 %3639 }
 0x50d   :  { %v3680_v46 = vmul.f32 %v4622_v44, %v3640_v45 }
 0x50f   :  { %v3645_v31 = vpop.xlane.xlu1 %3644  ;;  %4267 = vperm.xlu1 %4939, %v3680_v46  }
 0x510   :  { %v3681_v24 = vmul.f32 %v4623_v5, %v3645_v31 }
 0x512   :  { %4272 = vperm.xlu0 %4938, %v3681_v24  }
 0x514   :  { %v3650_v9 = vpop.xlane.xlu0 %3649 }
 0x515   :  { %v3682_v53 = vmul.f32 %v4624_v47, %v3650_v9 }
 0x516   :  { %v3655_v41 = vpop.xlane.xlu1 %3654 }
 0x517   :  { %4277 = vperm.xlu1 %4939, %v3682_v53   ;;  %v3683_v39 = vmul.f32 %v4625_v18, %v3655_v41  ;;  %v4091_v53 = vsel %vm4089_vm6, %v7265_v7, 0.0  ;;  %v4092_v7 = vsel %vm4089_vm6, %v7273_v4, 0.0 }
 0x519   :  { %4282 = vperm.xlu0 %4938, %v3683_v39  }
 0x51b   :  { %v3660_v35 = vpop.xlane.xlu0 %3659 }
 0x51c   :  { %v3684_v61 = vmul.f32 %v4626_v26, %v3660_v35 }
 0x51e   :  { %4287 = vperm.xlu1 %4939, %v3684_v61  }
 0x522   :  { %v3665_v3 = vpop.xlane.xlu1 %3664 }
 0x523   :  { %v3685_v22 = vmul.f32 %v4627_v40, %v3665_v3  ;;  %v3670_v59 = vpop.xlane.xlu0 %3669 }
 0x524   :  { %v3686_v6 = vmul.f32 %v4628_v27, %v3670_v59  ;;  %v4097_v59 = vsel %vm4089_vm6, %v7275_v25, 0.0  ;;  %v4098_v25 = vsel %vm4089_vm6, %v7285_v55, 0.0 }
 0x525   :  { %4292 = vperm.xlu0 %4938, %v3685_v22  }
 0x526   :  { %4297 = vperm.xlu1 %4939, %v3686_v6  }
 0x527   :  { %v4120_v50 = vpop.permute.xlu1 %4119 }
 0x528   :  { %v4189_v26 = vsel %vm4106_vm5, %v4120_v50, 0.0 }
 0x529   :  { %v4205_v6 = vadd.f32 %v4189_v26, %v4092_v7  ;;  %v4105_v7 = vsel %vm4089_vm6, %v7291_v2, 0.0 }
 0x52b   :  { %v4110_v38 = vpop.permute.xlu1 %4109 }
 0x52c   :  { %v4115_v21 = vpop.permute.xlu0 %4114  ;;  %v4187_v63 = vsel %vm4106_vm5, %v4110_v38, 0.0 }
 0x52d   :  { %v4203_v44 = vadd.f32 %v4187_v63, %v4090_v8  ;;  %v4188_v47 = vsel %vm4106_vm5, %v4115_v21, 0.0  ;;  %v4100_v8 = vsel %vm4089_vm6, %v7289_v56, 0.0  ;;  %v4101_v56 = vsel %vm4089_vm6, %v7283_v32, 0.0 }
 0x52e   :  { %v4204_v35 = vadd.f32 %v4188_v47, %v4091_v53 }
 0x52f   :  { %v4125_v17 = vpop.permute.xlu1 %4124 }
 0x530   :  { %v4190_v4 = vsel %vm4106_vm5, %v4125_v17, 0.0 }
 0x536   :  { %v4140_v58 = vpop.permute.xlu0 %4139 }
 0x537   :  { %v4193_v45 = vsel %vm4106_vm5, %v4140_v58, 0.0 }
 0x538   :  { %v4209_v41 = vadd.f32 %v4193_v45, %v4096_v42 }
 0x53a   :  { %v4145_v43 = vpop.permute.xlu1 %4144  ;;  %v4130_v28 = vpop.permute.xlu0 %4129 }
 0x53b   :  { %v4191_v57 = vsel %vm4106_vm5, %v4130_v28, 0.0  ;;  %v4194_v10 = vsel %vm4106_vm5, %v4145_v43, 0.0 }
 0x53c   :  { %v4207_v20 = vadd.f32 %v4191_v57, %v4094_v51  ;;  %v4210_v38 = vadd.f32 %v4194_v10, %v4097_v59 }
 0x53e   :  { %v4135_v62 = vpop.permute.xlu1 %4134 }
 0x53f   :  { %v4192_v36 = vsel %vm4106_vm5, %v4135_v62, 0.0 }
 0x540   :  { %v4208_v46 = vadd.f32 %v4192_v36, %v4095_v33  ;;  %v4099_v36 = vsel %vm4089_vm6, %v7279_v34, 0.0 }
 0x546   :  { %v7393_v37 = vpop.permute.xlu0 %4159 }
 0x54a   :  { %v7395_v14 = vpop.permute.xlu1 %4164  ;;  %v4150_v23 = vpop.permute.xlu0 %4149 }
 0x54b   :  { %v4195_v21 = vsel %vm4106_vm5, %v4150_v23, 0.0  ;;  %v4093_v23 = vsel %vm4089_vm6, %v7267_v11, 0.0  ;;  %v4197_v11 = vsel %vm4106_vm5, %v7393_v37, 0.0 }
 0x54c   :  { %v4211_v57 = vadd.f32 %v4195_v21, %v4098_v25 }
 0x54e   :  { %v7399_v0 = vpop.permute.xlu1 %4154 }
 0x556   :  { %v7397_v13 = vpop.permute.xlu0 %4179 }
 0x55a   :  { %v7405_v48 = vpop.permute.xlu1 %4184  ;;  %v7407_v60 = vpop.permute.xlu0 %4169 }
 0x55e   :  { %v7420_v19 = vpop.permute.xlu1 %4174 }
 0x55f   :  { %v4200_v32 = vsel %vm4106_vm5, %v7420_v19, 0.0 }
 0x572   :  { %v4243_v29 = vpop.permute.xlu0 %4242 }
 0x573   :  { %v4304_v54 = vsel %vm4219_vm7, %v4243_v29, 0.0 }
 0x574   :  { %v4320_v30 = vadd.f32 %v4304_v54, %v4207_v20  ;;  %v4206_v20 = vadd.f32 %v4190_v4, %v4093_v23  ;;  %v4196_v54 = vsel %vm4106_vm5, %v7399_v0, 0.0 }
 0x575   :  { %v4212_v33 = vadd.f32 %v4196_v54, %v4099_v36 }
 0x576   :  { %4336 = vst [vmem:[#allocation19 + $0x20] sm:$0xff] %v4320_v30 }
 0x578   :  { %v4223_v5 = vpop.permute.xlu0 %4222 }
 0x579   :  { %v4248_v31 = vpop.permute.xlu1 %4247  ;;  %v4300_v24 = vsel %vm4219_vm7, %v4223_v5, 0.0  ;;  %v4198_v5 = vsel %vm4106_vm5, %v7395_v14, 0.0 }
 0x57a   :  { %v4305_v12 = vsel %vm4219_vm7, %v4248_v31, 0.0  ;;  %v4316_v9 = vadd.f32 %v4300_v24, %v4203_v44  ;;  %v4213_v44 = vadd.f32 %v4197_v11, %v4100_v8  ;;  %v4199_v31 = vsel %vm4106_vm5, %v7407_v60, 0.0 }
 0x57b   :  { %v4321_v18 = vadd.f32 %v4305_v12, %v4208_v46  ;;  %v4214_v47 = vadd.f32 %v4198_v5, %v4101_v56  ;;  %v4102_v12 = vsel %vm4089_vm6, %v7293_v52, 0.0  ;;  %v4103_v52 = vsel %vm4089_vm6, %v7287_v16, 0.0 }
 0x57c   :  { %4332 = vst [vmem:[#allocation19] sm:$0xff] %v4316_v9  ;;  %v4215_v42 = vadd.f32 %v4199_v31, %v4102_v12  ;;  %v4202_v16 = vsel %vm4106_vm5, %v7405_v48, 0.0 }
 0x57d   :  { %v4253_v39 = vpop.permute.xlu0 %4252  ;;  %4337 = vst [vmem:[#allocation19 + $0x28] sm:$0xff] %v4321_v18 }
 0x57e   :  { %v4228_v61 = vpop.permute.xlu1 %4227  ;;  %v4306_v40 = vsel %vm4219_vm7, %v4253_v39, 0.0  ;;  %v4216_v39 = vadd.f32 %v4200_v32, %v4103_v52 }
 0x57f   :  { %v4301_v3 = vsel %vm4219_vm7, %v4228_v61, 0.0  ;;  %v4322_v22 = vadd.f32 %v4306_v40, %v4209_v41  ;;  %v4201_v61 = vsel %vm4106_vm5, %v7397_v13, 0.0  ;;  %v4104_v40 = vsel %vm4089_vm6, %v7298_v15, 0.0 }
 0x580   :  { %v4317_v27 = vadd.f32 %v4301_v3, %v4204_v35  ;;  %v4217_v10 = vadd.f32 %v4201_v61, %v4104_v40 }
 0x581   :  { %4338 = vst [vmem:[#allocation19 + $0x30] sm:$0xff] %v4322_v22  ;;  %v4233_v50 = vpop.permute.xlu0 %4232 }
 0x582   :  { %4333 = vst [vmem:[#allocation19 + $0x8] sm:$0xff] %v4317_v27  ;;  %v4258_v58 = vpop.permute.xlu1 %4257  ;;  %v4302_v43 = vsel %vm4219_vm7, %v4233_v50, 0.0  ;;  %v4218_v27 = vadd.f32 %v4202_v16, %v4105_v7 }
 0x583   :  { %v4307_v28 = vsel %vm4219_vm7, %v4258_v58, 0.0  ;;  %v4318_v62 = vadd.f32 %v4302_v43, %v4205_v6 }
 0x584   :  { %v4323_v49 = vadd.f32 %v4307_v28, %v4210_v38 }
 0x585   :  { %4334 = vst [vmem:[#allocation19 + $0x10] sm:$0xff] %v4318_v62 }
 0x586   :  { %v4263_v51 = vpop.permute.xlu0 %4262  ;;  %4339 = vst [vmem:[#allocation19 + $0x38] sm:$0xff] %v4323_v49  ;;  %v4238_v29 = vpop.permute.xlu1 %4237 }
 0x587   :  { %v4308_v17 = vsel %vm4219_vm7, %v4263_v51, 0.0  ;;  %v4303_v55 = vsel %vm4219_vm7, %v4238_v29, 0.0 }
 0x588   :  { %v4324_v63 = vadd.f32 %v4308_v17, %v4211_v57  ;;  %v4319_v30 = vadd.f32 %v4303_v55, %v4206_v20 }
 0x58a   :  { %4340 = vst [vmem:[#allocation19 + $0x40] sm:$0xff] %v4324_v63  ;;  %4335 = vst [vmem:[#allocation19 + $0x18] sm:$0xff] %v4319_v30  ;;  %v4268_v0 = vpop.permute.xlu1 %4267 }
 0x58b   :  { %v4309_v37 = vsel %vm4219_vm7, %v4268_v0, 0.0 }
 0x58c   :  { %v4325_v46 = vadd.f32 %v4309_v37, %v4212_v33 }
 0x58d   :  { %v4273_v45 = vpop.permute.xlu0 %4272 }
 0x58e   :  { %v4310_v34 = vsel %vm4219_vm7, %v4273_v45, 0.0  ;;  %4341 = vst [vmem:[#allocation19 + $0x48] sm:$0xff] %v4325_v46 }
 0x58f   :  { %v4326_v24 = vadd.f32 %v4310_v34, %v4213_v44 }
 0x591   :  { %4342 = vst [vmem:[#allocation19 + $0x50] sm:$0xff] %v4326_v24 }
 0x592   :  { %v4278_v14 = vpop.permute.xlu1 %4277 }
 0x593   :  { %v4311_v9 = vsel %vm4219_vm7, %v4278_v14, 0.0 }
 0x594   :  { %v4327_v18 = vadd.f32 %v4311_v9, %v4214_v47  ;;  %v4283_v53 = vpop.permute.xlu0 %4282 }
 0x595   :  { %v4312_v60 = vsel %vm4219_vm7, %v4283_v53, 0.0 }
 0x596   :  { %4343 = vst [vmem:[#allocation19 + $0x58] sm:$0xff] %v4327_v18  ;;  %v4328_v41 = vadd.f32 %v4312_v60, %v4215_v42 }
 0x598   :  { %4344 = vst [vmem:[#allocation19 + $0x60] sm:$0xff] %v4328_v41 }
 0x599   :  { %v4288_v26 = vpop.permute.xlu1 %4287 }
 0x59a   :  { %v4313_v35 = vsel %vm4219_vm7, %v4288_v26, 0.0 }
 0x59b   :  { %v4329_v19 = vadd.f32 %v4313_v35, %v4216_v39 }
 0x59d   :  { %4345 = vst [vmem:[#allocation19 + $0x68] sm:$0xff] %v4329_v19 }
 0x5a0   :  { %v4293_v3 = vpop.permute.xlu0 %4292 }
 0x5a1   :  { %v4314_v22 = vsel %vm4219_vm7, %v4293_v3, 0.0  ;;  %v4298_v59 = vpop.permute.xlu1 %4297 }
 0x5a2   :  { %v4330_v13 = vadd.f32 %v4314_v22, %v4217_v10  ;;  %v4315_v15 = vsel %vm4219_vm7, %v4298_v59, 0.0 }
 0x5a3   :  { %v4331_v6 = vadd.f32 %v4315_v15, %v4218_v27 }
 0x5a4   :  { %4346 = vst [vmem:[#allocation19 + $0x70] sm:$0xff] %v4330_v13 }
 0x5a5   :  { %4347 = vst [vmem:[#allocation19 + $0x78] sm:$0xff] %v4331_v6 }
 0x5a6   :  { %5623 = shalt.err (!%p5620_p12)
}
 0x5a7   :  { %4359 = dma.vmem_to_hbm [thread:$0]  %s4354_s6, 2048, %s7556_s18, [#allocation4], %s5647_s30, %s5647_s30, %s5648_s0  }
 0x5a8   :  { %5644 = dma.done.wait [#allocation4], 2048  }
 0x5a9   :  { %5645 = vsyncadd [#allocation4], 4294965248 }
 0x5aa   :  { %4363 = vsyncpa [#allocation3], 1 }
 0x5ab   :  { %4364 = vsyncpa [#allocation6], 1 }
 0x5ac   :  { %4365 = vsyncpa [#allocation9], 1 }
 0x5ad   :  { %4366 = vsyncpa [#allocation12], 1 }
 0x5ae   :  { %4367 = vsyncpa [#allocation15], 1 }
 0x5af   :  { %4368 = vsyncpa [#allocation18], 1 }
 0x5b0   :  { %4369 = vsyncpa [#allocation4], 1 }

// kernel: tpu_custom_call.1
= control target key start
LH: loop header
LB: loop body
LE: loop exit
PB: predicated region body
PF: predicated region fallthrough
CT: control target
= control target key end

     0   :  { %s7538_s0 = inlined_call_operand.vmem [shape: f32[128,128], index: 0, kind: input, shape index: {}]   ;;  %s7539_s1 = inlined_call_operand.hbm [shape: bf16[128,512], index: 1, kind: input, shape index: {}]   ;;  %s7540_s2 = inlined_call_operand.hbm [shape: f32[128,128], index: 2, kind: input, shape index: {}]   ;;  %s7541_s3 = inlined_call_operand.hbm [shape: f32[128,128], index: 3, kind: input, shape index: {}]   ;;  %s7542_s4 = inlined_call_operand.vmem [shape: s32[128,1], index: 4, kind: input, shape index: {}]   ;;  %s7543_s5 = inlined_call_operand.hbm [shape: bf16[128,128], index: 5, kind: input, shape index: {}]   ;;  %s7544_s6 = inlined_call_operand.vmem [shape: f32[1,128], index: 6, kind: input, shape index: {}]   ;;  %s7545_s7 = inlined_call_operand.hbm [shape: bf16[512,256], index: 7, kind: input, shape index: {}]   ;;  %s7546_s8 = inlined_call_operand.vmem [shape: f32[1,256], index: 8, kind: input, shape index: {}]   ;;  %s7547_s9 = inlined_call_operand.hbm [shape: bf16[128,128], index: 9, kind: input, shape index: {}]   ;;  %s7548_s10 = inlined_call_operand.hbm [shape: bf16[256,128], index: 10, kind: input, shape index: {}]   ;;  %s7549_s11 = inlined_call_operand.vmem [shape: f32[1,128], index: 11, kind: input, shape index: {}]   ;;  %s7550_s12 = inlined_call_operand.hbm [shape: bf16[128,384], index: 12, kind: input, shape index: {}]   ;;  %s7551_s13 = inlined_call_operand.vmem [shape: f32[1,384], index: 13, kind: input, shape index: {}]   ;;  %s7552_s14 = inlined_call_operand.hbm [shape: bf16[128,128], index: 14, kind: input, shape index: {}]   ;;  %s7553_s15 = inlined_call_operand.vmem [shape: f32[1,128], index: 15, kind: input, shape index: {}]   ;;  %s7554_s16 = inlined_call_operand.hbm [shape: bf16[256,512], index: 16, kind: input, shape index: {}]   ;;  %s7555_s17 = inlined_call_operand.vmem [shape: f32[1,512], index: 17, kind: input, shape index: {}]   ;;  %s7556_s18 = inlined_call_operand.hbm [shape: f32[128,128], index: 18, kind: output, shape index: {}]  }
   0x1   :  { %7643 = sst [smem:[#allocation50_spill]] %s7538_s0 }
   0x2   :  { %7644 = sst [smem:[#allocation51_spill]] %s7539_s1 }
   0x3   :  { %7645 = sst [smem:[#allocation52_spill]] %s7540_s2 }
   0x4   :  { %23 = vsyncpa [#allocation3], 0 }
   0x5   :  { %24 = vsyncpa [#allocation6], 0 }
   0x6   :  { %25 = vsyncpa [#allocation9], 0 }
   0x7   :  { %26 = vsyncpa [#allocation12], 0 }
   0x8   :  { %27 = vsyncpa [#allocation15], 0 }
   0x9   :  { %28 = vsyncpa [#allocation18], 0 }
   0xa   :  { %29 = vsyncpa [#allocation4], 0  ;;  %s5646_s27 = smov [#allocation5]  }
   0xb   :  { %s49_s28 = sshll.u32 %s5646_s27, 4  ;;  %s50_s28 = int_to_ptr.vmem [resolvable:$true] %s49_s28 }
   0xc   :  { %s5420_s29 = scalar_lea.vmem %s50_s28, 2048  ;;  %p5425_p1 = scmp.lt.s32.totalorder %s50_s28, %s50_s28 }
   0xd   :  { %p5421_p0 = scmp.ne.s32.totalorder %s50_s28, %s5420_s29  ;;  %p5426_p2 = scmp.lt.s32.totalorder %s5420_s29, %s5420_s29 }
   0xf   :  { %p5427_p3 = por %p5426_p2, %p5425_p1 }
  0x11   :  { %p5428_p4 = pnand %p5427_p3, %p5421_p0 }
  0x13   :  { %5431 = shalt.err (!%p5428_p4)
}
  0x14   :  { %s5647_s30 = smov 128   ;;  %s5648_s0 = smov 8  }
  0x15   :  { %s7646_s20 = sld [smem:[#allocation52_spill]]  ;;  %s5649_s21 = smov [#allocation8]  }
  0x16   :  { %s75_s22 = sshll.u32 %s5649_s21, 4  ;;  %s76_s22 = int_to_ptr.vmem [resolvable:$true] %s75_s22 }
  0x17   :  { %s5440_s2 = scalar_lea.vmem %s76_s22, 1024  ;;  %p5445_p6 = scmp.lt.s32.totalorder %s76_s22, %s76_s22 }
  0x18   :  { %p5441_p5 = scmp.ne.s32.totalorder %s76_s22, %s5440_s2  ;;  %p5446_p7 = scmp.lt.s32.totalorder %s5440_s2, %s5440_s2 }
  0x1a   :  { %p5447_p8 = por %p5446_p7, %p5445_p6 }
  0x1b   :  { %55 = dma.hbm_to_vmem [thread:$0]  %s7646_s20, 2048, %s50_s28, [#allocation6], %s5647_s30, %s5647_s30, %s5648_s0  }
  0x1c   :  { %p5448_p9 = pnand %p5447_p8, %p5441_p5 }
  0x1e   :  { %5451 = shalt.err (!%p5448_p9)
}
  0x1f   :  { %s5650_s23 = smov 64   ;;  %s5651_s24 = smov 4  }
  0x20   :  { %81 = dma.hbm_to_vmem [thread:$0]  %s7543_s5, 1024, %s76_s22, [#allocation9], %s5650_s23, %s5650_s23, %s5651_s24  }
  0x21   :  { %s5652_s27 = smov [#allocation11]   ;;  %s5653_s29 = smov [#allocation14]  }
  0x22   :  { %s103_s28 = sshll.u32 %s5652_s27, 4  ;;  %s129_s19 = sshll.u32 %s5653_s29, 4  ;;  %s104_s28 = int_to_ptr.vmem [resolvable:$true] %s103_s28  ;;  %s130_s19 = int_to_ptr.vmem [resolvable:$true] %s129_s19 }
  0x23   :  { %s5460_s1 = scalar_lea.vmem %s104_s28, 1024  ;;  %p5465_p11 = scmp.lt.s32.totalorder %s104_s28, %s104_s28 }
  0x24   :  { %p5461_p10 = scmp.ne.s32.totalorder %s104_s28, %s5460_s1  ;;  %p5466_p12 = scmp.lt.s32.totalorder %s5460_s1, %s5460_s1 }
  0x26   :  { %p5467_p13 = por %p5466_p12, %p5465_p11 }
  0x28   :  { %p5468_p0 = pnand %p5467_p13, %p5461_p10 }
  0x2a   :  { %5471 = shalt.err (!%p5468_p0)
}
  0x2b   :  { %109 = dma.hbm_to_vmem [thread:$0]  %s7547_s9, 1024, %s104_s28, [#allocation12], %s5650_s23, %s5650_s23, %s5651_s24  }
  0x2c   :  { %s5480_s5 = scalar_lea.vmem %s130_s19, 3072  ;;  %p5485_p2 = scmp.lt.s32.totalorder %s130_s19, %s130_s19 }
  0x2d   :  { %p5481_p1 = scmp.ne.s32.totalorder %s130_s19, %s5480_s5  ;;  %p5486_p3 = scmp.lt.s32.totalorder %s5480_s5, %s5480_s5 }
  0x2f   :  { %p5487_p4 = por %p5486_p3, %p5485_p2 }
  0x31   :  { %p5488_p5 = pnand %p5487_p4, %p5481_p1 }
  0x33   :  { %5491 = shalt.err (!%p5488_p5)
}
  0x34   :  { %s5654_s22 = smov 192   ;;  %s5655_s2 = smov 12  }
  0x35   :  { %135 = dma.hbm_to_vmem [thread:$0]  %s7550_s12, 3072, %s130_s19, [#allocation15], %s5654_s22, %s5654_s22, %s5655_s2  }
  0x36   :  { %s5656_s27 = smov [#allocation2]  }
  0x37   :  { %s37_s29 = sshll.u32 %s5656_s27, 4  ;;  %s38_s29 = int_to_ptr.vmem [resolvable:$true] %s37_s29 }
  0x38   :  { %s5500_s1 = scalar_lea.vmem %s38_s29, 4096  ;;  %p5505_p7 = scmp.lt.s32.totalorder %s38_s29, %s38_s29 }
  0x39   :  { %p5501_p6 = scmp.ne.s32.totalorder %s38_s29, %s5500_s1  ;;  %p5506_p8 = scmp.lt.s32.totalorder %s5500_s1, %s5500_s1 }
  0x3b   :  { %p5507_p9 = por %p5506_p8, %p5505_p7 }
  0x3d   :  { %p5508_p10 = pnand %p5507_p9, %p5501_p6 }
  0x3f   :  { %5511 = shalt.err (!%p5508_p10)
}
  0x40   :  { %s5657_s9 = smov 256   ;;  %s5658_s28 = smov 16  }
  0x41   :  { %s7647_s5 = sld [smem:[#allocation51_spill]]  ;;  %s5659_s12 = smov [#allocation7]  }
  0x42   :  { %s61_s19 = sshll.u32 %s5659_s12, 4  ;;  %s5660_s22 = smov [#allocation10]   ;;  %s62_s19 = int_to_ptr.vmem [resolvable:$true] %s61_s19 }
  0x43   :  { %s89_s2 = sshll.u32 %s5660_s22, 4  ;;  %s5520_s25 = scalar_lea.vmem %s62_s19, 2048  ;;  %s90_s2 = int_to_ptr.vmem [resolvable:$true] %s89_s2 }
  0x44   :  { %p5521_p11 = scmp.ne.s32.totalorder %s62_s19, %s5520_s25  ;;  %p5525_p12 = scmp.lt.s32.totalorder %s62_s19, %s62_s19 }
  0x45   :  { %p5526_p13 = scmp.lt.s32.totalorder %s5520_s25, %s5520_s25 }
  0x47   :  { %43 = dma.hbm_to_vmem [thread:$0]  %s7647_s5, 4096, %s38_s29, [#allocation3], %s5657_s9, %s5657_s9, %s5658_s28  }
  0x48   :  { %p5527_p0 = por %p5526_p13, %p5525_p12 }
  0x4a   :  { %p5528_p1 = pnand %p5527_p0, %p5521_p11 }
  0x4c   :  { %5531 = shalt.err (!%p5528_p1)
}
  0x4d   :  { %67 = dma.hbm_to_vmem [thread:$0]  %s7541_s3, 2048, %s62_s19, [#allocation6], %s5647_s30, %s5647_s30, %s5648_s0  }
  0x4e   :  { %s5540_s29 = scalar_lea.vmem %s90_s2, 8192  ;;  %p5545_p3 = scmp.lt.s32.totalorder %s90_s2, %s90_s2 }
  0x4f   :  { %p5541_p2 = scmp.ne.s32.totalorder %s90_s2, %s5540_s29  ;;  %p5546_p4 = scmp.lt.s32.totalorder %s5540_s29, %s5540_s29 }
  0x51   :  { %p5547_p5 = por %p5546_p4, %p5545_p3 }
  0x53   :  { %p5548_p6 = pnand %p5547_p5, %p5541_p2 }
  0x55   :  { %5551 = shalt.err (!%p5548_p6)
}
  0x56   :  { %95 = dma.hbm_to_vmem [thread:$0]  %s7545_s7, 8192, %s90_s2, [#allocation9], %s5647_s30, %s5647_s30, %s5648_s0  }
  0x57   :  { %s5661_s21 = smov [#allocation13]   ;;  %s5662_s12 = smov [#allocation16]  }
  0x58   :  { %s115_s5 = sshll.u32 %s5661_s21, 4  ;;  %s143_s3 = sshll.u32 %s5662_s12, 4  ;;  %s116_s5 = int_to_ptr.vmem [resolvable:$true] %s115_s5  ;;  %s144_s3 = int_to_ptr.vmem [resolvable:$true] %s143_s3 }
  0x59   :  { %s5560_s19 = scalar_lea.vmem %s116_s5, 2048  ;;  %p5565_p8 = scmp.lt.s32.totalorder %s116_s5, %s116_s5 }
  0x5a   :  { %p5561_p7 = scmp.ne.s32.totalorder %s116_s5, %s5560_s19  ;;  %p5566_p9 = scmp.lt.s32.totalorder %s5560_s19, %s5560_s19 }
  0x5c   :  { %p5567_p10 = por %p5566_p9, %p5565_p8 }
  0x5e   :  { %p5568_p11 = pnand %p5567_p10, %p5561_p7 }
  0x60   :  { %5571 = shalt.err (!%p5568_p11)
}
  0x61   :  { %121 = dma.hbm_to_vmem [thread:$0]  %s7548_s10, 2048, %s116_s5, [#allocation12], %s5650_s23, %s5650_s23, %s5651_s24  }
  0x62   :  { %s5580_s7 = scalar_lea.vmem %s144_s3, 1024  ;;  %p5585_p13 = scmp.lt.s32.totalorder %s144_s3, %s144_s3 }
  0x63   :  { %p5581_p12 = scmp.ne.s32.totalorder %s144_s3, %s5580_s7  ;;  %p5586_p0 = scmp.lt.s32.totalorder %s5580_s7, %s5580_s7 }
  0x65   :  { %p5587_p1 = por %p5586_p0, %p5585_p13 }
  0x67   :  { %p5588_p2 = pnand %p5587_p1, %p5581_p12 }
  0x69   :  { %5591 = shalt.err (!%p5588_p2)
}
  0x6a   :  { %149 = dma.hbm_to_vmem [thread:$0]  %s7552_s14, 1024, %s144_s3, [#allocation15], %s5650_s23, %s5650_s23, %s5651_s24  }
  0x6b   :  { %s5663_s27 = smov [#allocation17]  }
  0x6c   :  { %s157_s29 = sshll.u32 %s5663_s27, 4  ;;  %s158_s29 = int_to_ptr.vmem [resolvable:$true] %s157_s29 }
  0x6d   :  { %s5600_s1 = scalar_lea.vmem %s158_s29, 8192  ;;  %p5605_p4 = scmp.lt.s32.totalorder %s158_s29, %s158_s29 }
  0x6e   :  { %p5601_p3 = scmp.ne.s32.totalorder %s158_s29, %s5600_s1  ;;  %p5606_p5 = scmp.lt.s32.totalorder %s5600_s1, %s5600_s1 }
  0x70   :  { %p5607_p6 = por %p5606_p5, %p5605_p4 }
  0x72   :  { %p5608_p7 = pnand %p5607_p6, %p5601_p3 }
  0x74   :  { %5611 = shalt.err (!%p5608_p7)
}
  0x75   :  { %163 = dma.hbm_to_vmem [thread:$0]  %s7554_s16, 8192, %s158_s29, [#allocation18], %s5657_s9, %s5657_s9, %s5658_s28  }
  0x76   :  { %5632 = dma.done.wait [#allocation3], 4096  }
  0x77   :  { %5633 = vsyncadd [#allocation3], 4294963200 }
  0x78   :  { %5634 = dma.done.wait [#allocation6], 4096  }
  0x79   :  { %5635 = vsyncadd [#allocation6], 4294963200 }
  0x7a   :  { %5636 = dma.done.wait [#allocation9], 9216  }
  0x7b   :  { %5637 = vsyncadd [#allocation9], 4294958080 }
  0x7c   :  { %5638 = dma.done.wait [#allocation12], 3072  }
  0x7d   :  { %5639 = vsyncadd [#allocation12], 4294964224 }
  0x7e   :  { %5640 = dma.done.wait [#allocation15], 4096  }
  0x7f   :  { %5641 = vsyncadd [#allocation15], 4294963200 }
  0x80   :  { %5642 = dma.done.wait [#allocation18], 8192  }
  0x81   :  { %5643 = vsyncadd [#allocation18], 4294959104  ;;  %v4940_v0 = vld [vmem:[#allocation8 + $0x38] sm:$0xff]   ;;  %v4941_v1 = vld [vmem:[#allocation8 + $0x30] sm:$0xff]   ;;  %s7648_s23 = sld [smem:[#allocation50_spill]] }
  0x82   :  { %4757 = vmatprep.subr.bf16.mxu0 %v4940_v0  ;;  %v4942_v2 = vld [vmem:[#allocation8 + $0x28] sm:$0xff]   ;;  %v4943_v3 = vld [vmem:[#allocation8 + $0x20] sm:$0xff]   ;;  %v4947_v4 = vld [vmem:[#allocation10 + $0x74] ss:$8 sps:$4 sm:$0xff]  }
  0x83   :  { %4758 = vmatpush3.bf16.msra.mxu0 %v4940_v0  ;;  %v4949_v5 = vld [vmem:[#allocation10 + $0x70] ss:$8 sps:$4 sm:$0xff]   ;;  %1009 = vmatprep.subr.bf16.mxu1 %v4947_v4  ;;  %v4951_v6 = vld [vmem:[#allocation10 + $0x64] ss:$8 sps:$4 sm:$0xff]   ;;  %v4953_v7 = vld [vmem:[#allocation10 + $0x60] ss:$8 sps:$4 sm:$0xff]  }
  0x84   :  { %4759 = vmatprep.subr.bf16.mxu0 %v4941_v1  ;;  %1010 = vmatpush1.bf16.msra.mxu1 %v4949_v5  ;;  %v4944_v9 = vld [vmem:[#allocation8 + $0x18] sm:$0xff]   ;;  %v4960_v14 = vld [vmem:[#allocation10 + $0x44] ss:$8 sps:$4 sm:$0xff]   ;;  %v4945_v15 = vld [vmem:[#allocation8 + $0x10] sm:$0xff]  }
  0x85   :  { %1011 = vmatprep.subr.bf16.mxu1 %v4951_v6  ;;  %v4954_v12 = vld [vmem:[#allocation10 + $0x54] ss:$8 sps:$4 sm:$0xff]   ;;  %v4959_v13 = vld [vmem:[#allocation10 + $0x50] ss:$8 sps:$4 sm:$0xff]   ;;  %v4965_v16 = vld [vmem:[#allocation10 + $0x40] ss:$8 sps:$4 sm:$0xff]  }
  0x86   :  { %v4966_v17 = vld [vmem:[#allocation10 + $0x34] ss:$8 sps:$4 sm:$0xff]   ;;  %v4946_v18 = vld [vmem:[#allocation8 + $0x8] sm:$0xff]   ;;  %v4971_v19 = vld [vmem:[#allocation10 + $0x30] ss:$8 sps:$4 sm:$0xff]  }
  0x87   :  { %4760 = vmatpush3.bf16.msra.mxu0 %v4941_v1  ;;  %v197_v8 = vld [vmem:[%s7648_s23] sm:$0xff]  ;;  %v198_v10 = vld [vmem:[%s7648_s23 + $0x8] sm:$0xff]  ;;  %v199_v23 = vld [vmem:[%s7648_s23 + $0x10] sm:$0xff] }
  0x88   :  { %4761 = vmatprep.subr.bf16.mxu0 %v4942_v2  ;;  %v261_v11 = vpack.c.bf16 %v198_v10, %v197_v8  ;;  %1012 = vmatpush1.bf16.msra.mxu1 %v4953_v7  ;;  %v4972_v20 = vld [vmem:[#allocation10 + $0x24] ss:$8 sps:$4 sm:$0xff]   ;;  %v4977_v22 = vld [vmem:[#allocation10 + $0x20] ss:$8 sps:$4 sm:$0xff]   ;;  %v200_v24 = vld [vmem:[%s7648_s23 + $0x18] sm:$0xff] }
  0x89   :  { %1013 = vmatprep.subr.bf16.mxu1 %v4954_v12  ;;  %v4950_v21 = vld [vmem:[#allocation8] sm:$0xff]   ;;  %v4978_v25 = vld [vmem:[#allocation10 + $0x14] ss:$8 sps:$4 sm:$0xff]   ;;  %v262_v27 = vpack.c.bf16 %v200_v24, %v199_v23  ;;  %v4983_v28 = vld [vmem:[#allocation10 + $0x10] ss:$8 sps:$4 sm:$0xff]  }
  0x8a   :  { %4773 = vmatprep.mubr.bf16.mxu0 %v261_v11  ;;  %v4958_v26 = vld [vmem:[#allocation10 + $0x174] ss:$8 sps:$4 sm:$0xff]   ;;  %v201_v29 = vld [vmem:[%s7648_s23 + $0x20] sm:$0xff]  ;;  %v4956_v30 = vld [vmem:[#allocation10 + $0x170] ss:$8 sps:$4 sm:$0xff]  }
  0x8b   :  { %4762 = vmatpush3.bf16.msra.mxu0 %v4942_v2  ;;  %v4984_v31 = vld [vmem:[#allocation10 + $0x4] ss:$8 sps:$4 sm:$0xff]   ;;  %v4962_v35 = vld [vmem:[#allocation10 + $0x160] ss:$8 sps:$4 sm:$0xff]   ;;  %v4990_v37 = vld [vmem:[#allocation10 + $0xf4] ss:$8 sps:$4 sm:$0xff]  }
  0x8c   :  { %4763 = vmatprep.subr.bf16.mxu0 %v4943_v3  ;;  %1014 = vmatpush1.bf16.msra.mxu1 %v4959_v13  ;;  %v202_v32 = vld [vmem:[%s7648_s23 + $0x28] sm:$0xff]  ;;  %v203_v38 = vld [vmem:[%s7648_s23 + $0x30] sm:$0xff]  ;;  %v204_v39 = vld [vmem:[%s7648_s23 + $0x38] sm:$0xff] }
  0x8d   :  { %1015 = vmatprep.subr.bf16.mxu1 %v4960_v14  ;;  %v4964_v33 = vld [vmem:[#allocation10 + $0x164] ss:$8 sps:$4 sm:$0xff]   ;;  %v263_v34 = vpack.c.bf16 %v202_v32, %v201_v29  ;;  %v4989_v36 = vld [vmem:[#allocation10] ss:$8 sps:$4 sm:$0xff]   ;;  %v4970_v40 = vld [vmem:[#allocation10 + $0x154] ss:$8 sps:$4 sm:$0xff]   ;;  %v264_v45 = vpack.c.bf16 %v204_v39, %v203_v38 }
  0x8e   :  { %v205_v41 = vld [vmem:[%s7648_s23 + $0x40] sm:$0xff]  ;;  %v206_v42 = vld [vmem:[%s7648_s23 + $0x48] sm:$0xff]  ;;  %v4968_v43 = vld [vmem:[#allocation10 + $0x150] ss:$8 sps:$4 sm:$0xff]  }
  0x8f   :  { %4764 = vmatpush3.bf16.msra.mxu0 %v4943_v3  ;;  %v4995_v44 = vld [vmem:[#allocation10 + $0xf0] ss:$8 sps:$4 sm:$0xff]   ;;  %v4996_v46 = vld [vmem:[#allocation10 + $0xe4] ss:$8 sps:$4 sm:$0xff]   ;;  %v265_v48 = vpack.c.bf16 %v206_v42, %v205_v41  ;;  %v4974_v49 = vld [vmem:[#allocation10 + $0x140] ss:$8 sps:$4 sm:$0xff]  }
  0x90   :  { %4765 = vmatprep.subr.bf16.mxu0 %v4944_v9  ;;  %1016 = vmatpush1.bf16.msra.mxu1 %v4965_v16  ;;  %v4976_v47 = vld [vmem:[#allocation10 + $0x144] ss:$8 sps:$4 sm:$0xff]   ;;  %v5001_v50 = vld [vmem:[#allocation10 + $0xe0] ss:$8 sps:$4 sm:$0xff]   ;;  %v5002_v51 = vld [vmem:[#allocation10 + $0xd4] ss:$8 sps:$4 sm:$0xff]  }
  0x91   :  { %1017 = vmatprep.subr.bf16.mxu1 %v4966_v17  ;;  %v207_v52 = vld [vmem:[%s7648_s23 + $0x50] sm:$0xff]  ;;  %v208_v53 = vld [vmem:[%s7648_s23 + $0x58] sm:$0xff]  ;;  %v209_v55 = vld [vmem:[%s7648_s23 + $0x60] sm:$0xff] }
  0x92   :  { %v4982_v54 = vld [vmem:[#allocation10 + $0x134] ss:$8 sps:$4 sm:$0xff]   ;;  %v210_v56 = vld [vmem:[%s7648_s23 + $0x68] sm:$0xff]  ;;  %v5007_v57 = vld [vmem:[#allocation10 + $0xd0] ss:$8 sps:$4 sm:$0xff]   ;;  %v266_v58 = vpack.c.bf16 %v208_v53, %v207_v52 }
  0x93   :  { %4766 = vmatpush3.bf16.msra.mxu0 %v4944_v9  ;;  %v4980_v59 = vld [vmem:[#allocation10 + $0x130] ss:$8 sps:$4 sm:$0xff]   ;;  %v5008_v60 = vld [vmem:[#allocation10 + $0xc4] ss:$8 sps:$4 sm:$0xff]   ;;  %v267_v62 = vpack.c.bf16 %v210_v56, %v209_v55  ;;  %v4986_v63 = vld [vmem:[#allocation10 + $0x120] ss:$8 sps:$4 sm:$0xff]  }
  0x94   :  { %4767 = vmatprep.subr.bf16.mxu0 %v4945_v15  ;;  %1018 = vmatpush1.bf16.msra.mxu1 %v4971_v19  ;;  %v4988_v61 = vld [vmem:[#allocation10 + $0x124] ss:$8 sps:$4 sm:$0xff]   ;;  %v5013_v0 = vld [vmem:[#allocation10 + $0xc0] ss:$8 sps:$4 sm:$0xff]   ;;  %v5014_v1 = vld [vmem:[#allocation10 + $0xb4] ss:$8 sps:$4 sm:$0xff]  }
  0x95   :  { %1019 = vmatprep.subr.bf16.mxu1 %v4972_v20  ;;  %v211_v2 = vld [vmem:[%s7648_s23 + $0x70] sm:$0xff]  ;;  %v212_v3 = vld [vmem:[%s7648_s23 + $0x78] sm:$0xff]  ;;  %v213_v6 = vld [vmem:[#allocation2] sm:$0xff] }
  0x96   :  { %v4994_v4 = vld [vmem:[#allocation10 + $0x114] ss:$8 sps:$4 sm:$0xff]   ;;  %v4992_v5 = vld [vmem:[#allocation10 + $0x110] ss:$8 sps:$4 sm:$0xff]   ;;  %v268_v9 = vpack.c.bf16 %v212_v3, %v211_v2  ;;  %v5020_v11 = vld [vmem:[#allocation10 + $0xa4] ss:$8 sps:$4 sm:$0xff]  }
  0x97   :  { %4768 = vmatpush3.bf16.msra.mxu0 %v4945_v15  ;;  %v215_v7 = vld [vmem:[#allocation2 + $0x10] sm:$0xff]  ;;  %v5000_v12 = vld [vmem:[#allocation10 + $0x104] ss:$8 sps:$4 sm:$0xff]   ;;  %v5869_v14 = vld [vmem:[#allocation2 + $0x18] sm:$0xff] }
  0x98   :  { %4769 = vmatprep.subr.bf16.mxu0 %v4946_v18  ;;  %1020 = vmatpush1.bf16.msra.mxu1 %v4977_v22  ;;  %v5019_v8 = vld [vmem:[#allocation10 + $0xb0] ss:$8 sps:$4 sm:$0xff]   ;;  %v4380_v10 = vcombine.high %v213_v6, %v215_v7  ;;  %v5867_v13 = vld [vmem:[#allocation2 + $0x8] sm:$0xff]  ;;  %v5006_v19 = vld [vmem:[#allocation10 + $0x1f4] ss:$8 sps:$4 sm:$0xff]   ;;  %v4379_v29 = vcombine.low %v213_v6, %v215_v7 }
  0x99   :  { %1021 = vmatprep.subr.bf16.mxu1 %v4978_v25  ;;  %v5025_v15 = vld [vmem:[#allocation10 + $0xa0] ss:$8 sps:$4 sm:$0xff]   ;;  %v4382_v16 = vcombine.high %v5867_v13, %v5869_v14  ;;  %v5031_v20 = vld [vmem:[#allocation10 + $0x90] ss:$8 sps:$4 sm:$0xff]   ;;  %v5032_v22 = vld [vmem:[#allocation10 + $0x84] ss:$8 sps:$4 sm:$0xff]   ;;  %v4381_v56 = vcombine.low %v5867_v13, %v5869_v14 }
  0x9a   :  { %1041 = vmatprep.mubr.bf16.mxu1 %v4380_v10  ;;  %v4998_v17 = vld [vmem:[#allocation10 + $0x100] ss:$8 sps:$4 sm:$0xff]   ;;  %v5012_v23 = vld [vmem:[#allocation10 + $0x1e4] ss:$8 sps:$4 sm:$0xff]   ;;  %v220_v53 = vld [vmem:[#allocation2 + $0x38] sm:$0xff] }
  0x9b   :  { %4770 = vmatpush3.bf16.msra.mxu0 %v4946_v18  ;;  %v5026_v18 = vld [vmem:[#allocation10 + $0x94] ss:$8 sps:$4 sm:$0xff]   ;;  %v5010_v24 = vld [vmem:[#allocation10 + $0x1e0] ss:$8 sps:$4 sm:$0xff]   ;;  %v5024_v32 = vld [vmem:[#allocation10 + $0x1c4] ss:$8 sps:$4 sm:$0xff]  }
  0x9c   :  { %4771 = vmatprep.subr.bf16.mxu0 %v4950_v21  ;;  %1022 = vmatpush1.bf16.msra.mxu1 %v4983_v28  ;;  %v5037_v25 = vld [vmem:[#allocation10 + $0x80] ss:$8 sps:$4 sm:$0xff]   ;;  %v5018_v28 = vld [vmem:[#allocation10 + $0x1d4] ss:$8 sps:$4 sm:$0xff]   ;;  %v5036_v39 = vld [vmem:[#allocation10 + $0x1a4] ss:$8 sps:$4 sm:$0xff]  }
  0x9d   :  { %1023 = vmatprep.subr.bf16.mxu1 %v4984_v31  ;;  %v5034_v41 = vld [vmem:[#allocation10 + $0x1a0] ss:$8 sps:$4 sm:$0xff]   ;;  %v239_v7 = vld [vmem:[#allocation2 + $0xd0] sm:$0xff]  ;;  %v5080_v10 = vld [vmem:[#allocation11 + $0x18] sm:$0xff]  }
  0x9e   :  { %v225_v42 = vld [vmem:[#allocation2 + $0x60] sm:$0xff]  ;;  %v218_v52 = vld [vmem:[#allocation2 + $0x28] sm:$0xff] }
  0x9f   :  { %4772 = vmatpush3.bf16.msra.mxu0 %v4950_v21  ;;  %v5004_v21 = vld [vmem:[#allocation10 + $0x1f0] ss:$8 sps:$4 sm:$0xff]   ;;  %v4385_v2 = vcombine.low %v218_v52, %v220_v53  ;;  %v237_v6 = vld [vmem:[#allocation2 + $0xc0] sm:$0xff] }
  0xa0   :  { %1122 = vmatprep.subr.bf16.mxu0 %v4958_v26  ;;  %1024 = vmatpush1.bf16.msra.mxu1 %v4989_v36  ;;  %v217_v26 = vld [vmem:[#allocation2 + $0x20] sm:$0xff]  ;;  %v5030_v36 = vld [vmem:[#allocation10 + $0x1b4] ss:$8 sps:$4 sm:$0xff]   ;;  %v4404_v14 = vcombine.high %v237_v6, %v239_v7 }
  0xa1   :  { %1025 = vmatprep.subr.bf16.mxu1 %v4990_v37  ;;  %v5028_v37 = vld [vmem:[#allocation10 + $0x1b0] ss:$8 sps:$4 sm:$0xff]  }
  0xa2   :  { %4774 = vmatmul.mubr.bf16.vlgmr.msra.gmra.mxu0 %v262_v27  ;;  %v219_v27 = vld [vmem:[#allocation2 + $0x30] sm:$0xff] }
  0xa3   :  { %1123 = vmatpush1.bf16.msra.mxu0 %v4956_v30  ;;  %4777 = vmatprep.mubr.bf16.mxu0 %v263_v34  ;;  %v5016_v30 = vld [vmem:[#allocation10 + $0x1d0] ss:$8 sps:$4 sm:$0xff]   ;;  %v4384_v31 = vcombine.high %v217_v26, %v219_v27  ;;  %v221_v34 = vld [vmem:[#allocation2 + $0x40] sm:$0xff]  ;;  %v4383_v38 = vcombine.low %v217_v26, %v219_v27  ;;  %v4403_v26 = vcombine.low %v237_v6, %v239_v7  ;;  %v5938_v6 = vld [vmem:[%s7542_s4 + $0x28] sm:$0xff] }
  0xa4   :  { %1124 = vmatprep.subr.bf16.mxu0 %v4964_v33  ;;  %1026 = vmatpush2.bf16.msra.mxu1 %v4995_v44  ;;  %v5022_v33 = vld [vmem:[#allocation10 + $0x1c0] ss:$8 sps:$4 sm:$0xff]   ;;  %v5042_v44 = vld [vmem:[#allocation10 + $0x194] ss:$8 sps:$4 sm:$0xff]   ;;  %7654 = vst [vmem:[#allocation32_spill] sm:$0xff] %v5938_v6  ;;  %vm7565_vm9 = vcmp.eq.s32.totalorder %v5938_v6, 1 }
  0xa5   :  { %1027 = vmatprep.subr.bf16.mxu1 %v4996_v46  ;;  %vm1721_vm11 = vcmp.eq.s32.totalorder %v5938_v6, 0 }
  0xa7   :  { %1125 = vmatpush1.bf16.msra.mxu0 %v4962_v35  ;;  %v223_v35 = vld [vmem:[#allocation2 + $0x50] sm:$0xff] }
  0xa8   :  { %1126 = vmatprep.subr.bf16.mxu0 %v4970_v40  ;;  %1028 = vmatpush2.bf16.msra.mxu1 %v5001_v50  ;;  %v4388_v40 = vcombine.high %v221_v34, %v223_v35  ;;  %v4387_v46 = vcombine.low %v221_v34, %v223_v35  ;;  %v229_v50 = vld [vmem:[#allocation2 + $0x80] sm:$0xff]  ;;  %v236_v34 = vld [vmem:[#allocation2 + $0xb8] sm:$0xff] }
  0xa9   :  { %1029 = vmatprep.subr.bf16.mxu1 %v5002_v51  ;;  %v231_v51 = vld [vmem:[#allocation2 + $0x90] sm:$0xff]  ;;  %v5091_v35 = vld [vmem:[#allocation13 + $0x20] sm:$0xff]  }
  0xaa   :  { %4778 = vmatmul.mubr.bf16.gmra.mxu0 %v264_v45  ;;  %v5040_v45 = vld [vmem:[#allocation10 + $0x190] ss:$8 sps:$4 sm:$0xff]  }
  0xab   :  { %1127 = vmatpush1.bf16.msra.mxu0 %v4968_v43  ;;  %4781 = vmatprep.mubr.bf16.mxu0 %v265_v48  ;;  %v227_v43 = vld [vmem:[#allocation2 + $0x70] sm:$0xff] }
  0xac   :  { %1128 = vmatprep.subr.bf16.mxu0 %v4976_v47  ;;  %1030 = vmatpush2.bf16.msra.mxu1 %v5007_v57  ;;  %v5045_v47 = vld [vmem:[#allocation10 + $0x184] ss:$8 sps:$4 sm:$0xff]   ;;  %v4392_v48 = vcombine.high %v225_v42, %v227_v43  ;;  %v4391_v55 = vcombine.low %v225_v42, %v227_v43  ;;  %v4396_v57 = vcombine.high %v229_v50, %v231_v51  ;;  %v240_v43 = vld [vmem:[#allocation2 + $0xd8] sm:$0xff] }
  0xad   :  { %1031 = vmatprep.subr.bf16.mxu1 %v5008_v60  ;;  %v233_v60 = vld [vmem:[#allocation2 + $0xa0] sm:$0xff]  ;;  %v238_v42 = vld [vmem:[#allocation2 + $0xc8] sm:$0xff] }
  0xaf   :  { %1129 = vmatpush1.bf16.msra.mxu0 %v4974_v49  ;;  %v5043_v49 = vld [vmem:[#allocation10 + $0x180] ss:$8 sps:$4 sm:$0xff]  }
  0xb0   :  { %1130 = vmatprep.subr.bf16.mxu0 %v4982_v54  ;;  %1032 = vmatpush2.bf16.msra.mxu1 %v5013_v0  ;;  %v5076_v54 = vld [vmem:[#allocation11 + $0x38] sm:$0xff]   ;;  %v5078_v0 = vld [vmem:[#allocation11 + $0x28] sm:$0xff]  }
  0xb1   :  { %1033 = vmatprep.subr.bf16.mxu1 %v5014_v1  ;;  %v4395_v1 = vcombine.low %v229_v50, %v231_v51  ;;  %v5096_v50 = vld [vmem:[#allocation13 + $0x48] sm:$0xff]  }
  0xb2   :  { %4782 = vmatmul.mubr.bf16.gmra.mxu0 %v266_v58  ;;  %v5077_v58 = vld [vmem:[#allocation11 + $0x30] sm:$0xff]  }
  0xb3   :  { %1131 = vmatpush1.bf16.msra.mxu0 %v4980_v59  ;;  %4785 = vmatprep.mubr.bf16.mxu0 %v267_v62  ;;  %v4386_v59 = vcombine.high %v218_v52, %v220_v53  ;;  %v224_v62 = vld [vmem:[#allocation2 + $0x58] sm:$0xff]  ;;  %v5097_v52 = vld [vmem:[#allocation13 + $0x8] sm:$0xff]  }
  0xb4   :  { %1132 = vmatprep.subr.bf16.mxu0 %v4988_v61  ;;  %1034 = vmatpush2.bf16.msra.mxu1 %v5019_v8  ;;  %v222_v61 = vld [vmem:[#allocation2 + $0x48] sm:$0xff] }
  0xb5   :  { %1035 = vmatprep.subr.bf16.mxu1 %v5020_v11  ;;  %v226_v8 = vld [vmem:[#allocation2 + $0x68] sm:$0xff]  ;;  %v5084_v11 = vld [vmem:[#allocation13 + $0x78] sm:$0xff]   ;;  %v4389_v13 = vcombine.low %v222_v61, %v224_v62 }
  0xb7   :  { %1133 = vmatpush1.bf16.msra.mxu0 %v4986_v63  ;;  %v235_v63 = vld [vmem:[#allocation2 + $0xb0] sm:$0xff] }
  0xb8   :  { %1134 = vmatprep.subr.bf16.mxu0 %v4994_v4  ;;  %1036 = vmatpush2.bf16.msra.mxu1 %v5025_v15  ;;  %v4400_v3 = vcombine.high %v233_v60, %v235_v63  ;;  %v5079_v4 = vld [vmem:[#allocation11 + $0x20] sm:$0xff]  }
  0xb9   :  { %1037 = vmatprep.subr.bf16.mxu1 %v5026_v18  ;;  %v241_v18 = vld [vmem:[#allocation2 + $0xe0] sm:$0xff] }
  0xba   :  { %4786 = vmatmul.mubr.bf16.gmra.mxu0 %v268_v9  ;;  %v228_v9 = vld [vmem:[#allocation2 + $0x78] sm:$0xff] }
  0xbb   :  { %1135 = vmatpush1.bf16.msra.mxu0 %v4992_v5  ;;  %1154 = vmatprep.mubr.bf16.mxu0 %v4382_v16  ;;  %v4390_v5 = vcombine.high %v222_v61, %v224_v62  ;;  %v4394_v15 = vcombine.high %v226_v8, %v228_v9  ;;  %v5081_v16 = vld [vmem:[#allocation11 + $0x10] sm:$0xff]   ;;  %v4393_v27 = vcombine.low %v226_v8, %v228_v9 }
  0xbc   :  { %1136 = vmatprep.subr.bf16.mxu0 %v5000_v12  ;;  %1038 = vmatpush2.bf16.msra.mxu1 %v5031_v20  ;;  %v4399_v12 = vcombine.low %v233_v60, %v235_v63  ;;  %v5086_v20 = vld [vmem:[#allocation13 + $0x70] sm:$0xff]   ;;  %v5893_v60 = vld [vmem:[%s7542_s4 + $0x8] sm:$0xff] }
  0xbd   :  { %1039 = vmatprep.subr.bf16.mxu1 %v5032_v22  ;;  %v232_v22 = vld [vmem:[#allocation2 + $0x98] sm:$0xff]  ;;  %7650 = vst [vmem:[#allocation28_spill] sm:$0xff] %v5893_v60  ;;  %vm7563_vm2 = vcmp.eq.s32.totalorder %v5893_v60, 1  ;;  %vm1717_vm3 = vcmp.eq.s32.totalorder %v5893_v60, 0  ;;  %v5906_v63 = vld [vmem:[%s7542_s4 + $0x10] sm:$0xff] }
  0xbe   :  { %7651 = vst [vmem:[#allocation29_spill] sm:$0xff] %v5906_v63  ;;  %vm7560_vm4 = vcmp.eq.s32.totalorder %v5906_v63, 1  ;;  %vm1718_vm6 = vcmp.eq.s32.totalorder %v5906_v63, 0 }
  0xbf   :  { %1137 = vmatpush1.bf16.msra.mxu0 %v4998_v17  ;;  %v5085_v17 = vld [vmem:[#allocation13 + $0x38] sm:$0xff]  }
  0xc0   :  { %1138 = vmatprep.subr.bf16.mxu0 %v5006_v19  ;;  %1040 = vmatpush2.bf16.msra.mxu1 %v5037_v25  ;;  %v243_v19 = vld [vmem:[#allocation2 + $0xf0] sm:$0xff]  ;;  %v5088_v25 = vld [vmem:[#allocation13 + $0x68] sm:$0xff]  }
  0xc1   :  { %4645 = vmatprep.subr.bf16.mxu1 %v5084_v11  ;;  %v5958_v11 = vld [vmem:[%s7542_s4 + $0x30] sm:$0xff] }
  0xc2   :  { %7655 = vst [vmem:[#allocation33_spill] sm:$0xff] %v5958_v11  ;;  %vm7564_vm12 = vcmp.eq.s32.totalorder %v5958_v11, 1  ;;  %vm1722_vm14 = vcmp.eq.s32.totalorder %v5958_v11, 0 }
  0xc3   :  { %1139 = vmatpush2.bf16.msra.mxu0 %v5004_v21  ;;  %1042 = vmatmul.mubr.bf16.vlgmr.msra.gmra.mxu1 %v4379_v29  ;;  %v230_v21 = vld [vmem:[#allocation2 + $0x88] sm:$0xff]  ;;  %v5083_v29 = vld [vmem:[#allocation11] sm:$0xff]  }
  0xc4   :  { %1140 = vmatprep.subr.bf16.mxu0 %v5012_v23  ;;  %1051 = vmatprep.mubr.bf16.mxu1 %v4384_v31  ;;  %v5082_v23 = vld [vmem:[#allocation11 + $0x8] sm:$0xff]  }
  0xc5   :  { %4646 = vmatpush3.bf16.msra.mxu1 %v5085_v17  ;;  %v5089_v31 = vld [vmem:[#allocation13 + $0x28] sm:$0xff]   ;;  %v5984_v17 = vld [vmem:[%s7542_s4 + $0x40] sm:$0xff] }
  0xc6   :  { %4647 = vmatprep.subr.bf16.mxu1 %v5086_v20  ;;  %7657 = vst [vmem:[#allocation35_spill] sm:$0xff] %v5984_v17 }
  0xc7   :  { %1141 = vmatpush2.bf16.msra.mxu0 %v5010_v24  ;;  %v5087_v24 = vld [vmem:[#allocation13 + $0x30] sm:$0xff]  }
  0xc8   :  { %1142 = vmatprep.subr.bf16.mxu0 %v5018_v28  ;;  %v4408_v28 = vcombine.high %v241_v18, %v243_v19 }
  0xc9   :  { %4648 = vmatpush3.bf16.msra.mxu1 %v5087_v24 }
  0xca   :  { %4649 = vmatprep.subr.bf16.mxu1 %v5088_v25 }
  0xcb   :  { %1143 = vmatpush2.bf16.msra.mxu0 %v5016_v30  ;;  %1052 = vmatmul.mubr.bf16.gmra.mxu1 %v4383_v38  ;;  %v4398_v30 = vcombine.high %v230_v21, %v232_v22 }
  0xcc   :  { %1144 = vmatprep.subr.bf16.mxu0 %v5024_v32  ;;  %1061 = vmatprep.mubr.bf16.mxu1 %v4388_v40  ;;  %v5090_v32 = vld [vmem:[#allocation13 + $0x60] sm:$0xff]   ;;  %v5093_v40 = vld [vmem:[#allocation13 + $0x18] sm:$0xff]  }
  0xcd   :  { %4650 = vmatpush3.bf16.msra.mxu1 %v5089_v31 }
  0xce   :  { %4651 = vmatprep.subr.bf16.mxu1 %v5090_v32  ;;  %v6030_v32 = vld [vmem:[%s7542_s4 + $0x58] sm:$0xff] }
  0xcf   :  { %1145 = vmatpush2.bf16.msra.mxu0 %v5022_v33  ;;  %v234_v33 = vld [vmem:[#allocation2 + $0xa8] sm:$0xff]  ;;  %7660 = vst [vmem:[#allocation38_spill] sm:$0xff] %v6030_v32 }
  0xd0   :  { %1146 = vmatprep.subr.bf16.mxu0 %v5030_v36  ;;  %v4407_v36 = vcombine.low %v241_v18, %v243_v19  ;;  %v4402_v38 = vcombine.high %v234_v33, %v236_v34  ;;  %v5990_v18 = vld [vmem:[%s7542_s4 + $0x48] sm:$0xff] }
  0xd1   :  { %4652 = vmatpush3.bf16.msra.mxu1 %v5091_v35  ;;  %7658 = vst [vmem:[#allocation36_spill] sm:$0xff] %v5990_v18  ;;  %v6043_v35 = vld [vmem:[%s7542_s4 + $0x60] sm:$0xff] }
  0xd2   :  { %7661 = vst [vmem:[#allocation39_spill] sm:$0xff] %v6043_v35 }
  0xd3   :  { %1147 = vmatpush2.bf16.msra.mxu0 %v5028_v37  ;;  %1062 = vmatmul.mubr.bf16.gmra.mxu1 %v4387_v46  ;;  %v4397_v37 = vcombine.low %v230_v21, %v232_v22  ;;  %v4406_v46 = vcombine.high %v238_v42, %v240_v43  ;;  %v6002_v22 = vld [vmem:[%s7544_s6] ss:$0 sm:$0xff] }
  0xd4   :  { %1148 = vmatprep.subr.bf16.mxu0 %v5036_v39  ;;  %1071 = vmatprep.mubr.bf16.mxu1 %v4392_v48  ;;  %v5092_v39 = vld [vmem:[#allocation13 + $0x58] sm:$0xff]  }
  0xd5   :  { %4653 = vmatprep.subr.bf16.mxu1 %v5092_v39  ;;  %v244_v48 = vld [vmem:[#allocation2 + $0xf8] sm:$0xff]  ;;  %v6053_v39 = vld [vmem:[%s7542_s4 + $0x68] sm:$0xff] }
  0xd6   :  { %4654 = vmatpush3.bf16.msra.mxu1 %v5093_v40  ;;  %7662 = vst [vmem:[#allocation40_spill] sm:$0xff] %v6053_v39 }
  0xd7   :  { %1149 = vmatpush2.bf16.msra.mxu0 %v5034_v41  ;;  %v5094_v41 = vld [vmem:[#allocation13 + $0x50] sm:$0xff]  }
  0xd8   :  { %1150 = vmatprep.subr.bf16.mxu0 %v5042_v44  ;;  %v5095_v44 = vld [vmem:[#allocation13 + $0x10] sm:$0xff]   ;;  %4655 = vmatprep.subr.bf16.mxu1 %v5094_v41 }
  0xda   :  { %4656 = vmatpush3.bf16.msra.mxu1 %v5095_v44 }
  0xdb   :  { %1151 = vmatpush2.bf16.msra.mxu0 %v5040_v45  ;;  %1072 = vmatmul.mubr.bf16.gmra.mxu1 %v4391_v55  ;;  %v4401_v45 = vcombine.low %v234_v33, %v236_v34  ;;  %v5099_v55 = vld [vmem:[#allocation13] sm:$0xff]  }
  0xdc   :  { %1152 = vmatprep.subr.bf16.mxu0 %v5045_v47  ;;  %1081 = vmatprep.mubr.bf16.mxu1 %v4396_v57  ;;  %v242_v47 = vld [vmem:[#allocation2 + $0xe8] sm:$0xff]  ;;  %v7588_v57 = vmov 0  }
  0xdd   :  { %v4410_v51 = vcombine.high %v242_v47, %v244_v48  ;;  %4657 = vmatprep.subr.bf16.mxu1 %v5096_v50  ;;  %v4409_v53 = vcombine.low %v242_v47, %v244_v48  ;;  %4938 = vset.pattern.permute.xlu0 %v7588_v57  ;;  %v1749_v61 = vsel %vm7563_vm2, 1, %v7588_v57  ;;  %v1845_v62 = vsel %vm1717_vm3, 1, %v7588_v57 }
  0xde   :  { %4658 = vmatpush3.bf16.msra.mxu1 %v5097_v52  ;;  %4939 = vset.pattern.permute.xlu1 %v7588_v57  ;;  %v1753_v8 = vsel %vm7565_vm9, 1, %v7588_v57  ;;  %vm1727_vm9 = vcmp.eq.s32.totalorder %v6030_v32, 0 }
  0xdf   :  { %1153 = vmatpush2.bf16.msra.mxu0 %v5043_v49  ;;  %v4405_v49 = vcombine.low %v238_v42, %v240_v43 }
  0xe0   :  { %4789 = vmatprep.subr.bf16.mxu0 %v5076_v54 }
  0xe2   :  { %1155 = vmatmul.mubr.bf16.vlgmr.msra.gmra.mxu0 %v4381_v56  ;;  %v5878_v56 = vld [vmem:[%s7542_s4] sm:$0xff] }
  0xe3   :  { %1164 = vmatprep.mubr.bf16.mxu0 %v4386_v59  ;;  %4790 = vmatpush3.bf16.msra.mxu0 %v5076_v54  ;;  %v5098_v54 = vld [vmem:[#allocation13 + $0x40] sm:$0xff]   ;;  %7649 = vst [vmem:[#allocation27_spill] sm:$0xff] %v5878_v56  ;;  %vm7568_vm0 = vcmp.eq.s32.totalorder %v5878_v56, 1  ;;  %vm1716_vm1 = vcmp.eq.s32.totalorder %v5878_v56, 0 }
  0xe4   :  { %4791 = vmatprep.subr.bf16.mxu0 %v5077_v58  ;;  %1082 = vmatmul.mubr.bf16.gmra.mxu1 %v4395_v1  ;;  %v1844_v59 = vsel %vm1716_vm1, 1, %v7588_v57  ;;  %v1750_v1 = vsel %vm7560_vm4, 1, %v7588_v57  ;;  %vm1724_vm4 = vcmp.eq.s32.totalorder %v5984_v17, 0 }
  0xe5   :  { %1091 = vmatprep.mubr.bf16.mxu1 %v4400_v3  ;;  %4659 = vmatprep.subr.bf16.mxu1 %v5098_v54  ;;  %v1846_v3 = vsel %vm1718_vm6, 1, %v7588_v57  ;;  %v1852_v24 = vsel %vm1724_vm4, 1, %v7588_v57 }
  0xe6   :  { %4660 = vmatpush3.bf16.msra.mxu1 %v5099_v55  ;;  %1861 = vperm.xlu1 %4939, %v1844_v59  }
  0xe7   :  { %4792 = vmatpush3.bf16.msra.mxu0 %v5077_v58  ;;  %v1748_v58 = vsel %vm7568_vm0, 1, %v7588_v57  ;;  %vm7573_vm0 = vcmp.eq.s32.totalorder %v6043_v35, 0 }
  0xe8   :  { %4793 = vmatprep.subr.bf16.mxu0 %v5078_v0  ;;  %1765 = vperm.xlu0 %4938, %v1748_v58  }
  0xea   :  { %1165 = vmatmul.mubr.bf16.gmra.mxu0 %v4385_v2  ;;  %1864 = vperm.xlu1 %4939, %v1845_v62   ;;  %v6100_v62 = vld [vmem:[%s7542_s4 + $0x70] sm:$0xff] }
  0xeb   :  { %1174 = vmatprep.mubr.bf16.mxu0 %v4390_v5  ;;  %4794 = vmatpush3.bf16.msra.mxu0 %v5078_v0  ;;  %v5912_v0 = vld [vmem:[%s7542_s4 + $0x18] sm:$0xff]  ;;  %v5932_v5 = vld [vmem:[%s7542_s4 + $0x20] sm:$0xff]  ;;  %7663 = vst [vmem:[#allocation41_spill] sm:$0xff] %v6100_v62 }
  0xec   :  { %4795 = vmatprep.subr.bf16.mxu0 %v5079_v4  ;;  %1092 = vmatmul.mubr.bf16.gmra.mxu1 %v4399_v12  ;;  %7652 = vst [vmem:[#allocation30_spill] sm:$0xff] %v5912_v0  ;;  %vm7558_vm5 = vcmp.eq.s32.totalorder %v5912_v0, 1  ;;  %vm1719_vm7 = vcmp.eq.s32.totalorder %v5912_v0, 0  ;;  %7653 = vst [vmem:[#allocation31_spill] sm:$0xff] %v5932_v5  ;;  %vm7569_vm8 = vcmp.eq.s32.totalorder %v5932_v5, 1  ;;  %vm1720_vm10 = vcmp.eq.s32.totalorder %v5932_v5, 0 }
  0xed   :  { %1101 = vmatprep.mubr.bf16.mxu1 %v4404_v14  ;;  %1768 = vperm.xlu0 %4938, %v1749_v61   ;;  %v1751_v2 = vsel %vm7558_vm5, 1, %v7588_v57  ;;  %v1752_v7 = vsel %vm7569_vm8, 1, %v7588_v57  ;;  %v1848_v9 = vsel %vm1720_vm10, 1, %v7588_v57  ;;  %v5964_v12 = vld [vmem:[%s7542_s4 + $0x38] sm:$0xff]  ;;  %vm7561_vm5 = vcmp.eq.s32.totalorder %v5984_v17, 1 }
  0xee   :  { %1774 = vperm.xlu1 %4939, %v1751_v2   ;;  %7656 = vst [vmem:[#allocation34_spill] sm:$0xff] %v5964_v12  ;;  %vm7559_vm13 = vcmp.eq.s32.totalorder %v5964_v12, 1  ;;  %vm1723_vm15 = vcmp.eq.s32.totalorder %v5964_v12, 0  ;;  %v1756_v19 = vsel %vm7561_vm5, 1, %v7588_v57  ;;  %vm1725_vm5 = vcmp.eq.s32.totalorder %v5990_v18, 0  ;;  %v6105_v2 = vld [vmem:[%s7542_s4 + $0x78] sm:$0xff] }
  0xef   :  { %4796 = vmatpush3.bf16.msra.mxu0 %v5079_v4  ;;  %v1847_v4 = vsel %vm1719_vm7, 1, %v7588_v57  ;;  %v1755_v14 = vsel %vm7559_vm13, 1, %v7588_v57  ;;  %vm7562_vm13 = vcmp.eq.s32.totalorder %v5990_v18, 1  ;;  %vm7572_vm8 = vcmp.eq.s32.totalorder %v6053_v39, 0  ;;  %7664 = vst [vmem:[#allocation42_spill] sm:$0xff] %v6105_v2 }
  0xf0   :  { %4797 = vmatprep.subr.bf16.mxu0 %v5080_v10  ;;  %v1757_v21 = vsel %vm7562_vm13, 1, %v7588_v57 }
  0xf1   :  { %1771 = vperm.xlu0 %4938, %v1750_v1  }
  0xf2   :  { %1175 = vmatmul.mubr.bf16.gmra.mxu0 %v4389_v13  ;;  %1870 = vperm.xlu1 %4939, %v1847_v4   ;;  %v1754_v13 = vsel %vm7564_vm12, 1, %v7588_v57  ;;  %vm7566_vm12 = vcmp.eq.s32.totalorder %v6030_v32, 1  ;;  %v1856_v4 = vsel %vm7573_vm0, 1, %v7588_v57  ;;  %vm7613_vm0 = vcmp.eq.s32.totalorder %v6105_v2, 0 }
  0xf3   :  { %1184 = vmatprep.mubr.bf16.mxu0 %v4394_v15  ;;  %4798 = vmatpush3.bf16.msra.mxu0 %v5080_v10  ;;  %v1849_v10 = vsel %vm1721_vm11, 1, %v7588_v57  ;;  %v1850_v15 = vsel %vm1722_vm14, 1, %v7588_v57 }
  0xf4   :  { %4799 = vmatprep.subr.bf16.mxu0 %v5081_v16  ;;  %1102 = vmatmul.mubr.bf16.gmra.mxu1 %v4403_v26  ;;  %v1853_v26 = vsel %vm1725_vm5, 1, %v7588_v57 }
  0xf5   :  { %1111 = vmatprep.mubr.bf16.mxu1 %v4408_v28  ;;  %1867 = vperm.xlu0 %4938, %v1846_v3  }
  0xf6   :  { %1780 = vperm.xlu1 %4939, %v1753_v8  }
  0xf7   :  { %4800 = vmatpush3.bf16.msra.mxu0 %v5081_v16  ;;  %v1851_v16 = vsel %vm1723_vm15, 1, %v7588_v57 }
  0xf8   :  { %4801 = vmatprep.subr.bf16.mxu0 %v5082_v23 }
  0xf9   :  { %1777 = vperm.xlu0 %4938, %v1752_v7  }
  0xfa   :  { %1185 = vmatmul.mubr.bf16.gmra.mxu0 %v4393_v27  ;;  %1876 = vperm.xlu1 %4939, %v1849_v10   ;;  %v1857_v10 = vsel %vm7572_vm8, 1, %v7588_v57  ;;  %vm7614_vm8 = vcmp.eq.s32.totalorder %v6100_v62, 0 }
  0xfb   :  { %1194 = vmatprep.mubr.bf16.mxu0 %v4398_v30  ;;  %4802 = vmatpush3.bf16.msra.mxu0 %v5082_v23 }
  0xfc   :  { %4803 = vmatprep.subr.bf16.mxu0 %v5083_v29  ;;  %1112 = vmatmul.mubr.bf16.gmra.mxu1 %v4407_v36 }
  0xfd   :  { %1873 = vperm.xlu0 %4938, %v1848_v9  }
  0xfe   :  { %1786 = vperm.xlu1 %4939, %v1755_v14  }
  0xff   :  { %4804 = vmatpush3.bf16.msra.mxu0 %v5083_v29  ;;  %v6021_v29 = vld [vmem:[%s7542_s4 + $0x50] sm:$0xff] }
 0x100   :  { %7659 = vst [vmem:[#allocation37_spill] sm:$0xff] %v6021_v29  ;;  %vm7567_vm13 = vcmp.eq.s32.totalorder %v6021_v29, 1  ;;  %vm1726_vm2 = vcmp.eq.s32.totalorder %v6021_v29, 0  ;;  %v3786_v29 = vld [vmem:[#allocation7 + $0x18] sm:$0xff] }
 0x101   :  { %1783 = vperm.xlu0 %4938, %v1754_v13   ;;  %v1758_v34 = vsel %vm7567_vm13, 1, %v7588_v57  ;;  %v1854_v42 = vsel %vm1726_vm2, 1, %v7588_v57  ;;  %vm7570_vm13 = vcmp.eq.s32.totalorder %v6053_v39, 1 }
 0x102   :  { %1195 = vmatmul.mubr.bf16.gmra.mxu0 %v4397_v37  ;;  %1882 = vperm.xlu1 %4939, %v1851_v16   ;;  %v1761_v55 = vsel %vm7570_vm13, 1, %v7588_v57  ;;  %vm7612_vm13 = vcmp.eq.s32.totalorder %v6100_v62, 1 }
 0x103   :  { %1204 = vmatprep.mubr.bf16.mxu0 %v4402_v38  ;;  %v1759_v38 = vsel %vm7566_vm12, 1, %v7588_v57  ;;  %vm7571_vm12 = vcmp.eq.s32.totalorder %v6043_v35, 1 }
 0x104   :  { %v1760_v52 = vsel %vm7571_vm12, 1, %v7588_v57  ;;  %vm7611_vm12 = vcmp.eq.s32.totalorder %v6105_v2, 1 }
 0x105   :  { %1879 = vperm.xlu0 %4938, %v1850_v15  }
 0x106   :  { %1792 = vperm.xlu1 %4939, %v1757_v21  }
 0x109   :  { %1789 = vperm.xlu0 %4938, %v1756_v19   ;;  %v1762_v19 = vsel %vm7612_vm13, 1, %v7588_v57 }
 0x10a   :  { %1205 = vmatmul.mubr.bf16.gmra.mxu0 %v4401_v45  ;;  %1888 = vperm.xlu1 %4939, %v1853_v26  }
 0x10b   :  { %1214 = vmatprep.mubr.bf16.mxu0 %v4406_v46  ;;  %v1855_v46 = vsel %vm1727_vm9, 1, %v7588_v57 }
 0x10d   :  { %1885 = vperm.xlu0 %4938, %v1852_v24  }
 0x10e   :  { %1798 = vperm.xlu1 %4939, %v1759_v38  }
 0x111   :  { %1795 = vperm.xlu0 %4938, %v1758_v34  }
 0x112   :  { %1215 = vmatmul.mubr.bf16.gmra.mxu0 %v4405_v49  ;;  %1894 = vperm.xlu1 %4939, %v1855_v46   ;;  %v1859_v46 = vsel %vm7613_vm0, 1, %v7588_v57 }
 0x113   :  { %1224 = vmatprep.mubr.bf16.mxu0 %v4410_v51 }
 0x115   :  { %1891 = vperm.xlu0 %4938, %v1854_v42  }
 0x116   :  { %1804 = vperm.xlu1 %4939, %v1761_v55  }
 0x119   :  { %1801 = vperm.xlu0 %4938, %v1760_v52  }
 0x11a   :  { %1225 = vmatmul.mubr.bf16.gmra.mxu0 %v4409_v53  ;;  %1900 = vperm.xlu1 %4939, %v1857_v10  }
 0x11d   :  { %1897 = vperm.xlu0 %4938, %v1856_v4  }
 0x121   :  { %1807 = vperm.xlu0 %4938, %v1762_v19  }
 0x162   :  { %v4775_v20 = vpop.f32.mrf.mxu0 }
 0x163   :  { %v6024_v30 = vadd.f32 %v4775_v20, %v6002_v22 }
 0x164   :  { %v374_v23 = vpop.f32.mrf.mxu0 }
 0x165   :  { %v6013_v27 = vadd.f32 %v6002_v22, %v374_v23  ;;  %v7590_v43 = vmax.f32 %v6024_v30, 0.0  ;;  %v1763_v23 = vsel %vm7611_vm12, 1, %v7588_v57 }
 0x166   :  { %v4776_v25 = vpop.f32.mrf.mxu0  ;;  %1810 = vperm.xlu1 %4939, %v1763_v23  }
 0x167   :  { %v6016_v28 = vadd.f32 %v4776_v25, %v6002_v22  ;;  %v7592_v40 = vmax.f32 %v6013_v27, 0.0 }
 0x168   :  { %v377_v31 = vpop.f32.mrf.mxu0 }
 0x169   :  { %v6034_v33 = vadd.f32 %v6002_v22, %v377_v31  ;;  %v7587_v36 = vmax.f32 %v6016_v28, 0.0 }
 0x16a   :  { %v4779_v37 = vpop.f32.mrf.mxu0  ;;  %1906 = vperm.xlu1 %4939, %v1859_v46  }
 0x16b   :  { %v7591_v41 = vmax.f32 %v6034_v33, 0.0  ;;  %v6062_v44 = vadd.f32 %v4779_v37, %v6002_v22  ;;  %v1268_v49 = vpack.c.bf16 %v7587_v36, %v7590_v43  ;;  %v1858_v37 = vsel %vm7614_vm8, 1, %v7588_v57 }
 0x16c   :  { %v390_v45 = vpop.f32.mrf.mxu0  ;;  %1903 = vperm.xlu0 %4938, %v1858_v37   ;;  %v7577_v37 = vlaneseq }
 0x16d   :  { %v1267_v47 = vpack.c.bf16 %v7591_v41, %v7592_v40  ;;  %v6073_v48 = vadd.f32 %v6002_v22, %v390_v45  ;;  %v7584_v53 = vmax.f32 %v6062_v44, 0.0 }
 0x16e   :  { %v4780_v50 = vpop.f32.mrf.mxu0  ;;  %v6188_v46 = vshrl.u32 %v7577_v37, 7 }
 0x16f   :  { %4805 = vmatprep.mubr.bf16.mxu0 %v1267_v47  ;;  %v6081_v51 = vadd.f32 %v4780_v50, %v6002_v22  ;;  %v7586_v58 = vmax.f32 %v6073_v48, 0.0 }
 0x170   :  { %4806 = vmatmul.mubr.bf16.vlgmr.msra.gmra.mxu0 %v1268_v49  ;;  %v393_v54 = vpop.f32.mrf.mxu0 }
 0x171   :  { %v7583_v59 = vmax.f32 %v6081_v51, 0.0  ;;  %v6094_v61 = vadd.f32 %v6002_v22, %v393_v54 }
 0x172   :  { %v4783_v1 = vpop.f32.mrf.mxu0 }
 0x173   :  { %v7585_v3 = vmax.f32 %v6094_v61, 0.0  ;;  %v1270_v7 = vpack.c.bf16 %v7583_v59, %v7584_v53  ;;  %v6116_v8 = vadd.f32 %v4783_v1, %v6002_v22 }
 0x174   :  { %v406_v9 = vpop.f32.mrf.mxu0 }
 0x175   :  { %v6123_v13 = vadd.f32 %v6002_v22, %v406_v9  ;;  %v1269_v14 = vpack.c.bf16 %v7585_v3, %v7586_v58  ;;  %v7580_v20 = vmax.f32 %v6116_v8, 0.0 }
 0x176   :  { %v4784_v15 = vpop.f32.mrf.mxu0 }
 0x177   :  { %v6131_v16 = vadd.f32 %v4784_v15, %v6002_v22  ;;  %4809 = vmatprep.mubr.bf16.mxu0 %v1269_v14  ;;  %v7582_v24 = vmax.f32 %v6123_v13, 0.0 }
 0x178   :  { %v409_v21 = vpop.f32.mrf.mxu0  ;;  %4810 = vmatmul.mubr.bf16.gmra.mxu0 %v1270_v7 }
 0x179   :  { %v7579_v25 = vmax.f32 %v6131_v16, 0.0  ;;  %v6144_v26 = vadd.f32 %v6002_v22, %v409_v21 }
 0x17a   :  { %v4787_v31 = vpop.f32.mrf.mxu0 }
 0x17b   :  { %v7581_v34 = vmax.f32 %v6144_v26, 0.0  ;;  %v1272_v38 = vpack.c.bf16 %v7579_v25, %v7580_v20  ;;  %v6156_v42 = vadd.f32 %v4787_v31, %v6002_v22 }
 0x17c   :  { %v422_v45 = vpop.f32.mrf.mxu0 }
 0x17d   :  { %v6162_v47 = vadd.f32 %v6002_v22, %v422_v45  ;;  %v1271_v49 = vpack.c.bf16 %v7581_v34, %v7582_v24  ;;  %v7575_v54 = vmax.f32 %v6156_v42, 0.0 }
 0x17e   :  { %v4788_v50 = vpop.f32.mrf.mxu0 }
 0x17f   :  { %v6169_v52 = vadd.f32 %v4788_v50, %v6002_v22  ;;  %4813 = vmatprep.mubr.bf16.mxu0 %v1271_v49  ;;  %v7578_v1 = vmax.f32 %v6162_v47, 0.0 }
 0x180   :  { %v425_v55 = vpop.f32.mrf.mxu0  ;;  %4814 = vmatmul.mubr.bf16.gmra.mxu0 %v1272_v38 }
 0x181   :  { %v7574_v4 = vmax.f32 %v6169_v52, 0.0  ;;  %v6175_v7 = vadd.f32 %v6002_v22, %v425_v55  ;;  %v6191_v55 = vsub.s32 0, %v6188_v46 }
 0x183   :  { %v7576_v9 = vmax.f32 %v6175_v7, 0.0  ;;  %v1274_v10 = vpack.c.bf16 %v7574_v4, %v7575_v54  ;;  %v1043_v15 = vpop.f32.mrf.mxu1 }
 0x185   :  { %v1273_v14 = vpack.c.bf16 %v7576_v9, %v7578_v1  ;;  %v1045_v19 = vpop.f32.mrf.mxu1 }
 0x187   :  { %4817 = vmatprep.mubr.bf16.mxu0 %v1273_v14  ;;  %v1047_v22 = vpop.f32.mrf.mxu1  ;;  %v6197_v14 = vsub.s32 1, %v6188_v46 }
 0x188   :  { %4818 = vmatmul.mubr.bf16.gmra.mxu0 %v1274_v10  ;;  %v517_v10 = vld [vmem:[%s7546_s8] sm:$0x3] }
 0x189   :  { %2157 = vmatprep.mubr.bf16.mxu0 %v7588_v57  ;;  %v1049_v21 = vpop.f32.mrf.mxu1  ;;  %v6200_v9 = vrot.slane %v517_v10, %v6191_v55  ;;  %v6203_v37 = vrot.slane %v517_v10, %v6197_v14 }
 0x18b   :  { %v1053_v23 = vpop.f32.mrf.mxu1  ;;  %v1044_v34 = vadd.f32 %v1043_v15, %v6200_v9  ;;  %v1046_v59 = vadd.f32 %v1045_v19, %v6203_v37  ;;  %v1048_v53 = vadd.f32 %v1047_v22, %v6200_v9  ;;  %v1050_v36 = vadd.f32 %v1049_v21, %v6203_v37 }
 0x18c   :  { %v1054_v22 = vadd.f32 %v1053_v23, %v6200_v9 }
 0x18d   :  { %v1055_v31 = vpop.f32.mrf.mxu1 }
 0x18f   :  { %v1057_v38 = vpop.f32.mrf.mxu1 }
 0x191   :  { %v1059_v45 = vpop.f32.mrf.mxu1 }
 0x193   :  { %v1063_v49 = vpop.f32.mrf.mxu1 }
 0x195   :  { %v1065_v50 = vpop.f32.mrf.mxu1 }
 0x197   :  { %v1067_v4 = vpop.f32.mrf.mxu1 }
 0x199   :  { %v1069_v54 = vpop.f32.mrf.mxu1 }
 0x19b   :  { %v6205_v1 = vpop.f32.mrf.mxu1 }
 0x19d   :  { %v6207_v20 = vpop.f32.mrf.mxu1 }
 0x19f   :  { %v6212_v3 = vpop.f32.mrf.mxu1 }
 0x1a1   :  { %v6215_v43 = vpop.f32.mrf.mxu1 }
 0x1a2   :  { %v1156_v25 = vpop.f32.mrf.mxu0 }
 0x1a3   :  { %v1157_v41 = vadd.f32 %v1156_v25, %v1044_v34  ;;  %v1060_v25 = vadd.f32 %v1059_v45, %v6203_v37 }
 0x1a4   :  { %v1158_v24 = vpop.f32.mrf.mxu0  ;;  %v6217_v2 = vpop.f32.mrf.mxu1 }
 0x1a5   :  { %v1159_v57 = vadd.f32 %v1158_v24, %v1046_v59  ;;  %v1235_v32 = vmax.f32 %v1157_v41, 0.0  ;;  %v1056_v59 = vadd.f32 %v1055_v31, %v6203_v37  ;;  %v1064_v41 = vadd.f32 %v1063_v49, %v6200_v9 }
 0x1a6   :  { %v1160_v58 = vpop.f32.mrf.mxu0  ;;  %v6219_v18 = vpop.f32.mrf.mxu1  ;;  %v1070_v49 = vadd.f32 %v1069_v54, %v6203_v37  ;;  %v1076_v54 = vadd.f32 %v6207_v20, %v6203_v37  ;;  %v1080_v20 = vadd.f32 %v6215_v43, %v6203_v37 }
 0x1a7   :  { %v1161_v10 = vadd.f32 %v1160_v58, %v1048_v53  ;;  %v1236_v62 = vmax.f32 %v1159_v57, 0.0  ;;  %v1058_v53 = vadd.f32 %v1057_v38, %v6200_v9  ;;  %v1066_v38 = vadd.f32 %v1065_v50, %v6203_v37 }
 0x1a8   :  { %v1162_v40 = vpop.f32.mrf.mxu0  ;;  %v6224_v24 = vpop.f32.mrf.mxu1  ;;  %v1086_v43 = vadd.f32 %v6219_v18, %v6203_v37 }
 0x1a9   :  { %v1163_v39 = vadd.f32 %v1162_v40, %v1050_v36  ;;  %v1237_v15 = vmax.f32 %v1161_v10, 0.0 }
 0x1aa   :  { %v1166_v35 = vpop.f32.mrf.mxu0 }
 0x1ab   :  { %v1238_v19 = vmax.f32 %v1163_v39, 0.0  ;;  %v1291_v36 = vpack.c.bf16 %v1237_v15, %v1235_v32  ;;  %v6227_v39 = vpop.f32.mrf.mxu1  ;;  %v1167_v21 = vadd.f32 %v1166_v35, %v1054_v22 }
 0x1ac   :  { %v1168_v17 = vpop.f32.mrf.mxu0 }
 0x1ad   :  { %v1292_v58 = vpack.c.bf16 %v1238_v19, %v1236_v62  ;;  %v1169_v34 = vadd.f32 %v1168_v17, %v1056_v59  ;;  %v6231_v62 = vpop.f32.mrf.mxu1  ;;  %v1068_v17 = vadd.f32 %v1067_v4, %v6200_v9  ;;  %v1239_v59 = vmax.f32 %v1167_v21, 0.0 }
 0x1ae   :  { %v1170_v40 = vpop.f32.mrf.mxu0 }
 0x1af   :  { %v1171_v57 = vadd.f32 %v1170_v40, %v1058_v53  ;;  %1467 = vmatprep.mubr.bf16.mxu1 %v1292_v58  ;;  %v1240_v15 = vmax.f32 %v1169_v34, 0.0  ;;  %v6234_v45 = vpop.f32.mrf.mxu1 }
 0x1b0   :  { %v1172_v23 = vpop.f32.mrf.mxu0  ;;  %1468 = vmatmul.mubr.bf16.vlgmr.msra.gmra.mxu1 %v1291_v36 }
 0x1b1   :  { %v1173_v31 = vadd.f32 %v1172_v23, %v1060_v25  ;;  %v1241_v10 = vmax.f32 %v1171_v57, 0.0  ;;  %v6237_v36 = vpop.f32.mrf.mxu1  ;;  %v3783_v25 = vld [vmem:[#allocation7] sm:$0xff]  ;;  %v3784_v57 = vld [vmem:[#allocation7 + $0x8] sm:$0xff]  ;;  %v3785_v23 = vld [vmem:[#allocation7 + $0x10] sm:$0xff] }
 0x1b2   :  { %v1176_v32 = vpop.f32.mrf.mxu0  ;;  %v3800_v4 = vmul.f32 %v3784_v57, %v3784_v57 }
 0x1b3   :  { %v1242_v19 = vmax.f32 %v1173_v31, 0.0  ;;  %v1177_v53 = vadd.f32 %v1176_v32, %v1064_v41  ;;  %v1293_v50 = vpack.c.bf16 %v1241_v10, %v1239_v59  ;;  %v3799_v31 = vmul.f32 %v3783_v25, %v3783_v25  ;;  %v3787_v59 = vld [vmem:[#allocation7 + $0x20] sm:$0xff] }
 0x1b4   :  { %v1178_v35 = vpop.f32.mrf.mxu0  ;;  %v1074_v41 = vadd.f32 %v6205_v1, %v6200_v9  ;;  %3817 = vadd.xlane.f32.xlu0 %v3800_v4  ;;  %v1078_v1 = vadd.f32 %v6212_v3, %v6200_v9  ;;  %v3790_v4 = vld [vmem:[#allocation7 + $0x38] sm:$0xff] }
 0x1b5   :  { %v1179_v22 = vadd.f32 %v1178_v35, %v1066_v38  ;;  %v1294_v58 = vpack.c.bf16 %v1242_v19, %v1240_v15  ;;  %v1243_v6 = vmax.f32 %v1177_v53, 0.0  ;;  %v6243_v15 = vpop.f32.mrf.mxu1  ;;  %3815 = vadd.xlane.f32.xlu1 %v3799_v31  ;;  %v3801_v19 = vmul.f32 %v3785_v23, %v3785_v23  ;;  %v3788_v53 = vld [vmem:[#allocation7 + $0x28] sm:$0xff]  ;;  %v3789_v23 = vld [vmem:[#allocation7 + $0x30] sm:$0xff] }
 0x1b6   :  { %v1180_v40 = vpop.f32.mrf.mxu0 }
 0x1b7   :  { %v1181_v34 = vadd.f32 %v1180_v40, %v1068_v17  ;;  %1475 = vmatprep.mubr.bf16.mxu1 %v1294_v58  ;;  %v1244_v21 = vmax.f32 %v1179_v22, 0.0  ;;  %v3802_v17 = vmul.f32 %v3786_v29, %v3786_v29  ;;  %v3804_v29 = vmul.f32 %v3788_v53, %v3788_v53  ;;  %v3792_v53 = vld [vmem:[#allocation7 + $0x48] sm:$0xff] }
 0x1b8   :  { %v1182_v38 = vpop.f32.mrf.mxu0  ;;  %1476 = vmatmul.mubr.bf16.gmra.mxu1 %v1293_v50 }
 0x1b9   :  { %v1245_v10 = vmax.f32 %v1181_v34, 0.0  ;;  %v1183_v32 = vadd.f32 %v1182_v38, %v1070_v49  ;;  %v3803_v49 = vmul.f32 %v3787_v59, %v3787_v59  ;;  %v6249_v34 = vpop.f32.mrf.mxu1  ;;  %3819 = vadd.xlane.f32.xlu1 %v3801_v19  ;;  %3821 = vadd.xlane.f32.xlu0 %v3802_v17  ;;  %v3806_v17 = vmul.f32 %v3790_v4, %v3790_v4  ;;  %v3791_v59 = vld [vmem:[#allocation7 + $0x40] sm:$0xff]  ;;  %v3794_v4 = vld [vmem:[#allocation7 + $0x58] sm:$0xff] }
 0x1ba   :  { %v1186_v35 = vpop.f32.mrf.mxu0 }
 0x1bb   :  { %v1246_v22 = vmax.f32 %v1183_v32, 0.0  ;;  %v1295_v58 = vpack.c.bf16 %v1245_v10, %v1243_v6  ;;  %v1187_v50 = vadd.f32 %v1186_v35, %v1074_v41  ;;  %v1084_v6 = vadd.f32 %v6217_v2, %v6200_v9  ;;  %v6255_v19 = vpop.f32.mrf.mxu1 }
 0x1bc   :  { %v1188_v40 = vpop.f32.mrf.mxu0  ;;  %v1088_v2 = vadd.f32 %v6224_v24, %v6200_v9 }
 0x1bd   :  { %v1296_v25 = vpack.c.bf16 %v1246_v22, %v1244_v21  ;;  %v1189_v57 = vadd.f32 %v1188_v40, %v1076_v54  ;;  %v1247_v3 = vmax.f32 %v1187_v50, 0.0  ;;  %v3805_v21 = vmul.f32 %v3789_v23, %v3789_v23  ;;  %3823 = vadd.xlane.f32.xlu1 %v3803_v49  ;;  %3825 = vadd.xlane.f32.xlu0 %v3804_v29  ;;  %v5100_v22 = vld [vmem:[#allocation14 + $0xb0] ss:$12 sps:$4 sm:$0xff]  }
 0x1be   :  { %v1190_v31 = vpop.f32.mrf.mxu0  ;;  %v1090_v40 = vadd.f32 %v6227_v39, %v6203_v37  ;;  %4821 = vmatprep.subr.bf16.mxu1 %v5100_v22  ;;  %v3808_v29 = vmul.f32 %v3792_v53, %v3792_v53  ;;  %v3793_v23 = vld [vmem:[#allocation7 + $0x50] sm:$0xff]  ;;  %v5101_v53 = vld [vmem:[#allocation14 + $0x98] ss:$12 sps:$4 sm:$0xff]  }
 0x1bf   :  { %v1191_v38 = vadd.f32 %v1190_v31, %v1078_v1  ;;  %1483 = vmatprep.mubr.bf16.mxu1 %v1296_v25  ;;  %v1248_v54 = vmax.f32 %v1189_v57, 0.0  ;;  %v6261_v57 = vpop.f32.mrf.mxu1  ;;  %4822 = vmatpush3.bf16.msra.mxu1 %v5100_v22 }
 0x1c0   :  { %v1192_v41 = vpop.f32.mrf.mxu0  ;;  %1484 = vmatmul.mubr.bf16.gmra.mxu1 %v1295_v58  ;;  %4823 = vmatprep.subr.bf16.mxu1 %v5101_v53 }
 0x1c1   :  { %v1249_v10 = vmax.f32 %v1191_v38, 0.0  ;;  %v1193_v32 = vadd.f32 %v1192_v41, %v1080_v20  ;;  %v3807_v20 = vmul.f32 %v3791_v59, %v3791_v59  ;;  %3827 = vadd.xlane.f32.xlu1 %v3805_v21  ;;  %3829 = vadd.xlane.f32.xlu0 %v3806_v17  ;;  %v3809_v41 = vmul.f32 %v3793_v23, %v3793_v23  ;;  %v3795_v17 = vld [vmem:[#allocation7 + $0x60] sm:$0xff]  ;;  %v3798_v23 = vld [vmem:[#allocation7 + $0x78] sm:$0xff] }
 0x1c2   :  { %v1196_v35 = vpop.f32.mrf.mxu0 }
 0x1c3   :  { %v1250_v1 = vmax.f32 %v1193_v32, 0.0  ;;  %v1297_v58 = vpack.c.bf16 %v1249_v10, %v1247_v3  ;;  %v1197_v50 = vadd.f32 %v1196_v35, %v1084_v6  ;;  %v1094_v3 = vadd.f32 %v6231_v62, %v6200_v9  ;;  %v1109_v10 = vpop.f32.mrf.mxu1  ;;  %v3796_v35 = vld [vmem:[#allocation7 + $0x68] sm:$0xff]  ;;  %4824 = vmatpush3.bf16.msra.mxu1 %v5101_v53 }
 0x1c4   :  { %v1198_v18 = vpop.f32.mrf.mxu0  ;;  %v1096_v6 = vadd.f32 %v6234_v45, %v6203_v37  ;;  %v3810_v32 = vmul.f32 %v3794_v4, %v3794_v4  ;;  %v1098_v62 = vadd.f32 %v6237_v36, %v6200_v9  ;;  %v1100_v45 = vadd.f32 %v6243_v15, %v6203_v37  ;;  %v5104_v36 = vld [vmem:[#allocation14 + $0xac] ss:$12 sps:$4 sm:$0xff]  }
 0x1c5   :  { %v1298_v25 = vpack.c.bf16 %v1250_v1, %v1248_v54  ;;  %v1199_v49 = vadd.f32 %v1198_v18, %v1086_v43  ;;  %v1251_v38 = vmax.f32 %v1197_v50, 0.0  ;;  %3831 = vadd.xlane.f32.xlu1 %v3807_v20  ;;  %3833 = vadd.xlane.f32.xlu0 %v3808_v29  ;;  %v3811_v50 = vmul.f32 %v3795_v17, %v3795_v17  ;;  %v1113_v20 = vpop.f32.mrf.mxu1  ;;  %v3896_v53 = vld [vmem:[#allocation5 + $0x8] sm:$0xff] }
 0x1c6   :  { %v1200_v31 = vpop.f32.mrf.mxu0  ;;  %v1104_v15 = vadd.f32 %v6249_v34, %v6200_v9  ;;  %2125 = vmatprep.subr.bf16.mxu0 %v5104_v36  ;;  %v3814_v17 = vmul.f32 %v3798_v23, %v3798_v23  ;;  %v5105_v34 = vld [vmem:[#allocation14 + $0x90] ss:$12 sps:$4 sm:$0xff]  }
 0x1c7   :  { %v1201_v24 = vadd.f32 %v1200_v31, %v1088_v2  ;;  %1491 = vmatprep.mubr.bf16.mxu1 %v1298_v25  ;;  %v1252_v43 = vmax.f32 %v1199_v49, 0.0  ;;  %v3812_v25 = vmul.f32 %v3796_v35, %v3796_v35  ;;  %v3797_v49 = vld [vmem:[#allocation7 + $0x70] sm:$0xff]  ;;  %v3898_v36 = vld [vmem:[#allocation5 + $0x18] sm:$0xff] }
 0x1c8   :  { %v1202_v39 = vpop.f32.mrf.mxu0  ;;  %1492 = vmatmul.mubr.bf16.gmra.mxu1 %v1297_v58  ;;  %v5102_v31 = vld [vmem:[#allocation14 + $0xa8] ss:$12 sps:$4 sm:$0xff]  }
 0x1c9   :  { %v1253_v21 = vmax.f32 %v1201_v24, 0.0  ;;  %v1203_v54 = vadd.f32 %v1202_v39, %v1090_v40  ;;  %3835 = vadd.xlane.f32.xlu1 %v3809_v41  ;;  %3837 = vadd.xlane.f32.xlu0 %v3810_v32  ;;  %v3813_v39 = vmul.f32 %v3797_v49, %v3797_v49  ;;  %v5108_v41 = vld [vmem:[#allocation14 + $0x80] ss:$12 sps:$4 sm:$0xff]   ;;  %v1115_v32 = vpop.f32.mrf.mxu1  ;;  %v3897_v23 = vld [vmem:[#allocation5 + $0x10] sm:$0xff] }
 0x1ca   :  { %v1206_v59 = vpop.f32.mrf.mxu0  ;;  %2126 = vmatpush1.bf16.msra.mxu0 %v5102_v31  ;;  %4825 = vmatprep.subr.bf16.mxu1 %v5108_v41 }
 0x1cb   :  { %v1254_v22 = vmax.f32 %v1203_v54, 0.0  ;;  %v1299_v1 = vpack.c.bf16 %v1253_v21, %v1251_v38  ;;  %v1207_v2 = vadd.f32 %v1206_v59, %v1094_v3  ;;  %v1106_v3 = vadd.f32 %v6255_v19, %v6203_v37  ;;  %v3895_v59 = vld [vmem:[#allocation5] sm:$0xff]  ;;  %4826 = vmatpush3.bf16.msra.mxu1 %v5108_v41  ;;  %v1117_v49 = vpop.f32.mrf.mxu1 }
 0x1cc   :  { %v1208_v58 = vpop.f32.mrf.mxu0  ;;  %v1108_v19 = vadd.f32 %v6261_v57, %v6200_v9  ;;  %v5109_v57 = vld [vmem:[#allocation14 + $0x78] ss:$12 sps:$4 sm:$0xff]  }
 0x1cd   :  { %v1300_v18 = vpack.c.bf16 %v1254_v22, %v1252_v43  ;;  %v1209_v40 = vadd.f32 %v1208_v58, %v1096_v6  ;;  %v1255_v24 = vmax.f32 %v1207_v2, 0.0  ;;  %v5107_v6 = vld [vmem:[#allocation14 + $0x94] ss:$12 sps:$4 sm:$0xff]   ;;  %3839 = vadd.xlane.f32.xlu1 %v3811_v50  ;;  %3841 = vadd.xlane.f32.xlu0 %v3812_v25  ;;  %v1110_v50 = vadd.f32 %v1109_v10, %v6203_v37 }
 0x1ce   :  { %v1210_v29 = vpop.f32.mrf.mxu0  ;;  %2127 = vmatprep.subr.bf16.mxu0 %v5107_v6  ;;  %v1114_v10 = vadd.f32 %v1113_v20, %v6200_v9  ;;  %v1118_v20 = vadd.f32 %v1117_v49, %v6200_v9 }
 0x1cf   :  { %v1211_v4 = vadd.f32 %v1210_v29, %v1098_v62  ;;  %1499 = vmatprep.mubr.bf16.mxu1 %v1300_v18  ;;  %v1256_v43 = vmax.f32 %v1209_v40, 0.0  ;;  %v5111_v62 = vld [vmem:[#allocation14 + $0x7c] ss:$12 sps:$4 sm:$0xff]   ;;  %v3911_v18 = vmul.f32 %v3895_v59, %v3895_v59  ;;  %v3912_v29 = vmul.f32 %v3896_v53, %v3896_v53  ;;  %2128 = vmatpush1.bf16.msra.mxu0 %v5105_v34  ;;  %v5112_v53 = vld [vmem:[#allocation14 + $0x60] ss:$12 sps:$4 sm:$0xff]  }
 0x1d0   :  { %v1212_v38 = vpop.f32.mrf.mxu0  ;;  %1500 = vmatmul.mubr.bf16.gmra.mxu1 %v1299_v1  ;;  %v5115_v1 = vld [vmem:[#allocation14 + $0x68] ss:$12 sps:$4 sm:$0xff]   ;;  %2129 = vmatprep.subr.bf16.mxu0 %v5111_v62 }
 0x1d1   :  { %v1257_v21 = vmax.f32 %v1211_v4, 0.0  ;;  %v1213_v54 = vadd.f32 %v1212_v38, %v1100_v45  ;;  %3843 = vadd.xlane.f32.xlu1 %v3813_v39  ;;  %3845 = vadd.xlane.f32.xlu0 %v3814_v17  ;;  %v3913_v39 = vmul.f32 %v3897_v23, %v3897_v23  ;;  %v3899_v17 = vld [vmem:[#allocation5 + $0x20] sm:$0xff] }
 0x1d2   :  { %v1216_v35 = vpop.f32.mrf.mxu0  ;;  %4827 = vmatprep.subr.bf16.mxu1 %v5115_v1 }
 0x1d3   :  { %v1258_v22 = vmax.f32 %v1213_v54, 0.0  ;;  %v1301_v2 = vpack.c.bf16 %v1257_v21, %v1255_v24  ;;  %v1217_v58 = vadd.f32 %v1216_v35, %v1104_v15  ;;  %v5114_v24 = vld [vmem:[#allocation14 + $0x64] ss:$12 sps:$4 sm:$0xff]   ;;  %v1119_v21 = vpop.f32.mrf.mxu1  ;;  %v3914_v54 = vmul.f32 %v3898_v36, %v3898_v36  ;;  %v3900_v35 = vld [vmem:[#allocation5 + $0x28] sm:$0xff]  ;;  %2130 = vmatpush1.bf16.msra.mxu0 %v5109_v57  ;;  %4828 = vmatpush3.bf16.msra.mxu1 %v5115_v1 }
 0x1d4   :  { %v1218_v45 = vpop.f32.mrf.mxu0  ;;  %2131 = vmatprep.subr.bf16.mxu0 %v5114_v24  ;;  %v1120_v62 = vadd.f32 %v1119_v21, %v6203_v37  ;;  %v3903_v57 = vld [vmem:[#allocation5 + $0x40] sm:$0xff]  ;;  %v3906_v21 = vld [vmem:[#allocation5 + $0x58] sm:$0xff] }
 0x1d5   :  { %v1302_v40 = vpack.c.bf16 %v1258_v22, %v1256_v43  ;;  %v1219_v25 = vadd.f32 %v1218_v45, %v1106_v3  ;;  %v1259_v15 = vmax.f32 %v1217_v58, 0.0  ;;  %v1116_v3 = vadd.f32 %v1115_v32, %v6203_v37  ;;  %3927 = vadd.xlane.f32.xlu1 %v3911_v18  ;;  %3929 = vadd.xlane.f32.xlu0 %v3912_v29  ;;  %v3901_v18 = vld [vmem:[#allocation5 + $0x30] sm:$0xff] }
 0x1d6   :  { %v1220_v31 = vpop.f32.mrf.mxu0  ;;  %v3917_v49 = vmul.f32 %v3901_v18, %v3901_v18 }
 0x1d7   :  { %v1221_v4 = vadd.f32 %v1220_v31, %v1108_v19  ;;  %1507 = vmatprep.mubr.bf16.mxu1 %v1302_v40  ;;  %v1260_v6 = vmax.f32 %v1219_v25, 0.0  ;;  %v3902_v25 = vld [vmem:[#allocation5 + $0x38] sm:$0xff]  ;;  %2132 = vmatpush1.bf16.msra.mxu0 %v5112_v53 }
 0x1d8   :  { %v1222_v38 = vpop.f32.mrf.mxu0  ;;  %1508 = vmatmul.mubr.bf16.gmra.mxu1 %v1301_v2  ;;  %v3915_v2 = vmul.f32 %v3899_v17, %v3899_v17  ;;  %v3918_v37 = vmul.f32 %v3902_v25, %v3902_v25  ;;  %v5121_v17 = vld [vmem:[#allocation14 + $0x34] ss:$12 sps:$4 sm:$0xff]   ;;  %v5119_v53 = vld [vmem:[#allocation14 + $0x30] ss:$12 sps:$4 sm:$0xff]  }
 0x1d9   :  { %v1261_v41 = vmax.f32 %v1221_v4, 0.0  ;;  %v1223_v43 = vadd.f32 %v1222_v38, %v1110_v50  ;;  %3931 = vadd.xlane.f32.xlu1 %v3913_v39  ;;  %3933 = vadd.xlane.f32.xlu0 %v3914_v54  ;;  %v3916_v50 = vmul.f32 %v3900_v35, %v3900_v35  ;;  %v3904_v38 = vld [vmem:[#allocation5 + $0x48] sm:$0xff]  ;;  %v3907_v54 = vld [vmem:[#allocation5 + $0x60] sm:$0xff] }
 0x1da   :  { %v1226_v59 = vpop.f32.mrf.mxu0  ;;  %v5118_v39 = vld [vmem:[#allocation14 + $0x4c] ss:$12 sps:$4 sm:$0xff]   ;;  %v3923_v35 = vmul.f32 %v3907_v54, %v3907_v54 }
 0x1db   :  { %v1262_v34 = vmax.f32 %v1223_v43, 0.0  ;;  %v1303_v22 = vpack.c.bf16 %v1261_v41, %v1259_v15  ;;  %v1227_v32 = vadd.f32 %v1226_v59, %v1114_v10  ;;  %v3919_v10 = vmul.f32 %v3903_v57, %v3903_v57  ;;  %v5116_v43 = vld [vmem:[#allocation14 + $0x48] ss:$12 sps:$4 sm:$0xff]   ;;  %2133 = vmatprep.subr.bf16.mxu0 %v5118_v39  ;;  %v5130_v25 = vld [vmem:[#allocation14 + $0x20] ss:$12 sps:$4 sm:$0xff]  }
 0x1dc   :  { %v1228_v19 = vpop.f32.mrf.mxu0  ;;  %2134 = vmatpush1.bf16.msra.mxu0 %v5116_v43  ;;  %v3922_v59 = vmul.f32 %v3906_v21, %v3906_v21 }
 0x1dd   :  { %v1304_v58 = vpack.c.bf16 %v1262_v34, %v1260_v6  ;;  %v1229_v45 = vadd.f32 %v1228_v19, %v1116_v3  ;;  %v1263_v29 = vmax.f32 %v1227_v32, 0.0  ;;  %3935 = vadd.xlane.f32.xlu1 %v3915_v2  ;;  %3937 = vadd.xlane.f32.xlu0 %v3916_v50  ;;  %v3905_v3 = vld [vmem:[#allocation5 + $0x50] sm:$0xff]  ;;  %v3920_v6 = vmul.f32 %v3904_v38, %v3904_v38  ;;  %v3908_v34 = vld [vmem:[#allocation5 + $0x68] sm:$0xff]  ;;  %v5123_v2 = vld [vmem:[#allocation14 + $0x18] ss:$12 sps:$4 sm:$0xff]  }
 0x1de   :  { %v1230_v40 = vpop.f32.mrf.mxu0  ;;  %v3921_v41 = vmul.f32 %v3905_v3, %v3905_v3  ;;  %2135 = vmatprep.subr.bf16.mxu0 %v5121_v17  ;;  %v5125_v32 = vld [vmem:[#allocation14 + $0x1c] ss:$12 sps:$4 sm:$0xff]   ;;  %v3924_v19 = vmul.f32 %v3908_v34, %v3908_v34  ;;  %v5129_v50 = vld [vmem:[#allocation14 + $0x38] ss:$12 sps:$4 sm:$0xff]  }
 0x1df   :  { %v1231_v1 = vadd.f32 %v1230_v40, %v1118_v20  ;;  %1515 = vmatprep.mubr.bf16.mxu1 %v1304_v58  ;;  %v1264_v23 = vmax.f32 %v1229_v45, 0.0  ;;  %v3909_v20 = vld [vmem:[#allocation5 + $0x70] sm:$0xff]  ;;  %v3910_v58 = vld [vmem:[#allocation5 + $0x78] sm:$0xff]  ;;  %v5126_v40 = vld [vmem:[#allocation14] ss:$12 sps:$4 sm:$0xff]  }
 0x1e0   :  { %v1232_v9 = vpop.f32.mrf.mxu0  ;;  %1516 = vmatmul.mubr.bf16.gmra.mxu1 %v1303_v22  ;;  %2136 = vmatpush1.bf16.msra.mxu0 %v5119_v53  ;;  %v5122_v22 = vld [vmem:[#allocation14 + $0x50] ss:$12 sps:$4 sm:$0xff]   ;;  %v3926_v18 = vmul.f32 %v3910_v58, %v3910_v58 }
 0x1e1   :  { %v1265_v31 = vmax.f32 %v1231_v1, 0.0  ;;  %v1233_v36 = vadd.f32 %v1232_v9, %v1120_v62  ;;  %3939 = vadd.xlane.f32.xlu1 %v3917_v49  ;;  %3941 = vadd.xlane.f32.xlu0 %v3918_v37  ;;  %v3925_v62 = vmul.f32 %v3909_v20, %v3909_v20  ;;  %v5128_v45 = vld [vmem:[#allocation14 + $0x4] ss:$12 sps:$4 sm:$0xff]   ;;  %v5131_v1 = vld [vmem:[#allocation14 + $0x8] ss:$12 sps:$4 sm:$0xff]   ;;  %v1766_v9 = vpop.permute.xlu0 %1765 }
 0x1e2   :  { %4829 = vmatprep.subr.bf16.mxu1 %v5122_v22  ;;  %2137 = vmatprep.subr.bf16.mxu0 %v5125_v32  ;;  %vm1812_vm12 = vcmp.eq.s32.totalorder %v1766_v9, 1 }
 0x1e3   :  { %v1266_v4 = vmax.f32 %v1233_v36, 0.0  ;;  %v1305_v24 = vpack.c.bf16 %v1265_v31, %v1263_v29  ;;  %4830 = vmatpush3.bf16.msra.mxu1 %v5122_v22  ;;  %v1862_v29 = vpop.permute.xlu1 %1861 }
 0x1e4   :  { %2138 = vmatpush1.bf16.msra.mxu0 %v5123_v2  ;;  %4831 = vmatprep.subr.bf16.mxu1 %v5129_v50  ;;  %vm1908_vm13 = vcmp.eq.s32.totalorder %v1862_v29, 1 }
 0x1e5   :  { %v1306_v15 = vpack.c.bf16 %v1266_v4, %v1264_v23  ;;  %3943 = vadd.xlane.f32.xlu1 %v3919_v10  ;;  %3945 = vadd.xlane.f32.xlu0 %v3920_v6  ;;  %v1769_v23 = vpop.permute.xlu0 %1768 }
 0x1e6   :  { %2139 = vmatprep.subr.bf16.mxu0 %v5128_v45  ;;  %vm1813_vm0 = vcmp.eq.s32.totalorder %v1769_v23, 1 }
 0x1e7   :  { %1523 = vmatprep.mubr.bf16.mxu1 %v1306_v15  ;;  %4832 = vmatpush3.bf16.msra.mxu1 %v5129_v50  ;;  %v1865_v49 = vpop.permute.xlu1 %1864 }
 0x1e8   :  { %1524 = vmatmul.mubr.bf16.gmra.mxu1 %v1305_v24  ;;  %2140 = vmatpush1.bf16.msra.mxu0 %v5126_v40  ;;  %vm1909_vm8 = vcmp.eq.s32.totalorder %v1865_v49, 1 }
 0x1e9   :  { %3947 = vadd.xlane.f32.xlu1 %v3921_v41  ;;  %3949 = vadd.xlane.f32.xlu0 %v3922_v59  ;;  %v6284_v36 = vpop.permute.xlu0 %1771  ;;  %v6307_v59 = vld [vmem:[%s7549_s11] ss:$0 sm:$0xff] }
 0x1ea   :  { %4833 = vmatprep.subr.bf16.mxu1 %v5130_v25 }
 0x1eb   :  { %4834 = vmatpush3.bf16.msra.mxu1 %v5130_v25  ;;  %v6282_v31 = vpop.permute.xlu1 %1774 }
 0x1ec   :  { %4835 = vmatprep.subr.bf16.mxu1 %v5131_v1 }
 0x1ed   :  { %3951 = vadd.xlane.f32.xlu1 %v3923_v35  ;;  %3953 = vadd.xlane.f32.xlu0 %v3924_v19  ;;  %v6288_v57 = vpop.permute.xlu0 %1867 }
 0x1ef   :  { %4836 = vmatpush3.bf16.msra.mxu1 %v5131_v1  ;;  %v6286_v37 = vpop.permute.xlu1 %1870 }
 0x1f1   :  { %3955 = vadd.xlane.f32.xlu1 %v3925_v62  ;;  %3957 = vadd.xlane.f32.xlu0 %v3926_v18  ;;  %v6292_v24 = vpop.permute.xlu0 %1777 }
 0x1f3   :  { %v6290_v4 = vpop.permute.xlu1 %1780 }
 0x1f5   :  { %v6296_v10 = vpop.permute.xlu0 %1873 }
 0x1f7   :  { %v6294_v15 = vpop.permute.xlu1 %1876 }
 0x1f9   :  { %v6300_v41 = vpop.permute.xlu0 %1783 }
 0x1fb   :  { %v6298_v3 = vpop.permute.xlu1 %1786 }
 0x1fd   :  { %v6309_v20 = vpop.permute.xlu0 %1879 }
 0x1ff   :  { %v6302_v21 = vpop.permute.xlu1 %1882 }
 0x203   :  { %v6312_v2 = vpop.permute.xlu1 %1792 }
 0x230   :  { %v4807_v38 = vpop.f32.mrf.mxu0 }
 0x232   :  { %v1614_v39 = vpop.f32.mrf.mxu0 }
 0x234   :  { %v4808_v17 = vpop.f32.mrf.mxu0 }
 0x236   :  { %v1617_v19 = vpop.f32.mrf.mxu0 }
 0x238   :  { %v6315_v1 = vpop.f32.mrf.mxu0 }
 0x270   :  { %v4661_v6 = vpop.f32.mrf.mxu1 }
 0x272   :  { %v4662_v43 = vpop.f32.mrf.mxu1 }
 0x273   :  { %v4663_v54 = vadd.f32 %v4662_v43, %v4661_v6  ;;  %v7665_v6 = vmax.f32 %v6013_v27, 0.0  ;;  %v1630_v27 = vpop.f32.mrf.mxu0 }
 0x274   :  { %v4664_v35 = vpop.f32.mrf.mxu1 }
 0x275   :  { %v1615_v53 = vadd.f32 %v4663_v54, %v1614_v39  ;;  %v6321_v54 = vpop.permute.xlu0 %1789 }
 0x276   :  { %v4665_v34 = vpop.f32.mrf.mxu1 }
 0x277   :  { %v1684_v22 = vadd.f32 %v6307_v59, %v1615_v53  ;;  %v4666_v32 = vadd.f32 %v4665_v34, %v4664_v35  ;;  %v6325_v34 = vpop.permute.xlu1 %1888 }
 0x278   :  { %v4667_v62 = vpop.f32.mrf.mxu1 }
 0x279   :  { %v1700_v58 = vmax.f32 %v1684_v22, 0.0  ;;  %v1618_v45 = vadd.f32 %v4666_v32, %v1617_v19 }
 0x27a   :  { %v4668_v50 = vpop.f32.mrf.mxu1 }
 0x27b   :  { %v1685_v18 = vadd.f32 %v6307_v59, %v1618_v45  ;;  %v4669_v40 = vadd.f32 %v4668_v50, %v4667_v62  ;;  %v1828_v25 = vsel %vm1812_vm12, %v1700_v58, 0.0  ;;  %v7666_v58 = vmax.f32 %v6034_v33, 0.0 }
 0x27c   :  { %v4670_v39 = vpop.f32.mrf.mxu1  ;;  %v6319_v43 = vsel %vm1908_vm13, %v7665_v6, %v1828_v25  ;;  %vm1814_vm12 = vcmp.eq.s32.totalorder %v6284_v36, 1  ;;  %vm1910_vm13 = vcmp.eq.s32.totalorder %v6288_v57, 1  ;;  %v6346_v36 = vpop.permute.xlu1 %1798 }
 0x27d   :  { %v1701_v9 = vmax.f32 %v1685_v18, 0.0  ;;  %v1623_v29 = vadd.f32 %v4807_v38, %v4669_v40  ;;  %v3687_v35 = vmul.f32 %v6319_v43, %v6319_v43  ;;  %v6338_v40 = vpop.permute.xlu0 %1885 }
 0x27e   :  { %v4671_v53 = vpop.f32.mrf.mxu1 }
 0x27f   :  { %v1686_v22 = vadd.f32 %v6307_v59, %v1623_v29  ;;  %v4672_v32 = vadd.f32 %v4671_v53, %v4670_v39  ;;  %3703 = vadd.xlane.f32.xlu1 %v3687_v35  ;;  %v1829_v19 = vsel %vm1813_vm0, %v1701_v9, 0.0  ;;  %v7667_v9 = vmax.f32 %v6024_v30, 0.0 }
 0x280   :  { %v4673_v62 = vpop.f32.mrf.mxu1  ;;  %v6330_v45 = vsel %vm1909_vm8, %v7666_v58, %v1829_v19  ;;  %v7668_v35 = vmov 0   ;;  %vm1815_vm0 = vcmp.eq.s32.totalorder %v6282_v31, 1  ;;  %vm1911_vm8 = vcmp.eq.s32.totalorder %v6286_v37, 1 }
 0x281   :  { %v1702_v38 = vmax.f32 %v1686_v22, 0.0  ;;  %v1626_v50 = vadd.f32 %v4808_v17, %v4672_v32  ;;  %v3688_v23 = vmul.f32 %v6330_v45, %v6330_v45  ;;  %v1940_v49 = vpack.c.bf16 %v6330_v45, %v6319_v43  ;;  %v4812_v17 = vpop.f32.mrf.mxu0 }
 0x282   :  { %v4674_v18 = vpop.f32.mrf.mxu1 }
 0x283   :  { %v1687_v25 = vadd.f32 %v6307_v59, %v1626_v50  ;;  %v4675_v33 = vadd.f32 %v4674_v18, %v4673_v62  ;;  %3705 = vadd.xlane.f32.xlu0 %v3688_v23  ;;  %2158 = vmatmul.mubr.bf16.vlgmr.msra.gmra.mxu0 %v1940_v49  ;;  %v1830_v39 = vsel %vm1814_vm12, %v1702_v38, 0.0  ;;  %v1633_v58 = vpop.f32.mrf.mxu0  ;;  %v7669_v50 = vmax.f32 %v6016_v28, 0.0 }
 0x284   :  { %4837 = vmatprep.mubr.bf16.mxu1 %v1940_v49  ;;  %v4676_v6 = vpop.f32.mrf.mxu1  ;;  %v6343_v29 = vsel %vm1910_vm13, %v7667_v9, %v1830_v39  ;;  %2167 = vmatprep.mubr.bf16.mxu0 %v7668_v35  ;;  %vm1816_vm12 = vcmp.eq.s32.totalorder %v6292_v24, 1  ;;  %vm1912_vm13 = vcmp.eq.s32.totalorder %v6296_v10, 1 }
 0x285   :  { %v1703_v57 = vmax.f32 %v1687_v25, 0.0  ;;  %v1631_v53 = vadd.f32 %v4675_v33, %v1630_v27  ;;  %v3689_v22 = vmul.f32 %v6343_v29, %v6343_v29  ;;  %v6357_v27 = vpop.permute.xlu0 %1795  ;;  %v6365_v33 = vpop.permute.xlu1 %1894 }
 0x286   :  { %v4677_v32 = vpop.f32.mrf.mxu1  ;;  %v6368_v9 = vpop.f32.mrf.mxu0 }
 0x287   :  { %v1688_v19 = vadd.f32 %v6307_v59, %v1631_v53  ;;  %v4678_v62 = vadd.f32 %v4677_v32, %v4676_v6  ;;  %3707 = vadd.xlane.f32.xlu1 %v3689_v22  ;;  %v1831_v30 = vsel %vm1815_vm0, %v1703_v57, 0.0  ;;  %v7670_v53 = vmax.f32 %v6073_v48, 0.0 }
 0x288   :  { %v4679_v38 = vpop.f32.mrf.mxu1  ;;  %v6355_v23 = vsel %vm1911_vm8, %v7669_v50, %v1831_v30  ;;  %vm1817_vm0 = vcmp.eq.s32.totalorder %v6290_v4, 1  ;;  %vm1913_vm8 = vcmp.eq.s32.totalorder %v6294_v15, 1 }
 0x289   :  { %v1704_v49 = vmax.f32 %v1688_v19, 0.0  ;;  %v1634_v18 = vadd.f32 %v4678_v62, %v1633_v58  ;;  %v3690_v31 = vmul.f32 %v6355_v23, %v6355_v23  ;;  %v1941_v37 = vpack.c.bf16 %v6355_v23, %v6343_v29  ;;  %v6380_v62 = vpop.permute.xlu0 %1891 }
 0x28a   :  { %v4680_v25 = vpop.f32.mrf.mxu1 }
 0x28b   :  { %v1689_v28 = vadd.f32 %v6307_v59, %v1634_v18  ;;  %v4681_v39 = vadd.f32 %v4680_v25, %v4679_v38  ;;  %3709 = vadd.xlane.f32.xlu0 %v3690_v31  ;;  %2168 = vmatmul.mubr.bf16.gmra.mxu0 %v1941_v37  ;;  %v1832_v6 = vsel %vm1816_vm12, %v1704_v49, 0.0  ;;  %v1646_v38 = vpop.f32.mrf.mxu0  ;;  %v7671_v49 = vmax.f32 %v6094_v61, 0.0  ;;  %v6387_v18 = vpop.permute.xlu1 %1804 }
 0x28c   :  { %4838 = vmatmul.mubr.bf16.vlgmr.msra.gmra.mxu1 %v1941_v37  ;;  %v4682_v57 = vpop.f32.mrf.mxu1  ;;  %v6372_v22 = vsel %vm1912_vm13, %v7670_v53, %v1832_v6  ;;  %2177 = vmatprep.mubr.bf16.mxu0 %v7668_v35  ;;  %vm1818_vm12 = vcmp.eq.s32.totalorder %v6300_v41, 1  ;;  %vm1914_vm13 = vcmp.eq.s32.totalorder %v6309_v20, 1 }
 0x28d   :  { %v1705_v24 = vmax.f32 %v1689_v28, 0.0  ;;  %v1639_v10 = vadd.f32 %v6315_v1, %v4681_v39  ;;  %v3691_v32 = vmul.f32 %v6372_v22, %v6372_v22  ;;  %v4816_v6 = vpop.f32.mrf.mxu0 }
 0x28e   :  { %v4683_v19 = vpop.f32.mrf.mxu1 }
 0x28f   :  { %v1690_v30 = vadd.f32 %v6307_v59, %v1639_v10  ;;  %v4684_v48 = vadd.f32 %v4683_v19, %v4682_v57  ;;  %3711 = vadd.xlane.f32.xlu1 %v3691_v32  ;;  %v1833_v58 = vsel %vm1817_vm0, %v1705_v24, 0.0  ;;  %v7672_v57 = vmax.f32 %v6062_v44, 0.0  ;;  %v6401_v24 = vpop.permute.xlu0 %1801  ;;  %v6407_v19 = vpop.permute.xlu1 %1900 }
 0x290   :  { %v4685_v50 = vpop.f32.mrf.mxu1  ;;  %v6385_v1 = vsel %vm1913_vm8, %v7671_v49, %v1833_v58  ;;  %vm1819_vm0 = vcmp.eq.s32.totalorder %v6298_v3, 1  ;;  %vm1915_vm8 = vcmp.eq.s32.totalorder %v6302_v21, 1  ;;  %v1649_v58 = vpop.f32.mrf.mxu0  ;;  %v7673_v49 = vmax.f32 %v6081_v51, 0.0 }
 0x291   :  { %v1706_v31 = vmax.f32 %v1690_v30, 0.0  ;;  %v1642_v4 = vadd.f32 %v4812_v17, %v4684_v48  ;;  %v3692_v15 = vmul.f32 %v6385_v1, %v6385_v1  ;;  %v1942_v37 = vpack.c.bf16 %v6385_v1, %v6372_v22 }
 0x292   :  { %v4686_v25 = vpop.f32.mrf.mxu1 }
 0x293   :  { %v1691_v28 = vadd.f32 %v6307_v59, %v1642_v4  ;;  %v4687_v61 = vadd.f32 %v4686_v25, %v4685_v50  ;;  %3713 = vadd.xlane.f32.xlu0 %v3692_v15  ;;  %2178 = vmatmul.mubr.bf16.gmra.mxu0 %v1942_v37  ;;  %v1834_v39 = vsel %vm1818_vm12, %v1706_v31, 0.0  ;;  %v5134_v31 = vld [vmem:[#allocation17 + $0xe4] ss:$16 sps:$4 sm:$0xff]   ;;  %vm1820_vm12 = vcmp.eq.s32.totalorder %v6321_v54, 1 }
 0x294   :  { %4841 = vmatprep.mubr.bf16.mxu1 %v1942_v37  ;;  %v4688_v17 = vpop.f32.mrf.mxu1  ;;  %v6398_v53 = vsel %vm1914_vm13, %v7672_v57, %v1834_v39  ;;  %2187 = vmatprep.mubr.bf16.mxu0 %v7668_v35  ;;  %v5132_v37 = vld [vmem:[#allocation17 + $0xe0] ss:$16 sps:$4 sm:$0xff]   ;;  %vm1916_vm13 = vcmp.eq.s32.totalorder %v6338_v40, 1  ;;  %v5137_v54 = vld [vmem:[#allocation17 + $0xc4] ss:$16 sps:$4 sm:$0xff]   ;;  %v6430_v40 = vpop.permute.xlu1 %1810 }
 0x295   :  { %v1707_v41 = vmax.f32 %v1691_v28, 0.0  ;;  %v1647_v10 = vadd.f32 %v4687_v61, %v1646_v38  ;;  %v3693_v20 = vmul.f32 %v6398_v53, %v6398_v53  ;;  %2997 = vmatprep.subr.bf16.mxu0 %v5134_v31  ;;  %v6420_v28 = vpop.permute.xlu0 %1897 }
 0x296   :  { %v4689_v32 = vpop.f32.mrf.mxu1  ;;  %2998 = vmatpush1.bf16.msra.mxu0 %v5132_v37 }
 0x297   :  { %v1692_v44 = vadd.f32 %v6307_v59, %v1647_v10  ;;  %v4690_v30 = vadd.f32 %v4689_v32, %v4688_v17  ;;  %3715 = vadd.xlane.f32.xlu1 %v3693_v20  ;;  %v1835_v48 = vsel %vm1819_vm0, %v1707_v41, 0.0  ;;  %v6423_v17 = vpop.f32.mrf.mxu0  ;;  %v7674_v41 = vmax.f32 %v6123_v13, 0.0  ;;  %2999 = vmatprep.subr.bf16.mxu0 %v5137_v54 }
 0x298   :  { %v4691_v50 = vpop.f32.mrf.mxu1  ;;  %v6412_v38 = vsel %vm1915_vm8, %v7673_v49, %v1835_v48  ;;  %vm1821_vm0 = vcmp.eq.s32.totalorder %v6312_v2, 1  ;;  %vm1917_vm8 = vcmp.eq.s32.totalorder %v6325_v34, 1  ;;  %v7676_v54 = vmax.f32 %v6116_v8, 0.0 }
 0x299   :  { %v1708_v4 = vmax.f32 %v1692_v44, 0.0  ;;  %v1650_v15 = vadd.f32 %v4690_v30, %v1649_v58  ;;  %v3694_v3 = vmul.f32 %v6412_v38, %v6412_v38  ;;  %v1943_v21 = vpack.c.bf16 %v6412_v38, %v6398_v53  ;;  %v5135_v30 = vld [vmem:[#allocation17 + $0xc0] ss:$16 sps:$4 sm:$0xff]   ;;  %v1662_v49 = vpop.f32.mrf.mxu0 }
 0x29a   :  { %v4692_v25 = vpop.f32.mrf.mxu1  ;;  %3000 = vmatpush1.bf16.msra.mxu0 %v5135_v30  ;;  %v5141_v30 = vld [vmem:[#allocation17 + $0x80] ss:$16 sps:$4 sm:$0xff]  }
 0x29b   :  { %v1693_v51 = vadd.f32 %v6307_v59, %v1650_v15  ;;  %v4693_v61 = vadd.f32 %v4692_v25, %v4691_v50  ;;  %3717 = vadd.xlane.f32.xlu0 %v3694_v3  ;;  %2188 = vmatmul.mubr.bf16.gmra.mxu0 %v1943_v21  ;;  %v1836_v39 = vsel %vm1820_vm12, %v1708_v4, 0.0  ;;  %v5140_v15 = vld [vmem:[#allocation17 + $0xa4] ss:$16 sps:$4 sm:$0xff]   ;;  %v6442_v3 = vpop.permute.xlu0 %1807  ;;  %v5138_v25 = vld [vmem:[#allocation17 + $0xa0] ss:$16 sps:$4 sm:$0xff]   ;;  %vm1822_vm12 = vcmp.eq.s32.totalorder %v6357_v27, 1 }
 0x29c   :  { %4842 = vmatmul.mubr.bf16.gmra.mxu1 %v1943_v21  ;;  %v4694_v57 = vpop.f32.mrf.mxu1  ;;  %v6427_v10 = vsel %vm1916_vm13, %v7674_v41, %v1836_v39  ;;  %2197 = vmatprep.mubr.bf16.mxu0 %v7668_v35  ;;  %vm1918_vm13 = vcmp.eq.s32.totalorder %v6380_v62, 1  ;;  %v5143_v27 = vld [vmem:[#allocation17 + $0x84] ss:$16 sps:$4 sm:$0xff]  }
 0x29d   :  { %v1709_v20 = vmax.f32 %v1693_v51, 0.0  ;;  %v1655_v32 = vadd.f32 %v6368_v9, %v4693_v61  ;;  %v3695_v44 = vmul.f32 %v6427_v10, %v6427_v10  ;;  %v7675_v9 = vmax.f32 %v6144_v26, 0.0  ;;  %3001 = vmatprep.subr.bf16.mxu0 %v5140_v15  ;;  %v6450_v26 = vpop.permute.xlu1 %1906 }
 0x29e   :  { %v4695_v48 = vpop.f32.mrf.mxu1  ;;  %3002 = vmatpush1.bf16.msra.mxu0 %v5138_v25  ;;  %v7677_v15 = vmax.f32 %v6131_v16, 0.0  ;;  %v5144_v25 = vld [vmem:[#allocation17 + $0x60] ss:$16 sps:$4 sm:$0xff]  }
 0x29f   :  { %v1694_v13 = vadd.f32 %v6307_v59, %v1655_v32  ;;  %v4696_v58 = vadd.f32 %v4695_v48, %v4694_v57  ;;  %3719 = vadd.xlane.f32.xlu1 %v3695_v44  ;;  %v1837_v50 = vsel %vm1821_vm0, %v1709_v20, 0.0  ;;  %v6453_v57 = vpop.f32.mrf.mxu0  ;;  %vm1823_vm0 = vcmp.eq.s32.totalorder %v6346_v36, 1  ;;  %3003 = vmatprep.subr.bf16.mxu0 %v5143_v27  ;;  %v5146_v36 = vld [vmem:[#allocation17 + $0x64] ss:$16 sps:$4 sm:$0xff]  }
 0x2a0   :  { %v4697_v31 = vpop.f32.mrf.mxu1  ;;  %v6440_v4 = vsel %vm1917_vm8, %v7675_v9, %v1837_v50  ;;  %vm1919_vm8 = vcmp.eq.s32.totalorder %v6365_v33, 1 }
 0x2a1   :  { %v1710_v21 = vmax.f32 %v1694_v13, 0.0  ;;  %v1658_v2 = vadd.f32 %v4816_v6, %v4696_v58  ;;  %v3696_v37 = vmul.f32 %v6440_v4, %v6440_v4  ;;  %v1944_v34 = vpack.c.bf16 %v6440_v4, %v6427_v10  ;;  %v6464_v13 = vpop.permute.xlu0 %1903 }
 0x2a2   :  { %v4698_v51 = vpop.f32.mrf.mxu1  ;;  %3004 = vmatpush1.bf16.msra.mxu0 %v5141_v30 }
 0x2a3   :  { %v1695_v61 = vadd.f32 %v6307_v59, %v1658_v2  ;;  %v4699_v39 = vadd.f32 %v4698_v51, %v4697_v31  ;;  %3721 = vadd.xlane.f32.xlu0 %v3696_v37  ;;  %2198 = vmatmul.mubr.bf16.gmra.mxu0 %v1944_v34  ;;  %v1838_v6 = vsel %vm1822_vm12, %v1710_v21, 0.0  ;;  %v6467_v31 = vpop.xlane.xlu1 %3815  ;;  %vm1824_vm12 = vcmp.eq.s32.totalorder %v6401_v24, 1  ;;  %v5149_v24 = vld [vmem:[#allocation17 + $0x44] ss:$16 sps:$4 sm:$0xff]  }
 0x2a4   :  { %4845 = vmatprep.mubr.bf16.mxu1 %v1944_v34  ;;  %v4700_v41 = vpop.f32.mrf.mxu1  ;;  %v6457_v20 = vsel %vm1918_vm13, %v7676_v54, %v1838_v6  ;;  %2207 = vmatprep.mubr.bf16.mxu0 %v7668_v35  ;;  %vm1920_vm13 = vcmp.eq.s32.totalorder %v6420_v28, 1 }
 0x2a5   :  { %v1711_v62 = vmax.f32 %v1695_v61, 0.0  ;;  %v1663_v32 = vadd.f32 %v4699_v39, %v1662_v49  ;;  %v3697_v44 = vmul.f32 %v6457_v20, %v6457_v20  ;;  %v1665_v49 = vpop.f32.mrf.mxu0  ;;  %3005 = vmatprep.subr.bf16.mxu0 %v5146_v36  ;;  %v6485_v27 = vpop.xlane.xlu0 %3817 }
 0x2a6   :  { %v4701_v48 = vpop.f32.mrf.mxu1  ;;  %3006 = vmatpush1.bf16.msra.mxu0 %v5144_v25  ;;  %v5156_v25 = vld [vmem:[#allocation17 + $0x4] ss:$16 sps:$4 sm:$0xff]  }
 0x2a7   :  { %v1696_v8 = vadd.f32 %v6307_v59, %v1663_v32  ;;  %v4702_v58 = vadd.f32 %v4701_v48, %v4700_v41  ;;  %3723 = vadd.xlane.f32.xlu1 %v3697_v44  ;;  %v1839_v50 = vsel %vm1823_vm0, %v1711_v62, 0.0  ;;  %v7678_v41 = vmax.f32 %v6162_v47, 0.0  ;;  %v5147_v44 = vld [vmem:[#allocation17 + $0x40] ss:$16 sps:$4 sm:$0xff]   ;;  %v6491_v48 = vpop.xlane.xlu1 %3819  ;;  %3007 = vmatprep.subr.bf16.mxu0 %v5149_v24 }
 0x2a8   :  { %v4703_v9 = vpop.f32.mrf.mxu1  ;;  %v6471_v21 = vsel %vm1919_vm8, %v7677_v15, %v1839_v50  ;;  %vm1825_vm0 = vcmp.eq.s32.totalorder %v6387_v18, 1  ;;  %vm1921_vm8 = vcmp.eq.s32.totalorder %v6407_v19, 1  ;;  %v5150_v19 = vld [vmem:[#allocation17 + $0x20] ss:$16 sps:$4 sm:$0xff]   ;;  %v3849_v5 = vmax.f32 %v6491_v48, 1e-24 }
 0x2a9   :  { %v1712_v2 = vmax.f32 %v1696_v8, 0.0  ;;  %v1666_v37 = vadd.f32 %v4702_v58, %v1665_v49  ;;  %v3698_v33 = vmul.f32 %v6471_v21, %v6471_v21  ;;  %v1945_v34 = vpack.c.bf16 %v6471_v21, %v6457_v20  ;;  %v5152_v49 = vld [vmem:[#allocation17 + $0x24] ss:$16 sps:$4 sm:$0xff]   ;;  %v5158_v24 = vld [vmem:[#allocation17 + $0x1e0] ss:$16 sps:$4 sm:$0xff]  }
 0x2aa   :  { %v4704_v51 = vpop.f32.mrf.mxu1  ;;  %3008 = vmatpush1.bf16.msra.mxu0 %v5147_v44 }
 0x2ab   :  { %v1697_v16 = vadd.f32 %v6307_v59, %v1666_v37  ;;  %v4705_v61 = vadd.f32 %v4704_v51, %v4703_v9  ;;  %3725 = vadd.xlane.f32.xlu0 %v3698_v33  ;;  %2208 = vmatmul.mubr.bf16.gmra.mxu0 %v1945_v34  ;;  %v1840_v39 = vsel %vm1824_vm12, %v1712_v2, 0.0  ;;  %vm1826_vm12 = vcmp.eq.s32.totalorder %v6442_v3, 1  ;;  %v6505_v2 = vpop.xlane.xlu0 %3821  ;;  %v5153_v3 = vld [vmem:[#allocation16 + $0x38] sm:$0xff]  }
 0x2ac   :  { %4846 = vmatmul.mubr.bf16.gmra.mxu1 %v1945_v34  ;;  %v4706_v6 = vpop.f32.mrf.mxu1  ;;  %v6482_v54 = vsel %vm1920_vm13, %v7678_v41, %v1840_v39  ;;  %2217 = vmatprep.mubr.bf16.mxu0 %v7668_v35  ;;  %vm1922_vm13 = vcmp.eq.s32.totalorder %v6464_v13, 1  ;;  %v7680_v37 = vmax.f32 %v6156_v42, 0.0  ;;  %v6514_v34 = vpop.xlane.xlu1 %3823  ;;  %v5157_v39 = vld [vmem:[#allocation16 + $0x30] sm:$0xff]  }
 0x2ad   :  { %v1713_v62 = vmax.f32 %v1697_v16, 0.0  ;;  %v1671_v28 = vadd.f32 %v6423_v17, %v4705_v61  ;;  %v3699_v32 = vmul.f32 %v6482_v54, %v6482_v54  ;;  %v7679_v17 = vmax.f32 %v6175_v7, 0.0  ;;  %3009 = vmatprep.subr.bf16.mxu0 %v5152_v49  ;;  %4853 = vmatprep.subr.bf16.mxu1 %v5153_v3  ;;  %v5172_v49 = vld [vmem:[#allocation17 + $0x184] ss:$16 sps:$4 sm:$0xff]  }
 0x2ae   :  { %v4707_v30 = vpop.f32.mrf.mxu1  ;;  %3010 = vmatpush1.bf16.msra.mxu0 %v5150_v19  ;;  %4854 = vmatpush3.bf16.msra.mxu1 %v5153_v3  ;;  %v5174_v19 = vld [vmem:[#allocation17 + $0x160] ss:$16 sps:$4 sm:$0xff]   ;;  %v5180_v3 = vld [vmem:[#allocation17 + $0x144] ss:$16 sps:$4 sm:$0xff]  }
 0x2af   :  { %v1698_v47 = vadd.f32 %v6307_v59, %v1671_v28  ;;  %v4708_v8 = vadd.f32 %v4707_v30, %v4706_v6  ;;  %3727 = vadd.xlane.f32.xlu1 %v3699_v32  ;;  %v1841_v58 = vsel %vm1825_vm0, %v1713_v62, 0.0  ;;  %vm1827_vm0 = vcmp.eq.s32.totalorder %v6430_v40, 1  ;;  %3011 = vmatprep.subr.bf16.mxu0 %v5156_v25  ;;  %v6524_v61 = vpop.xlane.xlu0 %3825  ;;  %v5160_v6 = vld [vmem:[#allocation17 + $0x1e4] ss:$16 sps:$4 sm:$0xff]   ;;  %v5162_v28 = vld [vmem:[#allocation17 + $0x1c0] ss:$16 sps:$4 sm:$0xff]  }
 0x2b0   :  { %v6497_v50 = vsel %vm1921_vm8, %v7679_v17, %v1841_v58  ;;  %vm1923_vm8 = vcmp.eq.s32.totalorder %v6450_v26, 1  ;;  %v6530_v26 = vpop.xlane.xlu1 %3827  ;;  %4855 = vmatprep.subr.bf16.mxu1 %v5157_v39  ;;  %v5164_v62 = vld [vmem:[#allocation17 + $0x1c4] ss:$16 sps:$4 sm:$0xff]   ;;  %v5169_v17 = vld [vmem:[#allocation16 + $0x18] sm:$0xff]   ;;  %v5178_v25 = vld [vmem:[#allocation17 + $0x140] ss:$16 sps:$4 sm:$0xff]  }
 0x2b1   :  { %v1714_v9 = vmax.f32 %v1698_v47, 0.0  ;;  %v1674_v15 = vadd.f32 %v6453_v57, %v4708_v8  ;;  %v3700_v18 = vmul.f32 %v6497_v50, %v6497_v50  ;;  %v1946_v36 = vpack.c.bf16 %v6497_v50, %v6482_v54  ;;  %v5165_v30 = vld [vmem:[#allocation16 + $0x20] sm:$0xff]  }
 0x2b2   :  { %4856 = vmatpush3.bf16.msra.mxu1 %v5157_v39  ;;  %v5168_v47 = vld [vmem:[#allocation17 + $0x1a4] ss:$16 sps:$4 sm:$0xff]   ;;  %v5166_v8 = vld [vmem:[#allocation17 + $0x1a0] ss:$16 sps:$4 sm:$0xff]  }
 0x2b3   :  { %v1699_v7 = vadd.f32 %v6307_v59, %v1674_v15  ;;  %3729 = vadd.xlane.f32.xlu0 %v3700_v18  ;;  %2218 = vmatmul.mubr.bf16.gmra.mxu0 %v1946_v36  ;;  %v1842_v57 = vsel %vm1826_vm12, %v1714_v9, 0.0  ;;  %v5154_v59 = vld [vmem:[#allocation17] ss:$16 sps:$4 sm:$0xff]   ;;  %v6532_v32 = vpop.xlane.xlu0 %3829  ;;  %v5187_v39 = vld [vmem:[#allocation17 + $0x104] ss:$16 sps:$4 sm:$0xff]  }
 0x2b4   :  { %4849 = vmatprep.mubr.bf16.mxu1 %v1946_v36  ;;  %v6511_v33 = vsel %vm1922_vm13, %v7680_v37, %v1842_v57  ;;  %2227 = vmatprep.mubr.bf16.mxu0 %v7668_v35  ;;  %v7681_v35 = vmax.f32 %v6169_v52, 0.0  ;;  %v5161_v52 = vld [vmem:[#allocation16 + $0x28] sm:$0xff]   ;;  %v6534_v44 = vpop.xlane.xlu1 %3831  ;;  %v5170_v9 = vld [vmem:[#allocation17 + $0x180] ss:$16 sps:$4 sm:$0xff]   ;;  %v5176_v36 = vld [vmem:[#allocation17 + $0x164] ss:$16 sps:$4 sm:$0xff]  }
 0x2b5   :  { %v1715_v51 = vmax.f32 %v1699_v7, 0.0  ;;  %v3701_v13 = vmul.f32 %v6511_v33, %v6511_v33  ;;  %3012 = vmatpush1.bf16.msra.mxu0 %v5154_v59  ;;  %4857 = vmatprep.subr.bf16.mxu1 %v5161_v52  ;;  %v5173_v18 = vld [vmem:[#allocation16 + $0x10] sm:$0xff]   ;;  %v5177_v37 = vld [vmem:[#allocation16 + $0x8] sm:$0xff]  }
 0x2b6   :  { %3013 = vmatprep.subr.bf16.mxu0 %v5160_v6  ;;  %4858 = vmatpush3.bf16.msra.mxu1 %v5161_v52  ;;  %v5184_v59 = vld [vmem:[#allocation17 + $0x124] ss:$16 sps:$4 sm:$0xff]   ;;  %v5190_v6 = vld [vmem:[#allocation17 + $0xec] ss:$16 sps:$4 sm:$0xff]  }
 0x2b7   :  { %3731 = vadd.xlane.f32.xlu1 %v3701_v13  ;;  %v1843_v42 = vsel %vm1827_vm0, %v1715_v51, 0.0  ;;  %4859 = vmatprep.subr.bf16.mxu1 %v5165_v30  ;;  %v6536_v58 = vpop.xlane.xlu0 %3833  ;;  %v5181_v13 = vld [vmem:[#allocation16] sm:$0xff]  }
 0x2b8   :  { %v6522_v16 = vsel %vm1923_vm8, %v7681_v35, %v1843_v42  ;;  %v6538_v15 = vpop.xlane.xlu1 %3835  ;;  %v5182_v42 = vld [vmem:[#allocation17 + $0x120] ss:$16 sps:$4 sm:$0xff]  }
 0x2b9   :  { %v3702_v41 = vmul.f32 %v6522_v16, %v6522_v16  ;;  %v1947_v40 = vpack.c.bf16 %v6522_v16, %v6511_v33  ;;  %3014 = vmatpush2.bf16.msra.mxu0 %v5158_v24 }
 0x2ba   :  { %3015 = vmatprep.subr.bf16.mxu0 %v5164_v62  ;;  %4860 = vmatpush3.bf16.msra.mxu1 %v5165_v30 }
 0x2bb   :  { %3733 = vadd.xlane.f32.xlu0 %v3702_v41  ;;  %2228 = vmatmul.mubr.bf16.gmra.mxu0 %v1947_v40  ;;  %v6540_v7 = vpop.xlane.xlu0 %3837  ;;  %v5185_v41 = vld [vmem:[#allocation17 + $0x100] ss:$16 sps:$4 sm:$0xff]  }
 0x2bc   :  { %4850 = vmatmul.mubr.bf16.gmra.mxu1 %v1947_v40  ;;  %4861 = vmatprep.subr.bf16.mxu1 %v5169_v17  ;;  %v6542_v57 = vpop.xlane.xlu1 %3839 }
 0x2bd   :  { %3016 = vmatpush2.bf16.msra.mxu0 %v5162_v28 }
 0x2be   :  { %3017 = vmatprep.subr.bf16.mxu0 %v5168_v47  ;;  %4862 = vmatpush3.bf16.msra.mxu1 %v5169_v17 }
 0x2bf   :  { %4863 = vmatprep.subr.bf16.mxu1 %v5173_v18  ;;  %v6544_v51 = vpop.xlane.xlu0 %3841 }
 0x2c0   :  { %v6546_v35 = vpop.xlane.xlu1 %3843 }
 0x2c1   :  { %3018 = vmatpush2.bf16.msra.mxu0 %v5166_v8 }
 0x2c2   :  { %3019 = vmatprep.subr.bf16.mxu0 %v5172_v49  ;;  %4864 = vmatpush3.bf16.msra.mxu1 %v5173_v18 }
 0x2c3   :  { %4865 = vmatprep.subr.bf16.mxu1 %v5177_v37  ;;  %v6548_v40 = vpop.xlane.xlu0 %3845 }
 0x2c4   :  { %v3928_v24 = vpop.xlane.xlu1 %3927 }
 0x2c5   :  { %3020 = vmatpush2.bf16.msra.mxu0 %v5170_v9 }
 0x2c6   :  { %3021 = vmatprep.subr.bf16.mxu0 %v5176_v36  ;;  %4866 = vmatpush3.bf16.msra.mxu1 %v5177_v37 }
 0x2c7   :  { %4867 = vmatprep.subr.bf16.mxu1 %v5181_v13  ;;  %v3930_v52 = vpop.xlane.xlu0 %3929 }
 0x2c8   :  { %v3932_v62 = vpop.xlane.xlu1 %3931 }
 0x2c9   :  { %3022 = vmatpush2.bf16.msra.mxu0 %v5174_v19  ;;  %v3961_v11 = vmax.f32 %v3932_v62, 1e-24 }
 0x2ca   :  { %3023 = vmatprep.subr.bf16.mxu0 %v5180_v3  ;;  %4868 = vmatpush3.bf16.msra.mxu1 %v5181_v13  ;;  %v3959_v13 = vmax.f32 %v3928_v24, 1e-24 }
 0x2cb   :  { %4885 = vmatprep.subr.bf16.mxu1 %v5190_v6  ;;  %v3934_v28 = vpop.xlane.xlu0 %3933 }
 0x2cc   :  { %v3936_v30 = vpop.xlane.xlu1 %3935  ;;  %v3962_v24 = vmax.f32 %v3934_v28, 1e-24 }
 0x2cd   :  { %3024 = vmatpush2.bf16.msra.mxu0 %v5178_v25  ;;  %v3847_v25 = vmax.f32 %v6467_v31, 1e-24  ;;  %v3850_v31 = vmax.f32 %v6505_v2, 1e-24  ;;  %v3963_v48 = vmax.f32 %v3936_v30, 1e-24 }
 0x2ce   :  { %3025 = vmatprep.subr.bf16.mxu0 %v5184_v59  ;;  %v3848_v59 = vmax.f32 %v6485_v27, 1e-24 }
 0x2cf   :  { %v6550_v47 = vpop.xlane.xlu0 %3937  ;;  %5236 = vrsqrt.f32 %v3847_v25 }
 0x2d0   :  { %v6552_v8 = vpop.xlane.xlu1 %3939  ;;  %5238 = vrsqrt.f32 %v3959_v13  ;;  %v3964_v62 = vmax.f32 %v6550_v47, 1e-24 }
 0x2d1   :  { %3026 = vmatpush2.bf16.msra.mxu0 %v5182_v42  ;;  %5240 = vrsqrt.f32 %v3848_v59  ;;  %v3965_v47 = vmax.f32 %v6552_v8, 1e-24 }
 0x2d2   :  { %3027 = vmatprep.subr.bf16.mxu0 %v5187_v39 }
 0x2d3   :  { %v6554_v17 = vpop.xlane.xlu0 %3941 }
 0x2d4   :  { %v6556_v49 = vpop.xlane.xlu1 %3943  ;;  %v3966_v8 = vmax.f32 %v6554_v17, 1e-24 }
 0x2d5   :  { %3028 = vmatpush2.bf16.msra.mxu0 %v5185_v41  ;;  %v3967_v17 = vmax.f32 %v6556_v49, 1e-24 }
 0x2d6   :  { %3110 = vmatprep.subr.bf16.mxu0 %v5190_v6  ;;  %v3960_v6 = vmax.f32 %v3930_v52, 1e-24  ;;  %v3851_v52 = vmax.f32 %v6514_v34, 1e-24 }
 0x2d7   :  { %v6558_v9 = vpop.xlane.xlu0 %3945 }
 0x2d8   :  { %v6560_v18 = vpop.xlane.xlu1 %3947  ;;  %v3968_v49 = vmax.f32 %v6558_v9, 1e-24 }
 0x2d9   :  { %v3969_v9 = vmax.f32 %v6560_v18, 1e-24 }
 0x2db   :  { %v6562_v36 = vpop.xlane.xlu0 %3949 }
 0x2dc   :  { %v6564_v19 = vpop.xlane.xlu1 %3951  ;;  %v5237_v13 = vpop.eup %5236  ;;  %v3970_v18 = vmax.f32 %v6562_v36, 1e-24 }
 0x2dd   :  { %v3971_v36 = vmax.f32 %v6564_v19, 1e-24 }
 0x2df   :  { %v6566_v37 = vpop.xlane.xlu0 %3953 }
 0x2e0   :  { %v6568_v3 = vpop.xlane.xlu1 %3955  ;;  %v3972_v19 = vmax.f32 %v6566_v37, 1e-24 }
 0x2e1   :  { %v3973_v37 = vmax.f32 %v6568_v3, 1e-24 }
 0x2e3   :  { %v6572_v42 = vpop.xlane.xlu0 %3957 }
 0x308   :  { %v3704_v39 = vpop.xlane.xlu1 %3703 }
 0x309   :  { %v3735_v41 = vmax.f32 %v3704_v39, 1e-24 }
 0x30b   :  { %5242 = vrsqrt.f32 %v3735_v41 }
 0x30c   :  { %v3706_v12 = vpop.xlane.xlu0 %3705  ;;  %5244 = vrsqrt.f32 %v3960_v6  ;;  %v5239_v6 = vpop.eup %5238 }
 0x30d   :  { %v3736_v0 = vmax.f32 %v3706_v12, 1e-24  ;;  %5246 = vrsqrt.f32 %v3849_v5  ;;  %v3852_v5 = vmax.f32 %v6524_v61, 1e-24  ;;  %v5241_v12 = vpop.eup %5240 }
 0x30f   :  { %5248 = vrsqrt.f32 %v3736_v0  ;;  %v5332_v0 = vld [vmem:[#allocation7] sm:$0xff] }
 0x310   :  { %v3708_v27 = vpop.xlane.xlu1 %3707  ;;  %5250 = vrsqrt.f32 %v3961_v11  ;;  %v3879_v2 = vmul.f32 %v5332_v0, %v5237_v13 }
 0x311   :  { %v3737_v25 = vmax.f32 %v3708_v27, 1e-24  ;;  %5252 = vrsqrt.f32 %v3850_v31  ;;  %v5333_v31 = vld [vmem:[#allocation5] sm:$0xff] }
 0x312   :  { %v3991_v27 = vmul.f32 %v5333_v31, %v5239_v6 }
 0x313   :  { %5254 = vrsqrt.f32 %v3737_v25 }
 0x314   :  { %v3710_v59 = vpop.xlane.xlu0 %3709  ;;  %5256 = vrsqrt.f32 %v3962_v24  ;;  %v3853_v24 = vmax.f32 %v6530_v26, 1e-24  ;;  %v3854_v26 = vmax.f32 %v6532_v32, 1e-24  ;;  %v3855_v32 = vmax.f32 %v6534_v44, 1e-24 }
 0x315   :  { %v3738_v39 = vmax.f32 %v3710_v59, 1e-24  ;;  %5258 = vrsqrt.f32 %v3851_v52  ;;  %v5334_v52 = vld [vmem:[#allocation7 + $0x8] sm:$0xff]  ;;  %v3856_v44 = vmax.f32 %v6536_v58, 1e-24 }
 0x316   :  { %v3880_v59 = vmul.f32 %v5334_v52, %v5241_v12  ;;  %v5336_v12 = vld [vmem:[#allocation7 + $0x10] sm:$0xff]  ;;  %v3857_v58 = vmax.f32 %v6538_v15, 1e-24  ;;  %v3858_v15 = vmax.f32 %v6540_v7, 1e-24 }
 0x317   :  { %5260 = vrsqrt.f32 %v3738_v39  ;;  %v3859_v7 = vmax.f32 %v6542_v57, 1e-24  ;;  %v3860_v57 = vmax.f32 %v6544_v51, 1e-24  ;;  %v3861_v51 = vmax.f32 %v6546_v35, 1e-24 }
 0x318   :  { %v5243_v11 = vpop.eup %5242  ;;  %v3712_v28 = vpop.xlane.xlu1 %3711  ;;  %5262 = vrsqrt.f32 %v3963_v48  ;;  %v3862_v35 = vmax.f32 %v6548_v40, 1e-24 }
 0x319   :  { %v3739_v34 = vmax.f32 %v3712_v28, 1e-24  ;;  %v3767_v41 = vmul.f32 %v5243_v11, %v6319_v43  ;;  %v5245_v30 = vpop.eup %5244  ;;  %5264 = vrsqrt.f32 %v3852_v5  ;;  %v5335_v11 = vld [vmem:[#allocation5 + $0x8] sm:$0xff] }
 0x31a   :  { %v5247_v25 = vpop.eup %5246  ;;  %v3992_v6 = vmul.f32 %v5335_v11, %v5245_v30 }
 0x31b   :  { %5266 = vrsqrt.f32 %v3739_v34  ;;  %v4007_v61 = vadd.f32 %v3879_v2, %v3767_v41  ;;  %v3881_v41 = vmul.f32 %v5336_v12, %v5247_v25  ;;  %v5340_v12 = vld [vmem:[#allocation7 + $0x20] sm:$0xff] }
 0x31c   :  { %v5249_v13 = vpop.eup %5248  ;;  %5268 = vrsqrt.f32 %v3964_v62  ;;  %v3714_v39 = vpop.xlane.xlu0 %3713 }
 0x31d   :  { %v3740_v48 = vmax.f32 %v3714_v39, 1e-24  ;;  %v4023_v0 = vsub.f32 %v4007_v61, %v3991_v27  ;;  %v3768_v43 = vmul.f32 %v5249_v13, %v6330_v45  ;;  %v5251_v28 = vpop.eup %5250  ;;  %5270 = vrsqrt.f32 %v3853_v24  ;;  %v5337_v61 = vld [vmem:[#allocation5 + $0x10] sm:$0xff]  ;;  %v5338_v39 = vld [vmem:[#allocation7 + $0x18] sm:$0xff] }
 0x31e   :  { %v5253_v5 = vpop.eup %5252  ;;  %v3993_v24 = vmul.f32 %v5337_v61, %v5251_v28 }
 0x31f   :  { %5272 = vrsqrt.f32 %v3740_v48  ;;  %v4039_v2 = vand.u32 2147483647, %v4023_v0  ;;  %v4008_v34 = vadd.f32 %v3880_v59, %v3768_v43 }
 0x320   :  { %v5255_v62 = vpop.eup %5254  ;;  %5274 = vrsqrt.f32 %v3965_v47  ;;  %v3716_v31 = vpop.xlane.xlu1 %3715  ;;  %v3882_v47 = vmul.f32 %v5338_v39, %v5253_v5 }
 0x321   :  { %v3741_v27 = vmax.f32 %v3716_v31, 1e-24  ;;  %4055 = vadd.xlane.f32.xlu1 %v4039_v2  ;;  %v4024_v45 = vsub.f32 %v4008_v34, %v3992_v6  ;;  %v3769_v30 = vmul.f32 %v5255_v62, %v6343_v29  ;;  %v5257_v52 = vpop.eup %5256  ;;  %5276 = vrsqrt.f32 %v3854_v26  ;;  %v5339_v6 = vld [vmem:[#allocation5 + $0x18] sm:$0xff] }
 0x322   :  { %v5259_v13 = vpop.eup %5258  ;;  %v3994_v28 = vmul.f32 %v5339_v6, %v5257_v52 }
 0x323   :  { %5278 = vrsqrt.f32 %v3741_v27  ;;  %v4040_v59 = vand.u32 2147483647, %v4024_v45  ;;  %v4009_v25 = vadd.f32 %v3881_v41, %v3769_v30  ;;  %v3883_v41 = vmul.f32 %v5340_v12, %v5259_v13  ;;  %v5341_v30 = vld [vmem:[#allocation5 + $0x20] sm:$0xff]  ;;  %v5342_v13 = vld [vmem:[#allocation7 + $0x28] sm:$0xff] }
 0x324   :  { %v5261_v48 = vpop.eup %5260  ;;  %5280 = vrsqrt.f32 %v3966_v8  ;;  %v3718_v0 = vpop.xlane.xlu0 %3717 }
 0x325   :  { %v3742_v43 = vmax.f32 %v3718_v0, 1e-24  ;;  %4057 = vadd.xlane.f32.xlu0 %v4040_v59  ;;  %v4025_v29 = vsub.f32 %v4009_v25, %v3993_v24  ;;  %v3770_v11 = vmul.f32 %v5261_v48, %v6355_v23  ;;  %v5263_v26 = vpop.eup %5262  ;;  %5282 = vrsqrt.f32 %v3855_v32  ;;  %v5343_v0 = vld [vmem:[#allocation5 + $0x28] sm:$0xff] }
 0x326   :  { %v5265_v2 = vpop.eup %5264  ;;  %v3995_v61 = vmul.f32 %v5341_v30, %v5263_v26 }
 0x327   :  { %5284 = vrsqrt.f32 %v3742_v43  ;;  %v4041_v34 = vand.u32 2147483647, %v4025_v29  ;;  %v4010_v5 = vadd.f32 %v3882_v47, %v3770_v11  ;;  %v3884_v59 = vmul.f32 %v5342_v13, %v5265_v2 }
 0x328   :  { %v5267_v62 = vpop.eup %5266  ;;  %5286 = vrsqrt.f32 %v3967_v17  ;;  %v3720_v8 = vpop.xlane.xlu1 %3719 }
 0x329   :  { %v5269_v31 = vpop.eup %5268  ;;  %v3743_v27 = vmax.f32 %v3720_v8, 1e-24  ;;  %4059 = vadd.xlane.f32.xlu1 %v4041_v34  ;;  %v4026_v23 = vsub.f32 %v4010_v5, %v3994_v28  ;;  %v3771_v45 = vmul.f32 %v5267_v62, %v6372_v22  ;;  %5288 = vrsqrt.f32 %v3856_v44  ;;  %v5344_v28 = vld [vmem:[#allocation7 + $0x30] sm:$0xff] }
 0x32a   :  { %v5271_v24 = vpop.eup %5270  ;;  %v3996_v43 = vmul.f32 %v5343_v0, %v5269_v31 }
 0x32b   :  { %5290 = vrsqrt.f32 %v3743_v27  ;;  %v4042_v52 = vand.u32 2147483647, %v4026_v23  ;;  %v4011_v32 = vadd.f32 %v3883_v41, %v3771_v45  ;;  %v3885_v26 = vmul.f32 %v5344_v28, %v5271_v24  ;;  %v5345_v41 = vld [vmem:[#allocation5 + $0x30] sm:$0xff]  ;;  %v5346_v27 = vld [vmem:[#allocation7 + $0x38] sm:$0xff]  ;;  %v5350_v28 = vld [vmem:[#allocation7 + $0x48] sm:$0xff] }
 0x32c   :  { %v5273_v25 = vpop.eup %5272  ;;  %5292 = vrsqrt.f32 %v3968_v49  ;;  %v3722_v39 = vpop.xlane.xlu0 %3721 }
 0x32d   :  { %v5275_v47 = vpop.eup %5274  ;;  %v3744_v48 = vmax.f32 %v3722_v39, 1e-24  ;;  %4061 = vadd.xlane.f32.xlu0 %v4042_v52  ;;  %v4027_v22 = vsub.f32 %v4011_v32, %v3995_v61  ;;  %v3772_v17 = vmul.f32 %v5273_v25, %v6385_v1  ;;  %5294 = vrsqrt.f32 %v3857_v58  ;;  %v5347_v52 = vld [vmem:[#allocation5 + $0x38] sm:$0xff] }
 0x32e   :  { %v5277_v29 = vpop.eup %5276  ;;  %v3997_v62 = vmul.f32 %v5345_v41, %v5275_v47 }
 0x32f   :  { %5296 = vrsqrt.f32 %v3744_v48  ;;  %v4043_v11 = vand.u32 2147483647, %v4027_v22  ;;  %v4012_v6 = vadd.f32 %v3884_v59, %v3772_v17  ;;  %v3886_v23 = vmul.f32 %v5346_v27, %v5277_v29 }
 0x330   :  { %v5279_v44 = vpop.eup %5278  ;;  %5298 = vrsqrt.f32 %v3969_v9  ;;  %v3724_v2 = vpop.xlane.xlu1 %3723  ;;  %v5348_v9 = vld [vmem:[#allocation7 + $0x40] sm:$0xff] }
 0x331   :  { %v5281_v34 = vpop.eup %5280  ;;  %v3745_v5 = vmax.f32 %v3724_v2, 1e-24  ;;  %4063 = vadd.xlane.f32.xlu1 %v4043_v11  ;;  %v4028_v1 = vsub.f32 %v4012_v6, %v3996_v43  ;;  %v3773_v12 = vmul.f32 %v5279_v44, %v6398_v53  ;;  %5300 = vrsqrt.f32 %v3858_v15  ;;  %v5349_v43 = vld [vmem:[#allocation5 + $0x40] sm:$0xff] }
 0x332   :  { %v5283_v49 = vpop.eup %5282  ;;  %v3998_v32 = vmul.f32 %v5347_v52, %v5281_v34 }
 0x333   :  { %5302 = vrsqrt.f32 %v3745_v5  ;;  %v4044_v8 = vand.u32 2147483647, %v4028_v1  ;;  %v4013_v31 = vadd.f32 %v3885_v26, %v3773_v12  ;;  %v3887_v39 = vmul.f32 %v5348_v9, %v5283_v49  ;;  %v5351_v1 = vld [vmem:[#allocation5 + $0x48] sm:$0xff]  ;;  %v5352_v49 = vld [vmem:[#allocation7 + $0x50] sm:$0xff] }
 0x334   :  { %v5285_v45 = vpop.eup %5284  ;;  %5304 = vrsqrt.f32 %v3970_v18  ;;  %v3726_v30 = vpop.xlane.xlu0 %3725 }
 0x335   :  { %v5287_v61 = vpop.eup %5286  ;;  %v3746_v58 = vmax.f32 %v3726_v30, 1e-24  ;;  %4065 = vadd.xlane.f32.xlu0 %v4044_v8  ;;  %v4029_v53 = vsub.f32 %v4013_v31, %v3997_v62  ;;  %v3774_v24 = vmul.f32 %v5285_v45, %v6412_v38  ;;  %5306 = vrsqrt.f32 %v3859_v7  ;;  %v6611_v7 = vld [vmem:[%s7551_s13] sm:$0x7]  ;;  %v5353_v30 = vld [vmem:[#allocation5 + $0x50] sm:$0xff] }
 0x336   :  { %v5289_v13 = vpop.eup %5288  ;;  %v3999_v15 = vmul.f32 %v5349_v43, %v5287_v61 }
 0x337   :  { %5308 = vrsqrt.f32 %v3746_v58  ;;  %v4045_v59 = vand.u32 2147483647, %v4029_v53  ;;  %v4014_v25 = vadd.f32 %v3886_v23, %v3774_v24  ;;  %v3888_v26 = vmul.f32 %v5350_v28, %v5289_v13 }
 0x338   :  { %v5291_v47 = vpop.eup %5290  ;;  %5310 = vrsqrt.f32 %v3971_v36  ;;  %v3728_v48 = vpop.xlane.xlu1 %3727  ;;  %v6617_v58 = vrot.slane %v6611_v7, %v6191_v55 }
 0x339   :  { %v5293_v22 = vpop.eup %5292  ;;  %v3747_v17 = vmax.f32 %v3728_v48, 1e-24  ;;  %4067 = vadd.xlane.f32.xlu1 %v4045_v59  ;;  %v4030_v38 = vsub.f32 %v4014_v25, %v3998_v32  ;;  %v3775_v0 = vmul.f32 %v5291_v47, %v6427_v10  ;;  %5312 = vrsqrt.f32 %v3860_v57 }
 0x33a   :  { %v5295_v29 = vpop.eup %5294  ;;  %v4000_v12 = vmul.f32 %v5351_v1, %v5293_v22 }
 0x33b   :  { %5314 = vrsqrt.f32 %v3747_v17  ;;  %v4046_v11 = vand.u32 2147483647, %v4030_v38  ;;  %v4015_v6 = vadd.f32 %v3887_v39, %v3775_v0  ;;  %v3889_v8 = vmul.f32 %v5352_v49, %v5295_v29 }
 0x33c   :  { %v5297_v44 = vpop.eup %5296  ;;  %5316 = vrsqrt.f32 %v3972_v19  ;;  %v3730_v18 = vpop.xlane.xlu0 %3729  ;;  %v5355_v19 = vld [vmem:[#allocation5 + $0x58] sm:$0xff] }
 0x33d   :  { %v5299_v2 = vpop.eup %5298  ;;  %v3748_v34 = vmax.f32 %v3730_v18, 1e-24  ;;  %4069 = vadd.xlane.f32.xlu0 %v4046_v11  ;;  %v4031_v10 = vsub.f32 %v4015_v6, %v3999_v15  ;;  %v3776_v5 = vmul.f32 %v5297_v44, %v6440_v4  ;;  %5318 = vrsqrt.f32 %v3861_v51  ;;  %v5356_v15 = vld [vmem:[#allocation7 + $0x60] sm:$0xff] }
 0x33e   :  { %v5301_v41 = vpop.eup %5300  ;;  %v3974_v4 = vmax.f32 %v6572_v42, 1e-24  ;;  %v4001_v61 = vmul.f32 %v5353_v30, %v5299_v2  ;;  %v5354_v42 = vld [vmem:[#allocation7 + $0x58] sm:$0xff]  ;;  %v5357_v44 = vld [vmem:[#allocation5 + $0x60] sm:$0xff] }
 0x33f   :  { %5320 = vrsqrt.f32 %v3748_v34  ;;  %v4047_v62 = vand.u32 2147483647, %v4031_v10  ;;  %v4016_v3 = vadd.f32 %v3888_v26, %v3776_v5  ;;  %v3890_v57 = vmul.f32 %v5354_v42, %v5301_v41 }
 0x340   :  { %v5303_v31 = vpop.eup %5302  ;;  %5322 = vrsqrt.f32 %v3973_v37  ;;  %v3732_v27 = vpop.xlane.xlu1 %3731  ;;  %v1992_v34 = vsub.s32 2, %v6188_v46 }
 0x341   :  { %v5305_v23 = vpop.eup %5304  ;;  %v3749_v45 = vmax.f32 %v3732_v27, 1e-24  ;;  %4071 = vadd.xlane.f32.xlu1 %v4047_v62  ;;  %v4032_v40 = vsub.f32 %v4016_v3, %v4000_v12  ;;  %v3777_v36 = vmul.f32 %v5303_v31, %v6457_v20  ;;  %5324 = vrsqrt.f32 %v3862_v35  ;;  %v5358_v35 = vld [vmem:[#allocation7 + $0x68] sm:$0xff] }
 0x342   :  { %v5307_v53 = vpop.eup %5306  ;;  %v4002_v48 = vmul.f32 %v5355_v19, %v5305_v23  ;;  %v5359_v27 = vld [vmem:[#allocation5 + $0x68] sm:$0xff] }
 0x343   :  { %5326 = vrsqrt.f32 %v3749_v45  ;;  %v2159_v24 = vpop.f32.mrf.mxu0  ;;  %v4048_v52 = vand.u32 2147483647, %v4032_v40  ;;  %v4017_v32 = vadd.f32 %v3889_v8, %v3777_v36  ;;  %v3891_v51 = vmul.f32 %v5356_v15, %v5307_v53  ;;  %v5362_v15 = vld [vmem:[#allocation7 + $0x78] sm:$0xff] }
 0x344   :  { %v5309_v13 = vpop.eup %5308  ;;  %5328 = vrsqrt.f32 %v3974_v4  ;;  %v3734_v59 = vpop.xlane.xlu0 %3733  ;;  %v2160_v22 = vadd.f32 %v2159_v24, %v6617_v58  ;;  %v6631_v45 = vrot.slane %v6611_v7, %v6197_v14  ;;  %v6637_v36 = vrot.slane %v6611_v7, %v1992_v34 }
 0x345   :  { %v5311_v25 = vpop.eup %5310  ;;  %v3750_v9 = vmax.f32 %v3734_v59, 1e-24  ;;  %4073 = vadd.xlane.f32.xlu0 %v4048_v52  ;;  %v6619_v20 = vpop.f32.mrf.mxu0  ;;  %v4033_v39 = vsub.f32 %v4017_v32, %v4001_v61  ;;  %v3778_v47 = vmul.f32 %v5309_v13, %v6471_v21 }
 0x346   :  { %v5313_v17 = vpop.eup %5312  ;;  %v4003_v37 = vmul.f32 %v5357_v44, %v5311_v25  ;;  %v2335_v18 = vmax.f32 %v2160_v22, 0.0 }
 0x347   :  { %5330 = vrsqrt.f32 %v3750_v9  ;;  %v2163_v38 = vpop.f32.mrf.mxu0  ;;  %v4049_v0 = vand.u32 2147483647, %v4033_v39  ;;  %v4018_v43 = vadd.f32 %v3890_v57, %v3778_v47  ;;  %v3892_v41 = vmul.f32 %v5358_v35, %v5313_v17 }
 0x348   :  { %v5315_v29 = vpop.eup %5314  ;;  %v2164_v11 = vadd.f32 %v2163_v38, %v6617_v58  ;;  %v2162_v17 = vadd.f32 %v6619_v20, %v6631_v45 }
 0x349   :  { %v5317_v6 = vpop.eup %5316  ;;  %4075 = vadd.xlane.f32.xlu1 %v4049_v0  ;;  %v2165_v28 = vpop.f32.mrf.mxu0  ;;  %v4034_v26 = vsub.f32 %v4018_v43, %v4002_v48  ;;  %v3779_v21 = vmul.f32 %v5315_v29, %v6482_v54  ;;  %v5361_v48 = vld [vmem:[#allocation5 + $0x70] sm:$0xff] }
 0x34a   :  { %v2338_v2 = vmax.f32 %v2164_v11, 0.0  ;;  %v5319_v10 = vpop.eup %5318  ;;  %v4004_v23 = vmul.f32 %v5359_v27, %v5317_v6  ;;  %v2166_v57 = vadd.f32 %v2165_v28, %v6631_v45 }
 0x34b   :  { %v2169_v5 = vpop.f32.mrf.mxu0  ;;  %v4050_v1 = vand.u32 2147483647, %v4034_v26  ;;  %v4019_v12 = vadd.f32 %v3891_v51, %v3779_v21  ;;  %v5188_v26 = vld [vmem:[#allocation17 + $0xe8] ss:$16 sps:$4 sm:$0xff]  }
 0x34c   :  { %v5321_v62 = vpop.eup %5320  ;;  %v2383_v3 = vpack.c.bf16 %v2338_v2, %v2335_v18  ;;  %v4839_v49 = vpop.f32.mrf.mxu1  ;;  %v2170_v40 = vadd.f32 %v2169_v5, %v6617_v58  ;;  %v5193_v2 = vld [vmem:[#allocation17 + $0xcc] ss:$16 sps:$4 sm:$0xff]  }
 0x34d   :  { %v5323_v8 = vpop.eup %5322  ;;  %4077 = vadd.xlane.f32.xlu0 %v4050_v1  ;;  %v6626_v31 = vpop.f32.mrf.mxu0  ;;  %v4035_v54 = vsub.f32 %v4019_v12, %v4003_v37  ;;  %v3780_v4 = vmul.f32 %v5321_v62, %v6497_v50  ;;  %v5360_v50 = vld [vmem:[#allocation7 + $0x70] sm:$0xff]  ;;  %v2281_v29 = vadd.f32 %v4839_v49, %v6637_v36  ;;  %v2336_v62 = vmax.f32 %v2162_v17, 0.0 }
 0x34e   :  { %v2272_v30 = vpop.f32.mrf.mxu1  ;;  %4869 = vmatprep.mubr.bf16.mxu1 %v2383_v3  ;;  %v5325_v61 = vpop.eup %5324  ;;  %v3893_v32 = vmul.f32 %v5360_v50, %v5319_v10  ;;  %v4005_v22 = vmul.f32 %v5361_v48, %v5323_v8  ;;  %v2341_v38 = vmax.f32 %v2170_v40, 0.0  ;;  %v5363_v10 = vld [vmem:[#allocation5 + $0x78] sm:$0xff]  ;;  %v2172_v50 = vadd.f32 %v6626_v31, %v6631_v45 }
 0x34f   :  { %v2173_v53 = vpop.f32.mrf.mxu0  ;;  %v4051_v24 = vand.u32 2147483647, %v4035_v54  ;;  %v4020_v52 = vadd.f32 %v3892_v41, %v3780_v4  ;;  %v2273_v13 = vadd.f32 %v2272_v30, %v6637_v36  ;;  %v3894_v51 = vmul.f32 %v5362_v15, %v5325_v61  ;;  %v5191_v61 = vld [vmem:[#allocation17 + $0xc8] ss:$16 sps:$4 sm:$0xff]  }
 0x350   :  { %v5327_v42 = vpop.eup %5326  ;;  %v2174_v59 = vadd.f32 %v2173_v53, %v6617_v58  ;;  %v4840_v25 = vpop.f32.mrf.mxu1  ;;  %v2343_v49 = vmax.f32 %v2281_v29, 0.0  ;;  %v2342_v31 = vmax.f32 %v2172_v50, 0.0  ;;  %v5197_v15 = vld [vmem:[#allocation17 + $0x88] ss:$16 sps:$4 sm:$0xff]  }
 0x351   :  { %v5329_v9 = vpop.eup %5328  ;;  %v2284_v7 = vadd.f32 %v4840_v25, %v6637_v36  ;;  %4079 = vadd.xlane.f32.xlu1 %v4051_v24  ;;  %v2175_v39 = vpop.f32.mrf.mxu0  ;;  %v4036_v47 = vsub.f32 %v4020_v52, %v4004_v23  ;;  %v3781_v19 = vmul.f32 %v5327_v42, %v6511_v33  ;;  %v2339_v33 = vmax.f32 %v2166_v57, 0.0  ;;  %v5196_v52 = vld [vmem:[#allocation17 + $0xac] ss:$16 sps:$4 sm:$0xff]  }
 0x352   :  { %v2344_v0 = vmax.f32 %v2174_v59, 0.0  ;;  %v2275_v43 = vpop.f32.mrf.mxu1  ;;  %v2337_v37 = vmax.f32 %v2273_v13, 0.0  ;;  %v4006_v20 = vmul.f32 %v5363_v10, %v5329_v9  ;;  %v2176_v40 = vadd.f32 %v2175_v39, %v6631_v45 }
 0x353   :  { %v2276_v11 = vadd.f32 %v2275_v43, %v6637_v36  ;;  %v2179_v6 = vpop.f32.mrf.mxu0  ;;  %v4052_v28 = vand.u32 2147483647, %v4036_v47  ;;  %v4021_v21 = vadd.f32 %v3893_v32, %v3781_v19  ;;  %v2346_v5 = vmax.f32 %v2284_v7, 0.0  ;;  %v5194_v7 = vld [vmem:[#allocation17 + $0xa8] ss:$16 sps:$4 sm:$0xff]  }
 0x354   :  { %v5331_v44 = vpop.eup %5330  ;;  %v2384_v18 = vpack.c.bf16 %v2344_v0, %v2341_v38  ;;  %v2180_v3 = vadd.f32 %v2179_v6, %v6617_v58  ;;  %v6652_v23 = vpack.c.bf16 %v2339_v33, %v2336_v62  ;;  %v2345_v59 = vmax.f32 %v2176_v40, 0.0  ;;  %v5199_v47 = vld [vmem:[#allocation17 + $0x8c] ss:$16 sps:$4 sm:$0xff]  }
 0x355   :  { %v2340_v1 = vmax.f32 %v2276_v11, 0.0  ;;  %4081 = vadd.xlane.f32.xlu0 %v4052_v28  ;;  %v2181_v12 = vpop.f32.mrf.mxu0  ;;  %v4037_v35 = vsub.f32 %v4021_v21, %v4005_v22  ;;  %v3782_v41 = vmul.f32 %v5331_v44, %v6522_v16  ;;  %v6656_v16 = vpack.c.bf16 %v2346_v5, %v2343_v49  ;;  %v5202_v6 = vld [vmem:[#allocation17 + $0x6c] ss:$16 sps:$4 sm:$0xff]  }
 0x356   :  { %4870 = vmatmul.mubr.bf16.vlgmr.msra.gmra.mxu1 %v2384_v18  ;;  %v2347_v32 = vmax.f32 %v2180_v3, 0.0  ;;  %v6664_v17 = vpack.c.bf16 %v2345_v59, %v2342_v31  ;;  %v2182_v28 = vadd.f32 %v2181_v12, %v6631_v45 }
 0x357   :  { %v6650_v8 = vpack.c.bf16 %v2340_v1, %v2337_v37  ;;  %4901 = vmatpush1.bf16.msra.mxu1 %v5188_v26  ;;  %v2183_v54 = vpop.f32.mrf.mxu0  ;;  %v4053_v4 = vand.u32 2147483647, %v4037_v35  ;;  %v4022_v27 = vadd.f32 %v3894_v51, %v3782_v41  ;;  %v5205_v41 = vld [vmem:[#allocation17 + $0x4c] ss:$16 sps:$4 sm:$0xff]  }
 0x358   :  { %v2184_v30 = vadd.f32 %v2183_v54, %v6617_v58  ;;  %4886 = vmatprep.subr.bf16.mxu1 %v5193_v2  ;;  %v2348_v62 = vmax.f32 %v2182_v28, 0.0 }
 0x359   :  { %3029 = vmatprep.mubr.bf16.mxu0 %v6650_v8  ;;  %4083 = vadd.xlane.f32.xlu1 %v4053_v4  ;;  %v2185_v53 = vpop.f32.mrf.mxu0  ;;  %v4038_v24 = vsub.f32 %v4022_v27, %v4006_v20  ;;  %v5200_v20 = vld [vmem:[#allocation17 + $0x68] ss:$16 sps:$4 sm:$0xff]  }
 0x35a   :  { %v2350_v42 = vmax.f32 %v2184_v30, 0.0  ;;  %3030 = vmatmul.mubr.bf16.vlgmr.msra.gmra.mxu0 %v6652_v23  ;;  %v2186_v38 = vadd.f32 %v2185_v53, %v6631_v45 }
 0x35b   :  { %3039 = vmatprep.mubr.bf16.mxu0 %v6656_v16  ;;  %3111 = vmatpush1.bf16.msra.mxu0 %v5188_v26  ;;  %v2189_v57 = vpop.f32.mrf.mxu0  ;;  %v4054_v13 = vand.u32 2147483647, %v4038_v24 }
 0x35c   :  { %v2385_v25 = vpack.c.bf16 %v2350_v42, %v2347_v32  ;;  %4902 = vmatpush1.bf16.msra.mxu1 %v5191_v61  ;;  %v4843_v9 = vpop.f32.mrf.mxu1  ;;  %3112 = vmatprep.subr.bf16.mxu0 %v5193_v2  ;;  %v2190_v19 = vadd.f32 %v2189_v57, %v6617_v58  ;;  %v2351_v2 = vmax.f32 %v2186_v38, 0.0 }
 0x35d   :  { %4085 = vadd.xlane.f32.xlu0 %v4054_v13  ;;  %v2191_v39 = vpop.f32.mrf.mxu0  ;;  %4887 = vmatprep.subr.bf16.mxu1 %v5196_v52  ;;  %v2297_v33 = vadd.f32 %v4843_v9, %v6637_v36  ;;  %v5206_v9 = vld [vmem:[#allocation17 + $0x28] ss:$16 sps:$4 sm:$0xff]  }
 0x35e   :  { %v2288_v48 = vpop.f32.mrf.mxu1  ;;  %4873 = vmatprep.mubr.bf16.mxu1 %v2385_v25  ;;  %v2353_v26 = vmax.f32 %v2190_v19, 0.0  ;;  %v6677_v27 = vpack.c.bf16 %v2351_v2, %v2348_v62  ;;  %v2192_v50 = vadd.f32 %v2191_v39, %v6631_v45 }
 0x35f   :  { %3113 = vmatpush1.bf16.msra.mxu0 %v5191_v61  ;;  %v2193_v22 = vpop.f32.mrf.mxu0  ;;  %v2289_v51 = vadd.f32 %v2288_v48, %v6637_v36  ;;  %v2355_v49 = vmax.f32 %v2297_v33, 0.0  ;;  %v5203_v61 = vld [vmem:[#allocation17 + $0x48] ss:$16 sps:$4 sm:$0xff]  }
 0x360   :  { %4903 = vmatpush1.bf16.msra.mxu1 %v5194_v7  ;;  %v2194_v0 = vadd.f32 %v2193_v22, %v6617_v58  ;;  %v4844_v43 = vpop.f32.mrf.mxu1  ;;  %3114 = vmatprep.subr.bf16.mxu0 %v5196_v52  ;;  %v5208_v52 = vld [vmem:[#allocation17 + $0x2c] ss:$16 sps:$4 sm:$0xff]   ;;  %v2354_v31 = vmax.f32 %v2192_v50, 0.0 }
 0x361   :  { %v2300_v29 = vadd.f32 %v4844_v43, %v6637_v36  ;;  %v2195_v11 = vpop.f32.mrf.mxu0  ;;  %4888 = vmatprep.subr.bf16.mxu1 %v5199_v47  ;;  %v2349_v5 = vmax.f32 %v2289_v51, 0.0 }
 0x362   :  { %v2356_v21 = vmax.f32 %v2194_v0, 0.0  ;;  %v2291_v44 = vpop.f32.mrf.mxu1  ;;  %3040 = vmatmul.mubr.bf16.gmra.mxu0 %v6664_v17  ;;  %v2196_v40 = vadd.f32 %v2195_v11, %v6631_v45 }
 0x363   :  { %v2292_v37 = vadd.f32 %v2291_v44, %v6637_v36  ;;  %3115 = vmatpush1.bf16.msra.mxu0 %v5194_v7  ;;  %v2199_v18 = vpop.f32.mrf.mxu0  ;;  %v2358_v1 = vmax.f32 %v2300_v29, 0.0 }
 0x364   :  { %v2386_v10 = vpack.c.bf16 %v2356_v21, %v2353_v26  ;;  %4904 = vmatpush1.bf16.msra.mxu1 %v5197_v15  ;;  %3116 = vmatprep.subr.bf16.mxu0 %v5199_v47  ;;  %v2200_v3 = vadd.f32 %v2199_v18, %v6617_v58  ;;  %v2357_v13 = vmax.f32 %v2196_v40, 0.0  ;;  %v5211_v47 = vld [vmem:[#allocation17 + $0xc] ss:$16 sps:$4 sm:$0xff]  }
 0x365   :  { %v2352_v35 = vmax.f32 %v2292_v37, 0.0  ;;  %v2201_v12 = vpop.f32.mrf.mxu0  ;;  %4889 = vmatprep.subr.bf16.mxu1 %v5202_v6  ;;  %v6681_v53 = vpack.c.bf16 %v2358_v1, %v2355_v49 }
 0x366   :  { %4874 = vmatmul.mubr.bf16.gmra.mxu1 %v2386_v10  ;;  %v2359_v32 = vmax.f32 %v2200_v3, 0.0  ;;  %v6688_v22 = vpack.c.bf16 %v2357_v13, %v2354_v31  ;;  %v2202_v28 = vadd.f32 %v2201_v12, %v6631_v45 }
 0x367   :  { %v6675_v54 = vpack.c.bf16 %v2352_v35, %v2349_v5  ;;  %3117 = vmatpush1.bf16.msra.mxu0 %v5197_v15  ;;  %v2203_v4 = vpop.f32.mrf.mxu0  ;;  %v5209_v15 = vld [vmem:[#allocation17 + $0x8] ss:$16 sps:$4 sm:$0xff]  }
 0x368   :  { %4905 = vmatpush1.bf16.msra.mxu1 %v5200_v20  ;;  %v2204_v30 = vadd.f32 %v2203_v4, %v6617_v58  ;;  %3118 = vmatprep.subr.bf16.mxu0 %v5202_v6  ;;  %v5214_v6 = vld [vmem:[#allocation17 + $0x1ec] ss:$16 sps:$4 sm:$0xff]   ;;  %v2360_v62 = vmax.f32 %v2202_v28, 0.0 }
 0x369   :  { %3049 = vmatprep.mubr.bf16.mxu0 %v6675_v54  ;;  %v2205_v24 = vpop.f32.mrf.mxu0  ;;  %4890 = vmatprep.subr.bf16.mxu1 %v5205_v41 }
 0x36a   :  { %v2362_v42 = vmax.f32 %v2204_v30, 0.0  ;;  %3050 = vmatmul.mubr.bf16.gmra.mxu0 %v6677_v27  ;;  %v2206_v38 = vadd.f32 %v2205_v24, %v6631_v45 }
 0x36b   :  { %3059 = vmatprep.mubr.bf16.mxu0 %v6681_v53  ;;  %3119 = vmatpush1.bf16.msra.mxu0 %v5200_v20  ;;  %v2209_v57 = vpop.f32.mrf.mxu0  ;;  %v5212_v20 = vld [vmem:[#allocation17 + $0x1e8] ss:$16 sps:$4 sm:$0xff]  }
 0x36c   :  { %v2387_v59 = vpack.c.bf16 %v2362_v42, %v2359_v32  ;;  %4906 = vmatpush1.bf16.msra.mxu1 %v5203_v61  ;;  %v4847_v25 = vpop.f32.mrf.mxu1  ;;  %3120 = vmatprep.subr.bf16.mxu0 %v5205_v41  ;;  %v2210_v39 = vadd.f32 %v2209_v57, %v6617_v58  ;;  %v2363_v2 = vmax.f32 %v2206_v38, 0.0  ;;  %v5217_v41 = vld [vmem:[#allocation17 + $0x1cc] ss:$16 sps:$4 sm:$0xff]  }
 0x36d   :  { %v2211_v7 = vpop.f32.mrf.mxu0  ;;  %4891 = vmatprep.subr.bf16.mxu1 %v5208_v52  ;;  %v2313_v33 = vadd.f32 %v4847_v25, %v6637_v36  ;;  %v5220_v42 = vld [vmem:[#allocation17 + $0x1ac] ss:$16 sps:$4 sm:$0xff]  }
 0x36e   :  { %v2304_v19 = vpop.f32.mrf.mxu1  ;;  %4877 = vmatprep.mubr.bf16.mxu1 %v2387_v59  ;;  %v2365_v26 = vmax.f32 %v2210_v39, 0.0  ;;  %v6701_v30 = vpack.c.bf16 %v2363_v2, %v2360_v62  ;;  %v2212_v57 = vadd.f32 %v2211_v7, %v6631_v45  ;;  %v5218_v39 = vld [vmem:[#allocation17 + $0x1a8] ss:$16 sps:$4 sm:$0xff]  }
 0x36f   :  { %3121 = vmatpush1.bf16.msra.mxu0 %v5203_v61  ;;  %v2213_v48 = vpop.f32.mrf.mxu0  ;;  %v2305_v51 = vadd.f32 %v2304_v19, %v6637_v36  ;;  %v2367_v49 = vmax.f32 %v2313_v33, 0.0 }
 0x370   :  { %4907 = vmatpush1.bf16.msra.mxu1 %v5206_v9  ;;  %v2214_v0 = vadd.f32 %v2213_v48, %v6617_v58  ;;  %v4848_v43 = vpop.f32.mrf.mxu1  ;;  %3122 = vmatprep.subr.bf16.mxu0 %v5208_v52  ;;  %v5215_v52 = vld [vmem:[#allocation17 + $0x1c8] ss:$16 sps:$4 sm:$0xff]   ;;  %v5223_v48 = vld [vmem:[#allocation17 + $0x18c] ss:$16 sps:$4 sm:$0xff]   ;;  %v2366_v38 = vmax.f32 %v2212_v57, 0.0 }
 0x371   :  { %v2316_v29 = vadd.f32 %v4848_v43, %v6637_v36  ;;  %v2215_v11 = vpop.f32.mrf.mxu0  ;;  %4892 = vmatprep.subr.bf16.mxu1 %v5211_v47  ;;  %v2361_v5 = vmax.f32 %v2305_v51, 0.0 }
 0x372   :  { %v2368_v21 = vmax.f32 %v2214_v0, 0.0  ;;  %v2307_v44 = vpop.f32.mrf.mxu1  ;;  %3060 = vmatmul.mubr.bf16.gmra.mxu0 %v6688_v22  ;;  %v2216_v61 = vadd.f32 %v2215_v11, %v6631_v45 }
 0x373   :  { %v2308_v37 = vadd.f32 %v2307_v44, %v6637_v36  ;;  %3123 = vmatpush1.bf16.msra.mxu0 %v5206_v9  ;;  %v2219_v18 = vpop.f32.mrf.mxu0  ;;  %v2370_v1 = vmax.f32 %v2316_v29, 0.0 }
 0x374   :  { %v2388_v10 = vpack.c.bf16 %v2368_v21, %v2365_v26  ;;  %4908 = vmatpush1.bf16.msra.mxu1 %v5209_v15  ;;  %3124 = vmatprep.subr.bf16.mxu0 %v5211_v47  ;;  %v2220_v3 = vadd.f32 %v2219_v18, %v6617_v58  ;;  %v2369_v9 = vmax.f32 %v2216_v61, 0.0  ;;  %v5226_v21 = vld [vmem:[#allocation17 + $0x16c] ss:$16 sps:$4 sm:$0xff]  }
 0x375   :  { %v2364_v35 = vmax.f32 %v2308_v37, 0.0  ;;  %v2221_v12 = vpop.f32.mrf.mxu0  ;;  %4893 = vmatprep.subr.bf16.mxu1 %v5214_v6  ;;  %v6705_v50 = vpack.c.bf16 %v2370_v1, %v2367_v49 }
 0x376   :  { %4878 = vmatmul.mubr.bf16.gmra.mxu1 %v2388_v10  ;;  %v2371_v13 = vmax.f32 %v2220_v3, 0.0  ;;  %v2222_v44 = vadd.f32 %v2221_v12, %v6631_v45  ;;  %v5229_v12 = vld [vmem:[#allocation17 + $0x14c] ss:$16 sps:$4 sm:$0xff]  }
 0x377   :  { %v6699_v4 = vpack.c.bf16 %v2364_v35, %v2361_v5  ;;  %3125 = vmatpush1.bf16.msra.mxu0 %v5209_v15  ;;  %v2223_v40 = vpop.f32.mrf.mxu0  ;;  %v6712_v15 = vpack.c.bf16 %v2369_v9, %v2366_v38  ;;  %v5224_v5 = vld [vmem:[#allocation17 + $0x168] ss:$16 sps:$4 sm:$0xff]  }
 0x378   :  { %4909 = vmatpush2.bf16.msra.mxu1 %v5212_v20  ;;  %v2224_v24 = vadd.f32 %v2223_v40, %v6617_v58  ;;  %3126 = vmatprep.subr.bf16.mxu0 %v5214_v6  ;;  %v5221_v6 = vld [vmem:[#allocation17 + $0x188] ss:$16 sps:$4 sm:$0xff]   ;;  %v2372_v3 = vmax.f32 %v2222_v44, 0.0  ;;  %v6776_v44 = vld [vmem:[#allocation2 + $0x10] sm:$0xff] }
 0x379   :  { %3069 = vmatprep.mubr.bf16.mxu0 %v6699_v4  ;;  %v2225_v32 = vpop.f32.mrf.mxu0  ;;  %4894 = vmatprep.subr.bf16.mxu1 %v5217_v41  ;;  %v5233_v9 = vld [vmem:[#allocation17 + $0x108] ss:$16 sps:$4 sm:$0xff]  }
 0x37a   :  { %v2374_v59 = vmax.f32 %v2224_v24, 0.0  ;;  %3070 = vmatmul.mubr.bf16.gmra.mxu0 %v6701_v30  ;;  %v2226_v51 = vadd.f32 %v2225_v32, %v6631_v45  ;;  %v5227_v24 = vld [vmem:[#allocation17 + $0x148] ss:$16 sps:$4 sm:$0xff]   ;;  %v5232_v32 = vld [vmem:[#allocation17 + $0x12c] ss:$16 sps:$4 sm:$0xff]  }
 0x37b   :  { %3079 = vmatprep.mubr.bf16.mxu0 %v6705_v50  ;;  %3127 = vmatpush2.bf16.msra.mxu0 %v5212_v20  ;;  %v2229_v25 = vpop.f32.mrf.mxu0 }
 0x37c   :  { %v2389_v47 = vpack.c.bf16 %v2374_v59, %v2371_v13  ;;  %4910 = vmatpush2.bf16.msra.mxu1 %v5215_v52  ;;  %v4851_v31 = vpop.f32.mrf.mxu1  ;;  %3128 = vmatprep.subr.bf16.mxu0 %v5217_v41  ;;  %v2230_v7 = vadd.f32 %v2229_v25, %v6617_v58  ;;  %v2375_v10 = vmax.f32 %v2226_v51, 0.0  ;;  %v5230_v13 = vld [vmem:[#allocation17 + $0x128] ss:$16 sps:$4 sm:$0xff]  }
 0x37d   :  { %v2231_v19 = vpop.f32.mrf.mxu0  ;;  %4895 = vmatprep.subr.bf16.mxu1 %v5220_v42  ;;  %v2329_v2 = vadd.f32 %v4851_v31, %v6637_v36  ;;  %v6752_v31 = vld [vmem:[%s7555_s17] sm:$0xf] }
 0x37e   :  { %v2320_v0 = vpop.f32.mrf.mxu1  ;;  %4881 = vmatprep.mubr.bf16.mxu1 %v2389_v47  ;;  %v2377_v33 = vmax.f32 %v2230_v7, 0.0  ;;  %v6764_v51 = vrot.slane %v6752_v31, %v6191_v55  ;;  %v6949_v55 = vld [vmem:[#allocation2 + $0xc8] sm:$0xff] }
 0x37f   :  { %3129 = vmatpush2.bf16.msra.mxu0 %v5215_v52  ;;  %v2233_v43 = vpop.f32.mrf.mxu0  ;;  %v2321_v28 = vadd.f32 %v2320_v0, %v6637_v36  ;;  %v2379_v49 = vmax.f32 %v2329_v2, 0.0  ;;  %v6931_v2 = vld [vmem:[#allocation2 + $0xa8] sm:$0xff]  ;;  %7687 = vst [vmem:[#allocation48_spill] sm:$0xff] %v6949_v55 }
 0x380   :  { %4911 = vmatpush2.bf16.msra.mxu1 %v5218_v39  ;;  %v2234_v29 = vadd.f32 %v2233_v43, %v6617_v58  ;;  %v4852_v11 = vpop.f32.mrf.mxu1  ;;  %3130 = vmatprep.subr.bf16.mxu0 %v5220_v42  ;;  %v2232_v42 = vadd.f32 %v2231_v19, %v6631_v45  ;;  %7685 = vst [vmem:[#allocation46_spill] sm:$0xff] %v6931_v2 }
 0x381   :  { %v2332_v26 = vadd.f32 %v4852_v11, %v6637_v36  ;;  %4896 = vmatprep.subr.bf16.mxu1 %v5223_v48  ;;  %v2373_v1 = vmax.f32 %v2321_v28, 0.0  ;;  %v2235_v41 = vpop.f32.mrf.mxu0 }
 0x382   :  { %v2380_v37 = vmax.f32 %v2234_v29, 0.0  ;;  %v2323_v18 = vpop.f32.mrf.mxu1  ;;  %3080 = vmatmul.mubr.bf16.gmra.mxu0 %v6712_v15  ;;  %v2236_v61 = vadd.f32 %v2235_v41, %v6631_v45  ;;  %v2378_v59 = vmax.f32 %v2232_v42, 0.0  ;;  %v6739_v45 = vld [vmem:[%s7553_s15] ss:$0 sm:$0xff] }
 0x383   :  { %v2324_v58 = vadd.f32 %v2323_v18, %v6637_v36  ;;  %3131 = vmatpush2.bf16.msra.mxu0 %v5218_v39  ;;  %v2382_v35 = vmax.f32 %v2332_v26, 0.0  ;;  %v2587_v36 = vpack.c.bf16 %v2375_v10, %v2372_v3  ;;  %v6766_v29 = vld [vmem:[#allocation2] sm:$0xff]  ;;  %v6968_v18 = vld [vmem:[#allocation2 + $0xe8] sm:$0xff] }
 0x384   :  { %v2390_v20 = vpack.c.bf16 %v2380_v37, %v2377_v33  ;;  %4912 = vmatpush2.bf16.msra.mxu1 %v5221_v6  ;;  %3132 = vmatprep.subr.bf16.mxu0 %v5223_v48  ;;  %v2381_v57 = vmax.f32 %v2236_v61, 0.0  ;;  %v5365_v48 = vld [vmem:[%s7648_s23] sm:$0xff]  ;;  %v3399_v11 = vunpack.c.l.bf16 %v6766_v29  ;;  %v3400_v28 = vunpack.c.h.bf16 %v6766_v29 }
 0x385   :  { %v2376_v62 = vmax.f32 %v2324_v58, 0.0  ;;  %4897 = vmatprep.subr.bf16.mxu1 %v5226_v21  ;;  %v2590_v52 = vpack.c.bf16 %v2382_v35, %v2379_v49  ;;  %v6780_v37 = vld [vmem:[#allocation2 + $0x20] sm:$0xff]  ;;  %v5369_v58 = vld [vmem:[%s7648_s23 + $0x18] sm:$0xff]  ;;  %v5371_v35 = vld [vmem:[%s7648_s23 + $0x8] sm:$0xff] }
 0x386   :  { %4882 = vmatmul.mubr.bf16.gmra.mxu1 %v2390_v20  ;;  %v2589_v25 = vpack.c.bf16 %v2381_v57, %v2378_v59  ;;  %v6914_v57 = vld [vmem:[#allocation2 + $0x38] sm:$0xff]  ;;  %v7692_v2 = vunpack.c.h.bf16 %v6780_v37 }
 0x387   :  { %v2588_v40 = vpack.c.bf16 %v2376_v62, %v2373_v1  ;;  %3133 = vmatpush2.bf16.msra.mxu0 %v5221_v6  ;;  %3162 = vmatprep.mubr.bf16.mxu1 %v6675_v54  ;;  %v5235_v54 = vld [vmem:[#allocation17 + $0x10c] ss:$16 sps:$4 sm:$0xff]   ;;  %v6771_v6 = vrot.slane %v6752_v31, %v6197_v14 }
 0x388   :  { %4913 = vmatpush2.bf16.msra.mxu1 %v5224_v5  ;;  %3134 = vmatprep.subr.bf16.mxu0 %v5226_v21 }
 0x389   :  { %3089 = vmatprep.mubr.bf16.mxu0 %v2588_v40  ;;  %4898 = vmatprep.subr.bf16.mxu1 %v5229_v12 }
 0x38a   :  { %3090 = vmatmul.mubr.bf16.gmra.mxu0 %v2587_v36 }
 0x38b   :  { %3099 = vmatprep.mubr.bf16.mxu0 %v2590_v52  ;;  %3135 = vmatpush2.bf16.msra.mxu0 %v5224_v5  ;;  %v6789_v5 = vld [vmem:[#allocation2 + $0x30] sm:$0xff] }
 0x38c   :  { %4914 = vmatpush2.bf16.msra.mxu1 %v5227_v24  ;;  %3136 = vmatprep.subr.bf16.mxu0 %v5229_v12  ;;  %v6796_v12 = vld [vmem:[#allocation2 + $0x40] sm:$0xff] }
 0x38d   :  { %4899 = vmatprep.subr.bf16.mxu1 %v5232_v32 }
 0x38f   :  { %3137 = vmatpush2.bf16.msra.mxu0 %v5227_v24 }
 0x390   :  { %4915 = vmatpush2.bf16.msra.mxu1 %v5230_v13  ;;  %3138 = vmatprep.subr.bf16.mxu0 %v5232_v32  ;;  %v6806_v32 = vld [vmem:[#allocation2 + $0x60] sm:$0xff] }
 0x391   :  { %4900 = vmatprep.subr.bf16.mxu1 %v5235_v54 }
 0x392   :  { %3100 = vmatmul.mubr.bf16.gmra.mxu0 %v2589_v25 }
 0x393   :  { %3139 = vmatpush2.bf16.msra.mxu0 %v5230_v13  ;;  %3142 = vmatprep.mubr.bf16.mxu0 %v6650_v8  ;;  %v6810_v13 = vld [vmem:[#allocation2 + $0x70] sm:$0xff] }
 0x394   :  { %4916 = vmatpush2.bf16.msra.mxu1 %v5233_v9  ;;  %3140 = vmatprep.subr.bf16.mxu0 %v5235_v54  ;;  %v6876_v54 = vld [vmem:[#allocation2 + $0x58] sm:$0xff] }
 0x397   :  { %3163 = vmatmul.mubr.bf16.vlgmr.msra.gmra.mxu1 %v6677_v27  ;;  %3141 = vmatpush2.bf16.msra.mxu0 %v5233_v9 }
 0x398   :  { %3172 = vmatprep.mubr.bf16.mxu1 %v6681_v53 }
 0x39a   :  { %3143 = vmatmul.mubr.bf16.vlgmr.msra.gmra.mxu0 %v6652_v23 }
 0x39b   :  { %3152 = vmatprep.mubr.bf16.mxu0 %v6656_v16 }
 0x39f   :  { %3173 = vmatmul.mubr.bf16.gmra.mxu1 %v6688_v22 }
 0x3a0   :  { %3182 = vmatprep.mubr.bf16.mxu1 %v6699_v4 }
 0x3a2   :  { %3153 = vmatmul.mubr.bf16.gmra.mxu0 %v6664_v17 }
 0x3a7   :  { %3183 = vmatmul.mubr.bf16.gmra.mxu1 %v6701_v30 }
 0x3a8   :  { %3192 = vmatprep.mubr.bf16.mxu1 %v6705_v50  ;;  %v5364_v50 = vld [vmem:[%s7648_s23 + $0x10] sm:$0xff] }
 0x3af   :  { %3193 = vmatmul.mubr.bf16.gmra.mxu1 %v6712_v15 }
 0x3b0   :  { %3202 = vmatprep.mubr.bf16.mxu1 %v2588_v40  ;;  %v6800_v40 = vld [vmem:[#allocation2 + $0x50] sm:$0xff] }
 0x3b7   :  { %3203 = vmatmul.mubr.bf16.gmra.mxu1 %v2587_v36  ;;  %v6907_v36 = vld [vmem:[#allocation2 + $0x78] sm:$0xff] }
 0x3b8   :  { %3212 = vmatprep.mubr.bf16.mxu1 %v2590_v52  ;;  %v6904_v52 = vld [vmem:[#allocation2 + $0x28] sm:$0xff] }
 0x3bf   :  { %3213 = vmatmul.mubr.bf16.gmra.mxu1 %v2589_v25  ;;  %v6814_v25 = vld [vmem:[#allocation2 + $0x80] sm:$0xff] }
 0x416   :  { %v4871_v8 = vpop.f32.mrf.mxu1 }
 0x417   :  { %v2505_v23 = vadd.f32 %v4871_v8, %v6739_v45 }
 0x418   :  { %v2496_v16 = vpop.f32.mrf.mxu1 }
 0x419   :  { %v2561_v17 = vmax.f32 %v2505_v23, 0.0  ;;  %v2497_v27 = vadd.f32 %v6739_v45, %v2496_v16 }
 0x41a   :  { %v6743_v53 = vpop.f32.mrf.mxu0  ;;  %v4872_v22 = vpop.f32.mrf.mxu1 }
 0x41b   :  { %v2559_v4 = vmax.f32 %v2497_v27, 0.0  ;;  %v2508_v30 = vadd.f32 %v4872_v22, %v6739_v45  ;;  %v3321_v47 = vsub.f32 %v5364_v50, %v2561_v17  ;;  %v6820_v27 = vld [vmem:[#allocation2 + $0x90] sm:$0xff]  ;;  %v6825_v50 = vld [vmem:[#allocation2 + $0xa0] sm:$0xff] }
 0x41c   :  { %v6754_v39 = vpop.f32.mrf.mxu0  ;;  %v2499_v19 = vpop.f32.mrf.mxu1 }
 0x41d   :  { %v3319_v38 = vsub.f32 %v5365_v48, %v2559_v4  ;;  %v2562_v7 = vmax.f32 %v2508_v30, 0.0  ;;  %v2500_v0 = vadd.f32 %v6739_v45, %v2499_v19  ;;  %v3337_v15 = vmul.f32 %v3321_v47, %v3321_v47  ;;  %v6829_v48 = vld [vmem:[#allocation2 + $0xb0] sm:$0xff] }
 0x41e   :  { %v6760_v43 = vpop.f32.mrf.mxu0  ;;  %v2671_v30 = vsub.s32 3, %v6188_v46  ;;  %v6890_v46 = vld [vmem:[#allocation2 + $0x18] sm:$0xff] }
 0x41f   :  { %v2560_v26 = vmax.f32 %v2500_v0, 0.0  ;;  %3355 = vadd.xlane.f32.xlu0 %v3337_v15  ;;  %v3335_v14 = vmul.f32 %v3319_v38, %v3319_v38  ;;  %v3322_v10 = vsub.f32 %v5369_v58, %v2562_v7  ;;  %v6844_v38 = vld [vmem:[#allocation2 + $0xe0] sm:$0xff]  ;;  %v6863_v7 = vld [vmem:[#allocation2 + $0x48] sm:$0xff] }
 0x420   :  { %v6774_v21 = vpop.f32.mrf.mxu0  ;;  %7682 = vst [vmem:[#allocation43_spill] sm:$0xff] %v6844_v38  ;;  %v6860_v19 = vrot.slane %v6752_v31, %v2671_v30  ;;  %v6873_v30 = vld [vmem:[#allocation2 + $0x8] sm:$0xff] }
 0x421   :  { %v3320_v41 = vsub.f32 %v5371_v35, %v2560_v26  ;;  %v3338_v23 = vmul.f32 %v3322_v10, %v3322_v10  ;;  %v6840_v35 = vld [vmem:[#allocation2 + $0xd0] sm:$0xff] }
 0x422   :  { %v6787_v20 = vpop.f32.mrf.mxu0 }
 0x423   :  { %3351 = vadd.xlane.f32.xlu0 %v3335_v14  ;;  %v3336_v24 = vmul.f32 %v3320_v41, %v3320_v41  ;;  %v6836_v14 = vld [vmem:[#allocation2 + $0xc0] sm:$0xff]  ;;  %v6856_v41 = vld [vmem:[#allocation2 + $0xf0] sm:$0xff]  ;;  %v3042_v29 = vadd.f32 %v6787_v20, %v6764_v51 }
 0x424   :  { %v6803_v61 = vpop.f32.mrf.mxu0  ;;  %7683 = vst [vmem:[#allocation44_spill] sm:$0xff] %v6856_v41 }
 0x425   :  { %3353 = vadd.xlane.f32.xlu1 %v3336_v24  ;;  %v3231_v41 = vmax.f32 %v3042_v29, 0.0 }
 0x426   :  { %v6818_v16 = vpop.f32.mrf.mxu0  ;;  %v4875_v17 = vpop.f32.mrf.mxu1 }
 0x427   :  { %v2521_v0 = vadd.f32 %v4875_v17, %v6739_v45  ;;  %3357 = vadd.xlane.f32.xlu0 %v3338_v23  ;;  %v6851_v23 = vrot.slane %v6752_v31, %v1992_v34  ;;  %v3032_v34 = vadd.f32 %v6743_v53, %v6764_v51  ;;  %v6917_v53 = vld [vmem:[#allocation2 + $0x88] sm:$0xff] }
 0x428   :  { %v6834_v15 = vpop.f32.mrf.mxu0  ;;  %v2512_v26 = vpop.f32.mrf.mxu1 }
 0x429   :  { %v2565_v58 = vmax.f32 %v2521_v0, 0.0  ;;  %v2513_v10 = vadd.f32 %v6739_v45, %v2512_v26  ;;  %v5385_v26 = vld [vmem:[%s7648_s23 + $0x30] sm:$0xff]  ;;  %v3034_v0 = vadd.f32 %v6754_v39, %v6771_v6  ;;  %v5390_v39 = vld [vmem:[%s7648_s23 + $0x38] sm:$0xff] }
 0x42a   :  { %v6854_v47 = vpop.f32.mrf.mxu0  ;;  %v4876_v22 = vpop.f32.mrf.mxu1 }
 0x42b   :  { %v2524_v17 = vadd.f32 %v4876_v22, %v6739_v45  ;;  %v3325_v4 = vsub.f32 %v5385_v26, %v2565_v58  ;;  %v2563_v9 = vmax.f32 %v2513_v10, 0.0  ;;  %v5388_v26 = vld [vmem:[%s7648_s23 + $0x20] sm:$0xff]  ;;  %v6897_v58 = vld [vmem:[#allocation2 + $0x68] sm:$0xff]  ;;  %v3224_v3 = vmax.f32 %v3034_v0, 0.0 }
 0x42c   :  { %v6871_v24 = vpop.f32.mrf.mxu0  ;;  %v2515_v31 = vpop.f32.mrf.mxu1  ;;  %v3052_v56 = vadd.f32 %v6854_v47, %v6764_v51 }
 0x42d   :  { %v2566_v8 = vmax.f32 %v2524_v17, 0.0  ;;  %v3341_v10 = vmul.f32 %v3325_v4, %v3325_v4  ;;  %v3323_v59 = vsub.f32 %v5388_v26, %v2563_v9  ;;  %v2516_v4 = vadd.f32 %v6739_v45, %v2515_v31 }
 0x42e   :  { %v6887_v22 = vpop.f32.mrf.mxu0 }
 0x42f   :  { %v3326_v17 = vsub.f32 %v5390_v39, %v2566_v8  ;;  %3363 = vadd.xlane.f32.xlu1 %v3341_v10  ;;  %v3223_v39 = vmax.f32 %v3032_v34, 0.0  ;;  %v2564_v1 = vmax.f32 %v2516_v4, 0.0  ;;  %v3339_v9 = vmul.f32 %v3323_v59, %v3323_v59  ;;  %v5396_v34 = vld [vmem:[%s7648_s23 + $0x28] sm:$0xff]  ;;  %v6925_v4 = vld [vmem:[#allocation2 + $0x98] sm:$0xff] }
 0x430   :  { %v6901_v26 = vpop.f32.mrf.mxu0  ;;  %7684 = vst [vmem:[#allocation45_spill] sm:$0xff] %v6925_v4  ;;  %v3464_v10 = vsub.f32 %v3400_v28, %v3224_v3  ;;  %v3038_v59 = vadd.f32 %v6774_v21, %v6771_v6  ;;  %v3048_v28 = vadd.f32 %v6834_v15, %v6771_v6  ;;  %v3054_v3 = vadd.f32 %v6871_v24, %v6771_v6 }
 0x431   :  { %v3342_v42 = vmul.f32 %v3326_v17, %v3326_v17  ;;  %v3324_v0 = vsub.f32 %v5396_v34, %v2564_v1  ;;  %v3463_v17 = vsub.f32 %v3399_v11, %v3223_v39  ;;  %v6964_v34 = vld [vmem:[#allocation2 + $0xd8] sm:$0xff]  ;;  %v3046_v24 = vadd.f32 %v6818_v16, %v6764_v51 }
 0x432   :  { %v6911_v49 = vpop.f32.mrf.mxu0  ;;  %7688 = vst [vmem:[#allocation49_spill] sm:$0xff] %v6964_v34  ;;  %v3528_v33 = vmul.f32 %v3464_v10, %v3464_v10  ;;  %v3228_v60 = vmax.f32 %v3038_v59, 0.0  ;;  %v3236_v38 = vmax.f32 %v3048_v28, 0.0  ;;  %v5403_v10 = vld [vmem:[%s7648_s23 + $0x50] sm:$0xff]  ;;  %v3240_v59 = vmax.f32 %v3054_v3, 0.0 }
 0x433   :  { %3365 = vadd.xlane.f32.xlu0 %v3342_v42  ;;  %3359 = vadd.xlane.f32.xlu1 %v3339_v9  ;;  %v6935_v42 = vld [vmem:[#allocation2 + $0xb8] sm:$0xff]  ;;  %v3036_v9 = vadd.f32 %v6760_v43, %v6764_v51  ;;  %v3340_v62 = vmul.f32 %v3324_v0, %v3324_v0  ;;  %v3044_v43 = vadd.f32 %v6803_v61, %v6771_v6  ;;  %v7689_v61 = vunpack.c.l.bf16 %v6776_v44 }
 0x434   :  { %v6928_v31 = vpop.f32.mrf.mxu0  ;;  %7686 = vst [vmem:[#allocation47_spill] sm:$0xff] %v6935_v42  ;;  %v3527_v15 = vmul.f32 %v3463_v17, %v3463_v17  ;;  %v3056_v16 = vadd.f32 %v6887_v22, %v6764_v51  ;;  %v3058_v29 = vadd.f32 %v6901_v26, %v6771_v6  ;;  %v3239_v3 = vmax.f32 %v3052_v56, 0.0 }
 0x435   :  { %v3232_v34 = vmax.f32 %v3044_v43, 0.0  ;;  %v3062_v43 = vadd.f32 %v6911_v49, %v6764_v51  ;;  %v7690_v42 = vunpack.c.h.bf16 %v6776_v44  ;;  %v7693_v56 = vunpack.c.h.bf16 %v6789_v5 }
 0x436   :  { %v6946_v8 = vpop.f32.mrf.mxu0  ;;  %v4879_v1 = vpop.f32.mrf.mxu1 }
 0x437   :  { %v2537_v21 = vadd.f32 %v4879_v1, %v6739_v45  ;;  %3361 = vadd.xlane.f32.xlu0 %v3340_v62  ;;  %v3227_v1 = vmax.f32 %v3036_v9, 0.0  ;;  %v3472_v49 = vsub.f32 %v7692_v2, %v3232_v34  ;;  %v7695_v34 = vunpack.c.l.bf16 %v6789_v5 }
 0x438   :  { %v6962_v39 = vpop.f32.mrf.mxu0  ;;  %v2528_v0 = vpop.f32.mrf.mxu1  ;;  %v7019_v5 = vadd.f32 %v3528_v33, %v3527_v15 }
 0x439   :  { %v2569_v62 = vmax.f32 %v2537_v21, 0.0  ;;  %v2529_v63 = vadd.f32 %v6739_v45, %v2528_v0  ;;  %v3467_v55 = vsub.f32 %v7689_v61, %v3227_v1  ;;  %v3468_v61 = vsub.f32 %v7690_v42, %v3228_v60  ;;  %v5405_v60 = vld [vmem:[%s7648_s23 + $0x58] sm:$0xff] }
 0x43a   :  { %v6976_v11 = vpop.f32.mrf.mxu0  ;;  %v4880_v20 = vpop.f32.mrf.mxu1  ;;  %v7691_v1 = vunpack.c.l.bf16 %v6780_v37  ;;  %v3536_v4 = vmul.f32 %v3472_v49, %v3472_v49  ;;  %v7698_v49 = vunpack.c.h.bf16 %v6800_v40 }
 0x43b   :  { %v3329_v17 = vsub.f32 %v5403_v10, %v2569_v62  ;;  %v2567_v9 = vmax.f32 %v2529_v63, 0.0  ;;  %v2540_v47 = vadd.f32 %v4880_v20, %v6739_v45  ;;  %v3235_v62 = vmax.f32 %v3046_v24, 0.0  ;;  %v5404_v63 = vld [vmem:[%s7648_s23 + $0x40] sm:$0xff] }
 0x43c   :  { %v3073_v21 = vpop.f32.mrf.mxu0  ;;  %v2531_v0 = vpop.f32.mrf.mxu1  ;;  %v3471_v26 = vsub.f32 %v7691_v1, %v3231_v41  ;;  %v3244_v41 = vmax.f32 %v3058_v29, 0.0  ;;  %v3247_v1 = vmax.f32 %v3062_v43, 0.0  ;;  %v5406_v29 = vld [vmem:[%s7648_s23 + $0x48] sm:$0xff] }
 0x43d   :  { %v3345_v28 = vmul.f32 %v3329_v17, %v3329_v17  ;;  %v3327_v22 = vsub.f32 %v5404_v63, %v2567_v9  ;;  %v2570_v20 = vmax.f32 %v2540_v47, 0.0  ;;  %v2532_v24 = vadd.f32 %v6739_v45, %v2531_v0 }
 0x43e   :  { %v6993_v10 = vpop.f32.mrf.mxu0  ;;  %v3476_v17 = vsub.f32 %v7693_v56, %v3236_v38  ;;  %v7694_v9 = vunpack.c.h.bf16 %v6796_v12  ;;  %v3243_v63 = vmax.f32 %v3056_v16, 0.0  ;;  %v3475_v0 = vsub.f32 %v7695_v34, %v3235_v62 }
 0x43f   :  { %3371 = vadd.xlane.f32.xlu1 %v3345_v28  ;;  %v3330_v44 = vsub.f32 %v5405_v60, %v2570_v20  ;;  %v3343_v37 = vmul.f32 %v3327_v22, %v3327_v22  ;;  %v2568_v2 = vmax.f32 %v2532_v24, 0.0  ;;  %v7696_v28 = vunpack.c.l.bf16 %v6796_v12 }
 0x440   :  { %v3480_v47 = vsub.f32 %v7694_v9, %v3240_v59  ;;  %v3077_v42 = vpop.f32.mrf.mxu0  ;;  %v3064_v59 = vadd.f32 %v6928_v31, %v6771_v6  ;;  %v3532_v9 = vmul.f32 %v3468_v61, %v3468_v61  ;;  %v3540_v62 = vmul.f32 %v3476_v17, %v3476_v17 }
 0x441   :  { %v3479_v38 = vsub.f32 %v7696_v28, %v3239_v3  ;;  %v3346_v16 = vmul.f32 %v3330_v44, %v3330_v44  ;;  %v3328_v43 = vsub.f32 %v5406_v29, %v2568_v2  ;;  %v7697_v3 = vunpack.c.l.bf16 %v6800_v40 }
 0x442   :  { %v3081_v56 = vpop.f32.mrf.mxu0  ;;  %v3544_v12 = vmul.f32 %v3480_v47, %v3480_v47  ;;  %v3531_v24 = vmul.f32 %v3467_v55, %v3467_v55  ;;  %v3535_v61 = vmul.f32 %v3471_v26, %v3471_v26  ;;  %v3484_v60 = vsub.f32 %v7698_v49, %v3244_v41 }
 0x443   :  { %3367 = vadd.xlane.f32.xlu1 %v3343_v37  ;;  %v3483_v20 = vsub.f32 %v7697_v3, %v3243_v63  ;;  %3373 = vadd.xlane.f32.xlu0 %v3346_v16  ;;  %v7699_v44 = vunpack.c.l.bf16 %v6806_v32  ;;  %v3539_v37 = vmul.f32 %v3475_v0, %v3475_v0  ;;  %v3543_v34 = vmul.f32 %v3479_v38, %v3479_v38 }
 0x444   :  { %v3083_v31 = vpop.f32.mrf.mxu0  ;;  %v3248_v28 = vmax.f32 %v3064_v59, 0.0  ;;  %v3344_v33 = vmul.f32 %v3328_v43, %v3328_v43  ;;  %v7027_v47 = vadd.f32 %v3532_v9, %v3531_v24  ;;  %v7029_v29 = vadd.f32 %v3536_v4, %v3535_v61 }
 0x445   :  { %v3487_v2 = vsub.f32 %v7699_v44, %v3247_v1  ;;  %v3068_v55 = vadd.f32 %v6962_v39, %v6771_v6  ;;  %v7034_v40 = vadd.f32 %v3540_v62, %v3539_v37  ;;  %v7036_v63 = vadd.f32 %v3544_v12, %v3543_v34 }
 0x446   :  { %v3085_v15 = vpop.f32.mrf.mxu0  ;;  %v4883_v17 = vpop.f32.mrf.mxu1  ;;  %v7038_v41 = vmul.f32 %v3483_v20, %v3483_v20  ;;  %v3074_v1 = vadd.f32 %v3073_v21, %v6771_v6  ;;  %v7041_v59 = vmul.f32 %v3484_v60, %v3484_v60  ;;  %v3066_v39 = vadd.f32 %v6946_v8, %v6764_v51  ;;  %v5407_v8 = vld [vmem:[%s7648_s23 + $0x70] sm:$0xff] }
 0x447   :  { %v2553_v26 = vadd.f32 %v4883_v17, %v6739_v45  ;;  %3369 = vadd.xlane.f32.xlu0 %v3344_v33  ;;  %v7043_v4 = vmul.f32 %v3487_v2, %v3487_v2  ;;  %v7700_v9 = vunpack.c.h.bf16 %v6806_v32  ;;  %v3072_v62 = vadd.f32 %v6976_v11, %v6764_v51 }
 0x448   :  { %v3087_v0 = vpop.f32.mrf.mxu0  ;;  %v2544_v38 = vpop.f32.mrf.mxu1  ;;  %v3078_v12 = vadd.f32 %v3077_v42, %v6771_v6  ;;  %v3252_v24 = vmax.f32 %v3068_v55, 0.0  ;;  %v3084_v61 = vadd.f32 %v3083_v31, %v6771_v6  ;;  %v3256_v60 = vmax.f32 %v3074_v1, 0.0  ;;  %v5408_v1 = vld [vmem:[%s7648_s23 + $0x60] sm:$0xff] }
 0x449   :  { %v2573_v16 = vmax.f32 %v2553_v26, 0.0  ;;  %v3488_v43 = vsub.f32 %v7700_v9, %v3248_v28  ;;  %v2545_v21 = vadd.f32 %v6739_v45, %v2544_v38  ;;  %v3076_v11 = vadd.f32 %v6993_v10, %v6764_v51 }
 0x44a   :  { %v3091_v3 = vpop.f32.mrf.mxu0  ;;  %v4884_v20 = vpop.f32.mrf.mxu1  ;;  %v3082_v42 = vadd.f32 %v3081_v56, %v6764_v51  ;;  %v3251_v34 = vmax.f32 %v3066_v39, 0.0  ;;  %v3088_v31 = vadd.f32 %v3087_v0, %v6771_v6  ;;  %v3255_v17 = vmax.f32 %v3072_v62, 0.0  ;;  %v5409_v39 = vld [vmem:[%s7648_s23 + $0x78] sm:$0xff] }
 0x44b   :  { %v3333_v49 = vsub.f32 %v5407_v8, %v2573_v16  ;;  %v2556_v32 = vadd.f32 %v4884_v20, %v6739_v45  ;;  %v2571_v44 = vmax.f32 %v2545_v21, 0.0  ;;  %v3260_v55 = vmax.f32 %v3078_v12, 0.0 }
 0x44c   :  { %v3093_v2 = vpop.f32.mrf.mxu0  ;;  %v2547_v37 = vpop.f32.mrf.mxu1  ;;  %v3086_v26 = vadd.f32 %v3085_v15, %v6764_v51  ;;  %v3264_v16 = vmax.f32 %v3084_v61, 0.0  ;;  %v3092_v56 = vadd.f32 %v3091_v3, %v6764_v51  ;;  %v7701_v62 = vunpack.c.h.bf16 %v6810_v13 }
 0x44d   :  { %v3349_v28 = vmul.f32 %v3333_v49, %v3333_v49  ;;  %v2574_v33 = vmax.f32 %v2556_v32, 0.0  ;;  %v3331_v38 = vsub.f32 %v5408_v1, %v2571_v44  ;;  %v2548_v0 = vadd.f32 %v6739_v45, %v2547_v37 }
 0x44e   :  { %v3095_v10 = vpop.f32.mrf.mxu0  ;;  %v3492_v15 = vsub.f32 %v7701_v62, %v3252_v24  ;;  %v7702_v12 = vunpack.c.h.bf16 %v6814_v25  ;;  %v3259_v20 = vmax.f32 %v3076_v11, 0.0  ;;  %v3263_v8 = vmax.f32 %v3082_v42, 0.0 }
 0x44f   :  { %v3334_v9 = vsub.f32 %v5409_v39, %v2574_v33  ;;  %3379 = vadd.xlane.f32.xlu1 %v3349_v28  ;;  %v3268_v61 = vmax.f32 %v3088_v31, 0.0  ;;  %v3347_v32 = vmul.f32 %v3331_v38, %v3331_v38  ;;  %v2572_v44 = vmax.f32 %v2548_v0, 0.0  ;;  %v5410_v38 = vld [vmem:[%s7648_s23 + $0x68] sm:$0xff]  ;;  %s5666_s23 = smov [#allocation19]  }
 0x450   :  { %v3496_v21 = vsub.f32 %v7702_v12, %v3256_v60  ;;  %v3097_v49 = vpop.f32.mrf.mxu0  ;;  %v7703_v1 = vunpack.c.l.bf16 %v6810_v13  ;;  %v7704_v33 = vunpack.c.l.bf16 %v6814_v25  ;;  %v7705_v37 = vunpack.c.h.bf16 %v6820_v27  ;;  %s4353_s6 = sshll.u32 %s5666_s23, 4  ;;  %s4354_s6 = int_to_ptr.vmem [resolvable:$true] %s4353_s6 }
 0x451   :  { %v3350_v3 = vmul.f32 %v3334_v9, %v3334_v9  ;;  %v3267_v24 = vmax.f32 %v3086_v26, 0.0  ;;  %v7706_v60 = vunpack.c.h.bf16 %v6825_v50  ;;  %v3271_v42 = vmax.f32 %v3092_v56, 0.0  ;;  %s5612_s26 = scalar_lea.vmem %s4354_s6, 2048  ;;  %p5617_p9 = scmp.lt.s32.totalorder %s4354_s6, %s4354_s6 }
 0x452   :  { %v3491_v22 = vsub.f32 %v7703_v1, %v3251_v34  ;;  %v3495_v45 = vsub.f32 %v7704_v33, %v3255_v17  ;;  %v3500_v28 = vsub.f32 %v7705_v37, %v3260_v55  ;;  %v3101_v39 = vpop.f32.mrf.mxu0  ;;  %v3094_v31 = vadd.f32 %v3093_v2, %v6771_v6  ;;  %p5613_p8 = scmp.ne.s32.totalorder %s4354_s6, %s5612_s26  ;;  %p5618_p10 = scmp.lt.s32.totalorder %s5612_s26, %s5612_s26 }
 0x453   :  { %v3504_v11 = vsub.f32 %v7706_v60, %v3264_v16  ;;  %v3332_v13 = vsub.f32 %v5410_v38, %v2572_v44  ;;  %3375 = vadd.xlane.f32.xlu1 %v3347_v32  ;;  %3381 = vadd.xlane.f32.xlu0 %v3350_v3  ;;  %v3552_v25 = vmul.f32 %v3488_v43, %v3488_v43  ;;  %v7707_v55 = vunpack.c.l.bf16 %v6820_v27 }
 0x454   :  { %v3556_v34 = vmul.f32 %v3492_v15, %v3492_v15  ;;  %v3560_v17 = vmul.f32 %v3496_v21, %v3496_v21  ;;  %v7089_v9 = vpop.f32.mrf.mxu0  ;;  %v7708_v16 = vunpack.c.l.bf16 %v6825_v50  ;;  %v7709_v2 = vunpack.c.h.bf16 %v6829_v48  ;;  %p5619_p11 = por %p5618_p10, %p5617_p9 }
 0x455   :  { %v3499_v26 = vsub.f32 %v7707_v55, %v3259_v20  ;;  %v3348_v62 = vmul.f32 %v3332_v13, %v3332_v13  ;;  %v3096_v12 = vadd.f32 %v3095_v10, %v6764_v51  ;;  %v7098_v32 = vadd.f32 %v7041_v59, %v7038_v41 }
 0x456   :  { %v3503_v56 = vsub.f32 %v7708_v16, %v3263_v8  ;;  %v3508_v0 = vsub.f32 %v7709_v2, %v3268_v61  ;;  %v3555_v43 = vmul.f32 %v3491_v22, %v3491_v22  ;;  %v3564_v15 = vmul.f32 %v3500_v28, %v3500_v28  ;;  %v7102_v20 = vpop.f32.mrf.mxu0  ;;  %p5620_p12 = pnand %p5619_p11, %p5613_p8 }
 0x457   :  { %v7710_v27 = vunpack.c.l.bf16 %v6829_v48  ;;  %v3559_v3 = vmul.f32 %v3495_v45, %v3495_v45  ;;  %v3568_v50 = vmul.f32 %v3504_v11, %v3504_v11  ;;  %v7711_v8 = vunpack.c.l.bf16 %v6836_v14  ;;  %v3164_v1 = vpop.f32.mrf.mxu1  ;;  %3377 = vadd.xlane.f32.xlu0 %v3348_v62 }
 0x458   :  { %v3272_v61 = vmax.f32 %v3094_v31, 0.0  ;;  %v7107_v10 = vadd.f32 %v3552_v25, %v7043_v4  ;;  %v7109_v41 = vadd.f32 %v3556_v34, %v3555_v43  ;;  %v3563_v22 = vmul.f32 %v3499_v26, %v3499_v26  ;;  %v7112_v48 = vpop.f32.mrf.mxu0 }
 0x459   :  { %v3507_v21 = vsub.f32 %v7710_v27, %v3267_v24  ;;  %v3511_v44 = vsub.f32 %v7711_v8, %v3271_v42  ;;  %v3165_v59 = vadd.f32 %v3164_v1, %v6851_v23  ;;  %v7114_v33 = vadd.f32 %v3560_v17, %v3559_v3  ;;  %v3166_v24 = vpop.f32.mrf.mxu1 }
 0x45a   :  { %v3567_v45 = vmul.f32 %v3503_v56, %v3503_v56  ;;  %v3572_v37 = vmul.f32 %v3508_v0, %v3508_v0  ;;  %v3275_v28 = vmax.f32 %v3096_v12, 0.0  ;;  %v7116_v60 = vadd.f32 %v3564_v15, %v3563_v22  ;;  %v3144_v31 = vpop.f32.mrf.mxu0 }
 0x45b   :  { %v3571_v11 = vmul.f32 %v3507_v21, %v3507_v21  ;;  %v3241_v42 = vmax.f32 %v3165_v59, 0.0  ;;  %v3167_v4 = vadd.f32 %v3166_v24, %v6860_v19  ;;  %v7121_v13 = vmul.f32 %v3511_v44, %v3511_v44  ;;  %v3168_v55 = vpop.f32.mrf.mxu1 }
 0x45c   :  { %v7119_v38 = vadd.f32 %v3568_v50, %v3567_v45  ;;  %v7712_v25 = vunpack.c.h.bf16 %v6836_v14  ;;  %v3145_v17 = vadd.f32 %v3144_v31, %v6851_v23  ;;  %v7127_v26 = vadd.f32 %v3097_v49, %v6771_v6  ;;  %v3146_v62 = vpop.f32.mrf.mxu0 }
 0x45d   :  { %v7713_v16 = vunpack.c.l.bf16 %v6863_v7  ;;  %v3242_v2 = vmax.f32 %v3167_v4, 0.0  ;;  %v3169_v0 = vadd.f32 %v3168_v55, %v6851_v23  ;;  %v7132_v12 = vadd.f32 %v3572_v37, %v3571_v11  ;;  %v3170_v21 = vpop.f32.mrf.mxu1 }
 0x45e   :  { %v3512_v34 = vsub.f32 %v7712_v25, %v3272_v61  ;;  %v7714_v43 = vunpack.c.l.bf16 %v6840_v35  ;;  %v7139_v14 = vadd.f32 %v3101_v39, %v6764_v51  ;;  %v3225_v27 = vmax.f32 %v3145_v17, 0.0  ;;  %v3148_v61 = vpop.f32.mrf.mxu0 }
 0x45f   :  { %v3481_v56 = vsub.f32 %v7713_v16, %v3241_v42  ;;  %v7715_v3 = vunpack.c.h.bf16 %v6863_v7  ;;  %v3245_v8 = vmax.f32 %v3169_v0, 0.0  ;;  %v3147_v44 = vadd.f32 %v3146_v62, %v6860_v19  ;;  %v3174_v37 = vpop.f32.mrf.mxu1 }
 0x460   :  { %v7136_v15 = vsub.f32 %v7714_v43, %v3275_v28  ;;  %v7144_v1 = vmul.f32 %v3512_v34, %v3512_v34  ;;  %v7716_v22 = vunpack.c.l.bf16 %v6873_v30  ;;  %v3171_v45 = vadd.f32 %v3170_v21, %v6860_v19  ;;  %v3150_v4 = vpop.f32.mrf.mxu0 }
 0x461   :  { %v3545_v49 = vmul.f32 %v3481_v56, %v3481_v56  ;;  %v3482_v50 = vsub.f32 %v7715_v3, %v3242_v2  ;;  %v3149_v39 = vadd.f32 %v3148_v61, %v6851_v23  ;;  %v3276_v28 = vmax.f32 %v7127_v26, 0.0  ;;  %v3176_v55 = vpop.f32.mrf.mxu1 }
 0x462   :  { %v3465_v59 = vsub.f32 %v7716_v22, %v3225_v27  ;;  %v7717_v7 = vunpack.c.l.bf16 %v6876_v54  ;;  %v3226_v42 = vmax.f32 %v3147_v44, 0.0  ;;  %v3246_v34 = vmax.f32 %v3171_v45, 0.0  ;;  %v3154_v43 = vpop.f32.mrf.mxu0 }
 0x463   :  { %v3612_v24 = vadd.f32 %v7036_v63, %v3545_v49  ;;  %v3546_v31 = vmul.f32 %v3482_v50, %v3482_v50  ;;  %v3229_v17 = vmax.f32 %v3149_v39, 0.0  ;;  %v7718_v56 = vunpack.c.h.bf16 %v6873_v30 }
 0x464   :  { %v3485_v11 = vsub.f32 %v7717_v7, %v3245_v8  ;;  %v3529_v25 = vmul.f32 %v3465_v59, %v3465_v59  ;;  %v3175_v0 = vadd.f32 %v3174_v37, %v6851_v23  ;;  %v3151_v62 = vadd.f32 %v3150_v4, %v6860_v19  ;;  %v3178_v8 = vpop.f32.mrf.mxu1  ;;  %v3156_v59 = vpop.f32.mrf.mxu0 }
 0x465   :  { %v3466_v2 = vsub.f32 %v7718_v56, %v3226_v42  ;;  %v7719_v27 = vunpack.c.h.bf16 %v6876_v54  ;;  %v7720_v49 = vunpack.c.l.bf16 %v6890_v46  ;;  %v3177_v50 = vadd.f32 %v3176_v55, %v6860_v19 }
 0x466   :  { %v3549_v16 = vmul.f32 %v3485_v11, %v3485_v11  ;;  %v3592_v63 = vadd.f32 %v7019_v5, %v3529_v25  ;;  %v3249_v61 = vmax.f32 %v3175_v0, 0.0  ;;  %v3230_v22 = vmax.f32 %v3151_v62, 0.0  ;;  %v3180_v7 = vpop.f32.mrf.mxu1 }
 0x467   :  { %v3486_v21 = vsub.f32 %v7719_v27, %v3246_v34  ;;  %v3469_v3 = vsub.f32 %v7720_v49, %v3229_v17  ;;  %v3530_v30 = vmul.f32 %v3466_v2, %v3466_v2  ;;  %v3250_v37 = vmax.f32 %v3177_v50, 0.0 }
 0x468   :  { %v3617_v44 = vadd.f32 %v7098_v32, %v3549_v16  ;;  %v3155_v5 = vadd.f32 %v3154_v43, %v6851_v23  ;;  %v7721_v54 = vunpack.c.l.bf16 %v6897_v58  ;;  %v7722_v42 = vunpack.c.h.bf16 %v6890_v46  ;;  %v3158_v32 = vpop.f32.mrf.mxu0  ;;  %v3184_v0 = vpop.f32.mrf.mxu1 }
 0x469   :  { %v3550_v45 = vmul.f32 %v3486_v21, %v3486_v21  ;;  %v3533_v39 = vmul.f32 %v3469_v3, %v3469_v3  ;;  %v3179_v25 = vadd.f32 %v3178_v8, %v6851_v23  ;;  %v3613_v34 = vadd.f32 %v3612_v24, %v3546_v31 }
 0x46a   :  { %v3489_v11 = vsub.f32 %v7721_v54, %v3249_v61  ;;  %v3470_v4 = vsub.f32 %v7722_v42, %v3230_v22  ;;  %v7723_v55 = vunpack.c.h.bf16 %v6897_v58  ;;  %v3233_v56 = vmax.f32 %v3155_v5, 0.0  ;;  %v3186_v3 = vpop.f32.mrf.mxu1 }
 0x46b   :  { %v3597_v17 = vadd.f32 %v7027_v47, %v3533_v39  ;;  %v3157_v2 = vadd.f32 %v3156_v59, %v6860_v19  ;;  %v3253_v27 = vmax.f32 %v3179_v25, 0.0  ;;  %3614 = vadd.xlane.f32.xlu1 %v3613_v34  ;;  %v3181_v46 = vadd.f32 %v3180_v7, %v6860_v19  ;;  %v3160_v59 = vpop.f32.mrf.mxu0 }
 0x46c   :  { %v3490_v16 = vsub.f32 %v7723_v55, %v3250_v37  ;;  %v3553_v62 = vmul.f32 %v3489_v11, %v3489_v11  ;;  %v3534_v43 = vmul.f32 %v3470_v4, %v3470_v4  ;;  %v7724_v49 = vunpack.c.l.bf16 %v6904_v52  ;;  %v3188_v11 = vpop.f32.mrf.mxu1 }
 0x46d   :  { %v3234_v31 = vmax.f32 %v3157_v2, 0.0  ;;  %v3159_v47 = vadd.f32 %v3158_v32, %v6851_v23  ;;  %v7725_v50 = vunpack.c.l.bf16 %v6907_v36  ;;  %v3254_v61 = vmax.f32 %v3181_v46, 0.0 }
 0x46e   :  { %v3554_v21 = vmul.f32 %v3490_v16, %v3490_v16  ;;  %v3473_v24 = vsub.f32 %v7724_v49, %v3233_v56  ;;  %v3622_v58 = vadd.f32 %v7107_v10, %v3553_v62  ;;  %v3185_v22 = vadd.f32 %v3184_v0, %v6851_v23 }
 0x46f   :  { %v3493_v8 = vsub.f32 %v7725_v50, %v3253_v27  ;;  %v7726_v37 = vunpack.c.h.bf16 %v6904_v52  ;;  %v3237_v7 = vmax.f32 %v3159_v47, 0.0  ;;  %v3593_v54 = vadd.f32 %v3592_v63, %v3530_v30  ;;  %v3190_v52 = vpop.f32.mrf.mxu1 }
 0x470   :  { %v3537_v39 = vmul.f32 %v3473_v24, %v3473_v24  ;;  %v7727_v4 = vunpack.c.h.bf16 %v6907_v36  ;;  %v3257_v34 = vmax.f32 %v3185_v22, 0.0  ;;  %v3618_v10 = vadd.f32 %v3617_v44, %v3550_v45 }
 0x471   :  { %v3474_v5 = vsub.f32 %v7726_v37, %v3234_v31  ;;  %v3557_v42 = vmul.f32 %v3493_v8, %v3493_v8  ;;  %v7728_v16 = vunpack.c.l.bf16 %v6914_v57  ;;  %3594 = vadd.xlane.f32.xlu1 %v3593_v54  ;;  %v3161_v2 = vadd.f32 %v3160_v59, %v6860_v19  ;;  %v3194_v46 = vpop.f32.mrf.mxu1  ;;  %v7732_v37 = vld [vmem:[#allocation45_spill] sm:$0xff] }
 0x472   :  { %v3494_v25 = vsub.f32 %v7727_v4, %v3254_v61  ;;  %v3602_v32 = vadd.f32 %v7029_v29, %v3537_v39  ;;  %v7729_v30 = vunpack.c.l.bf16 %v6917_v53  ;;  %3619 = vadd.xlane.f32.xlu0 %v3618_v10  ;;  %v3187_v36 = vadd.f32 %v3186_v3, %v6860_v19  ;;  %v7735_v10 = vld [vmem:[#allocation46_spill] sm:$0xff] }
 0x473   :  { %v3538_v55 = vmul.f32 %v3474_v5, %v3474_v5  ;;  %v3477_v56 = vsub.f32 %v7728_v16, %v3237_v7  ;;  %v3627_v0 = vadd.f32 %v7109_v41, %v3557_v42  ;;  %v3238_v45 = vmax.f32 %v3161_v2, 0.0  ;;  %v3196_v22 = vpop.f32.mrf.mxu1 }
 0x474   :  { %v3558_v63 = vmul.f32 %v3494_v25, %v3494_v25  ;;  %v3497_v62 = vsub.f32 %v7729_v30, %v3257_v34  ;;  %v3189_v29 = vadd.f32 %v3188_v11, %v6851_v23  ;;  %v3623_v27 = vadd.f32 %v3622_v58, %v3554_v21 }
 0x475   :  { %v3541_v44 = vmul.f32 %v3477_v56, %v3477_v56  ;;  %v3258_v24 = vmax.f32 %v3187_v36, 0.0  ;;  %v3598_v31 = vadd.f32 %v3597_v17, %v3534_v43  ;;  %v3191_v47 = vadd.f32 %v3190_v52, %v6860_v19  ;;  %v3198_v54 = vpop.f32.mrf.mxu1 }
 0x476   :  { %v3561_v49 = vmul.f32 %v3497_v62, %v3497_v62  ;;  %v7730_v50 = vunpack.c.h.bf16 %v6914_v57  ;;  %v3261_v61 = vmax.f32 %v3189_v29, 0.0  ;;  %3624 = vadd.xlane.f32.xlu1 %v3623_v27  ;;  %v3195_v3 = vadd.f32 %v3194_v46, %v6851_v23 }
 0x477   :  { %v3607_v41 = vadd.f32 %v7034_v40, %v3541_v44  ;;  %v7731_v21 = vunpack.c.h.bf16 %v6917_v53  ;;  %3599 = vadd.xlane.f32.xlu0 %v3598_v31  ;;  %v3262_v39 = vmax.f32 %v3191_v47, 0.0  ;;  %v3603_v17 = vadd.f32 %v3602_v32, %v3538_v55  ;;  %v3200_v56 = vpop.f32.mrf.mxu1 }
 0x478   :  { %v3478_v8 = vsub.f32 %v7730_v50, %v3238_v45  ;;  %v3632_v59 = vadd.f32 %v7114_v33, %v3561_v49  ;;  %v7733_v5 = vunpack.c.l.bf16 %v7732_v37  ;;  %v3265_v7 = vmax.f32 %v3195_v3, 0.0  ;;  %v7739_v49 = vld [vmem:[#allocation47_spill] sm:$0xff] }
 0x479   :  { %v3498_v58 = vsub.f32 %v7731_v21, %v3258_v24  ;;  %v3628_v57 = vadd.f32 %v3627_v0, %v3558_v63  ;;  %v7734_v42 = vunpack.c.h.bf16 %v7732_v37  ;;  %v3197_v25 = vadd.f32 %v3196_v22, %v6860_v19  ;;  %v3204_v44 = vpop.f32.mrf.mxu1 }
 0x47a   :  { %v3542_v43 = vmul.f32 %v3478_v8, %v3478_v8  ;;  %v3501_v40 = vsub.f32 %v7733_v5, %v3261_v61  ;;  %v3199_v33 = vadd.f32 %v3198_v54, %v6851_v23  ;;  %v3279_v53 = vmax.f32 %v7139_v14, 0.0  ;;  %3604 = vadd.xlane.f32.xlu1 %v3603_v17 }
 0x47b   :  { %v3562_v11 = vmul.f32 %v3498_v58, %v3498_v58  ;;  %v3502_v4 = vsub.f32 %v7734_v42, %v3262_v39  ;;  %v7736_v32 = vunpack.c.l.bf16 %v7735_v10  ;;  %3629 = vadd.xlane.f32.xlu0 %v3628_v57  ;;  %v3266_v52 = vmax.f32 %v3197_v25, 0.0  ;;  %v3206_v26 = vpop.f32.mrf.mxu1  ;;  %v7742_v58 = vld [vmem:[#allocation48_spill] sm:$0xff]  ;;  %v7745_v42 = vld [vmem:[#allocation43_spill] sm:$0xff] }
 0x47c   :  { %v3565_v34 = vmul.f32 %v3501_v40, %v3501_v40  ;;  %v3608_v16 = vadd.f32 %v3607_v41, %v3542_v43  ;;  %v3269_v0 = vmax.f32 %v3199_v33, 0.0  ;;  %v3104_v30 = vadd.f32 %v7089_v9, %v6771_v6 }
 0x47d   :  { %v3505_v55 = vsub.f32 %v7736_v32, %v3265_v7  ;;  %v3566_v2 = vmul.f32 %v3502_v4, %v3502_v4  ;;  %v3633_v63 = vadd.f32 %v3632_v59, %v3562_v11  ;;  %v3201_v14 = vadd.f32 %v3200_v56, %v6860_v19 }
 0x47e   :  { %v3637_v62 = vadd.f32 %v7116_v60, %v3565_v34  ;;  %v7737_v45 = vunpack.c.h.bf16 %v6840_v35  ;;  %v7738_v27 = vunpack.c.h.bf16 %v7735_v10  ;;  %v7740_v24 = vunpack.c.l.bf16 %v7739_v49 }
 0x47f   :  { %v3569_v36 = vmul.f32 %v3505_v55, %v3505_v55  ;;  %v3205_v47 = vadd.f32 %v3204_v44, %v6851_v23  ;;  %v3108_v9 = vadd.f32 %v7112_v48, %v6771_v6  ;;  %3634 = vadd.xlane.f32.xlu1 %v3633_v63  ;;  %v3270_v41 = vmax.f32 %v3201_v14, 0.0  ;;  %3609 = vadd.xlane.f32.xlu0 %v3608_v16  ;;  %v7747_v16 = vld [vmem:[#allocation49_spill] sm:$0xff] }
 0x480   :  { %v3516_v29 = vsub.f32 %v7737_v45, %v3276_v28  ;;  %v3506_v46 = vsub.f32 %v7738_v27, %v3266_v52  ;;  %v3509_v31 = vsub.f32 %v7740_v24, %v3269_v0  ;;  %v3638_v50 = vadd.f32 %v3637_v62, %v3566_v2  ;;  %v7750_v62 = vld [vmem:[#allocation44_spill] sm:$0xff] }
 0x481   :  { %v3642_v60 = vadd.f32 %v7119_v38, %v3569_v36  ;;  %v3273_v28 = vmax.f32 %v3205_v47, 0.0  ;;  %v3207_v61 = vadd.f32 %v3206_v26, %v6860_v19  ;;  %v3651_v3 = vadd.f32 %v7144_v1, %v7121_v13  ;;  %v3208_v38 = vpop.f32.mrf.mxu1 }
 0x482   :  { %v3570_v8 = vmul.f32 %v3506_v46, %v3506_v46  ;;  %v3573_v35 = vmul.f32 %v3509_v31, %v3509_v31  ;;  %v3280_v22 = vmax.f32 %v3104_v30, 0.0  ;;  %v3106_v59 = vadd.f32 %v7102_v20, %v6764_v51 }
 0x483   :  { %v7741_v6 = vunpack.c.h.bf16 %v7739_v49  ;;  %v7743_v39 = vunpack.c.l.bf16 %v7742_v58  ;;  %v3274_v43 = vmax.f32 %v3207_v61, 0.0  ;;  %v3209_v37 = vadd.f32 %v3208_v38, %v6851_v23  ;;  %v3210_v1 = vpop.f32.mrf.mxu1  ;;  %3639 = vadd.xlane.f32.xlu0 %v3638_v50 }
 0x484   :  { %v3647_v21 = vadd.f32 %v7132_v12, %v3573_v35  ;;  %v3580_v5 = vmul.f32 %v3516_v29, %v3516_v29  ;;  %v3284_v40 = vmax.f32 %v3108_v9, 0.0  ;;  %v3643_v13 = vadd.f32 %v3642_v60, %v3570_v8  ;;  %v5411_v60 = vld [vmem:[#allocation2 + $0xf8] sm:$0xff] }
 0x485   :  { %v3510_v48 = vsub.f32 %v7741_v6, %v3270_v41  ;;  %v3513_v17 = vsub.f32 %v7743_v39, %v3273_v28  ;;  %v7744_v51 = vunpack.c.h.bf16 %v7742_v58  ;;  %v3277_v54 = vmax.f32 %v3209_v37, 0.0  ;;  %v3214_v34 = vpop.f32.mrf.mxu1 }
 0x486   :  { %v3211_v11 = vadd.f32 %v3210_v1, %v6860_v19  ;;  %v3579_v12 = vmul.f32 %v7136_v15, %v7136_v15  ;;  %v7746_v4 = vunpack.c.h.bf16 %v7745_v42  ;;  %v3283_v33 = vmax.f32 %v3106_v59, 0.0  ;;  %3644 = vadd.xlane.f32.xlu1 %v3643_v13 }
 0x487   :  { %v3574_v7 = vmul.f32 %v3510_v48, %v3510_v48  ;;  %v3577_v57 = vmul.f32 %v3513_v17, %v3513_v17  ;;  %v3514_v20 = vsub.f32 %v7744_v51, %v3274_v43  ;;  %v7748_v56 = vunpack.c.l.bf16 %v7747_v16  ;;  %v3216_v44 = vpop.f32.mrf.mxu1 }
 0x488   :  { %v3520_v25 = vsub.f32 %v7746_v4, %v3280_v22  ;;  %v3278_v52 = vmax.f32 %v3211_v11, 0.0  ;;  %v3656_v0 = vadd.f32 %v3580_v5, %v3579_v12  ;;  %v7749_v63 = vunpack.c.l.bf16 %v7745_v42  ;;  %v7269_v12 = vpop.xlane.xlu1 %4055 }
 0x489   :  { %v3648_v10 = vadd.f32 %v3647_v21, %v3574_v7  ;;  %v3652_v32 = vadd.f32 %v3651_v3, %v3577_v57  ;;  %v3578_v55 = vmul.f32 %v3514_v20, %v3514_v20  ;;  %v3517_v2 = vsub.f32 %v7748_v56, %v3277_v54  ;;  %v7265_v7 = vpop.xlane.xlu0 %4057 }
 0x48a   :  { %v3519_v30 = vsub.f32 %v7749_v63, %v3279_v53  ;;  %v7751_v36 = vunpack.c.h.bf16 %v7750_v62  ;;  %v3215_v14 = vadd.f32 %v3214_v34, %v6851_v23  ;;  %v7752_v29 = vunpack.c.h.bf16 %v7747_v16  ;;  %v3218_v53 = vpop.f32.mrf.mxu1  ;;  %v7756_v63 = vld [vmem:[#allocation29_spill] sm:$0xff] }
 0x48b   :  { %v3581_v45 = vmul.f32 %v3517_v2, %v3517_v2  ;;  %3649 = vadd.xlane.f32.xlu0 %v3648_v10  ;;  %v3217_v46 = vadd.f32 %v3216_v44, %v6860_v19  ;;  %v3653_v49 = vadd.f32 %v3652_v32, %v3578_v55  ;;  %v3584_v24 = vmul.f32 %v3520_v25, %v3520_v25 }
 0x48c   :  { %v3524_v15 = vsub.f32 %v7751_v36, %v3284_v40  ;;  %v3518_v27 = vsub.f32 %v7752_v29, %v3278_v52  ;;  %v7753_v31 = vunpack.c.l.bf16 %v7750_v62  ;;  %v3281_v9 = vmax.f32 %v3215_v14, 0.0  ;;  %v3220_v59 = vpop.f32.mrf.mxu1  ;;  %v7273_v4 = vpop.xlane.xlu1 %4059  ;;  %v7757_v14 = vld [vmem:[#allocation27_spill] sm:$0xff]  ;;  %v7758_v29 = vld [vmem:[#allocation28_spill] sm:$0xff] }
 0x48d   :  { %v3461_v41 = vunpack.c.l.bf16 %v5411_v60  ;;  %v3657_v50 = vadd.f32 %v3656_v0, %v3581_v45  ;;  %v3282_v8 = vmax.f32 %v3217_v46, 0.0  ;;  %v3219_v35 = vadd.f32 %v3218_v53, %v6851_v23  ;;  %3654 = vadd.xlane.f32.xlu1 %v3653_v49  ;;  %v7267_v11 = vpop.xlane.xlu0 %4061 }
 0x48e   :  { %v3523_v47 = vsub.f32 %v7753_v31, %v3283_v33  ;;  %v3582_v26 = vmul.f32 %v3518_v27, %v3518_v27  ;;  %v3583_v28 = vmul.f32 %v3519_v30, %v3519_v30  ;;  %v3588_v61 = vmul.f32 %v3524_v15, %v3524_v15 }
 0x48f   :  { %v7754_v3 = vunpack.c.l.bf16 %v6968_v18  ;;  %v3462_v6 = vunpack.c.h.bf16 %v5411_v60  ;;  %v7755_v48 = vunpack.c.h.bf16 %v6968_v18  ;;  %v3285_v21 = vmax.f32 %v3219_v35, 0.0  ;;  %v7760_v60 = vld [vmem:[#allocation33_spill] sm:$0xff] }
 0x490   :  { %v3221_v58 = vadd.f32 %v3220_v59, %v6860_v19  ;;  %v3658_v39 = vadd.f32 %v3657_v50, %v3582_v26  ;;  %v3661_v17 = vadd.f32 %v3584_v24, %v3583_v28  ;;  %v3587_v37 = vmul.f32 %v3523_v47, %v3523_v47  ;;  %v7277_v33 = vpop.xlane.xlu1 %4063  ;;  %v7759_v24 = vld [vmem:[#allocation30_spill] sm:$0xff]  ;;  %v7762_v28 = vld [vmem:[#allocation31_spill] sm:$0xff] }
 0x491   :  { %v3521_v22 = vsub.f32 %v7754_v3, %v3281_v9  ;;  %v3522_v38 = vsub.f32 %v7755_v48, %v3282_v8  ;;  %v3525_v23 = vsub.f32 %v3461_v41, %v3285_v21  ;;  %v7271_v42 = vpop.xlane.xlu0 %4065  ;;  %v5665_v0 = vmov 0.0   ;;  %v7761_v8 = vld [vmem:[#allocation34_spill] sm:$0xff]  ;;  %v7763_v48 = vld [vmem:[#allocation32_spill] sm:$0xff] }
 0x492   :  { %v3286_v40 = vmax.f32 %v3221_v58, 0.0  ;;  %3659 = vadd.xlane.f32.xlu0 %v3658_v39  ;;  %v3666_v1 = vadd.f32 %v3588_v61, %v3587_v37  ;;  %v4599_v30 = vsel %vm1718_vm6, 1.0, %v5665_v0  ;;  %v4597_v44 = vsel %vm1716_vm1, 1.0, %v5665_v0  ;;  %v7764_v39 = vld [vmem:[#allocation37_spill] sm:$0xff] }
 0x493   :  { %v3585_v43 = vmul.f32 %v3521_v22, %v3521_v22  ;;  %v3586_v5 = vmul.f32 %v3522_v38, %v3522_v38  ;;  %v3589_v57 = vmul.f32 %v3525_v23, %v3525_v23  ;;  %v4598_v27 = vsel %vm1717_vm3, 1.0, %v5665_v0 }
 0x494   :  { %v3526_v51 = vsub.f32 %v3462_v6, %v3286_v40  ;;  %v7281_v10 = vpop.xlane.xlu1 %4067  ;;  %v4600_v31 = vsel %vm1719_vm7, 1.0, %v5665_v0  ;;  %v4603_v41 = vsel %vm1722_vm14, 1.0, %v5665_v0  ;;  %v4604_v35 = vsel %vm1723_vm15, 1.0, %v5665_v0  ;;  %v7766_v40 = vld [vmem:[#allocation38_spill] sm:$0xff] }
 0x495   :  { %v3662_v13 = vadd.f32 %v3661_v17, %v3585_v43  ;;  %v3667_v18 = vadd.f32 %v3666_v1, %v3589_v57  ;;  %v7275_v25 = vpop.xlane.xlu0 %4069  ;;  %v4601_v61 = vsel %vm1720_vm10, 1.0, %v5665_v0  ;;  %v4602_v38 = vsel %vm1721_vm11, 1.0, %v5665_v0 }
 0x496   :  { %v3590_v54 = vmul.f32 %v3526_v51, %v3526_v51  ;;  %v4607_v17 = vsel %vm1726_vm2, 1.0, %v5665_v0  ;;  %v4605_v23 = vsel %vm1724_vm4, 1.0, %v5665_v0  ;;  %vm7777_vm6 = vcmp.eq.s32.totalorder %v7757_v14, 1 }
 0x497   :  { %v3663_v20 = vadd.f32 %v3662_v13, %v3586_v5  ;;  %v7765_v5 = vld [vmem:[#allocation35_spill] sm:$0xff]  ;;  %v4608_v13 = vsel %vm1727_vm9, 1.0, %v5665_v0  ;;  %vm7778_vm7 = vcmp.eq.s32.totalorder %v7763_v48, 1  ;;  %vm7779_vm9 = vcmp.eq.s32.totalorder %v7760_v60, 1 }
 0x498   :  { %v3668_v19 = vadd.f32 %v3667_v18, %v3590_v54  ;;  %v7285_v55 = vpop.xlane.xlu1 %4071  ;;  %v7767_v18 = vld [vmem:[#allocation36_spill] sm:$0xff]  ;;  %v4606_v54 = vsel %vm1725_vm5, 1.0, %v5665_v0  ;;  %vm7776_vm5 = vcmp.eq.s32.totalorder %v7762_v28, 1  ;;  %v4619_v28 = vsel %vm7779_vm9, 1.0, %v5665_v0 }
 0x499   :  { %3664 = vadd.xlane.f32.xlu1 %v3663_v20  ;;  %v7279_v34 = vpop.xlane.xlu0 %4073  ;;  %vm7780_vm10 = vcmp.eq.s32.totalorder %v7758_v29, 1  ;;  %vm7781_vm11 = vcmp.eq.s32.totalorder %v7756_v63, 1  ;;  %vm7782_vm14 = vcmp.eq.s32.totalorder %v7761_v8, 1  ;;  %vm7783_vm15 = vcmp.eq.s32.totalorder %v7765_v5, 1 }
 0x49a   :  { %3669 = vadd.xlane.f32.xlu0 %v3668_v19  ;;  %v4615_v48 = vsel %vm7781_vm11, 1.0, %v5665_v0  ;;  %v4620_v60 = vsel %vm7782_vm14, 1.0, %v5665_v0  ;;  %vm7784_vm12 = vcmp.eq.s32.totalorder %v7759_v24, 1  ;;  %vm7785_vm13 = vcmp.eq.s32.totalorder %v7767_v18, 1 }
 0x49b   :  { %v4616_v63 = vsel %vm7784_vm12, 1.0, %v5665_v0  ;;  %vm7786_vm0 = vcmp.eq.s32.totalorder %v7764_v39, 1  ;;  %vm7787_vm8 = vcmp.eq.s32.totalorder %v7766_v40, 1 }
 0x49c   :  { %v7289_v56 = vpop.xlane.xlu1 %4075  ;;  %v4623_v5 = vsel %vm7786_vm0, 1.0, %v5665_v0 }
 0x49d   :  { %v7283_v32 = vpop.xlane.xlu0 %4077 }
 0x4a0   :  { %v7293_v52 = vpop.xlane.xlu1 %4079 }
 0x4a1   :  { %v7287_v16 = vpop.xlane.xlu0 %4081 }
 0x4a4   :  { %v7298_v15 = vpop.xlane.xlu1 %4083 }
 0x4a5   :  { %v7291_v2 = vpop.xlane.xlu0 %4085 }
 0x4a9   :  { %v3356_v62 = vpop.xlane.xlu0 %3355 }
 0x4aa   :  { %v3385_v36 = vmul.f32 %v4599_v30, %v3356_v62  ;;  %v7768_v62 = vld [vmem:[#allocation41_spill] sm:$0xff] }
 0x4ab   :  { %vm7769_vm1 = vcmp.eq.s32.totalorder %v7768_v62, 0 }
 0x4ac   :  { %4119 = vperm.xlu1 %4939, %v3385_v36   ;;  %v4611_v36 = vsel %vm7769_vm1, 1.0, %v5665_v0 }
 0x4ad   :  { %v3352_v45 = vpop.xlane.xlu0 %3351 }
 0x4ae   :  { %v3383_v46 = vmul.f32 %v4597_v44, %v3352_v45  ;;  %v3354_v49 = vpop.xlane.xlu1 %3353 }
 0x4af   :  { %v3384_v47 = vmul.f32 %v4598_v27, %v3354_v49  ;;  %v7770_v27 = vld [vmem:[#allocation39_spill] sm:$0xff]  ;;  %v7772_v49 = vld [vmem:[#allocation42_spill] sm:$0xff] }
 0x4b0   :  { %4109 = vperm.xlu1 %4939, %v3383_v46   ;;  %vm7771_vm2 = vcmp.eq.s32.totalorder %v7770_v27, 0  ;;  %vm7773_vm3 = vcmp.eq.s32.totalorder %v7772_v49, 0  ;;  %vm7788_vm1 = vcmp.eq.s32.totalorder %v7770_v27, 1 }
 0x4b1   :  { %v3358_v9 = vpop.xlane.xlu0 %3357  ;;  %4114 = vperm.xlu0 %4938, %v3384_v47   ;;  %v4609_v46 = vsel %vm7771_vm2, 1.0, %v5665_v0  ;;  %v4625_v18 = vsel %vm7788_vm1, 1.0, %v5665_v0 }
 0x4b2   :  { %v3386_v53 = vmul.f32 %v4600_v31, %v3358_v9  ;;  %v4612_v31 = vsel %vm7773_vm3, 1.0, %v5665_v0  ;;  %vm7790_vm3 = vcmp.eq.s32.totalorder %v7768_v62, 1 }
 0x4b3   :  { %v4627_v40 = vsel %vm7790_vm3, 1.0, %v5665_v0 }
 0x4b4   :  { %4124 = vperm.xlu1 %4939, %v3386_v53  }
 0x4b8   :  { %v3364_v50 = vpop.xlane.xlu1 %3363 }
 0x4b9   :  { %v3389_v26 = vmul.f32 %v4603_v41, %v3364_v50  ;;  %v7774_v50 = vld [vmem:[#allocation40_spill] sm:$0xff] }
 0x4ba   :  { %vm7775_vm4 = vcmp.eq.s32.totalorder %v7774_v50, 0  ;;  %vm7789_vm2 = vcmp.eq.s32.totalorder %v7774_v50, 1 }
 0x4bb   :  { %4139 = vperm.xlu0 %4938, %v3389_v26   ;;  %v4610_v26 = vsel %vm7775_vm4, 1.0, %v5665_v0  ;;  %vm7791_vm4 = vcmp.eq.s32.totalorder %v7772_v49, 1  ;;  %v7792_v49 = vlaneseq }
 0x4bc   :  { %v3366_v3 = vpop.xlane.xlu0 %3365  ;;  %v3360_v22 = vpop.xlane.xlu1 %3359  ;;  %v4628_v27 = vsel %vm7791_vm4, 1.0, %v5665_v0 }
 0x4bd   :  { %v3390_v59 = vmul.f32 %v4604_v35, %v3366_v3  ;;  %v3387_v6 = vmul.f32 %v4601_v61, %v3360_v22  ;;  %v4617_v3 = vsel %vm7776_vm5, 1.0, %v5665_v0 }
 0x4bf   :  { %4144 = vperm.xlu1 %4939, %v3390_v59   ;;  %4129 = vperm.xlu0 %4938, %v3387_v6   ;;  %v4613_v6 = vsel %vm7777_vm6, 1.0, %v5665_v0 }
 0x4c0   :  { %v3362_v21 = vpop.xlane.xlu0 %3361 }
 0x4c1   :  { %v3388_v58 = vmul.f32 %v4602_v38, %v3362_v21  ;;  %v4618_v38 = vsel %vm7778_vm7, 1.0, %v5665_v0 }
 0x4c3   :  { %4134 = vperm.xlu1 %4939, %v3388_v58  }
 0x4c8   :  { %v3372_v43 = vpop.xlane.xlu1 %3371 }
 0x4c9   :  { %v3393_v37 = vmul.f32 %v4607_v17, %v3372_v43 }
 0x4cb   :  { %4159 = vperm.xlu0 %4938, %v3393_v37   ;;  %v4614_v37 = vsel %vm7780_vm10, 1.0, %v5665_v0 }
 0x4cc   :  { %v3368_v1 = vpop.xlane.xlu1 %3367  ;;  %v3374_v51 = vpop.xlane.xlu0 %3373 }
 0x4cd   :  { %v3391_v57 = vmul.f32 %v4605_v23, %v3368_v1  ;;  %v3394_v20 = vmul.f32 %v4608_v13, %v3374_v51 }
 0x4cf   :  { %4149 = vperm.xlu0 %4938, %v3391_v57   ;;  %4164 = vperm.xlu1 %4939, %v3394_v20  }
 0x4d0   :  { %v3370_v19 = vpop.xlane.xlu0 %3369 }
 0x4d1   :  { %v3392_v30 = vmul.f32 %v4606_v54, %v3370_v19  ;;  %v4621_v54 = vsel %vm7783_vm15, 1.0, %v5665_v0 }
 0x4d3   :  { %4154 = vperm.xlu1 %4939, %v3392_v30  }
 0x4d8   :  { %v3380_v44 = vpop.xlane.xlu1 %3379 }
 0x4d9   :  { %v3397_v45 = vmul.f32 %v4611_v36, %v3380_v44  ;;  %v4622_v44 = vsel %vm7785_vm13, 1.0, %v5665_v0 }
 0x4db   :  { %4179 = vperm.xlu0 %4938, %v3397_v45  }
 0x4dc   :  { %v3376_v47 = vpop.xlane.xlu1 %3375  ;;  %v3382_v9 = vpop.xlane.xlu0 %3381 }
 0x4dd   :  { %v3395_v53 = vmul.f32 %v4609_v46, %v3376_v47  ;;  %v3398_v41 = vmul.f32 %v4612_v31, %v3382_v9  ;;  %v4624_v47 = vsel %vm7787_vm8, 1.0, %v5665_v0 }
 0x4df   :  { %4169 = vperm.xlu0 %4938, %v3395_v53   ;;  %4184 = vperm.xlu1 %4939, %v3398_v41  }
 0x4e0   :  { %v3378_v35 = vpop.xlane.xlu0 %3377 }
 0x4e1   :  { %v3396_v61 = vmul.f32 %v4610_v26, %v3378_v35  ;;  %v4626_v26 = vsel %vm7789_vm2, 1.0, %v5665_v0 }
 0x4e3   :  { %4174 = vperm.xlu1 %4939, %v3396_v61  }
 0x4f4   :  { %v3615_v22 = vpop.xlane.xlu1 %3614 }
 0x4f5   :  { %v3675_v59 = vmul.f32 %v4617_v3, %v3615_v22 }
 0x4f7   :  { %4242 = vperm.xlu0 %4938, %v3675_v59  }
 0x4fa   :  { %v3595_v21 = vpop.xlane.xlu1 %3594 }
 0x4fb   :  { %v3671_v58 = vmul.f32 %v4613_v6, %v3595_v21  ;;  %v3620_v17 = vpop.xlane.xlu0 %3619 }
 0x4fc   :  { %v3676_v43 = vmul.f32 %v4618_v38, %v3620_v17 }
 0x4fd   :  { %4222 = vperm.xlu0 %4938, %v3671_v58  }
 0x4fe   :  { %4247 = vperm.xlu1 %4939, %v3676_v43  }
 0x4ff   :  { %v3625_v14 = vpop.xlane.xlu1 %3624 }
 0x500   :  { %v3677_v23 = vmul.f32 %v4619_v28, %v3625_v14  ;;  %v3600_v13 = vpop.xlane.xlu0 %3599 }
 0x501   :  { %v3672_v1 = vmul.f32 %v4614_v37, %v3600_v13 }
 0x502   :  { %4252 = vperm.xlu0 %4938, %v3677_v23  }
 0x503   :  { %4227 = vperm.xlu1 %4939, %v3672_v1   ;;  %v3605_v57 = vpop.xlane.xlu1 %3604  ;;  %v7402_v1 = vand.u32 127, %v7792_v49 }
 0x504   :  { %v3673_v51 = vmul.f32 %v4615_v48, %v3605_v57  ;;  %v3630_v20 = vpop.xlane.xlu0 %3629 }
 0x505   :  { %v3678_v29 = vmul.f32 %v4620_v60, %v3630_v20  ;;  %vm4106_vm5 = vcmp.eq.s32.totalorder %v7402_v1, 1  ;;  %vm4089_vm6 = vcmp.eq.s32.totalorder %v7402_v1, 0  ;;  %vm4219_vm7 = vcmp.eq.s32.totalorder %v7402_v1, 2 }
 0x506   :  { %4232 = vperm.xlu0 %4938, %v3673_v51   ;;  %v4094_v51 = vsel %vm4089_vm6, %v7277_v33, 0.0  ;;  %v4095_v33 = vsel %vm4089_vm6, %v7271_v42, 0.0  ;;  %v4096_v42 = vsel %vm4089_vm6, %v7281_v10, 0.0 }
 0x507   :  { %4257 = vperm.xlu1 %4939, %v3678_v29  }
 0x508   :  { %v3635_v19 = vpop.xlane.xlu1 %3634  ;;  %v3610_v36 = vpop.xlane.xlu0 %3609 }
 0x509   :  { %v3679_v30 = vmul.f32 %v4621_v54, %v3635_v19  ;;  %v3674_v8 = vmul.f32 %v4616_v63, %v3610_v36 }
 0x50b   :  { %4262 = vperm.xlu0 %4938, %v3679_v30   ;;  %4237 = vperm.xlu1 %4939, %v3674_v8   ;;  %v4090_v8 = vsel %vm4089_vm6, %v7269_v12, 0.0 }
 0x50c   :  { %v3640_v45 = vpop.xlane.xlu0 %3639 }
 0x50d   :  { %v3680_v46 = vmul.f32 %v4622_v44, %v3640_v45 }
 0x50f   :  { %v3645_v31 = vpop.xlane.xlu1 %3644  ;;  %4267 = vperm.xlu1 %4939, %v3680_v46  }
 0x510   :  { %v3681_v24 = vmul.f32 %v4623_v5, %v3645_v31 }
 0x512   :  { %4272 = vperm.xlu0 %4938, %v3681_v24  }
 0x514   :  { %v3650_v9 = vpop.xlane.xlu0 %3649 }
 0x515   :  { %v3682_v53 = vmul.f32 %v4624_v47, %v3650_v9 }
 0x516   :  { %v3655_v41 = vpop.xlane.xlu1 %3654 }
 0x517   :  { %4277 = vperm.xlu1 %4939, %v3682_v53   ;;  %v3683_v39 = vmul.f32 %v4625_v18, %v3655_v41  ;;  %v4091_v53 = vsel %vm4089_vm6, %v7265_v7, 0.0  ;;  %v4092_v7 = vsel %vm4089_vm6, %v7273_v4, 0.0 }
 0x519   :  { %4282 = vperm.xlu0 %4938, %v3683_v39  }
 0x51b   :  { %v3660_v35 = vpop.xlane.xlu0 %3659 }
 0x51c   :  { %v3684_v61 = vmul.f32 %v4626_v26, %v3660_v35 }
 0x51e   :  { %4287 = vperm.xlu1 %4939, %v3684_v61  }
 0x522   :  { %v3665_v3 = vpop.xlane.xlu1 %3664 }
 0x523   :  { %v3685_v22 = vmul.f32 %v4627_v40, %v3665_v3  ;;  %v3670_v59 = vpop.xlane.xlu0 %3669 }
 0x524   :  { %v3686_v6 = vmul.f32 %v4628_v27, %v3670_v59  ;;  %v4097_v59 = vsel %vm4089_vm6, %v7275_v25, 0.0  ;;  %v4098_v25 = vsel %vm4089_vm6, %v7285_v55, 0.0 }
 0x525   :  { %4292 = vperm.xlu0 %4938, %v3685_v22  }
 0x526   :  { %4297 = vperm.xlu1 %4939, %v3686_v6  }
 0x527   :  { %v4120_v50 = vpop.permute.xlu1 %4119 }
 0x528   :  { %v4189_v26 = vsel %vm4106_vm5, %v4120_v50, 0.0 }
 0x529   :  { %v4205_v6 = vadd.f32 %v4189_v26, %v4092_v7  ;;  %v4105_v7 = vsel %vm4089_vm6, %v7291_v2, 0.0 }
 0x52b   :  { %v4110_v38 = vpop.permute.xlu1 %4109 }
 0x52c   :  { %v4115_v21 = vpop.permute.xlu0 %4114  ;;  %v4187_v63 = vsel %vm4106_vm5, %v4110_v38, 0.0 }
 0x52d   :  { %v4203_v44 = vadd.f32 %v4187_v63, %v4090_v8  ;;  %v4188_v47 = vsel %vm4106_vm5, %v4115_v21, 0.0  ;;  %v4100_v8 = vsel %vm4089_vm6, %v7289_v56, 0.0  ;;  %v4101_v56 = vsel %vm4089_vm6, %v7283_v32, 0.0 }
 0x52e   :  { %v4204_v35 = vadd.f32 %v4188_v47, %v4091_v53 }
 0x52f   :  { %v4125_v17 = vpop.permute.xlu1 %4124 }
 0x530   :  { %v4190_v4 = vsel %vm4106_vm5, %v4125_v17, 0.0 }
 0x536   :  { %v4140_v58 = vpop.permute.xlu0 %4139 }
 0x537   :  { %v4193_v45 = vsel %vm4106_vm5, %v4140_v58, 0.0 }
 0x538   :  { %v4209_v41 = vadd.f32 %v4193_v45, %v4096_v42 }
 0x53a   :  { %v4145_v43 = vpop.permute.xlu1 %4144  ;;  %v4130_v28 = vpop.permute.xlu0 %4129 }
 0x53b   :  { %v4191_v57 = vsel %vm4106_vm5, %v4130_v28, 0.0  ;;  %v4194_v10 = vsel %vm4106_vm5, %v4145_v43, 0.0 }
 0x53c   :  { %v4207_v20 = vadd.f32 %v4191_v57, %v4094_v51  ;;  %v4210_v38 = vadd.f32 %v4194_v10, %v4097_v59 }
 0x53e   :  { %v4135_v62 = vpop.permute.xlu1 %4134 }
 0x53f   :  { %v4192_v36 = vsel %vm4106_vm5, %v4135_v62, 0.0 }
 0x540   :  { %v4208_v46 = vadd.f32 %v4192_v36, %v4095_v33  ;;  %v4099_v36 = vsel %vm4089_vm6, %v7279_v34, 0.0 }
 0x546   :  { %v7393_v37 = vpop.permute.xlu0 %4159 }
 0x54a   :  { %v7395_v14 = vpop.permute.xlu1 %4164  ;;  %v4150_v23 = vpop.permute.xlu0 %4149 }
 0x54b   :  { %v4195_v21 = vsel %vm4106_vm5, %v4150_v23, 0.0  ;;  %v4093_v23 = vsel %vm4089_vm6, %v7267_v11, 0.0  ;;  %v4197_v11 = vsel %vm4106_vm5, %v7393_v37, 0.0 }
 0x54c   :  { %v4211_v57 = vadd.f32 %v4195_v21, %v4098_v25 }
 0x54e   :  { %v7399_v0 = vpop.permute.xlu1 %4154 }
 0x556   :  { %v7397_v13 = vpop.permute.xlu0 %4179 }
 0x55a   :  { %v7405_v48 = vpop.permute.xlu1 %4184  ;;  %v7407_v60 = vpop.permute.xlu0 %4169 }
 0x55e   :  { %v7420_v19 = vpop.permute.xlu1 %4174 }
 0x55f   :  { %v4200_v32 = vsel %vm4106_vm5, %v7420_v19, 0.0 }
 0x572   :  { %v4243_v29 = vpop.permute.xlu0 %4242 }
 0x573   :  { %v4304_v54 = vsel %vm4219_vm7, %v4243_v29, 0.0 }
 0x574   :  { %v4320_v30 = vadd.f32 %v4304_v54, %v4207_v20  ;;  %v4206_v20 = vadd.f32 %v4190_v4, %v4093_v23  ;;  %v4196_v54 = vsel %vm4106_vm5, %v7399_v0, 0.0 }
 0x575   :  { %v4212_v33 = vadd.f32 %v4196_v54, %v4099_v36 }
 0x576   :  { %4336 = vst [vmem:[#allocation19 + $0x20] sm:$0xff] %v4320_v30 }
 0x578   :  { %v4223_v5 = vpop.permute.xlu0 %4222 }
 0x579   :  { %v4248_v31 = vpop.permute.xlu1 %4247  ;;  %v4300_v24 = vsel %vm4219_vm7, %v4223_v5, 0.0  ;;  %v4198_v5 = vsel %vm4106_vm5, %v7395_v14, 0.0 }
 0x57a   :  { %v4305_v12 = vsel %vm4219_vm7, %v4248_v31, 0.0  ;;  %v4316_v9 = vadd.f32 %v4300_v24, %v4203_v44  ;;  %v4213_v44 = vadd.f32 %v4197_v11, %v4100_v8  ;;  %v4199_v31 = vsel %vm4106_vm5, %v7407_v60, 0.0 }
 0x57b   :  { %v4321_v18 = vadd.f32 %v4305_v12, %v4208_v46  ;;  %v4214_v47 = vadd.f32 %v4198_v5, %v4101_v56  ;;  %v4102_v12 = vsel %vm4089_vm6, %v7293_v52, 0.0  ;;  %v4103_v52 = vsel %vm4089_vm6, %v7287_v16, 0.0 }
 0x57c   :  { %4332 = vst [vmem:[#allocation19] sm:$0xff] %v4316_v9  ;;  %v4215_v42 = vadd.f32 %v4199_v31, %v4102_v12  ;;  %v4202_v16 = vsel %vm4106_vm5, %v7405_v48, 0.0 }
 0x57d   :  { %v4253_v39 = vpop.permute.xlu0 %4252  ;;  %4337 = vst [vmem:[#allocation19 + $0x28] sm:$0xff] %v4321_v18 }
 0x57e   :  { %v4228_v61 = vpop.permute.xlu1 %4227  ;;  %v4306_v40 = vsel %vm4219_vm7, %v4253_v39, 0.0  ;;  %v4216_v39 = vadd.f32 %v4200_v32, %v4103_v52 }
 0x57f   :  { %v4301_v3 = vsel %vm4219_vm7, %v4228_v61, 0.0  ;;  %v4322_v22 = vadd.f32 %v4306_v40, %v4209_v41  ;;  %v4201_v61 = vsel %vm4106_vm5, %v7397_v13, 0.0  ;;  %v4104_v40 = vsel %vm4089_vm6, %v7298_v15, 0.0 }
 0x580   :  { %v4317_v27 = vadd.f32 %v4301_v3, %v4204_v35  ;;  %v4217_v10 = vadd.f32 %v4201_v61, %v4104_v40 }
 0x581   :  { %4338 = vst [vmem:[#allocation19 + $0x30] sm:$0xff] %v4322_v22  ;;  %v4233_v50 = vpop.permute.xlu0 %4232 }
 0x582   :  { %4333 = vst [vmem:[#allocation19 + $0x8] sm:$0xff] %v4317_v27  ;;  %v4258_v58 = vpop.permute.xlu1 %4257  ;;  %v4302_v43 = vsel %vm4219_vm7, %v4233_v50, 0.0  ;;  %v4218_v27 = vadd.f32 %v4202_v16, %v4105_v7 }
 0x583   :  { %v4307_v28 = vsel %vm4219_vm7, %v4258_v58, 0.0  ;;  %v4318_v62 = vadd.f32 %v4302_v43, %v4205_v6 }
 0x584   :  { %v4323_v49 = vadd.f32 %v4307_v28, %v4210_v38 }
 0x585   :  { %4334 = vst [vmem:[#allocation19 + $0x10] sm:$0xff] %v4318_v62 }
 0x586   :  { %v4263_v51 = vpop.permute.xlu0 %4262  ;;  %4339 = vst [vmem:[#allocation19 + $0x38] sm:$0xff] %v4323_v49  ;;  %v4238_v29 = vpop.permute.xlu1 %4237 }
 0x587   :  { %v4308_v17 = vsel %vm4219_vm7, %v4263_v51, 0.0  ;;  %v4303_v55 = vsel %vm4219_vm7, %v4238_v29, 0.0 }
 0x588   :  { %v4324_v63 = vadd.f32 %v4308_v17, %v4211_v57  ;;  %v4319_v30 = vadd.f32 %v4303_v55, %v4206_v20 }
 0x58a   :  { %4340 = vst [vmem:[#allocation19 + $0x40] sm:$0xff] %v4324_v63  ;;  %4335 = vst [vmem:[#allocation19 + $0x18] sm:$0xff] %v4319_v30  ;;  %v4268_v0 = vpop.permute.xlu1 %4267 }
 0x58b   :  { %v4309_v37 = vsel %vm4219_vm7, %v4268_v0, 0.0 }
 0x58c   :  { %v4325_v46 = vadd.f32 %v4309_v37, %v4212_v33 }
 0x58d   :  { %v4273_v45 = vpop.permute.xlu0 %4272 }
 0x58e   :  { %v4310_v34 = vsel %vm4219_vm7, %v4273_v45, 0.0  ;;  %4341 = vst [vmem:[#allocation19 + $0x48] sm:$0xff] %v4325_v46 }
 0x58f   :  { %v4326_v24 = vadd.f32 %v4310_v34, %v4213_v44 }
 0x591   :  { %4342 = vst [vmem:[#allocation19 + $0x50] sm:$0xff] %v4326_v24 }
 0x592   :  { %v4278_v14 = vpop.permute.xlu1 %4277 }
 0x593   :  { %v4311_v9 = vsel %vm4219_vm7, %v4278_v14, 0.0 }
 0x594   :  { %v4327_v18 = vadd.f32 %v4311_v9, %v4214_v47  ;;  %v4283_v53 = vpop.permute.xlu0 %4282 }
 0x595   :  { %v4312_v60 = vsel %vm4219_vm7, %v4283_v53, 0.0 }
 0x596   :  { %4343 = vst [vmem:[#allocation19 + $0x58] sm:$0xff] %v4327_v18  ;;  %v4328_v41 = vadd.f32 %v4312_v60, %v4215_v42 }
 0x598   :  { %4344 = vst [vmem:[#allocation19 + $0x60] sm:$0xff] %v4328_v41 }
 0x599   :  { %v4288_v26 = vpop.permute.xlu1 %4287 }
 0x59a   :  { %v4313_v35 = vsel %vm4219_vm7, %v4288_v26, 0.0 }
 0x59b   :  { %v4329_v19 = vadd.f32 %v4313_v35, %v4216_v39 }
 0x59d   :  { %4345 = vst [vmem:[#allocation19 + $0x68] sm:$0xff] %v4329_v19 }
 0x5a0   :  { %v4293_v3 = vpop.permute.xlu0 %4292 }
 0x5a1   :  { %v4314_v22 = vsel %vm4219_vm7, %v4293_v3, 0.0  ;;  %v4298_v59 = vpop.permute.xlu1 %4297 }
 0x5a2   :  { %v4330_v13 = vadd.f32 %v4314_v22, %v4217_v10  ;;  %v4315_v15 = vsel %vm4219_vm7, %v4298_v59, 0.0 }
 0x5a3   :  { %v4331_v6 = vadd.f32 %v4315_v15, %v4218_v27 }
 0x5a4   :  { %4346 = vst [vmem:[#allocation19 + $0x70] sm:$0xff] %v4330_v13 }
 0x5a5   :  { %4347 = vst [vmem:[#allocation19 + $0x78] sm:$0xff] %v4331_v6 }
 0x5a6   :  { %5623 = shalt.err (!%p5620_p12)
}
 0x5a7   :  { %4359 = dma.vmem_to_hbm [thread:$0]  %s4354_s6, 2048, %s7556_s18, [#allocation4], %s5647_s30, %s5647_s30, %s5648_s0  }
 0x5a8   :  { %5644 = dma.done.wait [#allocation4], 2048  }
 0x5a9   :  { %5645 = vsyncadd [#allocation4], 4294965248 }
 0x5aa   :  { %4363 = vsyncpa [#allocation3], 1 }
 0x5ab   :  { %4364 = vsyncpa [#allocation6], 1 }
 0x5ac   :  { %4365 = vsyncpa [#allocation9], 1 }
 0x5ad   :  { %4366 = vsyncpa [#allocation12], 1 }
 0x5ae   :  { %4367 = vsyncpa [#allocation15], 1 }
 0x5af   :  { %4368 = vsyncpa [#allocation18], 1 }
 0x5b0   :  { %4369 = vsyncpa [#allocation4], 1 }

</bundles_post_ra>
